<compile_context>
chip_gen: v5e
topology: v5e:2x2
jax: 0.10.0
libtpu: 0.0.40
codegen_flags: <defaults>
</compile_context>

<pallas_src>
import functools
from collections import namedtuple

import jax
import jax.numpy as jnp
from jax.experimental import pallas as pl
from jax.experimental.pallas import tpu as pltpu

StageSpec = namedtuple("StageSpec", ["index", "block_count"])

_MIB = 1024 * 1024


# ----------------------------------------------------------------------------
# Generation-aware VMEM budgeting.
# ----------------------------------------------------------------------------
def _vmem_budget_bytes():
    """~60% of physical VMEM (≈38 MiB on v7x, ≈77 MiB on v5e/v6e)."""
    cap = None
    try:
        cap = int(getattr(pltpu.get_tpu_info(), "vmem_capacity_bytes", 0)) or None
    except Exception:
        cap = None
    if cap is None:
        cap = 64 * _MIB  # conservative default (v7x-sized)
    return int(cap * 0.6)


def _vmem_limit(footprint, budget):
    if footprint <= budget:
        return int(budget)
    return int(footprint * 1.25)


# ----------------------------------------------------------------------------
# Fused bottleneck kernel (3x3 stride == 1 path): conv1 + BN1 + ReLU ->
# direct 3x3 conv2 + BN2 + ReLU -> conv3 + BN3 + residual/downsample + ReLU.
# All matmuls bf16 on the MXU with f32 accumulation; intermediates stay in
# VMEM / vregs.
# ----------------------------------------------------------------------------
def _bottleneck_kernel(*refs, dilation, has_down):
    if has_down:
        (x1_ref, w1_ref, b1_ref, w2_ref, b2_ref, w3_ref, b3_ref, wd_ref,
         o_ref, pad_ref) = refs
    else:
        (x1_ref, w1_ref, b1_ref, w2_ref, b2_ref, w3_ref, b3_ref,
         o_ref, pad_ref) = refs
        wd_ref = None

    bn, H, W, Cin = x1_ref.shape
    Cb = w1_ref.shape[1]
    Cout = w3_ref.shape[1]
    d = dilation
    M = bn * H * W

    # NOTE: a ragged last batch block reads garbage rows from the padded input
    # block; every computation here is per-image / row-wise, and the masked
    # output write drops those rows.  Do not add cross-image reductions here.
    x1 = x1_ref[...]                                  # bf16 (bn, H, W, Cin)
    x1_flat = x1.reshape(M, Cin)

    # conv1 (1x1) + frozen-BN (scale folded into w1) + ReLU.
    h1 = jnp.dot(x1_flat, w1_ref[...], preferred_element_type=jnp.float32)
    h1 = jnp.maximum(h1 + b1_ref[...], 0.0).astype(jnp.bfloat16)

    # conv2 (3x3, stride 1, dilation d, padding d): zero-padded VMEM scratch
    # + 9 shifted-tap matmuls accumulated in f32 (no im2col HBM round trip).
    pad_ref[...] = jnp.zeros_like(pad_ref)
    pad_ref[:, d:d + H, d:d + W, :] = h1.reshape(bn, H, W, Cb)
    acc = None
    for kh in range(3):
        for kw in range(3):
            tap = pad_ref[:, kh * d:kh * d + H, kw * d:kw * d + W, :]
            part = jnp.dot(tap.reshape(M, Cb), w2_ref[kh * 3 + kw],
                           preferred_element_type=jnp.float32)
            acc = part if acc is None else acc + part
    h2 = jnp.maximum(acc + b2_ref[...], 0.0).astype(jnp.bfloat16)

    # conv3 (1x1) + frozen-BN + residual (identity or fused downsample) + ReLU.
    out = jnp.dot(h2, w3_ref[...], preferred_element_type=jnp.float32)
    out = out + b3_ref[...]
    if has_down:
        # The downsample's (already strided) input equals conv1's input when
        # the 3x3 stride is 1, so reuse x1 — no second strided HBM read.
        out = out + jnp.dot(x1_flat, wd_ref[...],
                            preferred_element_type=jnp.float32)
    else:
        out = out + x1_flat.astype(jnp.float32)       # identity (Cin == Cout)
    out = jnp.maximum(out, 0.0)
    o_ref[...] = out.reshape(bn, H, W, Cout).astype(o_ref.dtype)


def fused_bottleneck(x1, w1, b1, w2, b2, w3, b3, wd, *, dilation):
    """x1: (N,H,W,Cin) conv1 input (already strided). Returns (N,H,W,Cout) bf16."""
    N, H, W, Cin = x1.shape
    Cb = w1.shape[1]
    Cout = w3.shape[1]
    has_down = wd is not None
    Hp, Wp = H + 2 * dilation, W + 2 * dilation

    budget = _vmem_budget_bytes()
    w_hbm = ((Cin * Cb + 9 * Cb * Cb + Cb * Cout
              + (Cin * Cout if has_down else 0)) * 2
             + (2 * Cb + Cout) * 4)

    def footprint(bn):
        m = bn * H * W
        io = 2 * (m * Cin + m * Cout) * 2        # double-buffered in/out blocks
        pad = bn * Hp * Wp * Cb * 2              # padded scratch
        live = m * (8 * Cb + 4 * Cout)           # rough live f32/bf16 values
        return io + 2 * w_hbm + pad + live

    # Prefer a single grid step (bn == N); only shrink if VMEM forces it.
    bn = N
    while bn > 1 and footprint(bn) > budget:
        bn = (bn + 1) // 2
    grid = (pl.cdiv(N, bn),)

    b1_2d = b1.reshape(1, Cb).astype(jnp.float32)
    b2_2d = b2.reshape(1, Cb).astype(jnp.float32)
    b3_2d = b3.reshape(1, Cout).astype(jnp.float32)

    in_specs = [
        pl.BlockSpec((bn, H, W, Cin), lambda i: (i, 0, 0, 0)),
        # Constant-index weight/bias blocks (index_map -> 0).  Mosaic may
        # double-buffer them; acceptable at these sizes (pl.Buffered(1) could
        # reclaim that VMEM for very large stages).
        pl.BlockSpec((Cin, Cb), lambda i: (0, 0)),
        pl.BlockSpec((1, Cb), lambda i: (0, 0)),
        pl.BlockSpec((9, Cb, Cb), lambda i: (0, 0, 0)),
        pl.BlockSpec((1, Cb), lambda i: (0, 0)),
        pl.BlockSpec((Cb, Cout), lambda i: (0, 0)),
        pl.BlockSpec((1, Cout), lambda i: (0, 0)),
    ]
    args = [x1.astype(jnp.bfloat16), w1.astype(jnp.bfloat16), b1_2d,
            w2.astype(jnp.bfloat16), b2_2d, w3.astype(jnp.bfloat16), b3_2d]
    if has_down:
        in_specs.append(pl.BlockSpec((Cin, Cout), lambda i: (0, 0)))
        args.append(wd.astype(jnp.bfloat16))

    M = N * H * W
    flops = 2 * M * (Cin * Cb + 9 * Cb * Cb + Cb * Cout
                     + (Cin * Cout if has_down else 0))
    bytes_acc = (M * Cin + M * Cout) * 2 + w_hbm * grid[0]

    kernel = functools.partial(_bottleneck_kernel, dilation=dilation,
                               has_down=has_down)
    return pl.pallas_call(
        kernel,
        out_shape=jax.ShapeDtypeStruct((N, H, W, Cout), jnp.bfloat16),
        grid=grid,
        in_specs=in_specs,
        out_specs=pl.BlockSpec((bn, H, W, Cout), lambda i: (i, 0, 0, 0)),
        scratch_shapes=[pltpu.VMEM((bn, Hp, Wp, Cb), jnp.bfloat16)],
        compiler_params=pltpu.CompilerParams(
            dimension_semantics=("arbitrary",),
            vmem_limit_bytes=_vmem_limit(footprint(bn), budget),
        ),
        cost_estimate=pl.CostEstimate(
            flops=flops, transcendentals=0, bytes_accessed=bytes_acc),
    )(*args)


# ----------------------------------------------------------------------------
# Fallback path (3x3 stride > 1): fused matmul kernel + bf16 im2col.
# TODO(synk): direct strided-3x3 path to remove this im2col HBM round trip.
# TODO(synk): N-axis (Cout) tiling of this kernel for very large Cout stages.
# ----------------------------------------------------------------------------
def _matmul_kernel(*refs, relu, mode):
    if mode == "plain":
        x_ref, w_ref, b_ref, o_ref = refs
        r_ref = xd_ref = wd_ref = None
    elif mode == "res":
        x_ref, w_ref, b_ref, r_ref, o_ref = refs
        xd_ref = wd_ref = None
    else:  # "down": residual branch is a second (downsample) matmul
        x_ref, w_ref, b_ref, xd_ref, wd_ref, o_ref = refs
        r_ref = None

    acc = jnp.dot(x_ref[...], w_ref[...], preferred_element_type=jnp.float32)
    acc = acc + b_ref[...]
    if mode == "res":
        acc = acc + r_ref[...].astype(jnp.float32)
    elif mode == "down":
        acc = acc + jnp.dot(xd_ref[...], wd_ref[...],
                            preferred_element_type=jnp.float32)
    if relu:
        acc = jnp.maximum(acc, 0.0)
    o_ref[...] = acc.astype(o_ref.dtype)


def fused_matmul_bias(x, w, bias, *, residual=None, down=None, relu=True):
    """relu(x @ w + bias [+ residual | + xd @ wd]) -> bf16 (M, N)."""
    M, K = x.shape
    N = w.shape[1]
    budget = _vmem_budget_bytes()
    Kd = down[0].shape[1] if down is not None else 0
    extra = N if residual is not None else Kd

    def fp(bm):
        io = 2 * (bm * (K + extra) + bm * N) * 2
        wb = 2 * ((K + Kd) * N * 2 + N * 4)
        return io + wb + bm * N * 4

    if fp(M) <= budget:
        bm = M                       # single grid step: no per-step overhead
    else:
        bm = 1024
        while bm > 128 and fp(bm) > budget:
            bm //= 2
        bm = min(bm, M)
    grid = (pl.cdiv(M, bm),)

    bias2d = bias.reshape(1, N).astype(jnp.float32)
    in_specs = [
        pl.BlockSpec((bm, K), lambda i: (i, 0)),
        pl.BlockSpec((K, N), lambda i: (0, 0)),
        pl.BlockSpec((1, N), lambda i: (0, 0)),
    ]
    args = [x.astype(jnp.bfloat16), w.astype(jnp.bfloat16), bias2d]

    flops = 2 * M * K * N
    bytes_acc = (M * K + M * N) * 2 + (K * N * 2 + N * 4) * grid[0]
    mode = "plain"
    if residual is not None:
        mode = "res"
        in_specs.append(pl.BlockSpec((bm, N), lambda i: (i, 0)))
        args.append(residual.astype(jnp.bfloat16))
        bytes_acc += M * N * 2
    elif down is not None:
        mode = "down"
        xd, wd = down
        in_specs.append(pl.BlockSpec((bm, Kd), lambda i: (i, 0)))
        in_specs.append(pl.BlockSpec((Kd, N), lambda i: (0, 0)))
        args.append(xd.astype(jnp.bfloat16))
        args.append(wd.astype(jnp.bfloat16))
        flops += 2 * M * Kd * N
        bytes_acc += M * Kd * 2 + Kd * N * 2 * grid[0]

    kernel = functools.partial(_matmul_kernel, relu=relu, mode=mode)
    return pl.pallas_call(
        kernel,
        out_shape=jax.ShapeDtypeStruct((M, N), jnp.bfloat16),
        grid=grid,
        in_specs=in_specs,
        out_specs=pl.BlockSpec((bm, N), lambda i: (i, 0)),
        compiler_params=pltpu.CompilerParams(
            dimension_semantics=("arbitrary",),
            vmem_limit_bytes=_vmem_limit(fp(bm), budget),
        ),
        cost_estimate=pl.CostEstimate(
            flops=flops, transcendentals=0, bytes_accessed=bytes_acc),
    )(*args)


def im2col_3x3(x, stride, dilation):
    """x: (N,H,W,C) bf16 -> (N,Ho,Wo,9*C) bf16, patch order (kh, kw, cin)."""
    N, H, W, C = x.shape
    pad = dilation
    xp = jnp.pad(x, ((0, 0), (pad, pad), (pad, pad), (0, 0)))
    Ho = (H + 2 * pad - dilation * 2 - 1) // stride + 1
    Wo = (W + 2 * pad - dilation * 2 - 1) // stride + 1
    cols = []
    for kh in range(3):
        for kw in range(3):
            h0, w0 = kh * dilation, kw * dilation
            sl = xp[:, h0:h0 + (Ho - 1) * stride + 1:stride,
                       w0:w0 + (Wo - 1) * stride + 1:stride, :]
            cols.append(sl)
    return jnp.concatenate(cols, axis=-1)


def bottleneck_unfused(x, p, s1, s3, down_stride, dilation):
    Cin = x.shape[-1]
    Cb = p["w1"].shape[1]
    Cout = p["w3"].shape[1]

    x1 = x[:, ::s1, ::s1, :] if s1 > 1 else x
    N1, H1, W1, _ = x1.shape
    h = fused_matmul_bias(x1.reshape(-1, Cin), p["w1"], p["b1"], relu=True)
    h = h.reshape(N1, H1, W1, Cb)

    patches = im2col_3x3(h, s3, dilation)
    N2, H2, W2, K2 = patches.shape
    h = fused_matmul_bias(patches.reshape(-1, K2),
                          p["w2"].reshape(9 * Cb, Cb), p["b2"], relu=True)

    if p["w_down"] is not None:
        xd = x1 if down_stride == s1 else x[:, ::down_stride, ::down_stride, :]
        out = fused_matmul_bias(h, p["w3"], p["b3"], relu=True,
                                down=(xd.reshape(-1, Cin), p["w_down"]))
    else:
        out = fused_matmul_bias(h, p["w3"], p["b3"], relu=True,
                                residual=x.reshape(-1, Cout))
    return out.reshape(N2, H2, W2, Cout)


# ----------------------------------------------------------------------------
# Bottleneck dispatch + head plumbing.
# ----------------------------------------------------------------------------
def bottleneck_forward(x, p, stride, stride_in_1x1, dilation):
    down_stride = stride if dilation == 1 else 1
    if dilation > 1:
        stride = 1
    s1, s3 = (stride, 1) if stride_in_1x1 else (1, stride)

    if s3 != 1:
        # Stride sits in the 3x3 conv (stride_in_1x1=False): im2col fallback.
        return bottleneck_unfused(x, p, s1, s3, down_stride, dilation)

    # Fused single-kernel path.  With s3 == 1 the downsample stride always
    # equals s1 (see Bottleneck.__init__), so x1 doubles as the downsample
    # input inside the kernel.
    x1 = x[:, ::s1, ::s1, :] if s1 > 1 else x
    Cin = x1.shape[-1]
    Cout = p["w3"].shape[1]
    if p["w_down"] is None:
        assert Cin == Cout, "identity residual requires Cin == Cout"
    return fused_bottleneck(x1, p["w1"], p["b1"], p["w2"], p["b2"],
                            p["w3"], p["b3"], p["w_down"], dilation=dilation)


# Pure-JAX reference (lax.conv, same bf16 rounding points) to validate Pallas.
def _conv_ref(x, w_hwio, stride, padding, dilation=1):
    return jax.lax.conv_general_dilated(
        x.astype(jnp.bfloat16), w_hwio.astype(jnp.bfloat16),
        (stride, stride), [(padding, padding)] * 2,
        rhs_dilation=(dilation, dilation),
        dimension_numbers=("NHWC", "HWIO", "NHWC"),
        preferred_element_type=jnp.float32)


def bottleneck_ref(x, p, stride, stride_in_1x1, dilation):
    down_stride = stride if dilation == 1 else 1
    if dilation > 1:
        stride = 1
    s1, s3 = (stride, 1) if stride_in_1x1 else (1, stride)
    Cin = x.shape[-1]
    Cb = p["w1"].shape[1]
    Cout = p["w3"].shape[1]

    h = _conv_ref(x, p["w1"].reshape(1, 1, Cin, Cb), s1, 0) + p["b1"]
    h = jax.nn.relu(h).astype(jnp.bfloat16)
    h = _conv_ref(h, p["w2"].reshape(3, 3, Cb, Cb), s3, dilation, dilation) + p["b2"]
    h = jax.nn.relu(h).astype(jnp.bfloat16)
    out = _conv_ref(h, p["w3"].reshape(1, 1, Cb, Cout), 1, 0) + p["b3"]
    if p["w_down"] is not None:   # p["b3"] already includes the downsample bias
        out = out + _conv_ref(x, p["w_down"].reshape(1, 1, Cin, Cout), down_stride, 0)
    else:
        out = out + x.astype(jnp.float32)
    return jax.nn.relu(out).astype(jnp.bfloat16)


def resnet_head_forward(x_nchw, stage_params, stage_specs, stride_in_1x1=True,
                        stride_init=None, dilation=1, use_ref=False,
                        out_dtype=jnp.float32):
    x = jnp.transpose(x_nchw, (0, 2, 3, 1)).astype(jnp.bfloat16)  # NCHW -> NHWC
    block_fn = bottleneck_ref if use_ref else bottleneck_forward
    stride = stride_init
    for spec, blocks in zip(stage_specs, stage_params):
        if not stride:
            stride = int(spec.index > 1) + 1
        for bp in blocks:
            x = block_fn(x, bp, stride, stride_in_1x1, dilation)
            stride = 1
        stride = None
    # Back to the module's NCHW interface.  Transpose in bf16 (half the HBM
    # bytes); pass out_dtype=jnp.bfloat16 to skip the f32 cast if the consumer
    # accepts bf16.
    x = jnp.transpose(x, (0, 3, 1, 2))
    return x.astype(out_dtype)


# ----------------------------------------------------------------------------
# Deterministic parameter init (mirrors module __init__) + kernel-ready prep.
# ----------------------------------------------------------------------------
def kaiming_uniform(key, shape, fan_in):
    bound = (3.0 / fan_in) ** 0.5  # kaiming_uniform_ with a=1
    return jax.random.uniform(key, shape, jnp.float32, -bound, bound)


def init_params(key, stage_specs, num_groups, width_per_group, res2_out_channels):
    factor = 2 ** (stage_specs[0].index - 1)
    out_channels = res2_out_channels * factor
    in_channels = out_channels // 2
    Cb = num_groups * width_per_group * factor
    Co = out_channels
    all_params = []
    for spec in stage_specs:
        cin = in_channels
        blocks = []
        for _ in range(spec.block_count):
            key, k1, k2, k3, k4, kbn = jax.random.split(key, 6)
            bnks = jax.random.split(kbn, 8)
            p = {
                "w1": kaiming_uniform(k1, (cin, Cb), cin),        # 1x1: (Cin, Cb)
                "w2": kaiming_uniform(k2, (9 * Cb, Cb), 9 * Cb),  # 3x3: (kh*kw*Cin, Cb)
                "w3": kaiming_uniform(k3, (Cb, Co), Cb),          # 1x1: (Cb, Cout)
                "s1": jax.random.uniform(bnks[0], (Cb,), jnp.float32, 0.5, 1.5),
                "b1": jax.random.uniform(bnks[1], (Cb,), jnp.float32, -0.2, 0.2),
                "s2": jax.random.uniform(bnks[2], (Cb,), jnp.float32, 0.5, 1.5),
                "b2": jax.random.uniform(bnks[3], (Cb,), jnp.float32, -0.2, 0.2),
                "s3": jax.random.uniform(bnks[4], (Co,), jnp.float32, 0.5, 1.5),
                "b3": jax.random.uniform(bnks[5], (Co,), jnp.float32, -0.2, 0.2),
            }
            if cin != Co:  # downsample branch (first block of the stage)
                p["w_down"] = kaiming_uniform(k4, (cin, Co), cin)
                p["s_down"] = jax.random.uniform(bnks[6], (Co,), jnp.float32, 0.5, 1.5)
                p["b_down"] = jax.random.uniform(bnks[7], (Co,), jnp.float32, -0.2, 0.2)
            else:
                p["w_down"] = p["s_down"] = p["b_down"] = None
            blocks.append(p)
            cin = Co
        all_params.append(blocks)
    return all_params, out_channels


def prepare_params(params):
    """Fold frozen-BN scale into bf16 weights; keep biases in f32.

    NOTE: folding rounds scale*W to bf16; the lax.conv reference applies the
    same rounding, so the self-test validates the Pallas lowering, not bf16
    drift vs. the original f32 PyTorch parameters.
    The downsample bias is folded into bn3's bias (both are added before the
    final ReLU), so the fused conv3+downsample epilogue uses one bias vector.
    w2 is stored as (9, Cb, Cb) with tap index k = kh*3 + kw (HWIO order).
    TODO(synk): optional fp8(e4m3) weight quantization on v7x.
    """
    prepped = []
    for blocks in params:
        pb = []
        for p in blocks:
            Cb = p["w1"].shape[1]
            q = {
                "w1": (p["w1"] * p["s1"][None, :]).astype(jnp.bfloat16),
                "b1": p["b1"].astype(jnp.float32),
                "w2": (p["w2"] * p["s2"][None, :]).astype(jnp.bfloat16)
                      .reshape(9, Cb, Cb),
                "b2": p["b2"].astype(jnp.float32),
                "w3": (p["w3"] * p["s3"][None, :]).astype(jnp.bfloat16),
            }
            if p["w_down"] is not None:
                q["w_down"] = (p["w_down"] * p["s_down"][None, :]).astype(jnp.bfloat16)
                q["b3"] = (p["b3"] + p["b_down"]).astype(jnp.float32)
            else:
                q["w_down"] = None
                q["b3"] = p["b3"].astype(jnp.float32)
            pb.append(q)
        prepped.append(pb)
    return prepped


if __name__ == "__main__":
    # Small ResNetHead config: one stage (index=2, 2 bottleneck blocks),
    # FrozenBatchNorm blocks, stride_in_1x1=True, first_stride=2.
    stage_specs = (StageSpec(index=2, block_count=2),)
    num_groups, width_per_group, res2_out_channels = 1, 64, 64

    key = jax.random.PRNGKey(0)
    kx, kp = jax.random.split(key)
    raw_params, out_channels = init_params(
        kp, stage_specs, num_groups, width_per_group, res2_out_channels
    )
    kparams = prepare_params(raw_params)
    in_channels = (res2_out_channels * 2 ** (stage_specs[0].index - 1)) // 2  # 64

    # PyTorch-style NCHW input
    x = jax.random.normal(kx, (2, in_channels, 16, 16), jnp.float32)

    fwd = jax.jit(lambda xx, pp: resnet_head_forward(xx, pp, stage_specs))
    y = fwd(x, kparams)
    y = jax.block_until_ready(y)

    # Validate against a pure-JAX lax.conv reference with matching bf16 rounding.
    y_ref = resnet_head_forward(x, kparams, stage_specs, use_ref=True)
    y_ref = jax.block_until_ready(y_ref)

    assert y.shape == (2, out_channels, 8, 8), y.shape
    max_err = float(jnp.max(jnp.abs(y - y_ref)))
    assert jnp.allclose(y, y_ref, atol=2e-2, rtol=2e-2), max_err

    print("KERNEL_OK")
</pallas_src>

<mosaic_0001>
module attributes {stable_mosaic.version = 11 : i64} {
  func.func @_bottleneck_kernel(%arg0: i32, %arg1: memref<2x8x8x128xbf16, #tpu.memory_space<vmem>>, %arg2: memref<128x128xbf16, #tpu.memory_space<vmem>>, %arg3: memref<1x128xf32, #tpu.memory_space<vmem>>, %arg4: memref<9x128x128xbf16, #tpu.memory_space<vmem>>, %arg5: memref<1x128xf32, #tpu.memory_space<vmem>>, %arg6: memref<128x128xbf16, #tpu.memory_space<vmem>>, %arg7: memref<1x128xf32, #tpu.memory_space<vmem>>, %arg8: memref<2x8x8x128xbf16, #tpu.memory_space<vmem>>, %arg9: memref<2x10x10x128xbf16, #tpu.memory_space<vmem>>) attributes {dimension_semantics = [#tpu.dimension_semantics<arbitrary>], iteration_bounds = array<i64: 1>, scalar_prefetch = 0 : i64, scratch_operands = 1 : i64, tpu.core_type = #tpu.core_type<tc>, window_params = [{transform_indices = @transform_0, window_bounds = array<i64: 2, 8, 8, 128>}, {pipeline_mode = #tpu.pipeline_mode<synchronous>, transform_indices = @transform_1, window_bounds = array<i64: 128, 128>}, {pipeline_mode = #tpu.pipeline_mode<synchronous>, transform_indices = @transform_2, window_bounds = array<i64: 1, 128>}, {pipeline_mode = #tpu.pipeline_mode<synchronous>, transform_indices = @transform_3, window_bounds = array<i64: 9, 128, 128>}, {pipeline_mode = #tpu.pipeline_mode<synchronous>, transform_indices = @transform_4, window_bounds = array<i64: 1, 128>}, {pipeline_mode = #tpu.pipeline_mode<synchronous>, transform_indices = @transform_5, window_bounds = array<i64: 128, 128>}, {pipeline_mode = #tpu.pipeline_mode<synchronous>, transform_indices = @transform_6, window_bounds = array<i64: 1, 128>}, {transform_indices = @transform_7, window_bounds = array<i64: 2, 8, 8, 128>}]} {
    %c0 = arith.constant 0 : index
    %c0_0 = arith.constant 0 : index
    %c0_1 = arith.constant 0 : index
    %c0_2 = arith.constant 0 : index
    %0 = vector.load %arg1[%c0, %c0_0, %c0_1, %c0_2] : memref<2x8x8x128xbf16, #tpu.memory_space<vmem>>, vector<2x8x8x128xbf16>
    %1 = vector.shape_cast %0 : vector<2x8x8x128xbf16> to vector<128x128xbf16>
    %c0_3 = arith.constant 0 : index
    %c0_4 = arith.constant 0 : index
    %2 = vector.load %arg2[%c0_3, %c0_4] : memref<128x128xbf16, #tpu.memory_space<vmem>>, vector<128x128xbf16>
    %cst = arith.constant dense<0.000000e+00> : vector<128x128xf32>
    %3 = tpu.matmul %1, %2, %cst {dimension_numbers = #tpu.dot_dimension_numbers<[1], [0], [0], [1], [0, 0, 1, 1], [], []>} : vector<128x128xbf16>, vector<128x128xbf16>, vector<128x128xf32> -> vector<128x128xf32>
    %c0_5 = arith.constant 0 : index
    %c0_6 = arith.constant 0 : index
    %4 = vector.load %arg3[%c0_5, %c0_6] : memref<1x128xf32, #tpu.memory_space<vmem>>, vector<1x128xf32>
    %5 = vector.broadcast %4 : vector<1x128xf32> to vector<128x128xf32>
    %6 = arith.addf %3, %5 : vector<128x128xf32>
    %cst_7 = arith.constant 0.000000e+00 : f32
    %7 = vector.broadcast %cst_7 : f32 to vector<128x128xf32>
    %8 = arith.maximumf %6, %7 : vector<128x128xf32>
    %9 = arith.truncf %8 : vector<128x128xf32> to vector<128x128xbf16>
    %cst_8 = arith.constant 0.000000e+00 : bf16
    %10 = vector.broadcast %cst_8 : bf16 to vector<2x10x10x128xbf16>
    %c0_9 = arith.constant 0 : index
    %c0_10 = arith.constant 0 : index
    %c0_11 = arith.constant 0 : index
    %c0_12 = arith.constant 0 : index
    %11 = vector.load %arg9[%c0_9, %c0_10, %c0_11, %c0_12] : memref<2x10x10x128xbf16, #tpu.memory_space<vmem>>, vector<2x10x10x128xbf16>
    tpu.vector_store %arg9[%c0_9, %c0_10, %c0_11, %c0_12], %10 {strides = array<i32>} : memref<2x10x10x128xbf16, #tpu.memory_space<vmem>>, vector<2x10x10x128xbf16>,
    %12 = vector.shape_cast %9 : vector<128x128xbf16> to vector<2x8x8x128xbf16>
    %c0_13 = arith.constant 0 : index
    %c1 = arith.constant 1 : index
    %c1_14 = arith.constant 1 : index
    %c0_15 = arith.constant 0 : index
    %13 = vector.load %arg9[%c0_13, %c1, %c1_14, %c0_15] : memref<2x10x10x128xbf16, #tpu.memory_space<vmem>>, vector<2x8x8x128xbf16>
    tpu.vector_store %arg9[%c0_13, %c1, %c1_14, %c0_15], %12 {strides = array<i32>} : memref<2x10x10x128xbf16, #tpu.memory_space<vmem>>, vector<2x8x8x128xbf16>,
    %c0_16 = arith.constant 0 : index
    %c0_17 = arith.constant 0 : index
    %c0_18 = arith.constant 0 : index
    %c0_19 = arith.constant 0 : index
    %14 = vector.load %arg9[%c0_16, %c0_17, %c0_18, %c0_19] : memref<2x10x10x128xbf16, #tpu.memory_space<vmem>>, vector<2x8x8x128xbf16>
    %15 = vector.shape_cast %14 : vector<2x8x8x128xbf16> to vector<128x128xbf16>
    %c0_20 = arith.constant 0 : index
    %c0_21 = arith.constant 0 : index
    %c0_22 = arith.constant 0 : index
    %16 = vector.load %arg4[%c0_20, %c0_21, %c0_22] : memref<9x128x128xbf16, #tpu.memory_space<vmem>>, vector<1x128x128xbf16>
    %17 = vector.shape_cast %16 : vector<1x128x128xbf16> to vector<128x128xbf16>
    %cst_23 = arith.constant dense<0.000000e+00> : vector<128x128xf32>
    %18 = tpu.matmul %15, %17, %cst_23 {dimension_numbers = #tpu.dot_dimension_numbers<[1], [0], [0], [1], [0, 0, 1, 1], [], []>} : vector<128x128xbf16>, vector<128x128xbf16>, vector<128x128xf32> -> vector<128x128xf32>
    %c0_24 = arith.constant 0 : index
    %c0_25 = arith.constant 0 : index
    %c1_26 = arith.constant 1 : index
    %c0_27 = arith.constant 0 : index
    %19 = vector.load %arg9[%c0_24, %c0_25, %c1_26, %c0_27] : memref<2x10x10x128xbf16, #tpu.memory_space<vmem>>, vector<2x8x8x128xbf16>
    %20 = vector.shape_cast %19 : vector<2x8x8x128xbf16> to vector<128x128xbf16>
    %c1_28 = arith.constant 1 : index
    %c0_29 = arith.constant 0 : index
    %c0_30 = arith.constant 0 : index
    %21 = vector.load %arg4[%c1_28, %c0_29, %c0_30] : memref<9x128x128xbf16, #tpu.memory_space<vmem>>, vector<1x128x128xbf16>
    %22 = vector.shape_cast %21 : vector<1x128x128xbf16> to vector<128x128xbf16>
    %cst_31 = arith.constant dense<0.000000e+00> : vector<128x128xf32>
    %23 = tpu.matmul %20, %22, %cst_31 {dimension_numbers = #tpu.dot_dimension_numbers<[1], [0], [0], [1], [0, 0, 1, 1], [], []>} : vector<128x128xbf16>, vector<128x128xbf16>, vector<128x128xf32> -> vector<128x128xf32>
    %24 = arith.addf %18, %23 : vector<128x128xf32>
    %c0_32 = arith.constant 0 : index
    %c0_33 = arith.constant 0 : index
    %c2 = arith.constant 2 : index
    %c0_34 = arith.constant 0 : index
    %25 = vector.load %arg9[%c0_32, %c0_33, %c2, %c0_34] : memref<2x10x10x128xbf16, #tpu.memory_space<vmem>>, vector<2x8x8x128xbf16>
    %26 = vector.shape_cast %25 : vector<2x8x8x128xbf16> to vector<128x128xbf16>
    %c2_35 = arith.constant 2 : index
    %c0_36 = arith.constant 0 : index
    %c0_37 = arith.constant 0 : index
    %27 = vector.load %arg4[%c2_35, %c0_36, %c0_37] : memref<9x128x128xbf16, #tpu.memory_space<vmem>>, vector<1x128x128xbf16>
    %28 = vector.shape_cast %27 : vector<1x128x128xbf16> to vector<128x128xbf16>
    %cst_38 = arith.constant dense<0.000000e+00> : vector<128x128xf32>
    %29 = tpu.matmul %26, %28, %cst_38 {dimension_numbers = #tpu.dot_dimension_numbers<[1], [0], [0], [1], [0, 0, 1, 1], [], []>} : vector<128x128xbf16>, vector<128x128xbf16>, vector<128x128xf32> -> vector<128x128xf32>
    %30 = arith.addf %24, %29 : vector<128x128xf32>
    %c0_39 = arith.constant 0 : index
    %c1_40 = arith.constant 1 : index
    %c0_41 = arith.constant 0 : index
    %c0_42 = arith.constant 0 : index
    %31 = vector.load %arg9[%c0_39, %c1_40, %c0_41, %c0_42] : memref<2x10x10x128xbf16, #tpu.memory_space<vmem>>, vector<2x8x8x128xbf16>
    %32 = vector.shape_cast %31 : vector<2x8x8x128xbf16> to vector<128x128xbf16>
    %c3 = arith.constant 3 : index
    %c0_43 = arith.constant 0 : index
    %c0_44 = arith.constant 0 : index
    %33 = vector.load %arg4[%c3, %c0_43, %c0_44] : memref<9x128x128xbf16, #tpu.memory_space<vmem>>, vector<1x128x128xbf16>
    %34 = vector.shape_cast %33 : vector<1x128x128xbf16> to vector<128x128xbf16>
    %cst_45 = arith.constant dense<0.000000e+00> : vector<128x128xf32>
    %35 = tpu.matmul %32, %34, %cst_45 {dimension_numbers = #tpu.dot_dimension_numbers<[1], [0], [0], [1], [0, 0, 1, 1], [], []>} : vector<128x128xbf16>, vector<128x128xbf16>, vector<128x128xf32> -> vector<128x128xf32>
    %36 = arith.addf %30, %35 : vector<128x128xf32>
    %c0_46 = arith.constant 0 : index
    %c1_47 = arith.constant 1 : index
    %c1_48 = arith.constant 1 : index
    %c0_49 = arith.constant 0 : index
    %37 = vector.load %arg9[%c0_46, %c1_47, %c1_48, %c0_49] : memref<2x10x10x128xbf16, #tpu.memory_space<vmem>>, vector<2x8x8x128xbf16>
    %38 = vector.shape_cast %37 : vector<2x8x8x128xbf16> to vector<128x128xbf16>
    %c4 = arith.constant 4 : index
    %c0_50 = arith.constant 0 : index
    %c0_51 = arith.constant 0 : index
    %39 = vector.load %arg4[%c4, %c0_50, %c0_51] : memref<9x128x128xbf16, #tpu.memory_space<vmem>>, vector<1x128x128xbf16>
    %40 = vector.shape_cast %39 : vector<1x128x128xbf16> to vector<128x128xbf16>
    %cst_52 = arith.constant dense<0.000000e+00> : vector<128x128xf32>
    %41 = tpu.matmul %38, %40, %cst_52 {dimension_numbers = #tpu.dot_dimension_numbers<[1], [0], [0], [1], [0, 0, 1, 1], [], []>} : vector<128x128xbf16>, vector<128x128xbf16>, vector<128x128xf32> -> vector<128x128xf32>
    %42 = arith.addf %36, %41 : vector<128x128xf32>
    %c0_53 = arith.constant 0 : index
    %c1_54 = arith.constant 1 : index
    %c2_55 = arith.constant 2 : index
    %c0_56 = arith.constant 0 : index
    %43 = vector.load %arg9[%c0_53, %c1_54, %c2_55, %c0_56] : memref<2x10x10x128xbf16, #tpu.memory_space<vmem>>, vector<2x8x8x128xbf16>
    %44 = vector.shape_cast %43 : vector<2x8x8x128xbf16> to vector<128x128xbf16>
    %c5 = arith.constant 5 : index
    %c0_57 = arith.constant 0 : index
    %c0_58 = arith.constant 0 : index
    %45 = vector.load %arg4[%c5, %c0_57, %c0_58] : memref<9x128x128xbf16, #tpu.memory_space<vmem>>, vector<1x128x128xbf16>
    %46 = vector.shape_cast %45 : vector<1x128x128xbf16> to vector<128x128xbf16>
    %cst_59 = arith.constant dense<0.000000e+00> : vector<128x128xf32>
    %47 = tpu.matmul %44, %46, %cst_59 {dimension_numbers = #tpu.dot_dimension_numbers<[1], [0], [0], [1], [0, 0, 1, 1], [], []>} : vector<128x128xbf16>, vector<128x128xbf16>, vector<128x128xf32> -> vector<128x128xf32>
    %48 = arith.addf %42, %47 : vector<128x128xf32>
    %c0_60 = arith.constant 0 : index
    %c2_61 = arith.constant 2 : index
    %c0_62 = arith.constant 0 : index
    %c0_63 = arith.constant 0 : index
    %49 = vector.load %arg9[%c0_60, %c2_61, %c0_62, %c0_63] : memref<2x10x10x128xbf16, #tpu.memory_space<vmem>>, vector<2x8x8x128xbf16>
    %50 = vector.shape_cast %49 : vector<2x8x8x128xbf16> to vector<128x128xbf16>
    %c6 = arith.constant 6 : index
    %c0_64 = arith.constant 0 : index
    %c0_65 = arith.constant 0 : index
    %51 = vector.load %arg4[%c6, %c0_64, %c0_65] : memref<9x128x128xbf16, #tpu.memory_space<vmem>>, vector<1x128x128xbf16>
    %52 = vector.shape_cast %51 : vector<1x128x128xbf16> to vector<128x128xbf16>
    %cst_66 = arith.constant dense<0.000000e+00> : vector<128x128xf32>
    %53 = tpu.matmul %50, %52, %cst_66 {dimension_numbers = #tpu.dot_dimension_numbers<[1], [0], [0], [1], [0, 0, 1, 1], [], []>} : vector<128x128xbf16>, vector<128x128xbf16>, vector<128x128xf32> -> vector<128x128xf32>
    %54 = arith.addf %48, %53 : vector<128x128xf32>
    %c0_67 = arith.constant 0 : index
    %c2_68 = arith.constant 2 : index
    %c1_69 = arith.constant 1 : index
    %c0_70 = arith.constant 0 : index
    %55 = vector.load %arg9[%c0_67, %c2_68, %c1_69, %c0_70] : memref<2x10x10x128xbf16, #tpu.memory_space<vmem>>, vector<2x8x8x128xbf16>
    %56 = vector.shape_cast %55 : vector<2x8x8x128xbf16> to vector<128x128xbf16>
    %c7 = arith.constant 7 : index
    %c0_71 = arith.constant 0 : index
    %c0_72 = arith.constant 0 : index
    %57 = vector.load %arg4[%c7, %c0_71, %c0_72] : memref<9x128x128xbf16, #tpu.memory_space<vmem>>, vector<1x128x128xbf16>
    %58 = vector.shape_cast %57 : vector<1x128x128xbf16> to vector<128x128xbf16>
    %cst_73 = arith.constant dense<0.000000e+00> : vector<128x128xf32>
    %59 = tpu.matmul %56, %58, %cst_73 {dimension_numbers = #tpu.dot_dimension_numbers<[1], [0], [0], [1], [0, 0, 1, 1], [], []>} : vector<128x128xbf16>, vector<128x128xbf16>, vector<128x128xf32> -> vector<128x128xf32>
    %60 = arith.addf %54, %59 : vector<128x128xf32>
    %c0_74 = arith.constant 0 : index
    %c2_75 = arith.constant 2 : index
    %c2_76 = arith.constant 2 : index
    %c0_77 = arith.constant 0 : index
    %61 = vector.load %arg9[%c0_74, %c2_75, %c2_76, %c0_77] : memref<2x10x10x128xbf16, #tpu.memory_space<vmem>>, vector<2x8x8x128xbf16>
    %62 = vector.shape_cast %61 : vector<2x8x8x128xbf16> to vector<128x128xbf16>
    %c8 = arith.constant 8 : index
    %c0_78 = arith.constant 0 : index
    %c0_79 = arith.constant 0 : index
    %63 = vector.load %arg4[%c8, %c0_78, %c0_79] : memref<9x128x128xbf16, #tpu.memory_space<vmem>>, vector<1x128x128xbf16>
    %64 = vector.shape_cast %63 : vector<1x128x128xbf16> to vector<128x128xbf16>
    %cst_80 = arith.constant dense<0.000000e+00> : vector<128x128xf32>
    %65 = tpu.matmul %62, %64, %cst_80 {dimension_numbers = #tpu.dot_dimension_numbers<[1], [0], [0], [1], [0, 0, 1, 1], [], []>} : vector<128x128xbf16>, vector<128x128xbf16>, vector<128x128xf32> -> vector<128x128xf32>
    %66 = arith.addf %60, %65 : vector<128x128xf32>
    %c0_81 = arith.constant 0 : index
    %c0_82 = arith.constant 0 : index
    %67 = vector.load %arg5[%c0_81, %c0_82] : memref<1x128xf32, #tpu.memory_space<vmem>>, vector<1x128xf32>
    %68 = vector.broadcast %67 : vector<1x128xf32> to vector<128x128xf32>
    %69 = arith.addf %66, %68 : vector<128x128xf32>
    %cst_83 = arith.constant 0.000000e+00 : f32
    %70 = vector.broadcast %cst_83 : f32 to vector<128x128xf32>
    %71 = arith.maximumf %69, %70 : vector<128x128xf32>
    %72 = arith.truncf %71 : vector<128x128xf32> to vector<128x128xbf16>
    %c0_84 = arith.constant 0 : index
    %c0_85 = arith.constant 0 : index
    %73 = vector.load %arg6[%c0_84, %c0_85] : memref<128x128xbf16, #tpu.memory_space<vmem>>, vector<128x128xbf16>
    %cst_86 = arith.constant dense<0.000000e+00> : vector<128x128xf32>
    %74 = tpu.matmul %72, %73, %cst_86 {dimension_numbers = #tpu.dot_dimension_numbers<[1], [0], [0], [1], [0, 0, 1, 1], [], []>} : vector<128x128xbf16>, vector<128x128xbf16>, vector<128x128xf32> -> vector<128x128xf32>
    %c0_87 = arith.constant 0 : index
    %c0_88 = arith.constant 0 : index
    %75 = vector.load %arg7[%c0_87, %c0_88] : memref<1x128xf32, #tpu.memory_space<vmem>>, vector<1x128xf32>
    %76 = vector.broadcast %75 : vector<1x128xf32> to vector<128x128xf32>
    %77 = arith.addf %74, %76 : vector<128x128xf32>
    %78 = arith.extf %1 : vector<128x128xbf16> to vector<128x128xf32>
    %79 = arith.addf %77, %78 : vector<128x128xf32>
    %cst_89 = arith.constant 0.000000e+00 : f32
    %80 = vector.broadcast %cst_89 : f32 to vector<128x128xf32>
    %81 = arith.maximumf %79, %80 : vector<128x128xf32>
    %82 = vector.shape_cast %81 : vector<128x128xf32> to vector<2x8x8x128xf32>
    %83 = arith.truncf %82 : vector<2x8x8x128xf32> to vector<2x8x8x128xbf16>
    %c0_90 = arith.constant 0 : index
    %c0_91 = arith.constant 0 : index
    %c0_92 = arith.constant 0 : index
    %c0_93 = arith.constant 0 : index
    %84 = vector.load %arg8[%c0_90, %c0_91, %c0_92, %c0_93] : memref<2x8x8x128xbf16, #tpu.memory_space<vmem>>, vector<2x8x8x128xbf16>
    tpu.vector_store %arg8[%c0_90, %c0_91, %c0_92, %c0_93], %83 {strides = array<i32>} : memref<2x8x8x128xbf16, #tpu.memory_space<vmem>>, vector<2x8x8x128xbf16>,
    return
  }
  func.func @transform_0(%arg0: i32) -> (i32, i32, i32, i32) {
    %c0_i32 = arith.constant 0 : i32
    %c0_i32_0 = arith.constant 0 : i32
    %c0_i32_1 = arith.constant 0 : i32
    %c0_i32_2 = arith.constant 0 : i32
    return %arg0, %c0_i32, %c0_i32_0, %c0_i32_1 : i32, i32, i32, i32
  }
  func.func @transform_1(%arg0: i32) -> (i32, i32) {
    %c0_i32 = arith.constant 0 : i32
    %c0_i32_0 = arith.constant 0 : i32
    %c0_i32_1 = arith.constant 0 : i32
    return %c0_i32, %c0_i32_0 : i32, i32
  }
  func.func @transform_2(%arg0: i32) -> (i32, i32) {
    %c0_i32 = arith.constant 0 : i32
    %c0_i32_0 = arith.constant 0 : i32
    %c0_i32_1 = arith.constant 0 : i32
    return %c0_i32, %c0_i32_0 : i32, i32
  }
  func.func @transform_3(%arg0: i32) -> (i32, i32, i32) {
    %c0_i32 = arith.constant 0 : i32
    %c0_i32_0 = arith.constant 0 : i32
    %c0_i32_1 = arith.constant 0 : i32
    %c0_i32_2 = arith.constant 0 : i32
    return %c0_i32, %c0_i32_0, %c0_i32_1 : i32, i32, i32
  }
  func.func @transform_4(%arg0: i32) -> (i32, i32) {
    %c0_i32 = arith.constant 0 : i32
    %c0_i32_0 = arith.constant 0 : i32
    %c0_i32_1 = arith.constant 0 : i32
    return %c0_i32, %c0_i32_0 : i32, i32
  }
  func.func @transform_5(%arg0: i32) -> (i32, i32) {
    %c0_i32 = arith.constant 0 : i32
    %c0_i32_0 = arith.constant 0 : i32
    %c0_i32_1 = arith.constant 0 : i32
    return %c0_i32, %c0_i32_0 : i32, i32
  }
  func.func @transform_6(%arg0: i32) -> (i32, i32) {
    %c0_i32 = arith.constant 0 : i32
    %c0_i32_0 = arith.constant 0 : i32
    %c0_i32_1 = arith.constant 0 : i32
    return %c0_i32, %c0_i32_0 : i32, i32
  }
  func.func @transform_7(%arg0: i32) -> (i32, i32, i32, i32) {
    %c0_i32 = arith.constant 0 : i32
    %c0_i32_0 = arith.constant 0 : i32
    %c0_i32_1 = arith.constant 0 : i32
    %c0_i32_2 = arith.constant 0 : i32
    return %arg0, %c0_i32, %c0_i32_0, %c0_i32_1 : i32, i32, i32, i32
  }
}

module attributes {stable_mosaic.version = 11 : i64} {
  func.func @_bottleneck_kernel(%arg0: i32, %arg1: memref<2x8x8x64xbf16, #tpu.memory_space<vmem>>, %arg2: memref<64x128xbf16, #tpu.memory_space<vmem>>, %arg3: memref<1x128xf32, #tpu.memory_space<vmem>>, %arg4: memref<9x128x128xbf16, #tpu.memory_space<vmem>>, %arg5: memref<1x128xf32, #tpu.memory_space<vmem>>, %arg6: memref<128x128xbf16, #tpu.memory_space<vmem>>, %arg7: memref<1x128xf32, #tpu.memory_space<vmem>>, %arg8: memref<64x128xbf16, #tpu.memory_space<vmem>>, %arg9: memref<2x8x8x128xbf16, #tpu.memory_space<vmem>>, %arg10: memref<2x10x10x128xbf16, #tpu.memory_space<vmem>>) attributes {dimension_semantics = [#tpu.dimension_semantics<arbitrary>], iteration_bounds = array<i64: 1>, scalar_prefetch = 0 : i64, scratch_operands = 1 : i64, tpu.core_type = #tpu.core_type<tc>, window_params = [{transform_indices = @transform_0, window_bounds = array<i64: 2, 8, 8, 64>}, {pipeline_mode = #tpu.pipeline_mode<synchronous>, transform_indices = @transform_1, window_bounds = array<i64: 64, 128>}, {pipeline_mode = #tpu.pipeline_mode<synchronous>, transform_indices = @transform_2, window_bounds = array<i64: 1, 128>}, {pipeline_mode = #tpu.pipeline_mode<synchronous>, transform_indices = @transform_3, window_bounds = array<i64: 9, 128, 128>}, {pipeline_mode = #tpu.pipeline_mode<synchronous>, transform_indices = @transform_4, window_bounds = array<i64: 1, 128>}, {pipeline_mode = #tpu.pipeline_mode<synchronous>, transform_indices = @transform_5, window_bounds = array<i64: 128, 128>}, {pipeline_mode = #tpu.pipeline_mode<synchronous>, transform_indices = @transform_6, window_bounds = array<i64: 1, 128>}, {pipeline_mode = #tpu.pipeline_mode<synchronous>, transform_indices = @transform_7, window_bounds = array<i64: 64, 128>}, {transform_indices = @transform_8, window_bounds = array<i64: 2, 8, 8, 128>}]} {
    %c0 = arith.constant 0 : index
    %c0_0 = arith.constant 0 : index
    %c0_1 = arith.constant 0 : index
    %c0_2 = arith.constant 0 : index
    %0 = vector.load %arg1[%c0, %c0_0, %c0_1, %c0_2] : memref<2x8x8x64xbf16, #tpu.memory_space<vmem>>, vector<2x8x8x64xbf16>
    %1 = vector.shape_cast %0 : vector<2x8x8x64xbf16> to vector<128x64xbf16>
    %c0_3 = arith.constant 0 : index
    %c0_4 = arith.constant 0 : index
    %2 = vector.load %arg2[%c0_3, %c0_4] : memref<64x128xbf16, #tpu.memory_space<vmem>>, vector<64x128xbf16>
    %cst = arith.constant dense<0.000000e+00> : vector<128x128xf32>
    %3 = tpu.matmul %1, %2, %cst {dimension_numbers = #tpu.dot_dimension_numbers<[1], [0], [0], [1], [0, 0, 1, 1], [], []>} : vector<128x64xbf16>, vector<64x128xbf16>, vector<128x128xf32> -> vector<128x128xf32>
    %c0_5 = arith.constant 0 : index
    %c0_6 = arith.constant 0 : index
    %4 = vector.load %arg3[%c0_5, %c0_6] : memref<1x128xf32, #tpu.memory_space<vmem>>, vector<1x128xf32>
    %5 = vector.broadcast %4 : vector<1x128xf32> to vector<128x128xf32>
    %6 = arith.addf %3, %5 : vector<128x128xf32>
    %cst_7 = arith.constant 0.000000e+00 : f32
    %7 = vector.broadcast %cst_7 : f32 to vector<128x128xf32>
    %8 = arith.maximumf %6, %7 : vector<128x128xf32>
    %9 = arith.truncf %8 : vector<128x128xf32> to vector<128x128xbf16>
    %cst_8 = arith.constant 0.000000e+00 : bf16
    %10 = vector.broadcast %cst_8 : bf16 to vector<2x10x10x128xbf16>
    %c0_9 = arith.constant 0 : index
    %c0_10 = arith.constant 0 : index
    %c0_11 = arith.constant 0 : index
    %c0_12 = arith.constant 0 : index
    %11 = vector.load %arg10[%c0_9, %c0_10, %c0_11, %c0_12] : memref<2x10x10x128xbf16, #tpu.memory_space<vmem>>, vector<2x10x10x128xbf16>
    tpu.vector_store %arg10[%c0_9, %c0_10, %c0_11, %c0_12], %10 {strides = array<i32>} : memref<2x10x10x128xbf16, #tpu.memory_space<vmem>>, vector<2x10x10x128xbf16>,
    %12 = vector.shape_cast %9 : vector<128x128xbf16> to vector<2x8x8x128xbf16>
    %c0_13 = arith.constant 0 : index
    %c1 = arith.constant 1 : index
    %c1_14 = arith.constant 1 : index
    %c0_15 = arith.constant 0 : index
    %13 = vector.load %arg10[%c0_13, %c1, %c1_14, %c0_15] : memref<2x10x10x128xbf16, #tpu.memory_space<vmem>>, vector<2x8x8x128xbf16>
    tpu.vector_store %arg10[%c0_13, %c1, %c1_14, %c0_15], %12 {strides = array<i32>} : memref<2x10x10x128xbf16, #tpu.memory_space<vmem>>, vector<2x8x8x128xbf16>,
    %c0_16 = arith.constant 0 : index
    %c0_17 = arith.constant 0 : index
    %c0_18 = arith.constant 0 : index
    %c0_19 = arith.constant 0 : index
    %14 = vector.load %arg10[%c0_16, %c0_17, %c0_18, %c0_19] : memref<2x10x10x128xbf16, #tpu.memory_space<vmem>>, vector<2x8x8x128xbf16>
    %15 = vector.shape_cast %14 : vector<2x8x8x128xbf16> to vector<128x128xbf16>
    %c0_20 = arith.constant 0 : index
    %c0_21 = arith.constant 0 : index
    %c0_22 = arith.constant 0 : index
    %16 = vector.load %arg4[%c0_20, %c0_21, %c0_22] : memref<9x128x128xbf16, #tpu.memory_space<vmem>>, vector<1x128x128xbf16>
    %17 = vector.shape_cast %16 : vector<1x128x128xbf16> to vector<128x128xbf16>
    %cst_23 = arith.constant dense<0.000000e+00> : vector<128x128xf32>
    %18 = tpu.matmul %15, %17, %cst_23 {dimension_numbers = #tpu.dot_dimension_numbers<[1], [0], [0], [1], [0, 0, 1, 1], [], []>} : vector<128x128xbf16>, vector<128x128xbf16>, vector<128x128xf32> -> vector<128x128xf32>
    %c0_24 = arith.constant 0 : index
    %c0_25 = arith.constant 0 : index
    %c1_26 = arith.constant 1 : index
    %c0_27 = arith.constant 0 : index
    %19 = vector.load %arg10[%c0_24, %c0_25, %c1_26, %c0_27] : memref<2x10x10x128xbf16, #tpu.memory_space<vmem>>, vector<2x8x8x128xbf16>
    %20 = vector.shape_cast %19 : vector<2x8x8x128xbf16> to vector<128x128xbf16>
    %c1_28 = arith.constant 1 : index
    %c0_29 = arith.constant 0 : index
    %c0_30 = arith.constant 0 : index
    %21 = vector.load %arg4[%c1_28, %c0_29, %c0_30] : memref<9x128x128xbf16, #tpu.memory_space<vmem>>, vector<1x128x128xbf16>
    %22 = vector.shape_cast %21 : vector<1x128x128xbf16> to vector<128x128xbf16>
    %cst_31 = arith.constant dense<0.000000e+00> : vector<128x128xf32>
    %23 = tpu.matmul %20, %22, %cst_31 {dimension_numbers = #tpu.dot_dimension_numbers<[1], [0], [0], [1], [0, 0, 1, 1], [], []>} : vector<128x128xbf16>, vector<128x128xbf16>, vector<128x128xf32> -> vector<128x128xf32>
    %24 = arith.addf %18, %23 : vector<128x128xf32>
    %c0_32 = arith.constant 0 : index
    %c0_33 = arith.constant 0 : index
    %c2 = arith.constant 2 : index
    %c0_34 = arith.constant 0 : index
    %25 = vector.load %arg10[%c0_32, %c0_33, %c2, %c0_34] : memref<2x10x10x128xbf16, #tpu.memory_space<vmem>>, vector<2x8x8x128xbf16>
    %26 = vector.shape_cast %25 : vector<2x8x8x128xbf16> to vector<128x128xbf16>
    %c2_35 = arith.constant 2 : index
    %c0_36 = arith.constant 0 : index
    %c0_37 = arith.constant 0 : index
    %27 = vector.load %arg4[%c2_35, %c0_36, %c0_37] : memref<9x128x128xbf16, #tpu.memory_space<vmem>>, vector<1x128x128xbf16>
    %28 = vector.shape_cast %27 : vector<1x128x128xbf16> to vector<128x128xbf16>
    %cst_38 = arith.constant dense<0.000000e+00> : vector<128x128xf32>
    %29 = tpu.matmul %26, %28, %cst_38 {dimension_numbers = #tpu.dot_dimension_numbers<[1], [0], [0], [1], [0, 0, 1, 1], [], []>} : vector<128x128xbf16>, vector<128x128xbf16>, vector<128x128xf32> -> vector<128x128xf32>
    %30 = arith.addf %24, %29 : vector<128x128xf32>
    %c0_39 = arith.constant 0 : index
    %c1_40 = arith.constant 1 : index
    %c0_41 = arith.constant 0 : index
    %c0_42 = arith.constant 0 : index
    %31 = vector.load %arg10[%c0_39, %c1_40, %c0_41, %c0_42] : memref<2x10x10x128xbf16, #tpu.memory_space<vmem>>, vector<2x8x8x128xbf16>
    %32 = vector.shape_cast %31 : vector<2x8x8x128xbf16> to vector<128x128xbf16>
    %c3 = arith.constant 3 : index
    %c0_43 = arith.constant 0 : index
    %c0_44 = arith.constant 0 : index
    %33 = vector.load %arg4[%c3, %c0_43, %c0_44] : memref<9x128x128xbf16, #tpu.memory_space<vmem>>, vector<1x128x128xbf16>
    %34 = vector.shape_cast %33 : vector<1x128x128xbf16> to vector<128x128xbf16>
    %cst_45 = arith.constant dense<0.000000e+00> : vector<128x128xf32>
    %35 = tpu.matmul %32, %34, %cst_45 {dimension_numbers = #tpu.dot_dimension_numbers<[1], [0], [0], [1], [0, 0, 1, 1], [], []>} : vector<128x128xbf16>, vector<128x128xbf16>, vector<128x128xf32> -> vector<128x128xf32>
    %36 = arith.addf %30, %35 : vector<128x128xf32>
    %c0_46 = arith.constant 0 : index
    %c1_47 = arith.constant 1 : index
    %c1_48 = arith.constant 1 : index
    %c0_49 = arith.constant 0 : index
    %37 = vector.load %arg10[%c0_46, %c1_47, %c1_48, %c0_49] : memref<2x10x10x128xbf16, #tpu.memory_space<vmem>>, vector<2x8x8x128xbf16>
    %38 = vector.shape_cast %37 : vector<2x8x8x128xbf16> to vector<128x128xbf16>
    %c4 = arith.constant 4 : index
    %c0_50 = arith.constant 0 : index
    %c0_51 = arith.constant 0 : index
    %39 = vector.load %arg4[%c4, %c0_50, %c0_51] : memref<9x128x128xbf16, #tpu.memory_space<vmem>>, vector<1x128x128xbf16>
    %40 = vector.shape_cast %39 : vector<1x128x128xbf16> to vector<128x128xbf16>
    %cst_52 = arith.constant dense<0.000000e+00> : vector<128x128xf32>
    %41 = tpu.matmul %38, %40, %cst_52 {dimension_numbers = #tpu.dot_dimension_numbers<[1], [0], [0], [1], [0, 0, 1, 1], [], []>} : vector<128x128xbf16>, vector<128x128xbf16>, vector<128x128xf32> -> vector<128x128xf32>
    %42 = arith.addf %36, %41 : vector<128x128xf32>
    %c0_53 = arith.constant 0 : index
    %c1_54 = arith.constant 1 : index
    %c2_55 = arith.constant 2 : index
    %c0_56 = arith.constant 0 : index
    %43 = vector.load %arg10[%c0_53, %c1_54, %c2_55, %c0_56] : memref<2x10x10x128xbf16, #tpu.memory_space<vmem>>, vector<2x8x8x128xbf16>
    %44 = vector.shape_cast %43 : vector<2x8x8x128xbf16> to vector<128x128xbf16>
    %c5 = arith.constant 5 : index
    %c0_57 = arith.constant 0 : index
    %c0_58 = arith.constant 0 : index
    %45 = vector.load %arg4[%c5, %c0_57, %c0_58] : memref<9x128x128xbf16, #tpu.memory_space<vmem>>, vector<1x128x128xbf16>
    %46 = vector.shape_cast %45 : vector<1x128x128xbf16> to vector<128x128xbf16>
    %cst_59 = arith.constant dense<0.000000e+00> : vector<128x128xf32>
    %47 = tpu.matmul %44, %46, %cst_59 {dimension_numbers = #tpu.dot_dimension_numbers<[1], [0], [0], [1], [0, 0, 1, 1], [], []>} : vector<128x128xbf16>, vector<128x128xbf16>, vector<128x128xf32> -> vector<128x128xf32>
    %48 = arith.addf %42, %47 : vector<128x128xf32>
    %c0_60 = arith.constant 0 : index
    %c2_61 = arith.constant 2 : index
    %c0_62 = arith.constant 0 : index
    %c0_63 = arith.constant 0 : index
    %49 = vector.load %arg10[%c0_60, %c2_61, %c0_62, %c0_63] : memref<2x10x10x128xbf16, #tpu.memory_space<vmem>>, vector<2x8x8x128xbf16>
    %50 = vector.shape_cast %49 : vector<2x8x8x128xbf16> to vector<128x128xbf16>
    %c6 = arith.constant 6 : index
    %c0_64 = arith.constant 0 : index
    %c0_65 = arith.constant 0 : index
    %51 = vector.load %arg4[%c6, %c0_64, %c0_65] : memref<9x128x128xbf16, #tpu.memory_space<vmem>>, vector<1x128x128xbf16>
    %52 = vector.shape_cast %51 : vector<1x128x128xbf16> to vector<128x128xbf16>
    %cst_66 = arith.constant dense<0.000000e+00> : vector<128x128xf32>
    %53 = tpu.matmul %50, %52, %cst_66 {dimension_numbers = #tpu.dot_dimension_numbers<[1], [0], [0], [1], [0, 0, 1, 1], [], []>} : vector<128x128xbf16>, vector<128x128xbf16>, vector<128x128xf32> -> vector<128x128xf32>
    %54 = arith.addf %48, %53 : vector<128x128xf32>
    %c0_67 = arith.constant 0 : index
    %c2_68 = arith.constant 2 : index
    %c1_69 = arith.constant 1 : index
    %c0_70 = arith.constant 0 : index
    %55 = vector.load %arg10[%c0_67, %c2_68, %c1_69, %c0_70] : memref<2x10x10x128xbf16, #tpu.memory_space<vmem>>, vector<2x8x8x128xbf16>
    %56 = vector.shape_cast %55 : vector<2x8x8x128xbf16> to vector<128x128xbf16>
    %c7 = arith.constant 7 : index
    %c0_71 = arith.constant 0 : index
    %c0_72 = arith.constant 0 : index
    %57 = vector.load %arg4[%c7, %c0_71, %c0_72] : memref<9x128x128xbf16, #tpu.memory_space<vmem>>, vector<1x128x128xbf16>
    %58 = vector.shape_cast %57 : vector<1x128x128xbf16> to vector<128x128xbf16>
    %cst_73 = arith.constant dense<0.000000e+00> : vector<128x128xf32>
    %59 = tpu.matmul %56, %58, %cst_73 {dimension_numbers = #tpu.dot_dimension_numbers<[1], [0], [0], [1], [0, 0, 1, 1], [], []>} : vector<128x128xbf16>, vector<128x128xbf16>, vector<128x128xf32> -> vector<128x128xf32>
    %60 = arith.addf %54, %59 : vector<128x128xf32>
    %c0_74 = arith.constant 0 : index
    %c2_75 = arith.constant 2 : index
    %c2_76 = arith.constant 2 : index
    %c0_77 = arith.constant 0 : index
    %61 = vector.load %arg10[%c0_74, %c2_75, %c2_76, %c0_77] : memref<2x10x10x128xbf16, #tpu.memory_space<vmem>>, vector<2x8x8x128xbf16>
    %62 = vector.shape_cast %61 : vector<2x8x8x128xbf16> to vector<128x128xbf16>
    %c8 = arith.constant 8 : index
    %c0_78 = arith.constant 0 : index
    %c0_79 = arith.constant 0 : index
    %63 = vector.load %arg4[%c8, %c0_78, %c0_79] : memref<9x128x128xbf16, #tpu.memory_space<vmem>>, vector<1x128x128xbf16>
    %64 = vector.shape_cast %63 : vector<1x128x128xbf16> to vector<128x128xbf16>
    %cst_80 = arith.constant dense<0.000000e+00> : vector<128x128xf32>
    %65 = tpu.matmul %62, %64, %cst_80 {dimension_numbers = #tpu.dot_dimension_numbers<[1], [0], [0], [1], [0, 0, 1, 1], [], []>} : vector<128x128xbf16>, vector<128x128xbf16>, vector<128x128xf32> -> vector<128x128xf32>
    %66 = arith.addf %60, %65 : vector<128x128xf32>
    %c0_81 = arith.constant 0 : index
    %c0_82 = arith.constant 0 : index
    %67 = vector.load %arg5[%c0_81, %c0_82] : memref<1x128xf32, #tpu.memory_space<vmem>>, vector<1x128xf32>
    %68 = vector.broadcast %67 : vector<1x128xf32> to vector<128x128xf32>
    %69 = arith.addf %66, %68 : vector<128x128xf32>
    %cst_83 = arith.constant 0.000000e+00 : f32
    %70 = vector.broadcast %cst_83 : f32 to vector<128x128xf32>
    %71 = arith.maximumf %69, %70 : vector<128x128xf32>
    %72 = arith.truncf %71 : vector<128x128xf32> to vector<128x128xbf16>
    %c0_84 = arith.constant 0 : index
    %c0_85 = arith.constant 0 : index
    %73 = vector.load %arg6[%c0_84, %c0_85] : memref<128x128xbf16, #tpu.memory_space<vmem>>, vector<128x128xbf16>
    %cst_86 = arith.constant dense<0.000000e+00> : vector<128x128xf32>
    %74 = tpu.matmul %72, %73, %cst_86 {dimension_numbers = #tpu.dot_dimension_numbers<[1], [0], [0], [1], [0, 0, 1, 1], [], []>} : vector<128x128xbf16>, vector<128x128xbf16>, vector<128x128xf32> -> vector<128x128xf32>
    %c0_87 = arith.constant 0 : index
    %c0_88 = arith.constant 0 : index
    %75 = vector.load %arg7[%c0_87, %c0_88] : memref<1x128xf32, #tpu.memory_space<vmem>>, vector<1x128xf32>
    %76 = vector.broadcast %75 : vector<1x128xf32> to vector<128x128xf32>
    %77 = arith.addf %74, %76 : vector<128x128xf32>
    %c0_89 = arith.constant 0 : index
    %c0_90 = arith.constant 0 : index
    %78 = vector.load %arg8[%c0_89, %c0_90] : memref<64x128xbf16, #tpu.memory_space<vmem>>, vector<64x128xbf16>
    %cst_91 = arith.constant dense<0.000000e+00> : vector<128x128xf32>
    %79 = tpu.matmul %1, %78, %cst_91 {dimension_numbers = #tpu.dot_dimension_numbers<[1], [0], [0], [1], [0, 0, 1, 1], [], []>} : vector<128x64xbf16>, vector<64x128xbf16>, vector<128x128xf32> -> vector<128x128xf32>
    %80 = arith.addf %77, %79 : vector<128x128xf32>
    %cst_92 = arith.constant 0.000000e+00 : f32
    %81 = vector.broadcast %cst_92 : f32 to vector<128x128xf32>
    %82 = arith.maximumf %80, %81 : vector<128x128xf32>
    %83 = vector.shape_cast %82 : vector<128x128xf32> to vector<2x8x8x128xf32>
    %84 = arith.truncf %83 : vector<2x8x8x128xf32> to vector<2x8x8x128xbf16>
    %c0_93 = arith.constant 0 : index
    %c0_94 = arith.constant 0 : index
    %c0_95 = arith.constant 0 : index
    %c0_96 = arith.constant 0 : index
    %85 = vector.load %arg9[%c0_93, %c0_94, %c0_95, %c0_96] : memref<2x8x8x128xbf16, #tpu.memory_space<vmem>>, vector<2x8x8x128xbf16>
    tpu.vector_store %arg9[%c0_93, %c0_94, %c0_95, %c0_96], %84 {strides = array<i32>} : memref<2x8x8x128xbf16, #tpu.memory_space<vmem>>, vector<2x8x8x128xbf16>,
    return
  }
  func.func @transform_0(%arg0: i32) -> (i32, i32, i32, i32) {
    %c0_i32 = arith.constant 0 : i32
    %c0_i32_0 = arith.constant 0 : i32
    %c0_i32_1 = arith.constant 0 : i32
    %c0_i32_2 = arith.constant 0 : i32
    return %arg0, %c0_i32, %c0_i32_0, %c0_i32_1 : i32, i32, i32, i32
  }
  func.func @transform_1(%arg0: i32) -> (i32, i32) {
    %c0_i32 = arith.constant 0 : i32
    %c0_i32_0 = arith.constant 0 : i32
    %c0_i32_1 = arith.constant 0 : i32
    return %c0_i32, %c0_i32_0 : i32, i32
  }
  func.func @transform_2(%arg0: i32) -> (i32, i32) {
    %c0_i32 = arith.constant 0 : i32
    %c0_i32_0 = arith.constant 0 : i32
    %c0_i32_1 = arith.constant 0 : i32
    return %c0_i32, %c0_i32_0 : i32, i32
  }
  func.func @transform_3(%arg0: i32) -> (i32, i32, i32) {
    %c0_i32 = arith.constant 0 : i32
    %c0_i32_0 = arith.constant 0 : i32
    %c0_i32_1 = arith.constant 0 : i32
    %c0_i32_2 = arith.constant 0 : i32
    return %c0_i32, %c0_i32_0, %c0_i32_1 : i32, i32, i32
  }
  func.func @transform_4(%arg0: i32) -> (i32, i32) {
    %c0_i32 = arith.constant 0 : i32
    %c0_i32_0 = arith.constant 0 : i32
    %c0_i32_1 = arith.constant 0 : i32
    return %c0_i32, %c0_i32_0 : i32, i32
  }
  func.func @transform_5(%arg0: i32) -> (i32, i32) {
    %c0_i32 = arith.constant 0 : i32
    %c0_i32_0 = arith.constant 0 : i32
    %c0_i32_1 = arith.constant 0 : i32
    return %c0_i32, %c0_i32_0 : i32, i32
  }
  func.func @transform_6(%arg0: i32) -> (i32, i32) {
    %c0_i32 = arith.constant 0 : i32
    %c0_i32_0 = arith.constant 0 : i32
    %c0_i32_1 = arith.constant 0 : i32
    return %c0_i32, %c0_i32_0 : i32, i32
  }
  func.func @transform_7(%arg0: i32) -> (i32, i32) {
    %c0_i32 = arith.constant 0 : i32
    %c0_i32_0 = arith.constant 0 : i32
    %c0_i32_1 = arith.constant 0 : i32
    return %c0_i32, %c0_i32_0 : i32, i32
  }
  func.func @transform_8(%arg0: i32) -> (i32, i32, i32, i32) {
    %c0_i32 = arith.constant 0 : i32
    %c0_i32_0 = arith.constant 0 : i32
    %c0_i32_1 = arith.constant 0 : i32
    %c0_i32_2 = arith.constant 0 : i32
    return %arg0, %c0_i32, %c0_i32_0, %c0_i32_1 : i32, i32, i32, i32
  }
}

</mosaic_0001>

<bundles_post_ra>
// kernel: _lambda_.2
= control target key start
LH: loop header
LB: loop body
LE: loop exit
PB: predicated region body
PF: predicated region fallthrough
CT: control target
= control target key end

     0   :  { %vm122_vm0 = vcmask 523264   ;;  %v4315_v20 = vmov 0   ;;  %vm429_vm1 = vcmask 1043456   ;;  %vm430_vm2 = vsmask.f32 7938  ;;  %s5411_s1 = inlined_call_operand.vmem [shape: bf16[64,128], index: 1, kind: input, shape index: {}]   ;;  %s5412_s2 = inlined_call_operand.vmem [shape: f32[1,128], index: 2, kind: input, shape index: {}]   ;;  %s5413_s0 = inlined_call_operand.vmem [shape: bf16[2,8,8,64], index: 0, kind: input, shape index: {}]   ;;  %s5414_s3 = inlined_call_operand.vmem [shape: bf16[9,128,128], index: 3, kind: input, shape index: {}]   ;;  %s5415_s5 = inlined_call_operand.vmem [shape: bf16[128,128], index: 5, kind: input, shape index: {}]   ;;  %s5416_s7 = inlined_call_operand.vmem [shape: bf16[64,128], index: 7, kind: input, shape index: {}]   ;;  %s5417_s4 = inlined_call_operand.vmem [shape: f32[1,128], index: 4, kind: input, shape index: {}]   ;;  %s5418_s6 = inlined_call_operand.vmem [shape: f32[1,128], index: 6, kind: input, shape index: {}]   ;;  %s5419_s8 = inlined_call_operand.vmem [shape: bf16[2,8,8,128], index: 8, kind: output, shape index: {}]  }
   0x1   :  { %v4140_v0 = vld [vmem:[%s5411_s1 + $0x18] sm:$0xff]  ;;  %v4139_v1 = vld [vmem:[%s5411_s1 + $0x10] sm:$0xff]  ;;  %v4138_v2 = vld [vmem:[%s5411_s1 + $0x8] sm:$0xff]  ;;  %230 = vst [vmem:[#allocation2 + $0x8] sm:$0xf] %v4315_v20  ;;  %vm435_vm3 = vcmask 1040384  }
   0x2   :  { %151 = vmatpush.bf16.msra.mxu0 %v4140_v0  ;;  %v4137_v3 = vld [vmem:[%s5411_s1] sm:$0xff]  ;;  %v4130_v5 = vld [vmem:[%s5413_s0 + $0x8] sm:$0xff]  ;;  %v4131_v6 = vld [vmem:[%s5413_s0 + $0x10] sm:$0xff]  ;;  %231 = vst [vmem:[#allocation2 + $0xc] sm:$0x1] %v4315_v20  ;;  %vm1145_vm7 = vcmask 1042432  }
   0x3   :  { %v4129_v4 = vld [vmem:[%s5413_s0] sm:$0xff]  ;;  %v4132_v7 = vld [vmem:[%s5413_s0 + $0x18] sm:$0xff]  ;;  %v4134_v9 = vld [vmem:[%s5413_s0 + $0x28] sm:$0xff]  ;;  %228 = vst [vmem:[#allocation2] sm:$0xf] %v4315_v20  ;;  %vm1146_vm8 = vcmask 1046532  }
   0x4   :  { %v4133_v8 = vld [vmem:[%s5413_s0 + $0x20] sm:$0xff]  ;;  %v4156_v10 = vld [vmem:[%s5414_s3 + $0x38] sm:$0xff]  ;;  %v4155_v12 = vld [vmem:[%s5414_s3 + $0x30] sm:$0xff]  ;;  %229 = vst [vmem:[#allocation2 + $0x4] sm:$0x1] %v4315_v20 }
   0x5   :  { %v4172_v11 = vld [vmem:[%s5414_s3 + $0xb8] sm:$0xff]  ;;  %1048 = vmatpush.bf16.msra.mxu2 %v4156_v10  ;;  %v4135_v13 = vld [vmem:[%s5413_s0 + $0x30] sm:$0xff]  ;;  %v4154_v14 = vld [vmem:[%s5414_s3 + $0x28] sm:$0xff]  ;;  %232 = vst [vmem:[#allocation2 + $0x10] sm:$0xf] %v4315_v20 }
   0x6   :  { %152 = vmatpush.bf16.msra.mxu0 %v4139_v1  ;;  %1309 = vmatpush.bf16.msra.mxu3 %v4172_v11  ;;  %v4188_v15 = vld [vmem:[%s5414_s3 + $0xf8] sm:$0xff]  ;;  %v4171_v16 = vld [vmem:[%s5414_s3 + $0xb0] sm:$0xff]  ;;  %v4153_v18 = vld [vmem:[%s5414_s3 + $0x20] sm:$0xff]  ;;  %233 = vst [vmem:[#allocation2 + $0x14] sm:$0x1] %v4315_v20 }
   0x7   :  { %v4164_v17 = vld [vmem:[%s5414_s3 + $0x78] sm:$0xff]  ;;  %v4187_v19 = vld [vmem:[%s5414_s3 + $0xf0] sm:$0xff]  ;;  %v4170_v21 = vld [vmem:[%s5414_s3 + $0xa8] sm:$0xff]  ;;  %234 = vst [vmem:[#allocation2 + $0x18] sm:$0xf] %v4315_v20 }
   0x8   :  { %903 = vmatpush.bf16.msra.mxu1 %v4164_v17  ;;  %v4163_v22 = vld [vmem:[%s5414_s3 + $0x70] sm:$0xff]  ;;  %v4152_v23 = vld [vmem:[%s5414_s3 + $0x18] sm:$0xff]  ;;  %v4186_v24 = vld [vmem:[%s5414_s3 + $0xe8] sm:$0xff]  ;;  %235 = vst [vmem:[#allocation2 + $0x1c] sm:$0x1] %v4315_v20 }
   0x9   :  { %1049 = vmatpush.bf16.msra.mxu2 %v4155_v12  ;;  %v4169_v25 = vld [vmem:[%s5414_s3 + $0xa0] sm:$0xff]  ;;  %v4162_v26 = vld [vmem:[%s5414_s3 + $0x68] sm:$0xff]  ;;  %v4151_v27 = vld [vmem:[%s5414_s3 + $0x10] sm:$0xff]  ;;  %236 = vst [vmem:[#allocation2 + $0x20] sm:$0xf] %v4315_v20 }
   0xa   :  { %153 = vmatpush.bf16.msra.mxu0 %v4138_v2  ;;  %1310 = vmatpush.bf16.msra.mxu3 %v4171_v16  ;;  %v4185_v28 = vld [vmem:[%s5414_s3 + $0xe0] sm:$0xff]  ;;  %v4168_v29 = vld [vmem:[%s5414_s3 + $0x98] sm:$0xff]  ;;  %237 = vst [vmem:[#allocation2 + $0x24] sm:$0x1] %v4315_v20  ;;  %v4150_v32 = vld [vmem:[%s5414_s3 + $0x8] sm:$0xff] }
   0xb   :  { %v4136_v30 = vld [vmem:[%s5413_s0 + $0x38] sm:$0xff]  ;;  %v4161_v31 = vld [vmem:[%s5414_s3 + $0x60] sm:$0xff]  ;;  %238 = vst [vmem:[#allocation2 + $0x28] sm:$0xf] %v4315_v20  ;;  %v4167_v34 = vld [vmem:[%s5414_s3 + $0x90] sm:$0xff] }
   0xc   :  { %904 = vmatpush.bf16.msra.mxu1 %v4163_v22  ;;  %v4184_v33 = vld [vmem:[%s5414_s3 + $0xd8] sm:$0xff]  ;;  %239 = vst [vmem:[#allocation2 + $0x2c] sm:$0x1] %v4315_v20  ;;  %v4149_v36 = vld [vmem:[%s5414_s3] sm:$0xff]  ;;  %v4183_v37 = vld [vmem:[%s5414_s3 + $0xd0] sm:$0xff] }
   0xd   :  { %1050 = vmatpush.bf16.msra.mxu2 %v4154_v14  ;;  %240 = vst [vmem:[#allocation2 + $0x30] sm:$0xf] %v4315_v20  ;;  %v4160_v35 = vld [vmem:[%s5414_s3 + $0x58] sm:$0xff]  ;;  %v4166_v38 = vld [vmem:[%s5414_s3 + $0x88] sm:$0xff]  ;;  %v4159_v39 = vld [vmem:[%s5414_s3 + $0x50] sm:$0xff] }
   0xe   :  { %154 = vmatpush.bf16.msra.mxu0 %v4137_v3  ;;  %1311 = vmatpush.bf16.msra.mxu3 %v4170_v21  ;;  %241 = vst [vmem:[#allocation2 + $0x34] sm:$0x1] %v4315_v20  ;;  %v4182_v40 = vld [vmem:[%s5414_s3 + $0xc8] sm:$0xff]  ;;  %v4165_v41 = vld [vmem:[%s5414_s3 + $0x80] sm:$0xff]  ;;  %vm436_vm4 = vsmask.f32 256  ;;  %vm4542_vm5 = vmand %vm429_vm1, %vm430_vm2 }
   0xf   :  { %242 = vst [vmem:[#allocation2 + $0x38] sm:$0xf] %v4315_v20  ;;  %v4158_v42 = vld [vmem:[%s5414_s3 + $0x48] sm:$0xff]  ;;  %v4181_v43 = vld [vmem:[%s5414_s3 + $0xc0] sm:$0xff]  ;;  %vm4548_vm6 = vmand %vm435_vm3, %vm436_vm4  ;;  %vm579_vm10 = vsmask.f32 3328 }
  0x10   :  { %905 = vmatpush.bf16.msra.mxu1 %v4162_v26  ;;  %243 = vst [vmem:[#allocation2 + $0x3c] sm:$0x1] %v4315_v20  ;;  %v4524_v44 = vld [vmem:[%s5412_s2] ss:$0 sm:$0xff]  ;;  %v432_v57 = vld [vmem:[#allocation2 + $0x8] sm:$0xf]  ;;  %vm4564_vm9 = vmor %vm1145_vm7, %vm1146_vm8 }
  0x11   :  { %3505 = vmatmul.msk.bf16.vlgmr.msra.gmra.mxu0 %vm122_vm0, %v4129_v4  ;;  %1051 = vmatpush.bf16.msra.mxu2 %v4153_v18  ;;  %244 = vst [vmem:[#allocation2 + $0x40] sm:$0xf] %v4315_v20  ;;  %v4157_v45 = vld [vmem:[%s5414_s3 + $0x40] sm:$0xff]  ;;  %v438_v59 = vld [vmem:[#allocation2 + $0xc] sm:$0x1] }
  0x12   :  { %1503 = vmatpush.bf16.msrb.mxu0 %v4188_v15  ;;  %1312 = vmatpush.bf16.msra.mxu3 %v4169_v25  ;;  %245 = vst [vmem:[#allocation2 + $0x44] sm:$0x1] %v4315_v20  ;;  %v531_v56 = vld [vmem:[#allocation2] sm:$0xf]  ;;  %v563_v4 = vld [vmem:[#allocation2 + $0x4] sm:$0x1] }
  0x13   :  { %246 = vst [vmem:[#allocation2 + $0x48] sm:$0xf] %v4315_v20  ;;  %v583_v63 = vshrl.u32 %v531_v56, 16  ;;  %v586_v0 = vshll.u32 %v531_v56, 16  ;;  %v1150_v10 = vrot.slane %v563_v4, 5  ;;  %v592_v25 = vshll.u32 %v563_v4, 16 }
  0x14   :  { %906 = vmatpush.bf16.msra.mxu1 %v4161_v31  ;;  %247 = vst [vmem:[#allocation2 + $0x4c] sm:$0x1] %v4315_v20  ;;  %v441_v17 = vld [vmem:[#allocation2 + $0x10] sm:$0xf]  ;;  %v444_v18 = vld [vmem:[#allocation2 + $0x14] sm:$0x1] }
  0x15   :  { %1052 = vmatpush.bf16.msra.mxu2 %v4152_v23  ;;  %248 = vst [vmem:[#allocation2 + $0x50] sm:$0xf] %v4315_v20  ;;  %v585_v11 = vrot.slane %v583_v63, 4  ;;  %v588_v12 = vrot.slane %v586_v0, 5  ;;  %v3563_v22 = vld [vmem:[#allocation2] sm:$0xf] }
  0x16   :  { %1504 = vmatpush.bf16.msrb.mxu0 %v4187_v19  ;;  %1313 = vmatpush.bf16.msra.mxu3 %v4168_v29  ;;  %249 = vst [vmem:[#allocation2 + $0x54] sm:$0x1] %v4315_v20  ;;  %vm580_vm11 = vsmask.f32 7440 }
  0x17   :  { %250 = vst [vmem:[#allocation2 + $0x58] sm:$0xf] %v4315_v20  ;;  %vm4579_vm12 = vmor %vm579_vm10, %vm580_vm11 }
  0x18   :  { %907 = vmatpush.bf16.msra.mxu1 %v4160_v35  ;;  %251 = vst [vmem:[#allocation2 + $0x5c] sm:$0x1] %v4315_v20 }
  0x19   :  { %1053 = vmatpush.bf16.msra.mxu2 %v4151_v27  ;;  %252 = vst [vmem:[#allocation2 + $0x60] sm:$0xf] %v4315_v20 }
  0x1a   :  { %1505 = vmatpush.bf16.msrb.mxu0 %v4186_v24  ;;  %1314 = vmatpush.bf16.msra.mxu3 %v4167_v34  ;;  %253 = vst [vmem:[#allocation2 + $0x64] sm:$0x1] %v4315_v20  ;;  %v589_v24 = vor.u32 %v588_v12, %v585_v11 }
  0x1b   :  { %254 = vst [vmem:[#allocation2 + $0x68] sm:$0xf] %v4315_v20 }
  0x1c   :  { %908 = vmatpush.bf16.msra.mxu1 %v4159_v39  ;;  %255 = vst [vmem:[#allocation2 + $0x6c] sm:$0x1] %v4315_v20 }
  0x1d   :  { %1054 = vmatpush.bf16.msra.mxu2 %v4150_v32  ;;  %256 = vst [vmem:[#allocation2 + $0x70] sm:$0xf] %v4315_v20 }
  0x1e   :  { %1506 = vmatpush.bf16.msrb.mxu0 %v4185_v28  ;;  %1315 = vmatpush.bf16.msra.mxu3 %v4166_v38  ;;  %257 = vst [vmem:[#allocation2 + $0x74] sm:$0x1] %v4315_v20 }
  0x1f   :  { %258 = vst [vmem:[#allocation2 + $0x78] sm:$0xf] %v4315_v20 }
  0x20   :  { %909 = vmatpush.bf16.msra.mxu1 %v4158_v42  ;;  %259 = vst [vmem:[#allocation2 + $0x7c] sm:$0x1] %v4315_v20 }
  0x21   :  { %3506 = vmatmul.msk.bf16.gmra.mxu0 %vm122_vm0, %v4130_v5  ;;  %1055 = vmatpush.bf16.msra.mxu2 %v4149_v36  ;;  %260 = vst [vmem:[#allocation2 + $0x80] sm:$0xf] %v4315_v20  ;;  %v1097_v5 = vld [vmem:[#allocation2] sm:$0xe] }
  0x22   :  { %1507 = vmatpush.bf16.msrb.mxu0 %v4184_v33  ;;  %1316 = vmatpush.bf16.msra.mxu3 %v4165_v41  ;;  %261 = vst [vmem:[#allocation2 + $0x84] sm:$0x1] %v4315_v20  ;;  %v594_v41 = vrot.slane %v592_v25, 5 }
  0x23   :  { %262 = vst [vmem:[#allocation2 + $0x88] sm:$0xf] %v4315_v20 }
  0x24   :  { %910 = vmatpush.bf16.msra.mxu1 %v4157_v45  ;;  %263 = vst [vmem:[#allocation2 + $0x8c] sm:$0x1] %v4315_v20 }
  0x25   :  { %264 = vst [vmem:[#allocation2 + $0x90] sm:$0xf] %v4315_v20 }
  0x26   :  { %1508 = vmatpush.bf16.msrb.mxu0 %v4183_v37  ;;  %265 = vst [vmem:[#allocation2 + $0x94] sm:$0x1] %v4315_v20 }
  0x27   :  { %266 = vst [vmem:[#allocation2 + $0x98] sm:$0xf] %v4315_v20 }
  0x28   :  { %267 = vst [vmem:[#allocation2 + $0x9c] sm:$0x1] %v4315_v20 }
  0x2a   :  { %1509 = vmatpush.bf16.msrb.mxu0 %v4182_v40  ;;  %v590_v40 = vrot.slane %v589_v24, 4 }
  0x2e   :  { %1510 = vmatpush.bf16.msrb.mxu0 %v4181_v43 }
  0x31   :  { %3507 = vmatmul.msk.bf16.gmra.mxu0 %vm122_vm0, %v4131_v6 }
  0x41   :  { %3508 = vmatmul.msk.bf16.gmra.mxu0 %vm122_vm0, %v4132_v7  ;;  %v4196_v7 = vld [vmem:[%s5414_s3 + $0x138] sm:$0xff] }
  0x42   :  { %1921 = vmatpush.bf16.msrb.mxu1 %v4196_v7 }
  0x51   :  { %3509 = vmatmul.msk.bf16.gmra.mxu0 %vm122_vm0, %v4133_v8 }
  0x61   :  { %3510 = vmatmul.msk.bf16.gmra.mxu0 %vm122_vm0, %v4134_v9  ;;  %v3625_v9 = vrot.slane %v1097_v5, 9 }
  0x63   :  { %v1151_v23 = vsel %vm4564_vm9, %v3625_v9, %v1150_v10 }
  0x64   :  { %v1229_v38 = vunpack.c.l.b16 %v1151_v23 }
  0x71   :  { %3511 = vmatmul.msk.bf16.gmra.mxu0 %vm122_vm0, %v4135_v13 }
  0x81   :  { %3512 = vmatmul.msk.bf16.gmra.mxu0 %vm122_vm0, %v4136_v30 }
  0x8e   :  { %v156_v46 = vpop.f32.mrf.mxu0 }
  0x8f   :  { %v157_v47 = vadd.f32 %v4524_v44, %v156_v46 }
  0x91   :  { %v196_v48 = vmax.f32 %v157_v47, 0.0  ;;  %v447_v47 = vld [vmem:[#allocation2 + $0x18] sm:$0xf] }
  0x93   :  { %v212_v49 = vpack.c.bf16 %v196_v48, %v196_v48  ;;  %v450_v48 = vld [vmem:[#allocation2 + $0x1c] sm:$0x1] }
  0x95   :  { %v269_v50 = vshrl.u32 %v212_v49, 16  ;;  %v272_v53 = vshll.u32 %v212_v49, 16 }
  0x96   :  { %v158_v51 = vpop.f32.mrf.mxu0 }
  0x97   :  { %v271_v52 = vrot.slane %v269_v50, 7  ;;  %v159_v55 = vadd.f32 %v4524_v44, %v158_v51  ;;  %v4248_v50 = vld [vmem:[%s5416_s7 + $0x18] sm:$0xff] }
  0x99   :  { %v274_v60 = vor.u32 %v272_v53, %v271_v52  ;;  %v275_v61 = vrot.slane %v271_v52, 4  ;;  %v197_v62 = vmax.f32 %v159_v55, 0.0 }
  0x9b   :  { %v433_v1 = vsel %vm4542_vm5, %v274_v60, %v432_v57  ;;  %v439_v2 = vsel %vm4548_vm6, %v275_v61, %v438_v59  ;;  %v213_v3 = vpack.c.bf16 %v197_v62, %v197_v62 }
  0x9c   :  { %434 = vst [vmem:[#allocation2 + $0x8] sm:$0xf] %v433_v1 }
  0x9d   :  { %440 = vst [vmem:[#allocation2 + $0xc] sm:$0x1] %v439_v2  ;;  %v277_v6 = vshrl.u32 %v213_v3, 16  ;;  %v280_v14 = vshll.u32 %v213_v3, 16  ;;  %v595_v2 = vsel %vm4579_vm12, %v590_v40, %v594_v41 }
  0x9e   :  { %v161_v8 = vpop.f32.mrf.mxu0  ;;  %v823_v11 = vunpack.c.l.b16 %v595_v2 }
  0x9f   :  { %v279_v13 = vrot.slane %v277_v6, 7  ;;  %v162_v15 = vadd.f32 %v4524_v44, %v161_v8 }
  0xa1   :  { %v282_v19 = vor.u32 %v280_v14, %v279_v13  ;;  %v283_v20 = vrot.slane %v279_v13, 4  ;;  %v198_v21 = vmax.f32 %v162_v15, 0.0  ;;  %v4195_v15 = vld [vmem:[%s5414_s3 + $0x130] sm:$0xff] }
  0xa2   :  { %1922 = vmatpush.bf16.msrb.mxu1 %v4195_v15 }
  0xa3   :  { %v442_v26 = vsel %vm4542_vm5, %v282_v19, %v441_v17  ;;  %v445_v27 = vsel %vm4548_vm6, %v283_v20, %v444_v18  ;;  %v214_v28 = vpack.c.bf16 %v198_v21, %v198_v21  ;;  %v4141_v29 = vld [vmem:[#allocation2 + $0x4] sm:$0xf0]  ;;  %v453_v21 = vld [vmem:[#allocation2 + $0x20] sm:$0xf] }
  0xa4   :  { %v1098_v30 = vld [vmem:[#allocation2 + $0x8] sm:$0xe]  ;;  %443 = vst [vmem:[#allocation2 + $0x10] sm:$0xf] %v442_v26  ;;  %v3564_v31 = vor.u32 %v4141_v29, %v3563_v22  ;;  %v564_v32 = vld [vmem:[#allocation2 + $0xc] sm:$0x1] }
  0xa5   :  { %v3626_v33 = vrot.slane %v1098_v30, 9  ;;  %446 = vst [vmem:[#allocation2 + $0x14] sm:$0x1] %v445_v27  ;;  %v285_v34 = vshrl.u32 %v214_v28, 16  ;;  %v1154_v35 = vrot.slane %v564_v32, 5  ;;  %v288_v36 = vshll.u32 %v214_v28, 16 }
  0xa6   :  { %v163_v37 = vpop.f32.mrf.mxu0  ;;  %1056 = vmatmul.bf16.vlgmr.msra.gmra.mxu2 %v3564_v31  ;;  %v532_v39 = vld [vmem:[#allocation2 + $0x8] sm:$0xf]  ;;  %v606_v52 = vshll.u32 %v564_v32, 16  ;;  %v456_v22 = vld [vmem:[#allocation2 + $0x24] sm:$0x1] }
  0xa7   :  { %v287_v42 = vrot.slane %v285_v34, 7  ;;  %v164_v43 = vadd.f32 %v4524_v44, %v163_v37  ;;  %v1155_v45 = vsel %vm4564_vm9, %v3626_v33, %v1154_v35  ;;  %v597_v46 = vshrl.u32 %v532_v39, 16  ;;  %v3707_v0 = vld [vmem:[#allocation2 + $0x8] sm:$0xf] }
  0xa8   :  { %v1230_v49 = vunpack.c.l.b16 %v1155_v45  ;;  %v600_v51 = vshll.u32 %v532_v39, 16  ;;  %v608_v8 = vrot.slane %v606_v52, 5 }
  0xa9   :  { %v290_v53 = vor.u32 %v288_v36, %v287_v42  ;;  %v291_v55 = vrot.slane %v287_v42, 4  ;;  %v199_v56 = vmax.f32 %v164_v43, 0.0  ;;  %v599_v57 = vrot.slane %v597_v46, 4 }
  0xaa   :  { %v1245_v59 = vpack.c.b16 %v1230_v49, %v1229_v38  ;;  %v602_v60 = vrot.slane %v600_v51, 5 }
  0xab   :  { %v448_v61 = vsel %vm4542_vm5, %v290_v53, %v447_v47  ;;  %v451_v62 = vsel %vm4548_vm6, %v291_v55, %v450_v48  ;;  %v215_v63 = vpack.c.bf16 %v199_v56, %v199_v56  ;;  %v4173_v1 = vld [vmem:[#allocation2 + $0xc] sm:$0xf0]  ;;  %v459_v53 = vld [vmem:[#allocation2 + $0x28] sm:$0xf] }
  0xac   :  { %v1099_v3 = vld [vmem:[#allocation2 + $0x10] sm:$0xe]  ;;  %449 = vst [vmem:[#allocation2 + $0x18] sm:$0xf] %v448_v61  ;;  %1317 = vmatmul.bf16.vlgmr.msra.gmra.mxu3 %v1245_v59  ;;  %v3708_v4 = vor.u32 %v4173_v1, %v3707_v0  ;;  %v603_v5 = vor.u32 %v602_v60, %v599_v57  ;;  %v4589_v6 = vld [vmem:[#allocation2 + $0x14] sm:$0x1] }
  0xad   :  { %452 = vst [vmem:[#allocation2 + $0x1c] sm:$0x1] %v451_v62  ;;  %v293_v7 = vshrl.u32 %v215_v63, 16  ;;  %v3627_v12 = vrot.slane %v1099_v3, 9  ;;  %v1158_v13 = vrot.slane %v4589_v6, 5  ;;  %v296_v18 = vshll.u32 %v215_v63, 16 }
  0xae   :  { %v166_v9 = vpop.f32.mrf.mxu0  ;;  %1511 = vmatmul.bf16.vlgmr.msrb.gmra.mxu0 %v3708_v4  ;;  %v604_v10 = vrot.slane %v603_v5, 4  ;;  %v533_v14 = vld [vmem:[#allocation2 + $0x10] sm:$0xf]  ;;  %v620_v51 = vshll.u32 %v4589_v6, 16  ;;  %v462_v59 = vld [vmem:[#allocation2 + $0x2c] sm:$0x1] }
  0xaf   :  { %v295_v17 = vrot.slane %v293_v7, 7  ;;  %v167_v19 = vadd.f32 %v4524_v44, %v166_v9  ;;  %v611_v20 = vshrl.u32 %v533_v14, 16  ;;  %v614_v24 = vshll.u32 %v533_v14, 16  ;;  %v3567_v36 = vld [vmem:[#allocation2 + $0x10] sm:$0xf] }
  0xb0   :  { %v609_v23 = vsel %vm4579_vm12, %v604_v10, %v608_v8  ;;  %v1159_v29 = vsel %vm4564_vm9, %v3627_v12, %v1158_v13  ;;  %v622_v5 = vrot.slane %v620_v51, 5 }
  0xb1   :  { %v298_v25 = vor.u32 %v296_v18, %v295_v17  ;;  %v299_v26 = vrot.slane %v295_v17, 4  ;;  %v200_v27 = vmax.f32 %v167_v19, 0.0  ;;  %v824_v28 = vunpack.c.l.b16 %v609_v23 }
  0xb2   :  { %v613_v30 = vrot.slane %v611_v20, 4  ;;  %v616_v31 = vrot.slane %v614_v24, 5  ;;  %v1231_v48 = vunpack.c.l.b16 %v1159_v29 }
  0xb3   :  { %v454_v32 = vsel %vm4542_vm5, %v298_v25, %v453_v21  ;;  %v457_v33 = vsel %vm4548_vm6, %v299_v26, %v456_v22  ;;  %v216_v34 = vpack.c.bf16 %v200_v27, %v200_v27  ;;  %v839_v35 = vpack.c.b16 %v824_v28, %v823_v11  ;;  %v4142_v37 = vld [vmem:[#allocation2 + $0x14] sm:$0xf0]  ;;  %v4194_v25 = vld [vmem:[%s5414_s3 + $0x128] sm:$0xff] }
  0xb4   :  { %v1100_v38 = vld [vmem:[#allocation2 + $0x18] sm:$0xe]  ;;  %455 = vst [vmem:[#allocation2 + $0x20] sm:$0xf] %v454_v32  ;;  %v3568_v39 = vor.u32 %v4142_v37, %v3567_v36  ;;  %v566_v40 = vld [vmem:[#allocation2 + $0x1c] sm:$0x1]  ;;  %v617_v42 = vor.u32 %v616_v31, %v613_v30  ;;  %1923 = vmatpush.bf16.msrb.mxu1 %v4194_v25 }
  0xb5   :  { %v3628_v41 = vrot.slane %v1100_v38, 9  ;;  %458 = vst [vmem:[#allocation2 + $0x24] sm:$0x1] %v457_v33  ;;  %v301_v43 = vshrl.u32 %v216_v34, 16  ;;  %911 = vmatmul.bf16.vlgmr.msra.gmra.mxu1 %v839_v35  ;;  %v1162_v45 = vrot.slane %v566_v40, 5  ;;  %v304_v46 = vshll.u32 %v216_v34, 16 }
  0xb6   :  { %v168_v47 = vpop.f32.mrf.mxu0  ;;  %1061 = vmatmul.bf16.gmra.mxu2 %v3568_v39  ;;  %v534_v49 = vld [vmem:[#allocation2 + $0x18] sm:$0xf]  ;;  %v618_v61 = vrot.slane %v617_v42, 4  ;;  %v634_v63 = vshll.u32 %v566_v40, 16  ;;  %v465_v30 = vld [vmem:[#allocation2 + $0x30] sm:$0xf] }
  0xb7   :  { %v303_v52 = vrot.slane %v301_v43, 7  ;;  %v169_v55 = vadd.f32 %v4524_v44, %v168_v47  ;;  %v1163_v56 = vsel %vm4564_vm9, %v3628_v41, %v1162_v45  ;;  %v625_v57 = vshrl.u32 %v534_v49, 16  ;;  %v3711_v10 = vld [vmem:[#allocation2 + $0x18] sm:$0xf]  ;;  %v468_v31 = vld [vmem:[#allocation2 + $0x34] sm:$0x1] }
  0xb8   :  { %v1232_v60 = vunpack.c.l.b16 %v1163_v56  ;;  %v628_v62 = vshll.u32 %v534_v49, 16  ;;  %v623_v18 = vsel %vm4579_vm12, %v618_v61, %v622_v5  ;;  %v636_v19 = vrot.slane %v634_v63, 5  ;;  %v474_v5 = vld [vmem:[#allocation2 + $0x3c] sm:$0x1] }
  0xb9   :  { %v306_v0 = vor.u32 %v304_v46, %v303_v52  ;;  %v307_v1 = vrot.slane %v303_v52, 4  ;;  %v201_v2 = vmax.f32 %v169_v55, 0.0  ;;  %v627_v3 = vrot.slane %v625_v57, 4 }
  0xba   :  { %v1246_v4 = vpack.c.b16 %v1232_v60, %v1231_v48  ;;  %v630_v6 = vrot.slane %v628_v62, 5  ;;  %v825_v33 = vunpack.c.l.b16 %v623_v18 }
  0xbb   :  { %v460_v7 = vsel %vm4542_vm5, %v306_v0, %v459_v53  ;;  %v463_v8 = vsel %vm4548_vm6, %v307_v1, %v462_v59  ;;  %v217_v9 = vpack.c.bf16 %v201_v2, %v201_v2  ;;  %v4174_v11 = vld [vmem:[#allocation2 + $0x1c] sm:$0xf0]  ;;  %v471_v1 = vld [vmem:[#allocation2 + $0x38] sm:$0xf] }
  0xbc   :  { %v1101_v12 = vld [vmem:[#allocation2 + $0x20] sm:$0xe]  ;;  %461 = vst [vmem:[#allocation2 + $0x28] sm:$0xf] %v460_v7  ;;  %1322 = vmatmul.bf16.gmra.mxu3 %v1246_v4  ;;  %v3712_v13 = vor.u32 %v4174_v11, %v3711_v10  ;;  %v631_v14 = vor.u32 %v630_v6, %v627_v3  ;;  %v4612_v15 = vld [vmem:[#allocation2 + $0x24] sm:$0x1] }
  0xbd   :  { %464 = vst [vmem:[#allocation2 + $0x2c] sm:$0x1] %v463_v8  ;;  %v309_v17 = vshrl.u32 %v217_v9, 16  ;;  %v3629_v22 = vrot.slane %v1101_v12, 9  ;;  %v1166_v23 = vrot.slane %v4612_v15, 5  ;;  %v312_v27 = vshll.u32 %v217_v9, 16 }
  0xbe   :  { %v171_v20 = vpop.f32.mrf.mxu0  ;;  %1516 = vmatmul.bf16.gmra.mxu0 %v3712_v13  ;;  %v632_v21 = vrot.slane %v631_v14, 4  ;;  %v535_v24 = vld [vmem:[#allocation2 + $0x20] sm:$0xf]  ;;  %v648_v63 = vshll.u32 %v4612_v15, 16 }
  0xbf   :  { %v311_v26 = vrot.slane %v309_v17, 7  ;;  %v172_v28 = vadd.f32 %v4524_v44, %v171_v20  ;;  %v639_v29 = vshrl.u32 %v535_v24, 16  ;;  %v642_v34 = vshll.u32 %v535_v24, 16  ;;  %v3571_v47 = vld [vmem:[#allocation2 + $0x20] sm:$0xf] }
  0xc0   :  { %v637_v32 = vsel %vm4579_vm12, %v632_v21, %v636_v19  ;;  %v1167_v39 = vsel %vm4564_vm9, %v3629_v22, %v1166_v23  ;;  %v650_v17 = vrot.slane %v648_v63, 5 }
  0xc1   :  { %v314_v35 = vor.u32 %v312_v27, %v311_v26  ;;  %v315_v36 = vrot.slane %v311_v26, 4  ;;  %v202_v37 = vmax.f32 %v172_v28, 0.0  ;;  %v826_v38 = vunpack.c.l.b16 %v637_v32 }
  0xc2   :  { %v641_v40 = vrot.slane %v639_v29, 4  ;;  %v644_v41 = vrot.slane %v642_v34, 5  ;;  %v1233_v61 = vunpack.c.l.b16 %v1167_v39 }
  0xc3   :  { %v466_v42 = vsel %vm4542_vm5, %v314_v35, %v465_v30  ;;  %v469_v43 = vsel %vm4548_vm6, %v315_v36, %v468_v31  ;;  %v218_v45 = vpack.c.bf16 %v202_v37, %v202_v37  ;;  %v840_v46 = vpack.c.b16 %v826_v38, %v825_v33  ;;  %v4143_v48 = vld [vmem:[#allocation2 + $0x24] sm:$0xf0]  ;;  %v4193_v35 = vld [vmem:[%s5414_s3 + $0x120] sm:$0xff] }
  0xc4   :  { %v1102_v49 = vld [vmem:[#allocation2 + $0x28] sm:$0xe]  ;;  %467 = vst [vmem:[#allocation2 + $0x30] sm:$0xf] %v466_v42  ;;  %v3572_v51 = vor.u32 %v4143_v48, %v3571_v47  ;;  %v568_v52 = vld [vmem:[#allocation2 + $0x2c] sm:$0x1]  ;;  %v645_v55 = vor.u32 %v644_v41, %v641_v40  ;;  %1924 = vmatpush.bf16.msrb.mxu1 %v4193_v35 }
  0xc5   :  { %v3630_v53 = vrot.slane %v1102_v49, 9  ;;  %470 = vst [vmem:[#allocation2 + $0x34] sm:$0x1] %v469_v43  ;;  %v317_v56 = vshrl.u32 %v218_v45, 16  ;;  %916 = vmatmul.bf16.gmra.mxu1 %v840_v46  ;;  %v1170_v57 = vrot.slane %v568_v52, 5  ;;  %v320_v59 = vshll.u32 %v218_v45, 16 }
  0xc6   :  { %v173_v60 = vpop.f32.mrf.mxu0  ;;  %1066 = vmatmul.bf16.gmra.mxu2 %v3572_v51  ;;  %v536_v62 = vld [vmem:[#allocation2 + $0x28] sm:$0xf]  ;;  %v646_v7 = vrot.slane %v645_v55, 4  ;;  %v662_v9 = vshll.u32 %v568_v52, 16  ;;  %v477_v40 = vld [vmem:[#allocation2 + $0x40] sm:$0xf] }
  0xc7   :  { %v319_v0 = vrot.slane %v317_v56, 7  ;;  %v174_v2 = vadd.f32 %v4524_v44, %v173_v60  ;;  %v1171_v3 = vsel %vm4564_vm9, %v3630_v53, %v1170_v57  ;;  %v653_v4 = vshrl.u32 %v536_v62, 16  ;;  %v3715_v21 = vld [vmem:[#allocation2 + $0x28] sm:$0xf]  ;;  %v480_v41 = vld [vmem:[#allocation2 + $0x44] sm:$0x1] }
  0xc8   :  { %v1234_v6 = vunpack.c.l.b16 %v1171_v3  ;;  %v656_v8 = vshll.u32 %v536_v62, 16  ;;  %v651_v28 = vsel %vm4579_vm12, %v646_v7, %v650_v17  ;;  %v664_v29 = vrot.slane %v662_v9, 5 }
  0xc9   :  { %v322_v10 = vor.u32 %v320_v59, %v319_v0  ;;  %v323_v11 = vrot.slane %v319_v0, 4  ;;  %v203_v12 = vmax.f32 %v174_v2, 0.0  ;;  %v655_v13 = vrot.slane %v653_v4, 4 }
  0xca   :  { %v1247_v14 = vpack.c.b16 %v1234_v6, %v1233_v61  ;;  %v658_v15 = vrot.slane %v656_v8, 5  ;;  %v827_v43 = vunpack.c.l.b16 %v651_v28 }
  0xcb   :  { %v472_v18 = vsel %vm4542_vm5, %v322_v10, %v471_v1  ;;  %v475_v19 = vsel %vm4548_vm6, %v323_v11, %v474_v5  ;;  %v219_v20 = vpack.c.bf16 %v203_v12, %v203_v12  ;;  %v4175_v22 = vld [vmem:[#allocation2 + $0x2c] sm:$0xf0]  ;;  %v483_v12 = vld [vmem:[#allocation2 + $0x58] sm:$0xf] }
  0xcc   :  { %v1103_v23 = vld [vmem:[#allocation2 + $0x30] sm:$0xe]  ;;  %473 = vst [vmem:[#allocation2 + $0x38] sm:$0xf] %v472_v18  ;;  %1327 = vmatmul.bf16.gmra.mxu3 %v1247_v14  ;;  %v3716_v24 = vor.u32 %v4175_v22, %v3715_v21  ;;  %v659_v25 = vor.u32 %v658_v15, %v655_v13  ;;  %v4637_v26 = vld [vmem:[#allocation2 + $0x34] sm:$0x1] }
  0xcd   :  { %476 = vst [vmem:[#allocation2 + $0x3c] sm:$0x1] %v475_v19  ;;  %v325_v27 = vshrl.u32 %v219_v20, 16  ;;  %v3631_v32 = vrot.slane %v1103_v23, 9  ;;  %v1174_v33 = vrot.slane %v4637_v26, 5  ;;  %v328_v37 = vshll.u32 %v219_v20, 16 }
  0xce   :  { %v176_v30 = vpop.f32.mrf.mxu0  ;;  %1521 = vmatmul.bf16.gmra.mxu0 %v3716_v24  ;;  %v660_v31 = vrot.slane %v659_v25, 4  ;;  %v537_v34 = vld [vmem:[#allocation2 + $0x30] sm:$0xf]  ;;  %v676_v10 = vshll.u32 %v4637_v26, 16  ;;  %v486_v15 = vld [vmem:[#allocation2 + $0x5c] sm:$0x1] }
  0xcf   :  { %v327_v36 = vrot.slane %v325_v27, 7  ;;  %v177_v38 = vadd.f32 %v4524_v44, %v176_v30  ;;  %v667_v39 = vshrl.u32 %v537_v34, 16  ;;  %v670_v45 = vshll.u32 %v537_v34, 16  ;;  %v3575_v60 = vld [vmem:[#allocation2 + $0x30] sm:$0xf] }
  0xd0   :  { %v665_v42 = vsel %vm4579_vm12, %v660_v31, %v664_v29  ;;  %v1175_v51 = vsel %vm4564_vm9, %v3631_v32, %v1174_v33  ;;  %v539_v5 = vld [vmem:[#allocation2 + $0x50] sm:$0xf]  ;;  %v4658_v27 = vld [vmem:[#allocation2 + $0x54] sm:$0x1] }
  0xd1   :  { %v330_v46 = vor.u32 %v328_v37, %v327_v36  ;;  %v331_v47 = vrot.slane %v327_v36, 4  ;;  %v204_v48 = vmax.f32 %v177_v38, 0.0  ;;  %v828_v49 = vunpack.c.l.b16 %v665_v42  ;;  %v1105_v30 = vld [vmem:[#allocation2 + $0x50] sm:$0xe] }
  0xd2   :  { %v669_v52 = vrot.slane %v667_v39, 4  ;;  %v672_v53 = vrot.slane %v670_v45, 5  ;;  %v1235_v8 = vunpack.c.l.b16 %v1175_v51  ;;  %v695_v21 = vshrl.u32 %v539_v5, 16  ;;  %v4192_v45 = vld [vmem:[%s5414_s3 + $0x118] sm:$0xff] }
  0xd3   :  { %v478_v55 = vsel %vm4542_vm5, %v330_v46, %v477_v40  ;;  %v481_v56 = vsel %vm4548_vm6, %v331_v47, %v480_v41  ;;  %v220_v57 = vpack.c.bf16 %v204_v48, %v204_v48  ;;  %v841_v59 = vpack.c.b16 %v828_v49, %v827_v43  ;;  %v4144_v61 = vld [vmem:[#allocation2 + $0x34] sm:$0xf0]  ;;  %1925 = vmatpush.bf16.msrb.mxu1 %v4192_v45 }
  0xd4   :  { %v1104_v62 = vld [vmem:[#allocation2 + $0x38] sm:$0xe]  ;;  %479 = vst [vmem:[#allocation2 + $0x40] sm:$0xf] %v478_v55  ;;  %v3576_v63 = vor.u32 %v4144_v61, %v3575_v60  ;;  %v570_v0 = vld [vmem:[#allocation2 + $0x3c] sm:$0x1]  ;;  %v673_v2 = vor.u32 %v672_v53, %v669_v52 }
  0xd5   :  { %v3632_v1 = vrot.slane %v1104_v62, 9  ;;  %482 = vst [vmem:[#allocation2 + $0x44] sm:$0x1] %v481_v56  ;;  %v333_v3 = vshrl.u32 %v220_v57, 16  ;;  %921 = vmatmul.bf16.gmra.mxu1 %v841_v59  ;;  %v1178_v4 = vrot.slane %v570_v0, 5  ;;  %v336_v6 = vshll.u32 %v220_v57, 16 }
  0xd6   :  { %v178_v7 = vpop.f32.mrf.mxu0  ;;  %1071 = vmatmul.bf16.gmra.mxu2 %v3576_v63  ;;  %v538_v9 = vld [vmem:[#allocation2 + $0x38] sm:$0xf]  ;;  %v674_v19 = vrot.slane %v673_v2, 4  ;;  %v690_v29 = vshll.u32 %v570_v0, 16  ;;  %v698_v31 = vshll.u32 %v539_v5, 16  ;;  %v678_v37 = vrot.slane %v676_v10, 5 }
  0xd7   :  { %v335_v11 = vrot.slane %v333_v3, 7  ;;  %v179_v13 = vadd.f32 %v4524_v44, %v178_v7  ;;  %v1179_v14 = vsel %vm4564_vm9, %v3632_v1, %v1178_v4  ;;  %v681_v17 = vshrl.u32 %v538_v9, 16  ;;  %v3719_v35 = vld [vmem:[#allocation2 + $0x38] sm:$0xf]  ;;  %v489_v56 = vld [vmem:[#allocation2 + $0x60] sm:$0xf] }
  0xd8   :  { %v1236_v18 = vunpack.c.l.b16 %v1179_v14  ;;  %v684_v20 = vshll.u32 %v538_v9, 16  ;;  %v679_v41 = vsel %vm4579_vm12, %v674_v19, %v678_v37  ;;  %v3633_v42 = vrot.slane %v1105_v30, 9  ;;  %v492_v57 = vld [vmem:[#allocation2 + $0x64] sm:$0x1]  ;;  %v3579_v1 = vld [vmem:[#allocation2 + $0x50] sm:$0xf] }
  0xd9   :  { %v338_v22 = vor.u32 %v336_v6, %v335_v11  ;;  %v339_v23 = vrot.slane %v335_v11, 4  ;;  %v205_v24 = vmax.f32 %v179_v13, 0.0  ;;  %v683_v25 = vrot.slane %v681_v17, 4 }
  0xda   :  { %v1248_v26 = vpack.c.b16 %v1236_v18, %v1235_v8  ;;  %v686_v28 = vrot.slane %v684_v20, 5  ;;  %v1182_v43 = vrot.slane %v4658_v27, 5  ;;  %v692_v48 = vrot.slane %v690_v29, 5 }
  0xdb   :  { %v484_v32 = vsel %vm4542_vm5, %v338_v22, %v483_v12  ;;  %v487_v33 = vsel %vm4548_vm6, %v339_v23, %v486_v15  ;;  %v221_v34 = vpack.c.bf16 %v205_v24, %v205_v24  ;;  %v4176_v36 = vld [vmem:[#allocation2 + $0x3c] sm:$0xf0]  ;;  %v697_v49 = vrot.slane %v695_v21, 4 }
  0xdc   :  { %485 = vst [vmem:[#allocation2 + $0x58] sm:$0xf] %v484_v32  ;;  %1332 = vmatmul.bf16.gmra.mxu3 %v1248_v26  ;;  %v3720_v38 = vor.u32 %v4176_v36, %v3719_v35  ;;  %v687_v39 = vor.u32 %v686_v28, %v683_v25  ;;  %v700_v51 = vrot.slane %v698_v31, 5  ;;  %v829_v60 = vunpack.c.l.b16 %v679_v41  ;;  %v495_v26 = vld [vmem:[#allocation2 + $0x68] sm:$0xf] }
  0xdd   :  { %488 = vst [vmem:[#allocation2 + $0x5c] sm:$0x1] %v487_v33  ;;  %v341_v40 = vshrl.u32 %v221_v34, 16  ;;  %v344_v53 = vshll.u32 %v221_v34, 16  ;;  %v1183_v2 = vsel %vm4564_vm9, %v3633_v42, %v1182_v43  ;;  %v704_v4 = vshll.u32 %v4658_v27, 16 }
  0xde   :  { %v181_v46 = vpop.f32.mrf.mxu0  ;;  %1526 = vmatmul.bf16.gmra.mxu0 %v3720_v38  ;;  %v688_v47 = vrot.slane %v687_v39, 4  ;;  %v701_v3 = vor.u32 %v700_v51, %v697_v49  ;;  %v1237_v19 = vunpack.c.l.b16 %v1183_v2  ;;  %v498_v28 = vld [vmem:[#allocation2 + $0x6c] sm:$0x1]  ;;  %v4204_v38 = vld [vmem:[%s5414_s3 + $0x178] sm:$0xff] }
  0xdf   :  { %v343_v52 = vrot.slane %v341_v40, 7  ;;  %v182_v55 = vadd.f32 %v4524_v44, %v181_v46  ;;  %v706_v22 = vrot.slane %v704_v4, 5  ;;  %2195 = vmatpush.bf16.msrb.mxu2 %v4204_v38  ;;  %v4220_v2 = vld [vmem:[%s5414_s3 + $0x1b8] sm:$0xff] }
  0xe0   :  { %v693_v59 = vsel %vm4579_vm12, %v688_v47, %v692_v48  ;;  %v702_v21 = vrot.slane %v701_v3, 4  ;;  %v504_v3 = vld [vmem:[#allocation2 + $0x74] sm:$0x1]  ;;  %2390 = vmatpush.bf16.msrb.mxu3 %v4220_v2 }
  0xe1   :  { %v346_v61 = vor.u32 %v344_v53, %v343_v52  ;;  %v347_v62 = vrot.slane %v343_v52, 4  ;;  %v206_v63 = vmax.f32 %v182_v55, 0.0  ;;  %v830_v0 = vunpack.c.l.b16 %v693_v59  ;;  %v501_v52 = vld [vmem:[#allocation2 + $0x70] sm:$0xf] }
  0xe2   :  { %v707_v45 = vsel %vm4579_vm12, %v702_v21, %v706_v22 }
  0xe3   :  { %v490_v5 = vsel %vm4542_vm5, %v346_v61, %v489_v56  ;;  %v493_v6 = vsel %vm4548_vm6, %v347_v62, %v492_v57  ;;  %v222_v7 = vpack.c.bf16 %v206_v63, %v206_v63  ;;  %v842_v8 = vpack.c.b16 %v830_v0, %v829_v60  ;;  %v4145_v9 = vld [vmem:[#allocation2 + $0x54] sm:$0xf0]  ;;  %v4191_v60 = vld [vmem:[%s5414_s3 + $0x110] sm:$0xff] }
  0xe4   :  { %v1106_v10 = vld [vmem:[#allocation2 + $0x58] sm:$0xe]  ;;  %491 = vst [vmem:[#allocation2 + $0x60] sm:$0xf] %v490_v5  ;;  %v3580_v11 = vor.u32 %v4145_v9, %v3579_v1  ;;  %v572_v12 = vld [vmem:[#allocation2 + $0x5c] sm:$0x1]  ;;  %v831_v57 = vunpack.c.l.b16 %v707_v45  ;;  %1926 = vmatpush.bf16.msrb.mxu1 %v4191_v60 }
  0xe5   :  { %v3634_v13 = vrot.slane %v1106_v10, 9  ;;  %494 = vst [vmem:[#allocation2 + $0x64] sm:$0x1] %v493_v6  ;;  %v349_v14 = vshrl.u32 %v222_v7, 16  ;;  %926 = vmatmul.bf16.gmra.mxu1 %v842_v8  ;;  %v1186_v17 = vrot.slane %v572_v12, 5  ;;  %v352_v15 = vshll.u32 %v222_v7, 16 }
  0xe6   :  { %v183_v18 = vpop.f32.mrf.mxu0  ;;  %1076 = vmatmul.bf16.gmra.mxu2 %v3580_v11  ;;  %v540_v20 = vld [vmem:[#allocation2 + $0x58] sm:$0xf]  ;;  %v718_v37 = vshll.u32 %v572_v12, 16  ;;  %v4203_v1 = vld [vmem:[%s5414_s3 + $0x170] sm:$0xff]  ;;  %v4218_v45 = vld [vmem:[%s5414_s3 + $0x1a8] sm:$0xff] }
  0xe7   :  { %v351_v23 = vrot.slane %v349_v14, 7  ;;  %v184_v24 = vadd.f32 %v4524_v44, %v183_v18  ;;  %v1187_v25 = vsel %vm4564_vm9, %v3634_v13, %v1186_v17  ;;  %v709_v27 = vshrl.u32 %v540_v20, 16  ;;  %v3723_v42 = vld [vmem:[#allocation2 + $0x58] sm:$0xf]  ;;  %2196 = vmatpush.bf16.msrb.mxu2 %v4203_v1  ;;  %v4202_v17 = vld [vmem:[%s5414_s3 + $0x168] sm:$0xff] }
  0xe8   :  { %v1238_v29 = vunpack.c.l.b16 %v1187_v25  ;;  %v712_v30 = vshll.u32 %v540_v20, 16  ;;  %v720_v56 = vrot.slane %v718_v37, 5  ;;  %v4190_v37 = vld [vmem:[%s5414_s3 + $0x108] sm:$0xff] }
  0xe9   :  { %v354_v31 = vor.u32 %v352_v15, %v351_v23  ;;  %v355_v32 = vrot.slane %v351_v23, 4  ;;  %v207_v33 = vmax.f32 %v184_v24, 0.0  ;;  %v711_v34 = vrot.slane %v709_v27, 4  ;;  %v4228_v15 = vld [vmem:[%s5414_s3 + $0x1f8] sm:$0xff]  ;;  %1927 = vmatpush.bf16.msrb.mxu1 %v4190_v37 }
  0xea   :  { %v1249_v35 = vpack.c.b16 %v1238_v29, %v1237_v19  ;;  %v714_v36 = vrot.slane %v712_v30, 5  ;;  %2808 = vmatpush.bf16.msra.mxu0 %v4228_v15  ;;  %v4219_v29 = vld [vmem:[%s5414_s3 + $0x1b0] sm:$0xff] }
  0xeb   :  { %v496_v39 = vsel %vm4542_vm5, %v354_v31, %v495_v26  ;;  %v499_v40 = vsel %vm4548_vm6, %v355_v32, %v498_v28  ;;  %v223_v41 = vpack.c.bf16 %v207_v33, %v207_v33  ;;  %v4177_v43 = vld [vmem:[#allocation2 + $0x5c] sm:$0xf0]  ;;  %2197 = vmatpush.bf16.msrb.mxu2 %v4202_v17  ;;  %2391 = vmatpush.bf16.msrb.mxu3 %v4219_v29 }
  0xec   :  { %497 = vst [vmem:[#allocation2 + $0x68] sm:$0xf] %v496_v39  ;;  %1337 = vmatmul.bf16.gmra.mxu3 %v1249_v35  ;;  %v3724_v46 = vor.u32 %v4177_v43, %v3723_v42  ;;  %v715_v47 = vor.u32 %v714_v36, %v711_v34  ;;  %v1107_v48 = vld [vmem:[#allocation2 + $0x60] sm:$0xe]  ;;  %v4692_v51 = vld [vmem:[#allocation2 + $0x64] sm:$0x1] }
  0xed   :  { %500 = vst [vmem:[#allocation2 + $0x6c] sm:$0x1] %v499_v40  ;;  %v357_v49 = vshrl.u32 %v223_v41, 16  ;;  %v541_v59 = vld [vmem:[#allocation2 + $0x60] sm:$0xf]  ;;  %v360_v62 = vshll.u32 %v223_v41, 16 }
  0xee   :  { %v186_v53 = vpop.f32.mrf.mxu0  ;;  %1531 = vmatmul.bf16.gmra.mxu0 %v3724_v46  ;;  %v716_v55 = vrot.slane %v715_v47, 4  ;;  %v723_v0 = vshrl.u32 %v541_v59, 16  ;;  %v3635_v5 = vrot.slane %v1107_v48, 9  ;;  %v1190_v6 = vrot.slane %v4692_v51, 5  ;;  %v3583_v22 = vld [vmem:[#allocation2 + $0x60] sm:$0xf] }
  0xef   :  { %v359_v61 = vrot.slane %v357_v49, 7  ;;  %v187_v63 = vadd.f32 %v4524_v44, %v186_v53  ;;  %v726_v7 = vshll.u32 %v541_v59, 16  ;;  %v732_v14 = vshll.u32 %v4692_v51, 16  ;;  %v4201_v42 = vld [vmem:[%s5414_s3 + $0x160] sm:$0xff]  ;;  %v4227_v43 = vld [vmem:[%s5414_s3 + $0x1f0] sm:$0xff]  ;;  %v4226_v59 = vld [vmem:[%s5414_s3 + $0x1e8] sm:$0xff]  ;;  %2392 = vmatpush.bf16.msrb.mxu3 %v4218_v45 }
  0xf0   :  { %v721_v4 = vsel %vm4579_vm12, %v716_v55, %v720_v56  ;;  %v725_v12 = vrot.slane %v723_v0, 4  ;;  %v1191_v31 = vsel %vm4564_vm9, %v3635_v5, %v1190_v6  ;;  %v507_v46 = vld [vmem:[#allocation2 + $0x78] sm:$0xf]  ;;  %v510_v47 = vld [vmem:[#allocation2 + $0x7c] sm:$0x1]  ;;  %2198 = vmatpush.bf16.msrb.mxu2 %v4201_v42  ;;  %2809 = vmatpush.bf16.msra.mxu0 %v4227_v43 }
  0xf1   :  { %v362_v8 = vor.u32 %v360_v62, %v359_v61  ;;  %v363_v9 = vrot.slane %v359_v61, 4  ;;  %v208_v10 = vmax.f32 %v187_v63, 0.0  ;;  %v832_v11 = vunpack.c.l.b16 %v721_v4  ;;  %v4217_v63 = vld [vmem:[%s5414_s3 + $0x1a0] sm:$0xff] }
  0xf2   :  { %v728_v13 = vrot.slane %v726_v7, 5  ;;  %v1239_v48 = vunpack.c.l.b16 %v1191_v31  ;;  %v734_v49 = vrot.slane %v732_v14, 5 }
  0xf3   :  { %v502_v18 = vsel %vm4542_vm5, %v362_v8, %v501_v52  ;;  %v505_v19 = vsel %vm4548_vm6, %v363_v9, %v504_v3  ;;  %v224_v20 = vpack.c.bf16 %v208_v10, %v208_v10  ;;  %v843_v21 = vpack.c.b16 %v832_v11, %v831_v57  ;;  %v4146_v23 = vld [vmem:[#allocation2 + $0x64] sm:$0xf0]  ;;  %v4200_v57 = vld [vmem:[%s5414_s3 + $0x158] sm:$0xff]  ;;  %v4199_v11 = vld [vmem:[%s5414_s3 + $0x150] sm:$0xff]  ;;  %2393 = vmatpush.bf16.msrb.mxu3 %v4217_v63 }
  0xf4   :  { %v1108_v24 = vld [vmem:[#allocation2 + $0x68] sm:$0xe]  ;;  %503 = vst [vmem:[#allocation2 + $0x70] sm:$0xf] %v502_v18  ;;  %v3584_v25 = vor.u32 %v4146_v23, %v3583_v22  ;;  %v4718_v27 = vld [vmem:[#allocation2 + $0x6c] sm:$0x1]  ;;  %v729_v28 = vor.u32 %v728_v13, %v725_v12  ;;  %2199 = vmatpush.bf16.msrb.mxu2 %v4200_v57  ;;  %2810 = vmatpush.bf16.msra.mxu0 %v4226_v59 }
  0xf5   :  { %v3636_v26 = vrot.slane %v1108_v24, 9  ;;  %506 = vst [vmem:[#allocation2 + $0x74] sm:$0x1] %v505_v19  ;;  %v365_v30 = vshrl.u32 %v224_v20, 16  ;;  %931 = vmatmul.bf16.gmra.mxu1 %v843_v21  ;;  %v1194_v32 = vrot.slane %v4718_v27, 5  ;;  %v368_v33 = vshll.u32 %v224_v20, 16 }
  0xf6   :  { %v188_v34 = vpop.f32.mrf.mxu0  ;;  %1081 = vmatmul.bf16.gmra.mxu2 %v3584_v25  ;;  %v542_v35 = vld [vmem:[#allocation2 + $0x68] sm:$0xf]  ;;  %v730_v36 = vrot.slane %v729_v28, 4  ;;  %v746_v62 = vshll.u32 %v4718_v27, 16  ;;  %v4225_v18 = vld [vmem:[%s5414_s3 + $0x1e0] sm:$0xff]  ;;  %v4216_v19 = vld [vmem:[%s5414_s3 + $0x198] sm:$0xff] }
  0xf7   :  { %v367_v38 = vrot.slane %v365_v30, 7  ;;  %v189_v39 = vadd.f32 %v4524_v44, %v188_v34  ;;  %v1195_v40 = vsel %vm4564_vm9, %v3636_v26, %v1194_v32  ;;  %v737_v41 = vshrl.u32 %v542_v35, 16  ;;  %v3727_v3 = vld [vmem:[#allocation2 + $0x68] sm:$0xf]  ;;  %v513_v22 = vld [vmem:[#allocation2 + $0x80] sm:$0xf]  ;;  %2394 = vmatpush.bf16.msrb.mxu3 %v4216_v19 }
  0xf8   :  { %v1240_v44 = vunpack.c.l.b16 %v1195_v40  ;;  %v740_v51 = vshll.u32 %v542_v35, 16  ;;  %v735_v5 = vsel %vm4579_vm12, %v730_v36, %v734_v49  ;;  %v748_v14 = vrot.slane %v746_v62, 5  ;;  %v4300_v23 = vld [vmem:[%s5412_s2] ss:$0 sm:$0xff]  ;;  %v516_v27 = vld [vmem:[#allocation2 + $0x84] sm:$0x1]  ;;  %2200 = vmatpush.bf16.msrb.mxu2 %v4199_v11  ;;  %2811 = vmatpush.bf16.msra.mxu0 %v4225_v18 }
  0xf9   :  { %v370_v52 = vor.u32 %v368_v33, %v367_v38  ;;  %v371_v53 = vrot.slane %v367_v38, 4  ;;  %v209_v55 = vmax.f32 %v189_v39, 0.0  ;;  %v739_v56 = vrot.slane %v737_v41, 4  ;;  %v4198_v35 = vld [vmem:[%s5414_s3 + $0x148] sm:$0xff]  ;;  %v4224_v40 = vld [vmem:[%s5414_s3 + $0x1d8] sm:$0xff]  ;;  %v4189_v63 = vld [vmem:[%s5414_s3 + $0x100] sm:$0xff] }
  0xfa   :  { %v1250_v60 = vpack.c.b16 %v1240_v44, %v1239_v48  ;;  %v742_v61 = vrot.slane %v740_v51, 5  ;;  %v833_v17 = vunpack.c.l.b16 %v735_v5  ;;  %v4777_v36 = vld [vmem:[#allocation2 + $0x8] sm:$0xe]  ;;  %v4215_v48 = vld [vmem:[%s5414_s3 + $0x190] sm:$0xff]  ;;  %1928 = vmatpush.bf16.msrb.mxu1 %v4189_v63 }
  0xfb   :  { %v508_v0 = vsel %vm4542_vm5, %v370_v52, %v507_v46  ;;  %v511_v1 = vsel %vm4548_vm6, %v371_v53, %v510_v47  ;;  %v225_v2 = vpack.c.bf16 %v209_v55, %v209_v55  ;;  %v4178_v4 = vld [vmem:[#allocation2 + $0x6c] sm:$0xf0]  ;;  %v3817_v57 = vrot.slane %v4777_v36, 9  ;;  %2395 = vmatpush.bf16.msrb.mxu3 %v4215_v48  ;;  %v2459_v36 = vld [vmem:[#allocation2 + $0x20] sm:$0xf] }
  0xfc   :  { %509 = vst [vmem:[#allocation2 + $0x78] sm:$0xf] %v508_v0  ;;  %1342 = vmatmul.bf16.gmra.mxu3 %v1250_v60  ;;  %v3728_v6 = vor.u32 %v4178_v4, %v3727_v3  ;;  %v743_v7 = vor.u32 %v742_v61, %v739_v56  ;;  %v1109_v8 = vld [vmem:[#allocation2 + $0x70] sm:$0xe]  ;;  %v4757_v10 = vld [vmem:[#allocation2 + $0x74] sm:$0x1]  ;;  %2201 = vmatpush.bf16.msrb.mxu2 %v4198_v35 }
  0xfd   :  { %512 = vst [vmem:[#allocation2 + $0x7c] sm:$0x1] %v511_v1  ;;  %v373_v9 = vshrl.u32 %v225_v2, 16  ;;  %v543_v15 = vld [vmem:[#allocation2 + $0x70] sm:$0xf]  ;;  %v376_v21 = vshll.u32 %v225_v2, 16  ;;  %2812 = vmatpush.bf16.msra.mxu0 %v4224_v40 }
  0xfe   :  { %v191_v12 = vpop.f32.mrf.mxu0  ;;  %1536 = vmatmul.bf16.gmra.mxu0 %v3728_v6  ;;  %v744_v13 = vrot.slane %v743_v7, 4  ;;  %v751_v25 = vshrl.u32 %v543_v15, 16  ;;  %v3637_v28 = vrot.slane %v1109_v8, 9  ;;  %v1198_v29 = vrot.slane %v4757_v10, 5  ;;  %v3587_v37 = vld [vmem:[#allocation2 + $0x70] sm:$0xf] }
  0xff   :  { %v375_v20 = vrot.slane %v373_v9, 7  ;;  %v192_v24 = vadd.f32 %v4300_v23, %v191_v12  ;;  %v754_v30 = vshll.u32 %v543_v15, 16  ;;  %v760_v62 = vshll.u32 %v4757_v10, 16  ;;  %v4197_v0 = vld [vmem:[%s5414_s3 + $0x140] sm:$0xff]  ;;  %v4223_v5 = vld [vmem:[%s5414_s3 + $0x1d0] sm:$0xff]  ;;  %v4214_v6 = vld [vmem:[%s5414_s3 + $0x188] sm:$0xff] }
 0x100   :  { %v749_v26 = vsel %vm4579_vm12, %v744_v13, %v748_v14  ;;  %v753_v38 = vrot.slane %v751_v25, 4  ;;  %v1199_v55 = vsel %vm4564_vm9, %v3637_v28, %v1198_v29  ;;  %v4810_v7 = vld [vmem:[#allocation2 + $0xc] sm:$0x1]  ;;  %v519_v8 = vld [vmem:[#allocation2 + $0x88] sm:$0xf]  ;;  %2202 = vmatpush.bf16.msrb.mxu2 %v4197_v0  ;;  %2396 = vmatpush.bf16.msrb.mxu3 %v4214_v6 }
 0x101   :  { %v378_v31 = vor.u32 %v376_v21, %v375_v20  ;;  %v379_v32 = vrot.slane %v375_v20, 4  ;;  %v210_v33 = vmax.f32 %v192_v24, 0.0  ;;  %v834_v34 = vunpack.c.l.b16 %v749_v26  ;;  %v522_v9 = vld [vmem:[#allocation2 + $0x8c] sm:$0x1]  ;;  %v4812_v19 = vld [vmem:[#allocation2 + $0x10] sm:$0xe]  ;;  %2813 = vmatpush.bf16.msra.mxu0 %v4223_v5 }
 0x102   :  { %v756_v39 = vrot.slane %v754_v30, 5  ;;  %v1241_v10 = vunpack.c.l.b16 %v1199_v55  ;;  %v4815_v24 = vld [vmem:[#allocation2 + $0x14] sm:$0x1]  ;;  %v762_v29 = vrot.slane %v760_v62, 5  ;;  %v4222_v30 = vld [vmem:[%s5414_s3 + $0x1c8] sm:$0xff]  ;;  %v2036_v35 = vrot.slane %v4810_v7, 5 }
 0x103   :  { %v514_v41 = vsel %vm4542_vm5, %v378_v31, %v513_v22  ;;  %v517_v42 = vsel %vm4548_vm6, %v379_v32, %v516_v27  ;;  %v226_v43 = vpack.c.bf16 %v210_v33, %v210_v33  ;;  %v844_v45 = vpack.c.b16 %v834_v34, %v833_v17  ;;  %v4147_v46 = vld [vmem:[#allocation2 + $0x74] sm:$0xf0]  ;;  %v4213_v31 = vld [vmem:[%s5414_s3 + $0x180] sm:$0xff]  ;;  %v528_v55 = vld [vmem:[#allocation2 + $0x94] sm:$0x1] }
 0x104   :  { %v1110_v47 = vld [vmem:[#allocation2 + $0x78] sm:$0xe]  ;;  %515 = vst [vmem:[#allocation2 + $0x80] sm:$0xf] %v514_v41  ;;  %v3588_v44 = vor.u32 %v4147_v46, %v3587_v37  ;;  %v4789_v49 = vld [vmem:[#allocation2 + $0x7c] sm:$0x1]  ;;  %v757_v52 = vor.u32 %v756_v39, %v753_v38  ;;  %2397 = vmatpush.bf16.msrb.mxu3 %v4213_v31 }
 0x105   :  { %v3638_v51 = vrot.slane %v1110_v47, 9  ;;  %518 = vst [vmem:[#allocation2 + $0x84] sm:$0x1] %v517_v42  ;;  %v381_v53 = vshrl.u32 %v226_v43, 16  ;;  %936 = vmatmul.bf16.gmra.mxu1 %v844_v45  ;;  %v1202_v56 = vrot.slane %v4789_v49, 5  ;;  %v384_v59 = vshll.u32 %v226_v43, 16  ;;  %2814 = vmatpush.bf16.msra.mxu0 %v4222_v30 }
 0x106   :  { %v193_v60 = vpop.f32.mrf.mxu0  ;;  %1086 = vmatmul.bf16.gmra.mxu2 %v3588_v44  ;;  %v544_v61 = vld [vmem:[#allocation2 + $0x78] sm:$0xf]  ;;  %v758_v12 = vrot.slane %v757_v52, 4  ;;  %v3818_v37 = vrot.slane %v4812_v19, 9  ;;  %v2040_v41 = vrot.slane %v4815_v24, 5  ;;  %v4221_v52 = vld [vmem:[%s5414_s3 + $0x1c0] sm:$0xff] }
 0x107   :  { %v383_v1 = vrot.slane %v381_v53, 7  ;;  %v194_v2 = vadd.f32 %v4300_v23, %v193_v60  ;;  %v1203_v3 = vsel %vm4564_vm9, %v3638_v51, %v1202_v56  ;;  %v765_v4 = vshrl.u32 %v544_v61, 16  ;;  %v3731_v21 = vld [vmem:[#allocation2 + $0x78] sm:$0xf]  ;;  %v4834_v42 = vld [vmem:[#allocation2 + $0x10] sm:$0xf] }
 0x108   :  { %v1242_v11 = vunpack.c.l.b16 %v1203_v3  ;;  %v768_v13 = vshll.u32 %v544_v61, 16  ;;  %v774_v23 = vshll.u32 %v4789_v49, 16  ;;  %v763_v39 = vsel %vm4579_vm12, %v758_v12, %v762_v29  ;;  %v2457_v47 = vld [vmem:[#allocation2 + $0x18] sm:$0xf]  ;;  %v525_v53 = vld [vmem:[#allocation2 + $0x90] sm:$0xf]  ;;  %3344 = vmatpush.bf16.msra.mxu3 %v4248_v50 }
 0x109   :  { %v386_v14 = vor.u32 %v384_v59, %v383_v1  ;;  %v387_v17 = vrot.slane %v383_v1, 4  ;;  %v211_v15 = vmax.f32 %v194_v2, 0.0  ;;  %v767_v18 = vrot.slane %v765_v4, 4  ;;  %2815 = vmatpush.bf16.msra.mxu0 %v4221_v52 }
 0x10a   :  { %v1251_v20 = vpack.c.b16 %v1242_v11, %v1241_v10  ;;  %v770_v22 = vrot.slane %v768_v13, 5  ;;  %v776_v45 = vrot.slane %v774_v23, 5  ;;  %v835_v59 = vunpack.c.l.b16 %v763_v39  ;;  %v1568_v39 = vld [vmem:[#allocation2 + $0x8] sm:$0xf] }
 0x10b   :  { %v520_v25 = vsel %vm4542_vm5, %v386_v14, %v519_v8  ;;  %v523_v27 = vsel %vm4548_vm6, %v387_v17, %v522_v9  ;;  %v227_v26 = vpack.c.bf16 %v211_v15, %v211_v15  ;;  %v4179_v28 = vld [vmem:[#allocation2 + $0x7c] sm:$0xf0]  ;;  %v2488_v3 = vshrl.u32 %v4834_v42, 16 }
 0x10c   :  { %521 = vst [vmem:[#allocation2 + $0x88] sm:$0xf] %v520_v25  ;;  %1347 = vmatmul.bf16.gmra.mxu3 %v1251_v20  ;;  %v3732_v32 = vor.u32 %v4179_v28, %v3731_v21  ;;  %v771_v33 = vor.u32 %v770_v22, %v767_v18  ;;  %v1111_v34 = vld [vmem:[#allocation2 + $0x80] sm:$0xe]  ;;  %v4831_v40 = vld [vmem:[#allocation2 + $0x84] sm:$0x1] }
 0x10d   :  { %524 = vst [vmem:[#allocation2 + $0x8c] sm:$0x1] %v523_v27  ;;  %v389_v38 = vshrl.u32 %v227_v26, 16  ;;  %v545_v46 = vld [vmem:[#allocation2 + $0x80] sm:$0xf]  ;;  %v392_v44 = vshll.u32 %v227_v26, 16 }
 0x10e   :  { %1541 = vmatmul.bf16.gmra.mxu0 %v3732_v32  ;;  %v772_v43 = vrot.slane %v771_v33, 4  ;;  %v779_v49 = vshrl.u32 %v545_v46, 16  ;;  %v782_v51 = vshll.u32 %v545_v46, 16  ;;  %v3639_v60 = vrot.slane %v1111_v34, 9  ;;  %v3591_v10 = vld [vmem:[#allocation2 + $0x80] sm:$0xf] }
 0x10f   :  { %v391_v48 = vrot.slane %v389_v38, 7  ;;  %v1206_v61 = vrot.slane %v4831_v40, 5  ;;  %v2502_v4 = vshrl.u32 %v2457_v47, 16  ;;  %v2505_v5 = vshll.u32 %v2457_v47, 16  ;;  %v1570_v20 = vld [vmem:[#allocation2 + $0x10] sm:$0xf] }
 0x110   :  { %v777_v56 = vsel %vm4579_vm12, %v772_v43, %v776_v45  ;;  %v781_v1 = vrot.slane %v779_v49, 4  ;;  %v784_v2 = vrot.slane %v782_v51, 5  ;;  %v2491_v58 = vshll.u32 %v4834_v42, 16  ;;  %v4236_v26 = vld [vmem:[%s5414_s3 + $0x238] sm:$0xff] }
 0x111   :  { %v394_v62 = vor.u32 %v392_v44, %v391_v48  ;;  %v395_v63 = vrot.slane %v391_v48, 4  ;;  %v836_v0 = vunpack.c.l.b16 %v777_v56  ;;  %v1207_v17 = vsel %vm4564_vm9, %v3639_v60, %v1206_v61  ;;  %3082 = vmatpush.bf16.msra.mxu1 %v4236_v26  ;;  %v2458_v44 = vld [vmem:[#allocation2 + $0x1c] sm:$0x1]  ;;  %v4205_v26 = vld [vmem:[#allocation2 + $0x14] sm:$0xf0] }
 0x112   :  { %v785_v18 = vor.u32 %v784_v2, %v781_v1  ;;  %v788_v22 = vshll.u32 %v4831_v40, 16  ;;  %v2504_v27 = vrot.slane %v2502_v4, 4  ;;  %v1243_v29 = vunpack.c.l.b16 %v1207_v17 }
 0x113   :  { %v526_v6 = vsel %vm4542_vm5, %v394_v62, %v525_v53  ;;  %v529_v8 = vsel %vm4548_vm6, %v395_v63, %v528_v55  ;;  %v845_v9 = vpack.c.b16 %v836_v0, %v835_v59  ;;  %v4148_v11 = vld [vmem:[#allocation2 + $0x84] sm:$0xf0]  ;;  %v2507_v31 = vrot.slane %v2505_v5, 5 }
 0x114   :  { %v1112_v12 = vld [vmem:[#allocation2 + $0x88] sm:$0xe]  ;;  %527 = vst [vmem:[#allocation2 + $0x90] sm:$0xf] %v526_v6  ;;  %v3592_v13 = vor.u32 %v4148_v11, %v3591_v10  ;;  %v578_v14 = vld [vmem:[#allocation2 + $0x8c] sm:$0x1]  ;;  %v2041_v40 = vsel %vm4564_vm9, %v3818_v37, %v2040_v41  ;;  %v2037_v61 = vsel %vm4564_vm9, %v3817_v57, %v2036_v35 }
 0x115   :  { %v3640_v15 = vrot.slane %v1112_v12, 9  ;;  %530 = vst [vmem:[#allocation2 + $0x94] sm:$0x1] %v529_v8  ;;  %941 = vmatmul.bf16.gmra.mxu1 %v845_v9  ;;  %v1210_v54 = vrot.slane %v578_v14, 5  ;;  %v546_v21 = vld [vmem:[#allocation2 + $0x88] sm:$0xf]  ;;  %v2508_v53 = vor.u32 %v2507_v31, %v2504_v27  ;;  %v2116_v62 = vunpack.c.l.b16 %v2041_v40 }
 0x116   :  { %1091 = vmatmul.bf16.gmra.mxu2 %v3592_v13  ;;  %v793_v23 = vshrl.u32 %v546_v21, 16  ;;  %v796_v25 = vshll.u32 %v546_v21, 16  ;;  %v802_v30 = vshll.u32 %v578_v14, 16  ;;  %v786_v33 = vrot.slane %v785_v18, 4  ;;  %v3735_v51 = vld [vmem:[#allocation2 + $0x88] sm:$0xf] }
 0x117   :  { %v1211_v28 = vsel %vm4564_vm9, %v3640_v15, %v1210_v54  ;;  %v2490_v42 = vrot.slane %v2488_v3, 4  ;;  %v2493_v43 = vrot.slane %v2491_v58, 5  ;;  %v1615_v45 = vshrl.u32 %v1570_v20, 16  ;;  %v2456_v41 = vld [vmem:[#allocation2 + $0x14] sm:$0x1] }
 0x118   :  { %v1244_v32 = vunpack.c.l.b16 %v1211_v28  ;;  %v795_v34 = vrot.slane %v793_v23, 4  ;;  %v798_v38 = vrot.slane %v796_v25, 5  ;;  %v790_v47 = vrot.slane %v788_v22, 5  ;;  %v2461_v57 = vld [vmem:[#allocation2 + $0x28] sm:$0xf]  ;;  %v4235_v28 = vld [vmem:[%s5414_s3 + $0x230] sm:$0xff] }
 0x119   :  { %v1618_v49 = vshll.u32 %v1570_v20, 16  ;;  %v1601_v55 = vshrl.u32 %v1568_v39, 16  ;;  %v1604_v56 = vshll.u32 %v1568_v39, 16  ;;  %v804_v37 = vrot.slane %v802_v30, 5  ;;  %v4874_v20 = vld [vmem:[#allocation2 + $0x24] sm:$0x1]  ;;  %3083 = vmatpush.bf16.msra.mxu1 %v4235_v28 }
 0x11a   :  { %v1252_v46 = vpack.c.b16 %v1244_v32, %v1243_v29  ;;  %v799_v48 = vor.u32 %v798_v38, %v795_v34  ;;  %v791_v19 = vsel %vm4579_vm12, %v786_v33, %v790_v47  ;;  %v2511_v63 = vshll.u32 %v2458_v44, 16  ;;  %v1989_v23 = vld [vmem:[#allocation2 + $0x20] sm:$0xe]  ;;  %v3899_v29 = vld [vmem:[#allocation2 + $0x10] sm:$0xf] }
 0x11b   :  { %v4180_v52 = vld [vmem:[#allocation2 + $0x8c] sm:$0xf0]  ;;  %v2494_v1 = vor.u32 %v2493_v43, %v2490_v42  ;;  %v1617_v2 = vrot.slane %v1615_v45, 4  ;;  %v1620_v3 = vrot.slane %v1618_v49, 5  ;;  %v837_v4 = vunpack.c.l.b16 %v791_v19  ;;  %v4883_v34 = vld [vmem:[#allocation2 + $0x1c] sm:$0x1] }
 0x11c   :  { %1352 = vmatmul.bf16.gmra.mxu3 %v1252_v46  ;;  %v3736_v59 = vor.u32 %v4180_v52, %v3735_v51  ;;  %v800_v60 = vrot.slane %v799_v48, 4  ;;  %v2497_v6 = vshll.u32 %v2456_v41, 16  ;;  %v2509_v8 = vrot.slane %v2508_v53, 4  ;;  %v1574_v43 = vld [vmem:[#allocation2 + $0x20] sm:$0xf] }
 0x11d   :  { %v2115_v9 = vunpack.c.l.b16 %v2037_v61  ;;  %v1603_v10 = vrot.slane %v1601_v55, 4  ;;  %v1606_v11 = vrot.slane %v1604_v56, 5  ;;  %v2513_v13 = vrot.slane %v2511_v63, 5  ;;  %v1572_v44 = vld [vmem:[#allocation2 + $0x18] sm:$0xf] }
 0x11e   :  { %1546 = vmatmul.bf16.gmra.mxu0 %v3736_v59  ;;  %v805_v0 = vsel %vm4579_vm12, %v800_v60, %v804_v37  ;;  %v2495_v14 = vrot.slane %v2494_v1, 4  ;;  %v1621_v17 = vor.u32 %v1620_v3, %v1617_v2  ;;  %v2499_v15 = vrot.slane %v2497_v6, 5  ;;  %v2460_v59 = vld [vmem:[#allocation2 + $0x24] sm:$0x1]  ;;  %v2462_v41 = vld [vmem:[#allocation2 + $0x2c] sm:$0x1] }
 0x11f   :  { %v838_v5 = vunpack.c.l.b16 %v805_v0  ;;  %v2131_v35 = vpack.c.b16 %v2116_v62, %v2115_v9  ;;  %v2514_v18 = vsel %vm4579_vm12, %v2509_v8, %v2513_v13  ;;  %v2516_v54 = vshrl.u32 %v2459_v36, 16  ;;  %v4898_v28 = vld [vmem:[#allocation2 + $0x34] sm:$0x1] }
 0x120   :  { %v2519_v21 = vshll.u32 %v2459_v36, 16  ;;  %v1607_v58 = vor.u32 %v1606_v11, %v1603_v10  ;;  %v1624_v22 = vshll.u32 %v4815_v24, 16  ;;  %v2530_v25 = vshrl.u32 %v2461_v57, 16  ;;  %v1988_v24 = vld [vmem:[#allocation2 + $0x18] sm:$0xe] }
 0x121   :  { %v846_v12 = vpack.c.b16 %v838_v5, %v837_v4  ;;  %v2533_v27 = vshll.u32 %v2461_v57, 16  ;;  %v2500_v30 = vsel %vm4579_vm12, %v2495_v14, %v2499_v15  ;;  %v2729_v31 = vunpack.c.l.b16 %v2514_v18 }
 0x122   :  { %v1610_v32 = vshll.u32 %v4810_v7, 16  ;;  %v1622_v33 = vrot.slane %v1621_v17, 4  ;;  %v3820_v38 = vrot.slane %v1989_v23, 9  ;;  %v2048_v39 = vrot.slane %v4874_v20, 5  ;;  %v4895_v17 = vld [vmem:[#allocation2 + $0x2c] sm:$0x1] }
 0x123   :  { %v2518_v40 = vrot.slane %v2516_v54, 4  ;;  %v2521_v42 = vrot.slane %v2519_v21, 5  ;;  %v1608_v45 = vrot.slane %v1607_v58, 4  ;;  %v1626_v46 = vrot.slane %v1624_v22, 5  ;;  %v1990_v21 = vld [vmem:[#allocation2 + $0x28] sm:$0xe] }
 0x124   :  { %v2532_v47 = vrot.slane %v2530_v25, 4  ;;  %v2535_v48 = vrot.slane %v2533_v27, 5  ;;  %v3900_v51 = vor.u32 %v4205_v26, %v3899_v29  ;;  %v2728_v52 = vunpack.c.l.b16 %v2500_v30  ;;  %v2465_v58 = vld [vmem:[#allocation2 + $0x38] sm:$0xf]  ;;  %v1991_v29 = vld [vmem:[#allocation2 + $0x30] sm:$0xe] }
 0x125   :  { %946 = vmatmul.bf16.gmra.mxu1 %v846_v12  ;;  %v3819_v7 = vrot.slane %v1988_v24, 9  ;;  %v2044_v53 = vrot.slane %v4883_v34, 5  ;;  %v1612_v55 = vrot.slane %v1610_v32, 5  ;;  %v1627_v56 = vsel %vm4579_vm12, %v1622_v33, %v1626_v46  ;;  %v2463_v24 = vld [vmem:[#allocation2 + $0x30] sm:$0xf] }
 0x126   :  { %2203 = vmatmul.bf16.vlgmr.msrb.gmra.mxu2 %v2131_v35  ;;  %v1643_v19 = vshrl.u32 %v1574_v43, 16  ;;  %v1646_v60 = vshll.u32 %v1574_v43, 16  ;;  %v2049_v37 = vsel %vm4564_vm9, %v3820_v38, %v2048_v39  ;;  %v2522_v61 = vor.u32 %v2521_v42, %v2518_v40  ;;  %v4206_v38 = vld [vmem:[#allocation2 + $0x24] sm:$0xf0] }
 0x127   :  { %v1629_v62 = vshrl.u32 %v1572_v44, 16  ;;  %v1632_v63 = vshll.u32 %v1572_v44, 16  ;;  %v2744_v0 = vpack.c.b16 %v2729_v31, %v2728_v52  ;;  %v1613_v1 = vsel %vm4579_vm12, %v1608_v45, %v1612_v55  ;;  %v1576_v55 = vld [vmem:[#allocation2 + $0x28] sm:$0xf] }
 0x128   :  { %v2536_v2 = vor.u32 %v2535_v48, %v2532_v47  ;;  %v1842_v3 = vunpack.c.l.b16 %v1627_v56  ;;  %v2045_v4 = vsel %vm4564_vm9, %v3819_v7, %v2044_v53  ;;  %v2525_v5 = vshll.u32 %v2460_v59, 16  ;;  %v3903_v48 = vld [vmem:[#allocation2 + $0x20] sm:$0xf] }
 0x129   :  { %v1057_v49 = vpop.f32.mrf.mxu2  ;;  %v2118_v6 = vunpack.c.l.b16 %v2049_v37  ;;  %v2539_v8 = vshll.u32 %v2462_v41, 16  ;;  %v1645_v9 = vrot.slane %v1643_v19, 4  ;;  %v1648_v10 = vrot.slane %v1646_v60, 5  ;;  %v1578_v37 = vld [vmem:[#allocation2 + $0x30] sm:$0xf] }
 0x12a   :  { %v1841_v36 = vunpack.c.l.b16 %v1613_v1  ;;  %v2523_v12 = vrot.slane %v2522_v61, 4  ;;  %v1631_v13 = vrot.slane %v1629_v62, 4  ;;  %v1634_v57 = vrot.slane %v1632_v63, 5 }
 0x12b   :  { %v2117_v35 = vunpack.c.l.b16 %v2045_v4  ;;  %v2537_v14 = vrot.slane %v2536_v2, 4  ;;  %v2527_v54 = vrot.slane %v2525_v5, 5  ;;  %v2541_v25 = vrot.slane %v2539_v8, 5 }
 0x12c   :  { %2398 = vmatmul.bf16.vlgmr.msrb.gmra.mxu3 %v3900_v51  ;;  %v1857_v18 = vpack.c.b16 %v1842_v3, %v1841_v36  ;;  %v1638_v27 = vshll.u32 %v4883_v34, 16  ;;  %v1649_v26 = vor.u32 %v1648_v10, %v1645_v9  ;;  %v1635_v32 = vor.u32 %v1634_v57, %v1631_v13  ;;  %v2464_v3 = vld [vmem:[#allocation2 + $0x34] sm:$0x1]  ;;  %v2466_v9 = vld [vmem:[#allocation2 + $0x3c] sm:$0x1] }
 0x12d   :  { %v2132_v23 = vpack.c.b16 %v2118_v6, %v2117_v35  ;;  %v2528_v31 = vsel %vm4579_vm12, %v2523_v12, %v2527_v54  ;;  %v1652_v33 = vshll.u32 %v4874_v20, 16  ;;  %v2542_v39 = vsel %vm4579_vm12, %v2537_v14, %v2541_v25  ;;  %v4234_v20 = vld [vmem:[%s5414_s3 + $0x228] sm:$0xff] }
 0x12e   :  { %2816 = vmatmul.bf16.vlgmr.msra.gmra.mxu0 %v2744_v0  ;;  %v3821_v40 = vrot.slane %v1990_v21, 9  ;;  %v2558_v42 = vshrl.u32 %v2465_v58, 16  ;;  %v2561_v43 = vshll.u32 %v2465_v58, 16  ;;  %v2052_v45 = vrot.slane %v4895_v17, 5  ;;  %3084 = vmatpush.bf16.msra.mxu1 %v4234_v20 }
 0x12f   :  { %v1318_v11 = vpop.f32.mrf.mxu3  ;;  %v3822_v46 = vrot.slane %v1991_v29, 9  ;;  %v2056_v47 = vrot.slane %v4898_v28, 5  ;;  %v1650_v44 = vrot.slane %v1649_v26, 4  ;;  %v2547_v51 = vshll.u32 %v2463_v24, 16 }
 0x130   :  { %v3904_v7 = vor.u32 %v4206_v38, %v3903_v48  ;;  %v2730_v53 = vunpack.c.l.b16 %v2528_v31  ;;  %v2731_v56 = vunpack.c.l.b16 %v2542_v39  ;;  %v1654_v59 = vrot.slane %v1652_v33, 5  ;;  %v4922_v33 = vld [vmem:[#allocation2 + $0x3c] sm:$0x1]  ;;  %v2467_v38 = vld [vmem:[#allocation2 + $0x40] sm:$0xf] }
 0x131   :  { %v1059_v15 = vpop.f32.mrf.mxu2  ;;  %v2560_v19 = vrot.slane %v2558_v42, 4  ;;  %v2563_v60 = vrot.slane %v2561_v43, 5  ;;  %v1636_v61 = vrot.slane %v1635_v32, 4  ;;  %v1640_v62 = vrot.slane %v1638_v27, 5 }
 0x132   :  { %v912_v22 = vpop.f32.mrf.mxu1  ;;  %v2053_v63 = vsel %vm4564_vm9, %v3821_v40, %v2052_v45  ;;  %v2057_v0 = vsel %vm4564_vm9, %v3822_v46, %v2056_v47  ;;  %v1655_v2 = vsel %vm4579_vm12, %v1650_v44, %v1654_v59  ;;  %v2549_v5 = vrot.slane %v2547_v51, 5  ;;  %v2469_v46 = vld [vmem:[#allocation2 + $0x48] sm:$0xf]  ;;  %v1993_v51 = vld [vmem:[#allocation2 + $0x40] sm:$0xe] }
 0x133   :  { %v1058_v30 = vadd.f32 %v1057_v49, %v912_v22  ;;  %v2544_v49 = vshrl.u32 %v2463_v24, 16  ;;  %v1657_v6 = vshrl.u32 %v1576_v55, 16  ;;  %v1660_v10 = vshll.u32 %v1576_v55, 16  ;;  %v1992_v24 = vld [vmem:[#allocation2 + $0x38] sm:$0xe] }
 0x134   :  { %v1674_v36 = vshll.u32 %v1578_v37, 16  ;;  %v2745_v12 = vpack.c.b16 %v2731_v56, %v2730_v53  ;;  %v2564_v13 = vor.u32 %v2563_v60, %v2560_v19  ;;  %v1641_v35 = vsel %vm4579_vm12, %v1636_v61, %v1640_v62 }
 0x135   :  { %v4905_v34 = vadd.f32 %v1318_v11, %v1058_v30  ;;  %1929 = vmatmul.bf16.vlgmr.msrb.gmra.mxu1 %v1857_v18  ;;  %v2546_v4 = vrot.slane %v2544_v49, 4  ;;  %v1671_v11 = vshrl.u32 %v1578_v37, 16  ;;  %v2119_v14 = vunpack.c.l.b16 %v2053_v63  ;;  %v4925_v49 = vld [vmem:[#allocation2 + $0x44] sm:$0x1]  ;;  %v4207_v63 = vld [vmem:[#allocation2 + $0x34] sm:$0xf0] }
 0x136   :  { %2208 = vmatmul.bf16.gmra.mxu2 %v2132_v23  ;;  %v2120_v18 = vunpack.c.l.b16 %v2057_v0  ;;  %v1844_v54 = vunpack.c.l.b16 %v1655_v2  ;;  %v2553_v58 = vshll.u32 %v2464_v3, 16  ;;  %v2567_v22 = vshll.u32 %v2466_v9, 16  ;;  %v3907_v3 = vld [vmem:[#allocation2 + $0x30] sm:$0xf] }
 0x137   :  { %v1320_v52 = vpop.f32.mrf.mxu3  ;;  %v2550_v21 = vor.u32 %v2549_v5, %v2546_v4  ;;  %v1659_v23 = vrot.slane %v1657_v6, 4  ;;  %v1662_v25 = vrot.slane %v1660_v10, 5  ;;  %v1673_v27 = vrot.slane %v1671_v11, 4 }
 0x138   :  { %v1676_v26 = vrot.slane %v1674_v36, 5  ;;  %v1843_v29 = vunpack.c.l.b16 %v1641_v35  ;;  %v2565_v30 = vrot.slane %v2564_v13, 4  ;;  %v2133_v32 = vpack.c.b16 %v2120_v18, %v2119_v14 }
 0x139   :  { %v1062_v41 = vpop.f32.mrf.mxu2  ;;  %v2551_v42 = vrot.slane %v2550_v21, 4  ;;  %v2555_v43 = vrot.slane %v2553_v58, 5  ;;  %v2569_v45 = vrot.slane %v2567_v22, 5  ;;  %v1663_v20 = vor.u32 %v1662_v25, %v1659_v23  ;;  %v4947_v23 = vld [vmem:[#allocation2 + $0x44] sm:$0x1] }
 0x13a   :  { %v914_v1 = vpop.f32.mrf.mxu1  ;;  %v1858_v40 = vpack.c.b16 %v1844_v54, %v1843_v29  ;;  %v1666_v48 = vshll.u32 %v4895_v17, 16  ;;  %v1677_v44 = vor.u32 %v1676_v26, %v1673_v27  ;;  %v2572_v53 = vshrl.u32 %v2467_v38, 16  ;;  %v4233_v17 = vld [vmem:[%s5414_s3 + $0x220] sm:$0xff]  ;;  %v1580_v54 = vld [vmem:[#allocation2 + $0x38] sm:$0xf] }
 0x13b   :  { %v1060_v8 = vadd.f32 %v1059_v15, %v914_v1  ;;  %v2575_v55 = vshll.u32 %v2467_v38, 16  ;;  %v3823_v59 = vrot.slane %v1992_v24, 9  ;;  %v2586_v19 = vshrl.u32 %v2469_v46, 16  ;;  %3085 = vmatpush.bf16.msra.mxu1 %v4233_v17  ;;  %v4949_v25 = vld [vmem:[#allocation2 + $0x4c] sm:$0x1] }
 0x13c   :  { %2403 = vmatmul.bf16.gmra.mxu3 %v3904_v7  ;;  %v1680_v7 = vshll.u32 %v4898_v28, 16  ;;  %v2589_v60 = vshll.u32 %v2469_v46, 16  ;;  %v2556_v37 = vsel %vm4579_vm12, %v2551_v42, %v2555_v43  ;;  %v3824_v61 = vrot.slane %v1993_v51, 9 }
 0x13d   :  { %v4918_v57 = vadd.f32 %v1320_v52, %v1060_v8  ;;  %v2570_v52 = vsel %vm4579_vm12, %v2565_v30, %v2569_v45  ;;  %v2064_v28 = vrot.slane %v4925_v49, 5  ;;  %v1664_v1 = vrot.slane %v1663_v20, 4 }
 0x13e   :  { %2821 = vmatmul.bf16.gmra.mxu0 %v2745_v12  ;;  %v2733_v0 = vunpack.c.l.b16 %v2570_v52  ;;  %v1678_v2 = vrot.slane %v1677_v44, 4  ;;  %v1668_v4 = vrot.slane %v1666_v48, 5  ;;  %v2574_v5 = vrot.slane %v2572_v53, 4  ;;  %v1582_v12 = vld [vmem:[#allocation2 + $0x40] sm:$0xf] }
 0x13f   :  { %v1323_v15 = vpop.f32.mrf.mxu3  ;;  %v2577_v6 = vrot.slane %v2575_v55, 5  ;;  %v2732_v9 = vunpack.c.l.b16 %v2556_v37  ;;  %v1682_v10 = vrot.slane %v1680_v7, 5  ;;  %v2588_v11 = vrot.slane %v2586_v19, 4  ;;  %v2473_v55 = vld [vmem:[#allocation2 + $0x68] sm:$0xf] }
 0x140   :  { %v2591_v36 = vrot.slane %v2589_v60, 5  ;;  %v3908_v35 = vor.u32 %v4207_v63, %v3907_v3  ;;  %v2065_v18 = vsel %vm4564_vm9, %v3824_v61, %v2064_v28  ;;  %v1669_v22 = vsel %vm4579_vm12, %v1664_v1, %v1668_v4  ;;  %v1995_v63 = vld [vmem:[#allocation2 + $0x60] sm:$0xe] }
 0x141   :  { %v1064_v31 = vpop.f32.mrf.mxu2  ;;  %v2746_v58 = vpack.c.b16 %v2733_v0, %v2732_v9  ;;  %v2578_v27 = vor.u32 %v2577_v6, %v2574_v5  ;;  %v2595_v26 = vshll.u32 %v4949_v25, 16  ;;  %v1699_v29 = vshrl.u32 %v1582_v12, 16  ;;  %v3911_v3 = vld [vmem:[#allocation2 + $0x40] sm:$0xf]  ;;  %v4208_v9 = vld [vmem:[#allocation2 + $0x44] sm:$0xf0] }
 0x142   :  { %v917_v39 = vpop.f32.mrf.mxu1  ;;  %v1702_v30 = vshll.u32 %v1582_v12, 16  ;;  %v1685_v24 = vshrl.u32 %v1580_v54, 16  ;;  %v1688_v38 = vshll.u32 %v1580_v54, 16  ;;  %v2122_v45 = vunpack.c.l.b16 %v2065_v18 }
 0x143   :  { %v1063_v47 = vadd.f32 %v1062_v41, %v917_v39  ;;  %v2060_v41 = vrot.slane %v4922_v33, 5  ;;  %v2581_v39 = vshll.u32 %v4947_v23, 16  ;;  %v1845_v46 = vunpack.c.l.b16 %v1669_v22 }
 0x144   :  { %v1701_v20 = vrot.slane %v1699_v29, 4  ;;  %v1704_v48 = vrot.slane %v1702_v30, 5  ;;  %v2597_v52 = vrot.slane %v2595_v26, 5  ;;  %v1687_v7 = vrot.slane %v1685_v24, 4 }
 0x145   :  { %v4930_v56 = vadd.f32 %v1323_v15, %v1063_v47  ;;  %1934 = vmatmul.bf16.gmra.mxu1 %v1858_v40  ;;  %v2061_v14 = vsel %vm4564_vm9, %v3823_v59, %v2060_v41  ;;  %v1683_v15 = vsel %vm4579_vm12, %v1678_v2, %v1682_v10  ;;  %v2579_v47 = vrot.slane %v2578_v27, 4  ;;  %v2471_v41 = vld [vmem:[#allocation2 + $0x60] sm:$0xf]  ;;  %v4967_v10 = vld [vmem:[#allocation2 + $0x5c] sm:$0x1] }
 0x146   :  { %2213 = vmatmul.bf16.gmra.mxu2 %v2133_v32  ;;  %v1846_v42 = vunpack.c.l.b16 %v1683_v15  ;;  %v2121_v43 = vunpack.c.l.b16 %v2061_v14  ;;  %v1690_v53 = vrot.slane %v1688_v38, 5  ;;  %v2583_v19 = vrot.slane %v2581_v39, 5  ;;  %v1994_v14 = vld [vmem:[#allocation2 + $0x58] sm:$0xe]  ;;  %v1586_v27 = vld [vmem:[#allocation2 + $0x60] sm:$0xf] }
 0x147   :  { %v1325_v62 = vpop.f32.mrf.mxu3  ;;  %v1705_v28 = vor.u32 %v1704_v48, %v1701_v20  ;;  %v2614_v0 = vshrl.u32 %v2473_v55, 16  ;;  %v2617_v1 = vshll.u32 %v2473_v55, 16  ;;  %v1708_v6 = vshll.u32 %v4925_v49, 16  ;;  %v4971_v49 = vpop.f32.mrf.mxu0  ;;  %v4982_v55 = vld [vmem:[#allocation2 + $0x64] sm:$0x1] }
 0x148   :  { %v1859_v17 = vpack.c.b16 %v1846_v42, %v1845_v46  ;;  %v2134_v37 = vpack.c.b16 %v2122_v45, %v2121_v43  ;;  %v2584_v61 = vsel %vm4579_vm12, %v2579_v47, %v2583_v19  ;;  %v1691_v5 = vor.u32 %v1690_v53, %v1687_v7  ;;  %v1584_v42 = vld [vmem:[#allocation2 + $0x58] sm:$0xf]  ;;  %v4974_v46 = vld [vmem:[#allocation2 + $0x6c] sm:$0x1] }
 0x149   :  { %v1067_v8 = vpop.f32.mrf.mxu2  ;;  %v3826_v18 = vrot.slane %v1995_v63, 9  ;;  %v2616_v22 = vrot.slane %v2614_v0, 4  ;;  %v2619_v15 = vrot.slane %v2617_v1, 5  ;;  %v3912_v29 = vor.u32 %v4208_v9, %v3911_v3 }
 0x14a   :  { %v919_v13 = vpop.f32.mrf.mxu1  ;;  %v1692_v30 = vrot.slane %v1691_v5, 4  ;;  %v3825_v38 = vrot.slane %v1994_v14, 9  ;;  %v1727_v47 = vshrl.u32 %v1586_v27, 16  ;;  %v1730_v20 = vshll.u32 %v1586_v27, 16  ;;  %v1996_v27 = vld [vmem:[#allocation2 + $0x68] sm:$0xe] }
 0x14b   :  { %v1065_v21 = vadd.f32 %v1064_v31, %v919_v13  ;;  %v2592_v31 = vor.u32 %v2591_v36, %v2588_v11  ;;  %v2600_v11 = vshrl.u32 %v2471_v41, 16  ;;  %v2603_v36 = vshll.u32 %v2471_v41, 16 }
 0x14c   :  { %2408 = vmatmul.bf16.gmra.mxu3 %v3908_v35  ;;  %v2734_v13 = vunpack.c.l.b16 %v2584_v61  ;;  %v1694_v35 = vshll.u32 %v4922_v33, 16  ;;  %v2068_v33 = vrot.slane %v4967_v10, 5  ;;  %v2620_v7 = vor.u32 %v2619_v15, %v2616_v22 }
 0x14d   :  { %v4952_v32 = vadd.f32 %v1325_v62, %v1065_v21  ;;  %v2593_v51 = vrot.slane %v2592_v31, 4  ;;  %v4957_v62 = vld [vmem:[#allocation2 + $0x64] sm:$0x1]  ;;  %v1710_v31 = vrot.slane %v1708_v6, 5  ;;  %v2602_v39 = vrot.slane %v2600_v11, 4 }
 0x14e   :  { %2826 = vmatmul.bf16.gmra.mxu0 %v2746_v58  ;;  %v2072_v54 = vrot.slane %v4957_v62, 5  ;;  %v1706_v58 = vrot.slane %v1705_v28, 4  ;;  %v1696_v45 = vrot.slane %v1694_v35, 5  ;;  %v1729_v63 = vrot.slane %v1727_v47, 4  ;;  %v2477_v11 = vld [vmem:[#allocation2 + $0x78] sm:$0xf] }
 0x14f   :  { %v1328_v40 = vpop.f32.mrf.mxu3  ;;  %v2598_v4 = vsel %vm4579_vm12, %v2593_v51, %v2597_v52  ;;  %v1732_v0 = vrot.slane %v1730_v20, 5  ;;  %v2609_v1 = vshll.u32 %v4982_v55, 16  ;;  %v2621_v3 = vrot.slane %v2620_v7, 4  ;;  %v4209_v20 = vld [vmem:[#allocation2 + $0x64] sm:$0xf0] }
 0x150   :  { %v2735_v21 = vunpack.c.l.b16 %v2598_v4  ;;  %v1711_v51 = vsel %vm4579_vm12, %v1706_v58, %v1710_v31  ;;  %v2073_v52 = vsel %vm4564_vm9, %v3826_v18, %v2072_v54  ;;  %v1697_v19 = vsel %vm4579_vm12, %v1692_v30, %v1696_v45  ;;  %v2475_v58 = vld [vmem:[#allocation2 + $0x70] sm:$0xf]  ;;  %v3915_v7 = vld [vmem:[#allocation2 + $0x60] sm:$0xf] }
 0x151   :  { %v1069_v44 = vpop.f32.mrf.mxu2  ;;  %v1848_v61 = vunpack.c.l.b16 %v1711_v51  ;;  %v2124_v28 = vunpack.c.l.b16 %v2073_v52  ;;  %v1847_v5 = vunpack.c.l.b16 %v1697_v19  ;;  %v2611_v22 = vrot.slane %v2609_v1, 5 }
 0x152   :  { %v922_v59 = vpop.f32.mrf.mxu1  ;;  %v2747_v48 = vpack.c.b16 %v2735_v21, %v2734_v13  ;;  %v1733_v21 = vor.u32 %v1732_v0, %v1729_v63  ;;  %v2645_v30 = vshll.u32 %v2477_v11, 16  ;;  %v2631_v45 = vshll.u32 %v2475_v58, 16  ;;  %v1590_v63 = vld [vmem:[#allocation2 + $0x70] sm:$0xf] }
 0x153   :  { %v1068_v60 = vadd.f32 %v1067_v8, %v922_v59  ;;  %v4232_v8 = vld [vmem:[%s5414_s3 + $0x218] sm:$0xff]  ;;  %v1713_v59 = vshrl.u32 %v1584_v42, 16  ;;  %v1860_v18 = vpack.c.b16 %v1848_v61, %v1847_v5  ;;  %v3827_v52 = vrot.slane %v1996_v27, 9 }
 0x154   :  { %3086 = vmatpush.bf16.msra.mxu1 %v4232_v8  ;;  %v1734_v51 = vrot.slane %v1733_v21, 4  ;;  %v3916_v1 = vor.u32 %v4209_v20, %v3915_v7  ;;  %v1758_v21 = vshll.u32 %v1590_v63, 16 }
 0x155   :  { %v4959_v2 = vadd.f32 %v1328_v40, %v1068_v60  ;;  %1939 = vmatmul.bf16.gmra.mxu1 %v1859_v17  ;;  %v2605_v40 = vrot.slane %v2603_v36, 5  ;;  %v2069_v60 = vsel %vm4564_vm9, %v3825_v38, %v2068_v33  ;;  %v1715_v8 = vrot.slane %v1713_v59, 4  ;;  %v4990_v36 = vpop.f32.mrf.mxu0  ;;  %v4997_v33 = vld [vmem:[#allocation2 + $0x74] sm:$0x1] }
 0x156   :  { %2218 = vmatmul.bf16.gmra.mxu2 %v2134_v37  ;;  %v2623_v37 = vshll.u32 %v4974_v46, 16  ;;  %v2123_v6 = vunpack.c.l.b16 %v2069_v60  ;;  %v1736_v38 = vshll.u32 %v4957_v62, 16  ;;  %v1722_v62 = vshll.u32 %v4967_v10, 16 }
 0x157   :  { %v1330_v12 = vpop.f32.mrf.mxu3  ;;  %v2606_v17 = vor.u32 %v2605_v40, %v2602_v39  ;;  %v4231_v39 = vld [vmem:[%s5414_s3 + $0x210] sm:$0xff]  ;;  %v2647_v60 = vrot.slane %v2645_v30, 5  ;;  %v2633_v10 = vrot.slane %v2631_v45, 5  ;;  %v1760_v45 = vrot.slane %v1758_v21, 5 }
 0x158   :  { %v2625_v35 = vrot.slane %v2623_v37, 5  ;;  %v2135_v54 = vpack.c.b16 %v2124_v28, %v2123_v6  ;;  %3087 = vmatpush.bf16.msra.mxu1 %v4231_v39  ;;  %v1738_v61 = vrot.slane %v1736_v38, 5 }
 0x159   :  { %v1072_v26 = vpop.f32.mrf.mxu2  ;;  %v2607_v13 = vrot.slane %v2606_v17, 4 }
 0x15a   :  { %v924_v24 = vpop.f32.mrf.mxu1  ;;  %v2626_v15 = vsel %vm4579_vm12, %v2621_v3, %v2625_v35 }
 0x15b   :  { %v1070_v43 = vadd.f32 %v1069_v44, %v924_v24  ;;  %v1716_v44 = vshll.u32 %v1584_v42, 16  ;;  %v2612_v40 = vsel %vm4579_vm12, %v2607_v13, %v2611_v22  ;;  %v5004_v42 = vld [vmem:[#allocation2 + $0x6c] sm:$0x1] }
 0x15c   :  { %2413 = vmatmul.bf16.gmra.mxu3 %v3912_v29  ;;  %v2642_v29 = vshrl.u32 %v2477_v11, 16  ;;  %v2736_v37 = vunpack.c.l.b16 %v2612_v40  ;;  %v2076_v28 = vrot.slane %v5004_v42, 5  ;;  %v5011_v11 = vld [vmem:[#allocation2 + $0x7c] sm:$0x1] }
 0x15d   :  { %v4980_v53 = vadd.f32 %v1330_v12, %v1070_v43  ;;  %v1718_v9 = vrot.slane %v1716_v44, 5  ;;  %v2628_v43 = vshrl.u32 %v2475_v58, 16  ;;  %v2080_v44 = vrot.slane %v4997_v33, 5  ;;  %v5013_v13 = vpop.f32.mrf.mxu0 }
 0x15e   :  { %2831 = vmatmul.bf16.gmra.mxu0 %v2747_v48  ;;  %v2737_v48 = vunpack.c.l.b16 %v2626_v15  ;;  %v2644_v19 = vrot.slane %v2642_v29, 4  ;;  %v2077_v22 = vsel %vm4564_vm9, %v3827_v52, %v2076_v28  ;;  %v2651_v27 = vshll.u32 %v5011_v11, 16 }
 0x15f   :  { %v1333_v41 = vpop.f32.mrf.mxu3  ;;  %v1719_v24 = vor.u32 %v1718_v9, %v1715_v8  ;;  %v2630_v3 = vrot.slane %v2628_v43, 4  ;;  %v1724_v8 = vrot.slane %v1722_v62, 5  ;;  %v1739_v9 = vsel %vm4579_vm12, %v1734_v51, %v1738_v61  ;;  %v2481_v62 = vld [vmem:[#allocation2 + $0x88] sm:$0xf]  ;;  %v1999_v61 = vld [vmem:[#allocation2 + $0x80] sm:$0xe] }
 0x160   :  { %v2748_v6 = vpack.c.b16 %v2737_v48, %v2736_v37  ;;  %v1850_v38 = vunpack.c.l.b16 %v1739_v9  ;;  %v2125_v48 = vunpack.c.l.b16 %v2077_v22  ;;  %v2653_v7 = vrot.slane %v2651_v27, 5 }
 0x161   :  { %v1074_v4 = vpop.f32.mrf.mxu2  ;;  %v2634_v15 = vor.u32 %v2633_v10, %v2630_v3  ;;  %v2670_v3 = vshrl.u32 %v2481_v62, 16  ;;  %v2673_v10 = vshll.u32 %v2481_v62, 16  ;;  %v3830_v21 = vrot.slane %v1999_v61, 9 }
 0x162   :  { %v927_v12 = vpop.f32.mrf.mxu1 }
 0x163   :  { %v1073_v14 = vadd.f32 %v1072_v26, %v927_v12  ;;  %v1997_v26 = vld [vmem:[#allocation2 + $0x70] sm:$0xe]  ;;  %v1588_v12 = vld [vmem:[#allocation2 + $0x68] sm:$0xf]  ;;  %v2635_v52 = vrot.slane %v2634_v15, 4 }
 0x164   :  { %v3828_v59 = vrot.slane %v1997_v26, 9  ;;  %v1741_v29 = vshrl.u32 %v1588_v12, 16  ;;  %v1744_v30 = vshll.u32 %v1588_v12, 16 }
 0x165   :  { %v4994_v31 = vadd.f32 %v1333_v41, %v1073_v14  ;;  %1944 = vmatmul.bf16.gmra.mxu1 %v1860_v18  ;;  %v1720_v41 = vrot.slane %v1719_v24, 4  ;;  %v5017_v14 = vld [vmem:[#allocation2 + $0x74] sm:$0x1]  ;;  %v2648_v18 = vor.u32 %v2647_v60, %v2644_v19 }
 0x166   :  { %2223 = vmatmul.bf16.gmra.mxu2 %v2135_v54  ;;  %v2081_v35 = vsel %vm4564_vm9, %v3828_v59, %v2080_v44  ;;  %v1755_v54 = vshrl.u32 %v1590_v63, 16  ;;  %v2637_v39 = vshll.u32 %v5017_v14, 16  ;;  %v1743_v59 = vrot.slane %v1741_v29, 4 }
 0x167   :  { %v1335_v47 = vpop.f32.mrf.mxu3  ;;  %v1725_v58 = vsel %vm4579_vm12, %v1720_v41, %v1724_v8  ;;  %v2126_v26 = vunpack.c.l.b16 %v2081_v35  ;;  %v2649_v40 = vrot.slane %v2648_v18, 4  ;;  %v1746_v44 = vrot.slane %v1744_v30, 5  ;;  %v5039_v8 = vpop.f32.mrf.mxu0  ;;  %v5044_v18 = vld [vmem:[#allocation2 + $0x7c] sm:$0x1] }
 0x168   :  { %v1757_v43 = vrot.slane %v1755_v54, 4  ;;  %v1849_v20 = vunpack.c.l.b16 %v1725_v58  ;;  %v2639_v41 = vrot.slane %v2637_v39, 5  ;;  %v1764_v35 = vshll.u32 %v4997_v33, 16  ;;  %v1998_v54 = vld [vmem:[#allocation2 + $0x78] sm:$0xe] }
 0x169   :  { %v1077_v17 = vpop.f32.mrf.mxu2  ;;  %v2136_v37 = vpack.c.b16 %v2126_v26, %v2125_v48  ;;  %v2654_v28 = vsel %vm4579_vm12, %v2649_v40, %v2653_v7  ;;  %v1747_v12 = vor.u32 %v1746_v44, %v1743_v59  ;;  %v3919_v26 = vld [vmem:[#allocation2 + $0x70] sm:$0xf]  ;;  %v3829_v40 = vrot.slane %v1998_v54, 9  ;;  %v5054_v44 = vld [vmem:[#allocation2 + $0x8c] sm:$0x1] }
 0x16a   :  { %v929_v0 = vpop.f32.mrf.mxu1  ;;  %v1861_v60 = vpack.c.b16 %v1850_v38, %v1849_v20  ;;  %v1761_v63 = vor.u32 %v1760_v45, %v1757_v43  ;;  %v2640_v9 = vsel %vm4579_vm12, %v2635_v52, %v2639_v41  ;;  %v2739_v22 = vunpack.c.l.b16 %v2654_v28  ;;  %v1594_v43 = vld [vmem:[#allocation2 + $0x80] sm:$0xf]  ;;  %5432 = vst [vmem:[#allocation3_spill] sm:$0xff] %v5054_v44 }
 0x16b   :  { %v1075_v5 = vadd.f32 %v1074_v4, %v929_v0  ;;  %v5031_v0 = vld [vmem:[#allocation2 + $0x84] sm:$0x1]  ;;  %v2675_v38 = vrot.slane %v2673_v10, 5  ;;  %v2738_v39 = vunpack.c.l.b16 %v2640_v9  ;;  %v2084_v33 = vrot.slane %v5044_v18, 5 }
 0x16c   :  { %2418 = vmatmul.bf16.gmra.mxu3 %v3916_v1  ;;  %v2479_v1 = vld [vmem:[#allocation2 + $0x80] sm:$0xf]  ;;  %v2088_v15 = vrot.slane %v5031_v0, 5  ;;  %v1762_v30 = vrot.slane %v1761_v63, 4  ;;  %v1748_v62 = vrot.slane %v1747_v12, 4  ;;  %v1766_v52 = vrot.slane %v1764_v35, 5 }
 0x16d   :  { %v5019_v4 = vadd.f32 %v1335_v47, %v1075_v5  ;;  %v2656_v27 = vshrl.u32 %v2479_v1, 16  ;;  %v2659_v29 = vshll.u32 %v2479_v1, 16  ;;  %v2749_v7 = vpack.c.b16 %v2739_v22, %v2738_v39 }
 0x16e   :  { %2836 = vmatmul.bf16.gmra.mxu0 %v2748_v6  ;;  %v1750_v6 = vshll.u32 %v5004_v42, 16  ;;  %v4210_v42 = vld [vmem:[#allocation2 + $0x74] sm:$0xf0]  ;;  %v2089_v59 = vsel %vm4564_vm9, %v3830_v21, %v2088_v15  ;;  %v1767_v41 = vsel %vm4579_vm12, %v1762_v30, %v1766_v52  ;;  %v1783_v28 = vshrl.u32 %v1594_v43, 16 }
 0x16f   :  { %v1338_v24 = vpop.f32.mrf.mxu3  ;;  %v3920_v48 = vor.u32 %v4210_v42, %v3919_v26  ;;  %v1786_v63 = vshll.u32 %v1594_v43, 16  ;;  %v2085_v1 = vsel %vm4564_vm9, %v3829_v40, %v2084_v33  ;;  %v1852_v35 = vunpack.c.l.b16 %v1767_v41  ;;  %v5065_v42 = vpop.f32.mrf.mxu0  ;;  %v2485_v43 = vld [vmem:[#allocation2 + $0x98] sm:$0xf] }
 0x170   :  { %v2128_v54 = vunpack.c.l.b16 %v2089_v59 }
 0x171   :  { %v5027_v47 = vpop.f32.mrf.mxu2 }
 0x172   :  { %v932_v51 = vpop.f32.mrf.mxu1 }
 0x173   :  { %v1078_v19 = vadd.f32 %v1077_v17, %v932_v51  ;;  %v4230_v17 = vld [vmem:[%s5414_s3 + $0x208] sm:$0xff]  ;;  %v1752_v51 = vrot.slane %v1750_v6, 5  ;;  %v2679_v6 = vshll.u32 %v5054_v44, 16 }
 0x174   :  { %3088 = vmatpush.bf16.msra.mxu1 %v4230_v17 }
 0x175   :  { %v5033_v5 = vadd.f32 %v1338_v24, %v1078_v19  ;;  %1949 = vmatmul.bf16.gmra.mxu1 %v1861_v60  ;;  %v2672_v24 = vrot.slane %v2670_v3, 4  ;;  %v2658_v19 = vrot.slane %v2656_v27, 4  ;;  %v2661_v60 = vrot.slane %v2659_v29, 5  ;;  %v5060_v3 = vld [vmem:[#allocation2 + $0x84] sm:$0x1] }
 0x176   :  { %2228 = vmatmul.bf16.gmra.mxu2 %v2136_v37  ;;  %v1592_v37 = vld [vmem:[#allocation2 + $0x78] sm:$0xf]  ;;  %5433 = vst [vmem:[#allocation4_spill] sm:$0xff] %v5060_v3  ;;  %v1753_v10 = vsel %vm4579_vm12, %v1748_v62, %v1752_v51  ;;  %v2665_v22 = vshll.u32 %v5060_v3, 16  ;;  %v1785_v27 = vrot.slane %v1783_v28, 4  ;;  %v1788_v29 = vrot.slane %v1786_v63, 5 }
 0x177   :  { %v5046_v58 = vpop.f32.mrf.mxu3  ;;  %v2676_v61 = vor.u32 %v2675_v38, %v2672_v24  ;;  %v1769_v17 = vshrl.u32 %v1592_v37, 16  ;;  %v1772_v9 = vshll.u32 %v1592_v37, 16  ;;  %v2662_v21 = vor.u32 %v2661_v60, %v2658_v19  ;;  %v2483_v38 = vld [vmem:[#allocation2 + $0x90] sm:$0xf]  ;;  %v5072_v37 = vld [vmem:[#allocation2 + $0x94] sm:$0x1] }
 0x178   :  { %v1851_v30 = vunpack.c.l.b16 %v1753_v10  ;;  %v2127_v24 = vunpack.c.l.b16 %v2085_v1  ;;  %v2681_v39 = vrot.slane %v2679_v6, 5  ;;  %v2667_v59 = vrot.slane %v2665_v22, 5  ;;  %v2001_v28 = vld [vmem:[#allocation2 + $0x90] sm:$0xe]  ;;  %v4229_v10 = vld [vmem:[%s5414_s3 + $0x200] sm:$0xff] }
 0x179   :  { %v1082_v20 = vpop.f32.mrf.mxu2  ;;  %v2677_v15 = vrot.slane %v2676_v61, 4  ;;  %v1771_v40 = vrot.slane %v1769_v17, 4  ;;  %v1774_v33 = vrot.slane %v1772_v9, 5  ;;  %v2663_v52 = vrot.slane %v2662_v21, 4  ;;  %v5085_v22 = vld [vmem:[#allocation2 + $0x8c] sm:$0x1]  ;;  %3089 = vmatpush.bf16.msra.mxu1 %v4229_v10 }
 0x17a   :  { %v5050_v45 = vpop.f32.mrf.mxu1  ;;  %v1862_v62 = vpack.c.b16 %v1852_v35, %v1851_v30  ;;  %v2137_v51 = vpack.c.b16 %v2128_v54, %v2127_v24  ;;  %v1789_v60 = vor.u32 %v1788_v29, %v1785_v27  ;;  %v2684_v41 = vshrl.u32 %v2483_v38, 16  ;;  %v3923_v35 = vld [vmem:[#allocation2 + $0x80] sm:$0xf]  ;;  %v4211_v54 = vld [vmem:[#allocation2 + $0x84] sm:$0xf0] }
 0x17b   :  { %v2682_v19 = vsel %vm4579_vm12, %v2677_v15, %v2681_v39  ;;  %v2687_v63 = vshll.u32 %v2483_v38, 16  ;;  %v2698_v1 = vshrl.u32 %v2485_v43, 16  ;;  %v1775_v6 = vor.u32 %v1774_v33, %v1771_v40  ;;  %v2000_v29 = vld [vmem:[#allocation2 + $0x88] sm:$0xe]  ;;  %v1598_v40 = vld [vmem:[#allocation2 + $0x90] sm:$0xf]  ;;  %v5088_v33 = vpop.f32.mrf.mxu0 }
 0x17c   :  { %2423 = vmatmul.bf16.gmra.mxu3 %v3920_v48  ;;  %v1792_v17 = vshll.u32 %v5031_v0, 16  ;;  %v1778_v21 = vshll.u32 %v5044_v18, 16  ;;  %v2741_v15 = vunpack.c.l.b16 %v2682_v19  ;;  %v1790_v27 = vrot.slane %v1789_v60, 4  ;;  %v1596_v60 = vld [vmem:[#allocation2 + $0x88] sm:$0xf] }
 0x17d   :  { %v3832_v30 = vrot.slane %v2001_v28, 9  ;;  %v2096_v24 = vrot.slane %v5072_v37, 5  ;;  %v2686_v38 = vrot.slane %v2684_v41, 4  ;;  %v2689_v0 = vrot.slane %v2687_v63, 5  ;;  %v5095_v63 = vld [vmem:[#allocation2 + $0x94] sm:$0x1] }
 0x17e   :  { %2841 = vmatmul.bf16.gmra.mxu0 %v2749_v7  ;;  %v2092_v19 = vrot.slane %v5085_v22, 5  ;;  %5434 = vst [vmem:[#allocation5_spill] sm:$0xff] %v5095_v63  ;;  %v1814_v10 = vshll.u32 %v1598_v40, 16 }
 0x17f   :  { %v1343_v12 = vpop.f32.mrf.mxu3 }
 0x181   :  { %v5068_v7 = vpop.f32.mrf.mxu2 }
 0x182   :  { %v937_v26 = vpop.f32.mrf.mxu1 }
 0x183   :  { %v1083_v48 = vadd.f32 %v1082_v20, %v937_v26  ;;  %v2701_v20 = vshll.u32 %v2485_v43, 16  ;;  %v2700_v26 = vrot.slane %v2698_v1, 4  ;;  %v5097_v1 = vld [vmem:[#allocation2 + $0x9c] sm:$0x1]  ;;  %v5107_v44 = vpop.f32.mrf.mxu0 }
 0x184   :  { %5435 = vst [vmem:[#allocation6_spill] sm:$0xff] %v5097_v1 }
 0x185   :  { %v5074_v61 = vadd.f32 %v1343_v12, %v1083_v48  ;;  %1954 = vmatmul.bf16.gmra.mxu1 %v1862_v62  ;;  %v2668_v12 = vsel %vm4579_vm12, %v2663_v52, %v2667_v59  ;;  %v2703_v39 = vrot.slane %v2701_v20, 5  ;;  %v3924_v48 = vor.u32 %v4211_v54, %v3923_v35 }
 0x186   :  { %2233 = vmatmul.bf16.gmra.mxu2 %v2137_v51  ;;  %v2740_v18 = vunpack.c.l.b16 %v2668_v12  ;;  %v1776_v62 = vrot.slane %v1775_v6, 4  ;;  %v1794_v51 = vrot.slane %v1792_v17, 5  ;;  %v1780_v52 = vrot.slane %v1778_v21, 5 }
 0x187   :  { %v5080_v9 = vpop.f32.mrf.mxu3  ;;  %v3831_v59 = vrot.slane %v2000_v29, 9  ;;  %v1811_v20 = vshrl.u32 %v1598_v40, 16  ;;  %v2097_v6 = vsel %vm4564_vm9, %v3832_v30, %v2096_v24  ;;  %v2690_v17 = vor.u32 %v2689_v0, %v2686_v38 }
 0x188   :  { %v2750_v28 = vpack.c.b16 %v2741_v15, %v2740_v18  ;;  %v1795_v41 = vsel %vm4579_vm12, %v1790_v27, %v1794_v51  ;;  %v2704_v35 = vor.u32 %v2703_v39, %v2700_v26  ;;  %v2707_v54 = vshll.u32 %v5097_v1, 16 }
 0x189   :  { %v1087_v12 = vpop.f32.mrf.mxu2  ;;  %v1781_v21 = vsel %vm4579_vm12, %v1776_v62, %v1780_v52  ;;  %v1797_v15 = vshrl.u32 %v1596_v60, 16  ;;  %v1800_v27 = vshll.u32 %v1596_v60, 16  ;;  %v1854_v29 = vunpack.c.l.b16 %v1795_v41 }
 0x18a   :  { %v5090_v43 = vpop.f32.mrf.mxu1  ;;  %v2693_v40 = vshll.u32 %v5095_v63, 16  ;;  %v2130_v51 = vunpack.c.l.b16 %v2097_v6  ;;  %v1813_v30 = vrot.slane %v1811_v20, 4  ;;  %v1816_v24 = vrot.slane %v1814_v10, 5 }
 0x18b   :  { %v1853_v38 = vunpack.c.l.b16 %v1781_v21  ;;  %v2691_v0 = vrot.slane %v2690_v17, 4  ;;  %v2705_v26 = vrot.slane %v2704_v35, 4  ;;  %v2709_v39 = vrot.slane %v2707_v54, 5  ;;  %v3927_v35 = vld [vmem:[#allocation2 + $0x90] sm:$0xf] }
 0x18c   :  { %2428 = vmatmul.bf16.gmra.mxu3 %v3924_v48  ;;  %v2093_v48 = vsel %vm4564_vm9, %v3831_v59, %v2092_v19  ;;  %v1799_v3 = vrot.slane %v1797_v15, 4  ;;  %v1802_v62 = vrot.slane %v1800_v27, 5  ;;  %v2695_v41 = vrot.slane %v2693_v40, 5  ;;  %v4212_v54 = vld [vmem:[#allocation2 + $0x94] sm:$0xf0] }
 0x18d   :  { %v2129_v1 = vunpack.c.l.b16 %v2093_v48  ;;  %v1863_v60 = vpack.c.b16 %v1854_v29, %v1853_v38  ;;  %v1817_v19 = vor.u32 %v1816_v24, %v1813_v30  ;;  %v2710_v10 = vsel %vm4579_vm12, %v2705_v26, %v2709_v39  ;;  %v5125_v24 = vpop.f32.mrf.mxu0 }
 0x18e   :  { %2846 = vmatmul.bf16.gmra.mxu0 %v2750_v28  ;;  %v2696_v20 = vsel %vm4579_vm12, %v2691_v0, %v2695_v41  ;;  %v1803_v6 = vor.u32 %v1802_v62, %v1799_v3  ;;  %v1820_v17 = vshll.u32 %v5072_v37, 16  ;;  %v1806_v15 = vshll.u32 %v5085_v22, 16  ;;  %v2874_v41 = vld [vmem:[#allocation2 + $0x18] sm:$0xe] }
 0x18f   :  { %v1348_v18 = vpop.f32.mrf.mxu3  ;;  %v2138_v59 = vpack.c.b16 %v2130_v51, %v2129_v1  ;;  %v2742_v21 = vunpack.c.l.b16 %v2696_v20  ;;  %v2743_v1 = vunpack.c.l.b16 %v2710_v10  ;;  %v1818_v27 = vrot.slane %v1817_v19, 4  ;;  %v4244_v19 = vld [vmem:[%s5415_s5 + $0x38] sm:$0xff] }
 0x190   :  { %v3928_v40 = vor.u32 %v4212_v54, %v3927_v35  ;;  %v1822_v51 = vrot.slane %v1820_v17, 5  ;;  %v1808_v30 = vrot.slane %v1806_v15, 5  ;;  %v4010_v20 = vrot.slane %v2874_v41, 9  ;;  %v4301_v10 = vld [vmem:[#allocation2 + $0x1c] sm:$0x1]  ;;  %3259 = vmatpush.bf16.msra.mxu2 %v4244_v19 }
 0x191   :  { %v2751_v3 = vpack.c.b16 %v2743_v1, %v2742_v21  ;;  %v4302_v54 = vld [vmem:[#allocation2 + $0x14] sm:$0x1] }
 0x192   :  { %v942_v28 = vpop.f32.mrf.mxu1  ;;  %v1823_v37 = vsel %vm4579_vm12, %v1818_v27, %v1822_v51  ;;  %v2923_v21 = vrot.slane %v4302_v54, 5  ;;  %v2878_v54 = vld [vmem:[#allocation2 + $0x38] sm:$0xe] }
 0x193   :  { %v1088_v52 = vadd.f32 %v1087_v12, %v942_v28  ;;  %v5116_v12 = vpop.f32.mrf.mxu2  ;;  %v1856_v38 = vunpack.c.l.b16 %v1823_v37  ;;  %v2876_v37 = vld [vmem:[#allocation2 + $0x28] sm:$0xe] }
 0x195   :  { %v5109_v63 = vadd.f32 %v1348_v18, %v1088_v52  ;;  %1959 = vmatmul.bf16.gmra.mxu1 %v1863_v60  ;;  %v1804_v18 = vrot.slane %v1803_v6, 4  ;;  %v2927_v6 = vrot.slane %v4301_v10, 5 }
 0x196   :  { %2238 = vmatmul.bf16.gmra.mxu2 %v2138_v59  ;;  %v2873_v59 = vld [vmem:[#allocation2 + $0x10] sm:$0xe] }
 0x197   :  { %v5121_v48 = vpop.f32.mrf.mxu3  ;;  %v1809_v22 = vsel %vm4579_vm12, %v1804_v18, %v1808_v30  ;;  %v4009_v35 = vrot.slane %v2873_v59, 9  ;;  %v2928_v1 = vsel %vm4564_vm9, %v4010_v20, %v2927_v6  ;;  %v1554_v20 = vadd.f32 %v5013_v13, %v4930_v56  ;;  %v5160_v6 = vpop.f32.mrf.mxu0  ;;  %v4305_v56 = vld [vmem:[#allocation2 + $0x3c] sm:$0x1] }
 0x198   :  { %v1855_v0 = vunpack.c.l.b16 %v1809_v22  ;;  %v3003_v27 = vunpack.c.l.b16 %v2928_v1  ;;  %v2875_v22 = vld [vmem:[#allocation2 + $0x20] sm:$0xe]  ;;  %v4242_v1 = vld [vmem:[%s5415_s5 + $0x28] sm:$0xff]  ;;  %v2943_v13 = vrot.slane %v4305_v56, 5 }
 0x199   :  { %v2924_v15 = vsel %vm4564_vm9, %v4009_v35, %v2923_v21  ;;  %v2877_v21 = vld [vmem:[#allocation2 + $0x30] sm:$0xe] }
 0x19a   :  { %v5119_v29 = vpop.f32.mrf.mxu1  ;;  %v1864_v62 = vpack.c.b16 %v1856_v38, %v1855_v0  ;;  %v3002_v18 = vunpack.c.l.b16 %v2924_v15  ;;  %v4243_v38 = vld [vmem:[%s5415_s5 + $0x30] sm:$0xff]  ;;  %v4012_v0 = vrot.slane %v2876_v37, 9 }
 0x19b   :  { %v1092_v26 = vpop.f32.mrf.mxu2  ;;  %3260 = vmatpush.bf16.msra.mxu2 %v4243_v38  ;;  %v4247_v15 = vld [vmem:[%s5416_s7 + $0x10] sm:$0xff] }
 0x19c   :  { %2433 = vmatmul.bf16.gmra.mxu3 %v3928_v40  ;;  %v1552_v40 = vadd.f32 %v4971_v49, %v4905_v34  ;;  %v3018_v30 = vpack.c.b16 %v3003_v27, %v3002_v18  ;;  %v4011_v49 = vrot.slane %v2875_v22, 9  ;;  %v4014_v27 = vrot.slane %v2878_v54, 9 }
 0x19d   :  { %3345 = vmatpush.bf16.msra.mxu3 %v4247_v15 }
 0x19e   :  { %2851 = vmatmul.bf16.gmra.mxu0 %v2751_v3 }
 0x19f   :  { %v1353_v52 = vpop.f32.mrf.mxu3  ;;  %3261 = vmatpush.bf16.msra.mxu2 %v4242_v1  ;;  %v5174_v38 = vpop.f32.mrf.mxu0 }
 0x1a2   :  { %v947_v39 = vpop.f32.mrf.mxu1 }
 0x1a3   :  { %v1093_v28 = vadd.f32 %v1092_v26, %v947_v39  ;;  %v4303_v26 = vld [vmem:[#allocation2 + $0x2c] sm:$0x1] }
 0x1a4   :  { %v2935_v39 = vrot.slane %v4303_v26, 5 }
 0x1a5   :  { %v5129_v60 = vadd.f32 %v1353_v52, %v1093_v28  ;;  %1964 = vmatmul.bf16.gmra.mxu1 %v1864_v62  ;;  %v1553_v28 = vadd.f32 %v4990_v36, %v4918_v57  ;;  %v4304_v62 = vld [vmem:[#allocation2 + $0x24] sm:$0x1] }
 0x1a6   :  { %v2931_v52 = vrot.slane %v4304_v62, 5  ;;  %v2936_v59 = vsel %vm4564_vm9, %v4012_v0, %v2935_v39  ;;  %v2944_v0 = vsel %vm4564_vm9, %v4014_v27, %v2943_v13  ;;  %v2879_v62 = vld [vmem:[#allocation2 + $0x40] sm:$0xe] }
 0x1a7   :  { %v3005_v50 = vunpack.c.l.b16 %v2936_v59  ;;  %v3007_v39 = vunpack.c.l.b16 %v2944_v0  ;;  %v5184_v59 = vpop.f32.mrf.mxu0  ;;  %v2881_v13 = vld [vmem:[#allocation2 + $0x60] sm:$0xe] }
 0x1a8   :  { %v2932_v19 = vsel %vm4564_vm9, %v4011_v49, %v2931_v52  ;;  %v2880_v52 = vld [vmem:[#allocation2 + $0x48] sm:$0xe]  ;;  %v4017_v0 = vrot.slane %v2881_v13, 9 }
 0x1a9   :  { %v3004_v10 = vunpack.c.l.b16 %v2932_v19  ;;  %v4241_v19 = vld [vmem:[%s5415_s5 + $0x20] sm:$0xff] }
 0x1aa   :  { %v5137_v17 = vpop.f32.mrf.mxu1  ;;  %3262 = vmatpush.bf16.msra.mxu2 %v4241_v19 }
 0x1ab   :  { %v3019_v35 = vpack.c.b16 %v3005_v50, %v3004_v10  ;;  %v4015_v50 = vrot.slane %v2879_v62, 9  ;;  %v4016_v10 = vrot.slane %v2880_v52, 9 }
 0x1af   :  { %v5199_v27 = vpop.f32.mrf.mxu0 }
 0x1b2   :  { %v1930_v51 = vpop.f32.mrf.mxu1 }
 0x1b3   :  { %v5145_v3 = vadd.f32 %v1930_v51, %v1552_v40  ;;  %v1555_v40 = vadd.f32 %v5039_v8, %v4952_v32  ;;  %v4013_v51 = vrot.slane %v2877_v21, 9  ;;  %v1556_v32 = vadd.f32 %v5065_v42, %v4959_v2 }
 0x1b4   :  { %v2951_v2 = vrot.slane %v4949_v25, 5  ;;  %v1557_v42 = vadd.f32 %v5088_v33, %v4980_v53  ;;  %v2882_v33 = vld [vmem:[#allocation2 + $0x68] sm:$0xe] }
 0x1b5   :  { %3090 = vmatmul.bf16.vlgmr.msra.gmra.mxu1 %v3018_v30  ;;  %v4306_v30 = vld [vmem:[#allocation2 + $0x34] sm:$0x1] }
 0x1b6   :  { %v2939_v37 = vrot.slane %v4306_v30, 5  ;;  %v2952_v21 = vsel %vm4564_vm9, %v4016_v10, %v2951_v2  ;;  %v2959_v30 = vrot.slane %v4974_v46, 5  ;;  %v4239_v10 = vld [vmem:[%s5415_s5 + $0x10] sm:$0xff] }
 0x1b7   :  { %v3009_v15 = vunpack.c.l.b16 %v2952_v21 }
 0x1b8   :  { %v2940_v26 = vsel %vm4564_vm9, %v4013_v51, %v2939_v37  ;;  %v4018_v51 = vrot.slane %v2882_v33, 9 }
 0x1b9   :  { %v3006_v8 = vunpack.c.l.b16 %v2940_v26  ;;  %v2955_v26 = vrot.slane %v4982_v55, 5 }
 0x1ba   :  { %v1932_v34 = vpop.f32.mrf.mxu1 }
 0x1bb   :  { %v5152_v41 = vadd.f32 %v1932_v34, %v1553_v28  ;;  %v3020_v49 = vpack.c.b16 %v3007_v39, %v3006_v8  ;;  %v2956_v8 = vsel %vm4564_vm9, %v4017_v0, %v2955_v26  ;;  %v5437_v26 = vld [vmem:[#allocation4_spill] sm:$0xff] }
 0x1c2   :  { %v1935_v57 = vpop.f32.mrf.mxu1 }
 0x1c3   :  { %v5162_v36 = vadd.f32 %v1935_v57, %v1554_v20  ;;  %v2947_v20 = vrot.slane %v4947_v23, 5  ;;  %v1558_v23 = vadd.f32 %v5107_v44, %v4994_v31  ;;  %v1559_v31 = vadd.f32 %v5125_v24, %v5019_v4  ;;  %v5214_v44 = vpop.f32.mrf.mxu0 }
 0x1c4   :  { %v1080_v4 = vadd.f32 %v5027_v47, %v5050_v45  ;;  %v1560_v24 = vadd.f32 %v5160_v6, %v5033_v5  ;;  %v2967_v45 = vrot.slane %v5011_v11, 5  ;;  %v1085_v11 = vadd.f32 %v5068_v7, %v5090_v43  ;;  %v4245_v7 = vld [vmem:[%s5416_s7] sm:$0xff] }
 0x1c5   :  { %3095 = vmatmul.bf16.gmra.mxu1 %v3019_v35  ;;  %v2948_v54 = vsel %vm4564_vm9, %v4015_v50, %v2947_v20  ;;  %v2884_v50 = vld [vmem:[#allocation2 + $0x78] sm:$0xe]  ;;  %v2883_v20 = vld [vmem:[#allocation2 + $0x70] sm:$0xe] }
 0x1c6   :  { %v3008_v1 = vunpack.c.l.b16 %v2948_v54  ;;  %v1367_v19 = vadd.f32 %v5046_v58, %v1080_v4  ;;  %v4020_v47 = vrot.slane %v2884_v50, 9  ;;  %v4019_v2 = vrot.slane %v2883_v20, 9 }
 0x1c7   :  { %v1369_v13 = vadd.f32 %v5080_v9, %v1085_v11 }
 0x1c8   :  { %v3021_v53 = vpack.c.b16 %v3009_v15, %v3008_v1  ;;  %v1561_v5 = vadd.f32 %v5174_v38, %v1367_v19  ;;  %v2968_v58 = vsel %vm4564_vm9, %v4020_v47, %v2967_v45  ;;  %v1094_v15 = vpop.f32.mrf.mxu2  ;;  %v1562_v38 = vadd.f32 %v5184_v59, %v5074_v61  ;;  %v5436_v59 = vld [vmem:[#allocation3_spill] sm:$0xff] }
 0x1c9   :  { %v3013_v1 = vunpack.c.l.b16 %v2968_v58  ;;  %v5438_v58 = vld [vmem:[#allocation5_spill] sm:$0xff] }
 0x1ca   :  { %v1937_v18 = vpop.f32.mrf.mxu1 }
 0x1cb   :  { %v5172_v22 = vadd.f32 %v1937_v18, %v1555_v40  ;;  %v4240_v40 = vld [vmem:[%s5415_s5 + $0x18] sm:$0xff]  ;;  %v4246_v18 = vld [vmem:[%s5416_s7 + $0x8] sm:$0xff]  ;;  %v5229_v52 = vpop.f32.mrf.mxu0 }
 0x1cc   :  { %3263 = vmatpush.bf16.msra.mxu2 %v4240_v40  ;;  %3346 = vmatpush.bf16.msra.mxu3 %v4246_v18  ;;  %v2886_v40 = vld [vmem:[#allocation2 + $0x88] sm:$0xe]  ;;  %v2885_v18 = vld [vmem:[#allocation2 + $0x80] sm:$0xe] }
 0x1cd   :  { %v4022_v43 = vrot.slane %v2886_v40, 9  ;;  %v4021_v0 = vrot.slane %v2885_v18, 9 }
 0x1d0   :  { %3264 = vmatpush.bf16.msra.mxu2 %v4239_v10  ;;  %3347 = vmatpush.bf16.msra.mxu3 %v4245_v7  ;;  %v2204_v9 = vpop.f32.mrf.mxu2  ;;  %v1095_v7 = vadd.f32 %v1094_v15, %v5137_v17  ;;  %v4309_v17 = vld [vmem:[%s5413_s0 + $0x10] sm:$0xff] }
 0x1d2   :  { %v1940_v28 = vpop.f32.mrf.mxu1 }
 0x1d3   :  { %v5182_v34 = vadd.f32 %v1940_v28, %v1556_v32  ;;  %v2960_v32 = vsel %vm4564_vm9, %v4018_v51, %v2959_v30  ;;  %v3010_v28 = vunpack.c.l.b16 %v2956_v8  ;;  %v5242_v54 = vpop.f32.mrf.mxu0  ;;  %v4238_v51 = vld [vmem:[%s5415_s5 + $0x8] sm:$0xff]  ;;  %v2975_v30 = vrot.slane %v5436_v59, 5 }
 0x1d4   :  { %v3011_v46 = vunpack.c.l.b16 %v2960_v32  ;;  %3265 = vmatpush.bf16.msra.mxu2 %v4238_v51  ;;  %v2971_v32 = vrot.slane %v5437_v26, 5 }
 0x1d5   :  { %3100 = vmatmul.bf16.gmra.mxu1 %v3020_v49  ;;  %v2976_v4 = vsel %vm4564_vm9, %v4022_v43, %v2975_v30  ;;  %v1566_v43 = vadd.f32 %v5242_v54, %v5129_v60  ;;  %v2244_v60 = vadd.f32 %v2204_v9, %v5145_v3 }
 0x1d6   :  { %v3022_v55 = vpack.c.b16 %v3011_v46, %v3010_v28  ;;  %v3015_v28 = vunpack.c.l.b16 %v2976_v4 }
 0x1d8   :  { %v2206_v45 = vpop.f32.mrf.mxu2 }
 0x1da   :  { %v1942_v57 = vpop.f32.mrf.mxu1 }
 0x1db   :  { %v5193_v35 = vadd.f32 %v1942_v57, %v1557_v42  ;;  %v2963_v42 = vrot.slane %v5017_v14, 5  ;;  %v5250_v14 = vpop.f32.mrf.mxu3  ;;  %v1549_v61 = vpop.f32.mrf.mxu0 }
 0x1dd   :  { %v2964_v21 = vsel %vm4564_vm9, %v4019_v2, %v2963_v42  ;;  %v2888_v2 = vld [vmem:[#allocation2 + $0x98] sm:$0xe] }
 0x1e0   :  { %v2209_v40 = vpop.f32.mrf.mxu2 }
 0x1e2   :  { %v1945_v25 = vpop.f32.mrf.mxu1 }
 0x1e3   :  { %v5203_v56 = vadd.f32 %v1945_v25, %v1558_v23  ;;  %v3012_v23 = vunpack.c.l.b16 %v2964_v21  ;;  %v2399_v46 = vpop.f32.mrf.mxu3  ;;  %v2817_v50 = vpop.f32.mrf.mxu0  ;;  %v5439_v21 = vld [vmem:[#allocation6_spill] sm:$0xff] }
 0x1e4   :  { %v2439_v15 = vadd.f32 %v2399_v46, %v2244_v60 }
 0x1e5   :  { %3105 = vmatmul.bf16.gmra.mxu1 %v3021_v53  ;;  %v3023_v33 = vpack.c.b16 %v3013_v1, %v3012_v23  ;;  %v2983_v1 = vrot.slane %v5439_v21, 5 }
 0x1ea   :  { %v1947_v37 = vpop.f32.mrf.mxu1 }
 0x1eb   :  { %v5217_v39 = vadd.f32 %v1947_v37, %v1559_v31  ;;  %v1563_v31 = vadd.f32 %v5199_v27, %v1369_v13  ;;  %v2972_v27 = vsel %vm4564_vm9, %v4021_v0, %v2971_v32  ;;  %v2401_v42 = vpop.f32.mrf.mxu3  ;;  %v4308_v13 = vld [vmem:[%s5413_s0 + $0x8] sm:$0xff]  ;;  %v2211_v0 = vpop.f32.mrf.mxu2 }
 0x1ec   :  { %v3014_v19 = vunpack.c.l.b16 %v2972_v27 }
 0x1ee   :  { %v3024_v47 = vpack.c.b16 %v3015_v28, %v3014_v19 }
 0x1f2   :  { %v1950_v49 = vpop.f32.mrf.mxu1 }
 0x1f3   :  { %v5227_v62 = vadd.f32 %v1950_v49, %v1560_v24  ;;  %v4307_v24 = vld [vmem:[%s5413_s0] sm:$0xff]  ;;  %v1090_v49 = vadd.f32 %v5116_v12, %v5119_v29  ;;  %v2404_v51 = vpop.f32.mrf.mxu3  ;;  %v2214_v27 = vpop.f32.mrf.mxu2 }
 0x1f4   :  { %4121 = vmatmul.msk.bf16.vlgmr.msra.gmra.mxu3 %vm122_vm0, %v4307_v24  ;;  %v4237_v12 = vld [vmem:[%s5415_s5] sm:$0xff] }
 0x1f5   :  { %3110 = vmatmul.bf16.gmra.mxu1 %v3022_v55  ;;  %v1564_v55 = vadd.f32 %v5214_v44, %v5109_v63  ;;  %v2979_v63 = vrot.slane %v5438_v58, 5  ;;  %v4024_v44 = vrot.slane %v2888_v2, 9  ;;  %3266 = vmatpush.bf16.msra.mxu2 %v4237_v12  ;;  %v2247_v58 = vadd.f32 %v2211_v0, %v5172_v22 }
 0x1f6   :  { %v2248_v22 = vadd.f32 %v2214_v27, %v5182_v34 }
 0x1fa   :  { %v1952_v6 = vpop.f32.mrf.mxu1 }
 0x1fb   :  { %v5238_v57 = vadd.f32 %v1952_v6, %v1561_v5  ;;  %v1371_v5 = vadd.f32 %v5121_v48, %v1090_v49  ;;  %v2887_v6 = vld [vmem:[#allocation2 + $0x90] sm:$0xe]  ;;  %v2819_v48 = vpop.f32.mrf.mxu0  ;;  %v2406_v32 = vpop.f32.mrf.mxu3 }
 0x1fc   :  { %v4023_v29 = vrot.slane %v2887_v6, 9  ;;  %v2216_v46 = vpop.f32.mrf.mxu2 }
 0x1fd   :  { %v1565_v11 = vadd.f32 %v5229_v52, %v1371_v5 }
 0x202   :  { %v1955_v25 = vpop.f32.mrf.mxu1 }
 0x203   :  { %v5252_v53 = vadd.f32 %v1955_v25, %v1562_v38  ;;  %v2980_v25 = vsel %vm4564_vm9, %v4023_v29, %v2979_v63  ;;  %v2409_v49 = vpop.f32.mrf.mxu3 }
 0x204   :  { %4122 = vmatmul.msk.bf16.gmra.mxu3 %vm122_vm0, %v4308_v13  ;;  %v3016_v18 = vunpack.c.l.b16 %v2980_v25 }
 0x205   :  { %3115 = vmatmul.bf16.gmra.mxu1 %v3023_v33  ;;  %v2984_v33 = vsel %vm4564_vm9, %v4024_v44, %v2983_v1  ;;  %v2442_v1 = vadd.f32 %v2406_v32, %v2247_v58 }
 0x206   :  { %v3017_v52 = vunpack.c.l.b16 %v2984_v33 }
 0x208   :  { %v3025_v16 = vpack.c.b16 %v3017_v52, %v3016_v18  ;;  %v4311_v18 = vld [vmem:[%s5413_s0 + $0x20] sm:$0xff] }
 0x20a   :  { %v1957_v37 = vpop.f32.mrf.mxu1 }
 0x20b   :  { %v5264_v8 = vadd.f32 %v1957_v37, %v1563_v31  ;;  %v1373_v31 = vadd.f32 %v5250_v14, %v1095_v7  ;;  %v2822_v37 = vpop.f32.mrf.mxu0  ;;  %v2245_v14 = vadd.f32 %v2206_v45, %v5152_v41  ;;  %v4310_v41 = vld [vmem:[%s5413_s0 + $0x18] sm:$0xff]  ;;  %v2411_v2 = vpop.f32.mrf.mxu3 }
 0x20d   :  { %v1567_v26 = vadd.f32 %v1549_v61, %v1373_v31  ;;  %v2440_v61 = vadd.f32 %v2401_v42, %v2245_v14  ;;  %v2249_v31 = vadd.f32 %v2216_v46, %v5193_v35 }
 0x20f   :  { %v2444_v32 = vadd.f32 %v2411_v2, %v2249_v31 }
 0x212   :  { %v1960_v20 = vpop.f32.mrf.mxu1 }
 0x213   :  { %v5278_v10 = vadd.f32 %v1960_v20, %v1564_v55  ;;  %v2824_v54 = vpop.f32.mrf.mxu0  ;;  %v2857_v55 = vadd.f32 %v2817_v50, %v2439_v15  ;;  %v5314_v20 = vld [vmem:[%s5417_s4] ss:$0 sm:$0xff]  ;;  %v2246_v50 = vadd.f32 %v2209_v40, %v5162_v36  ;;  %v2414_v25 = vpop.f32.mrf.mxu3 }
 0x214   :  { %4123 = vmatmul.msk.bf16.gmra.mxu3 %vm122_vm0, %v4309_v17  ;;  %v2860_v33 = vadd.f32 %v2824_v54, %v2442_v1 }
 0x215   :  { %3120 = vmatmul.bf16.gmra.mxu1 %v3024_v47  ;;  %v2858_v47 = vadd.f32 %v2819_v48, %v2440_v61  ;;  %v2441_v29 = vadd.f32 %v2404_v51, %v2246_v50 }
 0x21a   :  { %v1962_v38 = vpop.f32.mrf.mxu1 }
 0x21b   :  { %v5287_v23 = vadd.f32 %v1962_v38, %v1565_v11  ;;  %v2827_v5 = vpop.f32.mrf.mxu0  ;;  %v2859_v11 = vadd.f32 %v2822_v37, %v2441_v29  ;;  %v2219_v38 = vpop.f32.mrf.mxu2 }
 0x21c   :  { %v2416_v0 = vpop.f32.mrf.mxu3  ;;  %v2250_v35 = vadd.f32 %v2219_v38, %v5203_v56 }
 0x222   :  { %v1965_v59 = vpop.f32.mrf.mxu1 }
 0x223   :  { %v5300_v30 = vadd.f32 %v1965_v59, %v1566_v43  ;;  %v2829_v21 = vpop.f32.mrf.mxu0  ;;  %v2221_v59 = vpop.f32.mrf.mxu2 }
 0x224   :  { %4124 = vmatmul.msk.bf16.gmra.mxu3 %vm122_vm0, %v4310_v41  ;;  %v2862_v54 = vadd.f32 %v2829_v21, %v2444_v32 }
 0x225   :  { %3125 = vmatmul.bf16.gmra.mxu1 %v3025_v16  ;;  %v2443_v16 = vadd.f32 %v2409_v49, %v2248_v22  ;;  %v4312_v49 = vld [vmem:[%s5413_s0 + $0x28] sm:$0xff] }
 0x22a   :  { %v1967_v4 = vpop.f32.mrf.mxu1 }
 0x22b   :  { %v5303_v24 = vadd.f32 %v1967_v4, %v1567_v26  ;;  %v2832_v51 = vpop.f32.mrf.mxu0  ;;  %v2861_v4 = vadd.f32 %v2827_v5, %v2443_v16  ;;  %v2224_v15 = vpop.f32.mrf.mxu2  ;;  %v2251_v5 = vadd.f32 %v2221_v59, %v5217_v39  ;;  %v4314_v16 = vld [vmem:[%s5413_s0 + $0x38] sm:$0xff] }
 0x22c   :  { %v2252_v39 = vadd.f32 %v2224_v15, %v5227_v62 }
 0x22d   :  { %v2446_v41 = vadd.f32 %v2416_v0, %v2251_v5 }
 0x232   :  { %v3091_v28 = vpop.f32.mrf.mxu1 }
 0x233   :  { %v3131_v19 = vadd.f32 %v3091_v28, %v2857_v55  ;;  %v2834_v60 = vpop.f32.mrf.mxu0  ;;  %v2419_v28 = vpop.f32.mrf.mxu3 }
 0x234   :  { %4125 = vmatmul.msk.bf16.gmra.mxu3 %vm122_vm0, %v4311_v18  ;;  %v2226_v46 = vpop.f32.mrf.mxu2 }
 0x235   :  { %v3151_v3 = vadd.f32 %v5314_v20, %v3131_v19 }
 0x237   :  { %v3167_v42 = vmax.f32 %v3151_v3, 0.0 }
 0x23a   :  { %v3093_v6 = vpop.f32.mrf.mxu1 }
 0x23b   :  { %v3132_v9 = vadd.f32 %v3093_v6, %v2858_v47  ;;  %v2445_v47 = vadd.f32 %v2414_v25, %v2250_v35  ;;  %v2837_v3 = vpop.f32.mrf.mxu0  ;;  %v2253_v25 = vadd.f32 %v2226_v46, %v5238_v57 }
 0x23c   :  { %v2229_v21 = vpop.f32.mrf.mxu2 }
 0x23d   :  { %v3152_v45 = vadd.f32 %v5314_v20, %v3132_v9  ;;  %v2863_v50 = vadd.f32 %v2832_v51, %v2445_v47  ;;  %v2254_v57 = vadd.f32 %v2229_v21, %v5252_v53 }
 0x23f   :  { %v3168_v12 = vmax.f32 %v3152_v45, 0.0  ;;  %v2421_v45 = vpop.f32.mrf.mxu3 }
 0x241   :  { %v3183_v63 = vpack.c.bf16 %v3168_v12, %v3167_v42  ;;  %v2864_v42 = vadd.f32 %v2834_v60, %v2446_v41 }
 0x242   :  { %v3096_v44 = vpop.f32.mrf.mxu1 }
 0x243   :  { %3267 = vmatmul.bf16.vlgmr.msra.gmra.mxu2 %v3183_v63  ;;  %v3133_v48 = vadd.f32 %v3096_v44, %v2859_v11  ;;  %v2839_v58 = vpop.f32.mrf.mxu0  ;;  %v4313_v63 = vld [vmem:[%s5413_s0 + $0x30] sm:$0xff] }
 0x244   :  { %4126 = vmatmul.msk.bf16.gmra.mxu3 %vm122_vm0, %v4312_v49 }
 0x245   :  { %v3153_v36 = vadd.f32 %v5314_v20, %v3133_v48  ;;  %v2447_v48 = vadd.f32 %v2419_v28, %v2252_v39 }
 0x247   :  { %v3169_v7 = vmax.f32 %v3153_v36, 0.0  ;;  %v2424_v38 = vpop.f32.mrf.mxu3  ;;  %v2448_v36 = vadd.f32 %v2421_v45, %v2253_v25 }
 0x248   :  { %v2449_v32 = vadd.f32 %v2424_v38, %v2254_v57 }
 0x249   :  { %v2866_v51 = vadd.f32 %v2839_v58, %v2448_v36 }
 0x24a   :  { %v3098_v13 = vpop.f32.mrf.mxu1 }
 0x24b   :  { %v3134_v40 = vadd.f32 %v3098_v13, %v2860_v33  ;;  %v2842_v18 = vpop.f32.mrf.mxu0 }
 0x24d   :  { %v3154_v52 = vadd.f32 %v5314_v20, %v3134_v40  ;;  %v2865_v40 = vadd.f32 %v2837_v3, %v2447_v48 }
 0x24f   :  { %v3170_v43 = vmax.f32 %v3154_v52, 0.0  ;;  %v2231_v52 = vpop.f32.mrf.mxu2 }
 0x251   :  { %v3184_v37 = vpack.c.bf16 %v3170_v43, %v3169_v7  ;;  %v2426_v7 = vpop.f32.mrf.mxu3 }
 0x252   :  { %v3101_v26 = vpop.f32.mrf.mxu1 }
 0x253   :  { %3272 = vmatmul.bf16.gmra.mxu2 %v3184_v37  ;;  %v3135_v17 = vadd.f32 %v3101_v26, %v2861_v4  ;;  %v2844_v26 = vpop.f32.mrf.mxu0  ;;  %v2255_v4 = vadd.f32 %v2231_v52, %v5264_v8 }
 0x254   :  { %4127 = vmatmul.msk.bf16.gmra.mxu3 %vm122_vm0, %v4313_v63 }
 0x255   :  { %v3155_v14 = vadd.f32 %v5314_v20, %v3135_v17 }
 0x257   :  { %v3171_v55 = vmax.f32 %v3155_v14, 0.0  ;;  %v2234_v60 = vpop.f32.mrf.mxu2  ;;  %v2867_v14 = vadd.f32 %v2842_v18, %v2449_v32 }
 0x259   :  { %v2429_v15 = vpop.f32.mrf.mxu3 }
 0x25a   :  { %v3103_v34 = vpop.f32.mrf.mxu1 }
 0x25b   :  { %v3136_v27 = vadd.f32 %v3103_v34, %v2862_v54  ;;  %v2450_v34 = vadd.f32 %v2426_v7, %v2255_v4  ;;  %v2847_v49 = vpop.f32.mrf.mxu0 }
 0x25d   :  { %v3156_v61 = vadd.f32 %v5314_v20, %v3136_v27  ;;  %v2868_v28 = vadd.f32 %v2844_v26, %v2450_v34 }
 0x25f   :  { %v3172_v19 = vmax.f32 %v3156_v61, 0.0 }
 0x261   :  { %v3185_v6 = vpack.c.bf16 %v3172_v19, %v3171_v55  ;;  %v2236_v55 = vpop.f32.mrf.mxu2  ;;  %v2256_v19 = vadd.f32 %v2234_v60, %v5278_v10  ;;  %v2431_v8 = vpop.f32.mrf.mxu3 }
 0x262   :  { %v3106_v9 = vpop.f32.mrf.mxu1 }
 0x263   :  { %3277 = vmatmul.bf16.gmra.mxu2 %v3185_v6  ;;  %v3137_v2 = vadd.f32 %v3106_v9, %v2863_v50  ;;  %v2451_v3 = vadd.f32 %v2429_v15, %v2256_v19  ;;  %v2257_v9 = vadd.f32 %v2236_v55, %v5287_v23  ;;  %v2849_v50 = vpop.f32.mrf.mxu0 }
 0x264   :  { %4128 = vmatmul.msk.bf16.gmra.mxu3 %vm122_vm0, %v4314_v16 }
 0x265   :  { %v3157_v56 = vadd.f32 %v5314_v20, %v3137_v2  ;;  %v2452_v45 = vadd.f32 %v2431_v8, %v2257_v9  ;;  %v2869_v2 = vadd.f32 %v2847_v49, %v2451_v3 }
 0x267   :  { %v3173_v1 = vmax.f32 %v3157_v56, 0.0 }
 0x269   :  { %v2434_v56 = vpop.f32.mrf.mxu3 }
 0x26a   :  { %v3108_v12 = vpop.f32.mrf.mxu1 }
 0x26b   :  { %v3138_v29 = vadd.f32 %v3108_v12, %v2864_v42  ;;  %v2239_v42 = vpop.f32.mrf.mxu2  ;;  %v2852_v21 = vpop.f32.mrf.mxu0 }
 0x26c   :  { %v2258_v39 = vadd.f32 %v2239_v42, %v5300_v30 }
 0x26d   :  { %v3158_v44 = vadd.f32 %v5314_v20, %v3138_v29  ;;  %v2870_v29 = vadd.f32 %v2849_v50, %v2452_v45 }
 0x26e   :  { %v2453_v38 = vadd.f32 %v2434_v56, %v2258_v39 }
 0x26f   :  { %v3174_v11 = vmax.f32 %v3158_v44, 0.0 }
 0x271   :  { %v3186_v33 = vpack.c.bf16 %v3174_v11, %v3173_v1 }
 0x272   :  { %v3111_v13 = vpop.f32.mrf.mxu1 }
 0x273   :  { %3282 = vmatmul.bf16.gmra.mxu2 %v3186_v33  ;;  %v3139_v22 = vadd.f32 %v3111_v13, %v2865_v40  ;;  %v2241_v11 = vpop.f32.mrf.mxu2  ;;  %v2436_v33 = vpop.f32.mrf.mxu3  ;;  %v2871_v40 = vadd.f32 %v2852_v21, %v2453_v38 }
 0x274   :  { %v2259_v48 = vadd.f32 %v2241_v11, %v5303_v24 }
 0x275   :  { %v3159_v43 = vadd.f32 %v5314_v20, %v3139_v22  ;;  %v2854_v22 = vpop.f32.mrf.mxu0 }
 0x276   :  { %v2454_v36 = vadd.f32 %v2436_v33, %v2259_v48 }
 0x277   :  { %v3175_v37 = vmax.f32 %v3159_v43, 0.0 }
 0x278   :  { %v2872_v52 = vadd.f32 %v2854_v22, %v2454_v36 }
 0x27a   :  { %v3113_v62 = vpop.f32.mrf.mxu1 }
 0x27b   :  { %v3140_v59 = vadd.f32 %v3113_v62, %v2866_v51  ;;  %v3349_v30 = vpop.f32.mrf.mxu3 }
 0x27d   :  { %v3160_v31 = vadd.f32 %v5314_v20, %v3140_v59 }
 0x27f   :  { %v3176_v0 = vmax.f32 %v3160_v31, 0.0 }
 0x281   :  { %v3187_v17 = vpack.c.bf16 %v3176_v0, %v3175_v37  ;;  %v5369_v0 = vld [vmem:[%s5418_s6] ss:$0 sm:$0xff] }
 0x282   :  { %v3116_v54 = vpop.f32.mrf.mxu1 }
 0x283   :  { %3287 = vmatmul.bf16.gmra.mxu2 %v3187_v17  ;;  %v3141_v27 = vadd.f32 %v3116_v54, %v2867_v14  ;;  %v3351_v24 = vpop.f32.mrf.mxu3 }
 0x285   :  { %v3161_v53 = vadd.f32 %v5314_v20, %v3141_v27 }
 0x287   :  { %v3177_v5 = vmax.f32 %v3161_v53, 0.0 }
 0x28a   :  { %v3118_v35 = vpop.f32.mrf.mxu1 }
 0x28b   :  { %v3142_v61 = vadd.f32 %v3118_v35, %v2868_v28  ;;  %v3354_v31 = vpop.f32.mrf.mxu3 }
 0x28d   :  { %v3162_v47 = vadd.f32 %v5314_v20, %v3142_v61 }
 0x28f   :  { %v3178_v6 = vmax.f32 %v3162_v47, 0.0 }
 0x291   :  { %v3188_v46 = vpack.c.bf16 %v3178_v6, %v3177_v5 }
 0x292   :  { %v3121_v41 = vpop.f32.mrf.mxu1 }
 0x293   :  { %3292 = vmatmul.bf16.gmra.mxu2 %v3188_v46  ;;  %v3143_v12 = vadd.f32 %v3121_v41, %v2869_v2  ;;  %v3356_v26 = vpop.f32.mrf.mxu3 }
 0x295   :  { %v3163_v10 = vadd.f32 %v5314_v20, %v3143_v12 }
 0x297   :  { %v3179_v23 = vmax.f32 %v3163_v10, 0.0 }
 0x29a   :  { %v3123_v58 = vpop.f32.mrf.mxu1 }
 0x29b   :  { %v3144_v63 = vadd.f32 %v3123_v58, %v2870_v29  ;;  %v3359_v54 = vpop.f32.mrf.mxu3 }
 0x29d   :  { %v3164_v44 = vadd.f32 %v5314_v20, %v3144_v63 }
 0x29f   :  { %v3180_v1 = vmax.f32 %v3164_v44, 0.0 }
 0x2a1   :  { %v3189_v25 = vpack.c.bf16 %v3180_v1, %v3179_v23 }
 0x2a2   :  { %v3126_v13 = vpop.f32.mrf.mxu1 }
 0x2a3   :  { %3297 = vmatmul.bf16.gmra.mxu2 %v3189_v25  ;;  %v3145_v18 = vadd.f32 %v3126_v13, %v2871_v40  ;;  %v3361_v49 = vpop.f32.mrf.mxu3 }
 0x2a5   :  { %v3165_v7 = vadd.f32 %v5314_v20, %v3145_v18 }
 0x2a7   :  { %v3181_v59 = vmax.f32 %v3165_v7, 0.0 }
 0x2aa   :  { %v3128_v51 = vpop.f32.mrf.mxu1 }
 0x2ab   :  { %v3146_v62 = vadd.f32 %v3128_v51, %v2872_v52  ;;  %v3364_v6 = vpop.f32.mrf.mxu3 }
 0x2ad   :  { %v3166_v43 = vadd.f32 %v5314_v20, %v3146_v62 }
 0x2af   :  { %v3182_v16 = vmax.f32 %v3166_v43, 0.0 }
 0x2b1   :  { %v3190_v57 = vpack.c.bf16 %v3182_v16, %v3181_v59 }
 0x2b3   :  { %3302 = vmatmul.bf16.gmra.mxu2 %v3190_v57  ;;  %v3366_v50 = vpop.f32.mrf.mxu3 }
 0x2bb   :  { %v3369_v29 = vpop.f32.mrf.mxu3 }
 0x2c3   :  { %v3371_v1 = vpop.f32.mrf.mxu3 }
 0x2c6   :  { %v3268_v37 = vpop.f32.mrf.mxu2 }
 0x2c7   :  { %v3269_v32 = vadd.f32 %v5369_v0, %v3268_v37 }
 0x2c9   :  { %v3389_v17 = vadd.f32 %v3349_v30, %v3269_v32 }
 0x2cb   :  { %v3405_v15 = vmax.f32 %v3389_v17, 0.0  ;;  %v3374_v33 = vpop.f32.mrf.mxu3 }
 0x2ce   :  { %v3270_v4 = vpop.f32.mrf.mxu2 }
 0x2cf   :  { %v3271_v60 = vadd.f32 %v5369_v0, %v3270_v4 }
 0x2d1   :  { %v3390_v20 = vadd.f32 %v3351_v24, %v3271_v60 }
 0x2d3   :  { %v3406_v34 = vmax.f32 %v3390_v20, 0.0  ;;  %v3376_v30 = vpop.f32.mrf.mxu3 }
 0x2d5   :  { %v4252_v14 = vpack.c.bf16 %v3406_v34, %v3405_v15 }
 0x2d6   :  { %v3273_v27 = vpop.f32.mrf.mxu2 }
 0x2d7   :  { %4253 = vst [vmem:[%s5419_s8] sm:$0xff] %v4252_v14   ;;  %v3274_v28 = vadd.f32 %v5369_v0, %v3273_v27 }
 0x2d9   :  { %v3391_v53 = vadd.f32 %v3354_v31, %v3274_v28 }
 0x2db   :  { %v3407_v19 = vmax.f32 %v3391_v53, 0.0  ;;  %v3379_v57 = vpop.f32.mrf.mxu3 }
 0x2de   :  { %v3275_v35 = vpop.f32.mrf.mxu2 }
 0x2df   :  { %v3276_v61 = vadd.f32 %v5369_v0, %v3275_v35 }
 0x2e1   :  { %v3392_v55 = vadd.f32 %v3356_v26, %v3276_v61 }
 0x2e3   :  { %v3408_v47 = vmax.f32 %v3392_v55, 0.0  ;;  %v3381_v4 = vpop.f32.mrf.mxu3 }
 0x2e5   :  { %v4257_v8 = vpack.c.bf16 %v3408_v47, %v3407_v19 }
 0x2e6   :  { %v3278_v5 = vpop.f32.mrf.mxu2 }
 0x2e7   :  { %4289 = vst [vmem:[%s5419_s8 + $0x8] sm:$0xff] %v4257_v8   ;;  %v3279_v3 = vadd.f32 %v5369_v0, %v3278_v5 }
 0x2e9   :  { %v3393_v46 = vadd.f32 %v3359_v54, %v3279_v3 }
 0x2eb   :  { %v3409_v2 = vmax.f32 %v3393_v46, 0.0  ;;  %v3384_v27 = vpop.f32.mrf.mxu3 }
 0x2ee   :  { %v3280_v9 = vpop.f32.mrf.mxu2 }
 0x2ef   :  { %v3281_v41 = vadd.f32 %v5369_v0, %v3280_v9 }
 0x2f1   :  { %v3394_v45 = vadd.f32 %v3361_v49, %v3281_v41 }
 0x2f3   :  { %v3410_v42 = vmax.f32 %v3394_v45, 0.0  ;;  %v3386_v55 = vpop.f32.mrf.mxu3 }
 0x2f5   :  { %v4262_v12 = vpack.c.bf16 %v3410_v42, %v3409_v2 }
 0x2f6   :  { %v3283_v56 = vpop.f32.mrf.mxu2 }
 0x2f7   :  { %4290 = vst [vmem:[%s5419_s8 + $0x10] sm:$0xff] %v4262_v12   ;;  %v3284_v58 = vadd.f32 %v5369_v0, %v3283_v56 }
 0x2f9   :  { %v3395_v63 = vadd.f32 %v3364_v6, %v3284_v58 }
 0x2fb   :  { %v3411_v21 = vmax.f32 %v3395_v63, 0.0 }
 0x2fe   :  { %v3285_v10 = vpop.f32.mrf.mxu2 }
 0x2ff   :  { %v3286_v39 = vadd.f32 %v5369_v0, %v3285_v10 }
 0x301   :  { %v3396_v44 = vadd.f32 %v3366_v50, %v3286_v39 }
 0x303   :  { %v3412_v23 = vmax.f32 %v3396_v44, 0.0 }
 0x305   :  { %v4267_v11 = vpack.c.bf16 %v3412_v23, %v3411_v21 }
 0x306   :  { %v3288_v38 = vpop.f32.mrf.mxu2 }
 0x307   :  { %4291 = vst [vmem:[%s5419_s8 + $0x18] sm:$0xff] %v4267_v11   ;;  %v3289_v48 = vadd.f32 %v5369_v0, %v3288_v38 }
 0x309   :  { %v3397_v13 = vadd.f32 %v3369_v29, %v3289_v48 }
 0x30b   :  { %v3413_v18 = vmax.f32 %v3397_v13, 0.0 }
 0x30e   :  { %v3290_v25 = vpop.f32.mrf.mxu2 }
 0x30f   :  { %v3291_v36 = vadd.f32 %v5369_v0, %v3290_v25 }
 0x311   :  { %v3398_v40 = vadd.f32 %v3371_v1, %v3291_v36 }
 0x313   :  { %v3414_v22 = vmax.f32 %v3398_v40, 0.0 }
 0x315   :  { %v4272_v52 = vpack.c.bf16 %v3414_v22, %v3413_v18 }
 0x316   :  { %v3293_v51 = vpop.f32.mrf.mxu2 }
 0x317   :  { %4292 = vst [vmem:[%s5419_s8 + $0x20] sm:$0xff] %v4272_v52   ;;  %v3294_v7 = vadd.f32 %v5369_v0, %v3293_v51 }
 0x319   :  { %v3399_v43 = vadd.f32 %v3374_v33, %v3294_v7 }
 0x31b   :  { %v3415_v24 = vmax.f32 %v3399_v43, 0.0 }
 0x31e   :  { %v3295_v62 = vpop.f32.mrf.mxu2 }
 0x31f   :  { %v3296_v59 = vadd.f32 %v5369_v0, %v3295_v62 }
 0x321   :  { %v3400_v16 = vadd.f32 %v3376_v30, %v3296_v59 }
 0x323   :  { %v3416_v31 = vmax.f32 %v3400_v16, 0.0 }
 0x325   :  { %v4277_v37 = vpack.c.bf16 %v3416_v31, %v3415_v24 }
 0x326   :  { %v3298_v26 = vpop.f32.mrf.mxu2 }
 0x327   :  { %4293 = vst [vmem:[%s5419_s8 + $0x28] sm:$0xff] %v4277_v37   ;;  %v3299_v32 = vadd.f32 %v5369_v0, %v3298_v26 }
 0x329   :  { %v3401_v60 = vadd.f32 %v3379_v57, %v3299_v32 }
 0x32b   :  { %v3417_v15 = vmax.f32 %v3401_v60, 0.0 }
 0x32e   :  { %v3300_v17 = vpop.f32.mrf.mxu2 }
 0x32f   :  { %v3301_v20 = vadd.f32 %v5369_v0, %v3300_v17 }
 0x331   :  { %v3402_v54 = vadd.f32 %v3381_v4, %v3301_v20 }
 0x333   :  { %v3418_v34 = vmax.f32 %v3402_v54, 0.0 }
 0x335   :  { %v4282_v14 = vpack.c.bf16 %v3418_v34, %v3417_v15 }
 0x336   :  { %v3303_v28 = vpop.f32.mrf.mxu2 }
 0x337   :  { %4294 = vst [vmem:[%s5419_s8 + $0x30] sm:$0xff] %v4282_v14   ;;  %v3304_v49 = vadd.f32 %v5369_v0, %v3303_v28 }
 0x339   :  { %v3403_v53 = vadd.f32 %v3384_v27, %v3304_v49 }
 0x33b   :  { %v3419_v47 = vmax.f32 %v3403_v53, 0.0 }
 0x33e   :  { %v3305_v35 = vpop.f32.mrf.mxu2 }
 0x33f   :  { %v3306_v61 = vadd.f32 %v5369_v0, %v3305_v35 }
 0x341   :  { %v3404_v19 = vadd.f32 %v3386_v55, %v3306_v61 }
 0x343   :  { %v3420_v8 = vmax.f32 %v3404_v19, 0.0 }
 0x345   :  { %v4287_v5 = vpack.c.bf16 %v3420_v8, %v3419_v47 }
 0x347   :  { %4295 = vst [vmem:[%s5419_s8 + $0x38] sm:$0xff] %v4287_v5  }

// kernel: _lambda_.3
= control target key start
LH: loop header
LB: loop body
LE: loop exit
PB: predicated region body
PF: predicated region fallthrough
CT: control target
= control target key end

     0   :  { %v4256_v19 = vmov 0   ;;  %vm441_vm0 = vcmask 1043456   ;;  %vm442_vm1 = vsmask.f32 7938  ;;  %vm448_vm2 = vsmask.f32 256  ;;  %s5365_s1 = inlined_call_operand.vmem [shape: bf16[128,128], index: 1, kind: input, shape index: {}]   ;;  %s5366_s2 = inlined_call_operand.vmem [shape: f32[1,128], index: 2, kind: input, shape index: {}]   ;;  %s5367_s0 = inlined_call_operand.vmem [shape: bf16[2,8,8,128], index: 0, kind: input, shape index: {}]   ;;  %s5368_s3 = inlined_call_operand.vmem [shape: bf16[9,128,128], index: 3, kind: input, shape index: {}]   ;;  %s5369_s5 = inlined_call_operand.vmem [shape: bf16[128,128], index: 5, kind: input, shape index: {}]   ;;  %s5370_s4 = inlined_call_operand.vmem [shape: f32[1,128], index: 4, kind: input, shape index: {}]   ;;  %s5371_s6 = inlined_call_operand.vmem [shape: f32[1,128], index: 6, kind: input, shape index: {}]   ;;  %s5372_s7 = inlined_call_operand.vmem [shape: bf16[2,8,8,128], index: 7, kind: output, shape index: {}]  }
   0x1   :  { %v4075_v0 = vld [vmem:[%s5365_s1 + $0x38] sm:$0xff]  ;;  %v4074_v1 = vld [vmem:[%s5365_s1 + $0x30] sm:$0xff]  ;;  %v4073_v2 = vld [vmem:[%s5365_s1 + $0x28] sm:$0xff]  ;;  %242 = vst [vmem:[#allocation2 + $0x8] sm:$0xf] %v4256_v19  ;;  %vm447_vm3 = vcmask 1040384  }
   0x2   :  { %159 = vmatpush.bf16.msra.mxu0 %v4075_v0  ;;  %4227 = vmatpush.bf16.msra.mxu3 %v4075_v0  ;;  %v4072_v3 = vld [vmem:[%s5365_s1 + $0x20] sm:$0xff]  ;;  %v4071_v4 = vld [vmem:[%s5365_s1 + $0x18] sm:$0xff]  ;;  %v4070_v5 = vld [vmem:[%s5365_s1 + $0x10] sm:$0xff]  ;;  %243 = vst [vmem:[#allocation2 + $0xc] sm:$0x1] %v4256_v19  ;;  %vm1157_vm6 = vcmask 1042432  }
   0x3   :  { %v4069_v6 = vld [vmem:[%s5365_s1 + $0x8] sm:$0xff]  ;;  %v4068_v7 = vld [vmem:[%s5365_s1] sm:$0xff]  ;;  %v4062_v9 = vld [vmem:[%s5367_s0 + $0x10] sm:$0xff]  ;;  %240 = vst [vmem:[#allocation2] sm:$0xf] %v4256_v19  ;;  %vm1158_vm7 = vcmask 1046532  }
   0x4   :  { %v4060_v8 = vld [vmem:[%s5367_s0] sm:$0xff]  ;;  %v4061_v10 = vld [vmem:[%s5367_s0 + $0x8] sm:$0xff]  ;;  %v4063_v11 = vld [vmem:[%s5367_s0 + $0x18] sm:$0xff]  ;;  %241 = vst [vmem:[#allocation2 + $0x4] sm:$0x1] %v4256_v19 }
   0x5   :  { %v4064_v12 = vld [vmem:[%s5367_s0 + $0x20] sm:$0xff]  ;;  %v4065_v13 = vld [vmem:[%s5367_s0 + $0x28] sm:$0xff]  ;;  %v4107_v14 = vld [vmem:[%s5368_s3 + $0xb8] sm:$0xff]  ;;  %244 = vst [vmem:[#allocation2 + $0x10] sm:$0xf] %v4256_v19 }
   0x6   :  { %160 = vmatpush.bf16.msra.mxu0 %v4074_v1  ;;  %4228 = vmatpush.bf16.msra.mxu3 %v4074_v1  ;;  %v4066_v15 = vld [vmem:[%s5367_s0 + $0x30] sm:$0xff]  ;;  %v4067_v16 = vld [vmem:[%s5367_s0 + $0x38] sm:$0xff]  ;;  %v4105_v20 = vld [vmem:[%s5368_s3 + $0xa8] sm:$0xff]  ;;  %245 = vst [vmem:[#allocation2 + $0x14] sm:$0x1] %v4256_v19 }
   0x7   :  { %v4106_v17 = vld [vmem:[%s5368_s3 + $0xb0] sm:$0xff]  ;;  %v4099_v18 = vld [vmem:[%s5368_s3 + $0x78] sm:$0xff]  ;;  %v4104_v22 = vld [vmem:[%s5368_s3 + $0xa0] sm:$0xff]  ;;  %246 = vst [vmem:[#allocation2 + $0x18] sm:$0xf] %v4256_v19 }
   0x8   :  { %4235 = vmatpush.bf16.msra.mxu1 %v4099_v18  ;;  %v4098_v21 = vld [vmem:[%s5368_s3 + $0x70] sm:$0xff]  ;;  %v4097_v23 = vld [vmem:[%s5368_s3 + $0x68] sm:$0xff]  ;;  %247 = vst [vmem:[#allocation2 + $0x1c] sm:$0x1] %v4256_v19  ;;  %v4103_v24 = vld [vmem:[%s5368_s3 + $0x98] sm:$0xff] }
   0x9   :  { %248 = vst [vmem:[#allocation2 + $0x20] sm:$0xf] %v4256_v19  ;;  %v4096_v25 = vld [vmem:[%s5368_s3 + $0x60] sm:$0xff]  ;;  %v4091_v26 = vld [vmem:[%s5368_s3 + $0x38] sm:$0xff]  ;;  %v4102_v27 = vld [vmem:[%s5368_s3 + $0x90] sm:$0xff] }
   0xa   :  { %161 = vmatpush.bf16.msra.mxu0 %v4073_v2  ;;  %4229 = vmatpush.bf16.msra.mxu3 %v4073_v2  ;;  %249 = vst [vmem:[#allocation2 + $0x24] sm:$0x1] %v4256_v19  ;;  %v4095_v28 = vld [vmem:[%s5368_s3 + $0x58] sm:$0xff]  ;;  %v4090_v29 = vld [vmem:[%s5368_s3 + $0x30] sm:$0xff]  ;;  %v4101_v30 = vld [vmem:[%s5368_s3 + $0x88] sm:$0xff] }
   0xb   :  { %250 = vst [vmem:[#allocation2 + $0x28] sm:$0xf] %v4256_v19  ;;  %4243 = vmatpush.bf16.msra.mxu2 %v4091_v26  ;;  %v4094_v31 = vld [vmem:[%s5368_s3 + $0x50] sm:$0xff]  ;;  %v4413_v32 = vld [vmem:[%s5368_s3 + $0x28] sm:$0xff]  ;;  %v4100_v33 = vld [vmem:[%s5368_s3 + $0x80] sm:$0xff] }
   0xc   :  { %4236 = vmatpush.bf16.msra.mxu1 %v4098_v21  ;;  %251 = vst [vmem:[#allocation2 + $0x2c] sm:$0x1] %v4256_v19  ;;  %v4093_v34 = vld [vmem:[%s5368_s3 + $0x48] sm:$0xff]  ;;  %v4428_v35 = vld [vmem:[%s5366_s2] ss:$0 sm:$0xff]  ;;  %v4449_v40 = vld [vmem:[%s5368_s3 + $0x18] sm:$0xff] }
   0xd   :  { %252 = vst [vmem:[#allocation2 + $0x30] sm:$0xf] %v4256_v19  ;;  %v4434_v36 = vld [vmem:[%s5368_s3 + $0x20] sm:$0xff]  ;;  %v444_v50 = vld [vmem:[#allocation2 + $0x8] sm:$0xf]  ;;  %v4462_v54 = vld [vmem:[%s5368_s3 + $0x10] sm:$0xff] }
   0xe   :  { %162 = vmatpush.bf16.msra.mxu0 %v4072_v3  ;;  %4230 = vmatpush.bf16.msra.mxu3 %v4072_v3  ;;  %253 = vst [vmem:[#allocation2 + $0x34] sm:$0x1] %v4256_v19  ;;  %v4092_v39 = vld [vmem:[%s5368_s3 + $0x40] sm:$0xff]  ;;  %v450_v51 = vld [vmem:[#allocation2 + $0xc] sm:$0x1]  ;;  %vm4466_vm4 = vmand %vm441_vm0, %vm442_vm1 }
   0xf   :  { %254 = vst [vmem:[#allocation2 + $0x38] sm:$0xf] %v4256_v19  ;;  %4244 = vmatpush.bf16.msra.mxu2 %v4090_v29  ;;  %v543_v42 = vld [vmem:[#allocation2] sm:$0xf]  ;;  %v575_v49 = vld [vmem:[#allocation2 + $0x4] sm:$0x1]  ;;  %vm4474_vm5 = vmand %vm447_vm3, %vm448_vm2 }
  0x10   :  { %4237 = vmatpush.bf16.msra.mxu1 %v4097_v23  ;;  %255 = vst [vmem:[#allocation2 + $0x3c] sm:$0x1] %v4256_v19  ;;  %v595_v45 = vshrl.u32 %v543_v42, 16  ;;  %v598_v46 = vshll.u32 %v543_v42, 16  ;;  %v1109_v53 = vld [vmem:[#allocation2] sm:$0xe]  ;;  %vm4495_vm8 = vmor %vm1157_vm6, %vm1158_vm7 }
  0x11   :  { %256 = vst [vmem:[#allocation2 + $0x40] sm:$0xf] %v4256_v19  ;;  %v3580_v3 = vrot.slane %v1109_v53, 9  ;;  %vm591_vm9 = vsmask.f32 3328 }
  0x12   :  { %163 = vmatpush.bf16.msra.mxu0 %v4071_v4  ;;  %4231 = vmatpush.bf16.msra.mxu3 %v4071_v4  ;;  %257 = vst [vmem:[#allocation2 + $0x44] sm:$0x1] %v4256_v19  ;;  %v597_v61 = vrot.slane %v595_v45, 4  ;;  %v600_v62 = vrot.slane %v598_v46, 5  ;;  %v1162_v4 = vrot.slane %v575_v49, 5 }
  0x13   :  { %258 = vst [vmem:[#allocation2 + $0x48] sm:$0xf] %v4256_v19  ;;  %4245 = vmatpush.bf16.msra.mxu2 %v4413_v32  ;;  %vm592_vm10 = vsmask.f32 7440 }
  0x14   :  { %4238 = vmatpush.bf16.msra.mxu1 %v4096_v25  ;;  %259 = vst [vmem:[#allocation2 + $0x4c] sm:$0x1] %v4256_v19  ;;  %vm4523_vm11 = vmor %vm591_vm9, %vm592_vm10 }
  0x15   :  { %260 = vst [vmem:[#allocation2 + $0x50] sm:$0xf] %v4256_v19 }
  0x16   :  { %164 = vmatpush.bf16.msra.mxu0 %v4070_v5  ;;  %4232 = vmatpush.bf16.msra.mxu3 %v4070_v5  ;;  %261 = vst [vmem:[#allocation2 + $0x54] sm:$0x1] %v4256_v19  ;;  %v4485_v5 = vld [vmem:[%s5368_s3 + $0x8] sm:$0xff] }
  0x17   :  { %262 = vst [vmem:[#allocation2 + $0x58] sm:$0xf] %v4256_v19  ;;  %4246 = vmatpush.bf16.msra.mxu2 %v4434_v36 }
  0x18   :  { %4239 = vmatpush.bf16.msra.mxu1 %v4095_v28  ;;  %263 = vst [vmem:[#allocation2 + $0x5c] sm:$0x1] %v4256_v19 }
  0x19   :  { %264 = vst [vmem:[#allocation2 + $0x60] sm:$0xf] %v4256_v19 }
  0x1a   :  { %165 = vmatpush.bf16.msra.mxu0 %v4069_v6  ;;  %4233 = vmatpush.bf16.msra.mxu3 %v4069_v6  ;;  %265 = vst [vmem:[#allocation2 + $0x64] sm:$0x1] %v4256_v19 }
  0x1b   :  { %266 = vst [vmem:[#allocation2 + $0x68] sm:$0xf] %v4256_v19  ;;  %4247 = vmatpush.bf16.msra.mxu2 %v4449_v40 }
  0x1c   :  { %4240 = vmatpush.bf16.msra.mxu1 %v4094_v31  ;;  %267 = vst [vmem:[#allocation2 + $0x6c] sm:$0x1] %v4256_v19 }
  0x1d   :  { %268 = vst [vmem:[#allocation2 + $0x70] sm:$0xf] %v4256_v19 }
  0x1e   :  { %166 = vmatpush.bf16.msra.mxu0 %v4068_v7  ;;  %4234 = vmatpush.bf16.msra.mxu3 %v4068_v7  ;;  %269 = vst [vmem:[#allocation2 + $0x74] sm:$0x1] %v4256_v19 }
  0x1f   :  { %270 = vst [vmem:[#allocation2 + $0x78] sm:$0xf] %v4256_v19  ;;  %4248 = vmatpush.bf16.msra.mxu2 %v4462_v54 }
  0x20   :  { %4241 = vmatpush.bf16.msra.mxu1 %v4093_v34  ;;  %271 = vst [vmem:[#allocation2 + $0x7c] sm:$0x1] %v4256_v19 }
  0x21   :  { %167 = vmatmul.bf16.vlgmr.msra.gmra.mxu0 %v4060_v8  ;;  %177 = vmatmul.bf16.vlgmr.msra.gmra.mxu3 %v4062_v9  ;;  %272 = vst [vmem:[#allocation2 + $0x80] sm:$0xf] %v4256_v19 }
  0x22   :  { %1321 = vmatpush.bf16.msrb.mxu3 %v4107_v14  ;;  %915 = vmatpush.bf16.msrb.mxu0 %v4099_v18  ;;  %273 = vst [vmem:[#allocation2 + $0x84] sm:$0x1] %v4256_v19  ;;  %v601_v14 = vor.u32 %v600_v62, %v597_v61 }
  0x23   :  { %274 = vst [vmem:[#allocation2 + $0x88] sm:$0xf] %v4256_v19  ;;  %4249 = vmatpush.bf16.msra.mxu2 %v4485_v5 }
  0x24   :  { %4242 = vmatpush.bf16.msra.mxu1 %v4092_v39  ;;  %275 = vst [vmem:[#allocation2 + $0x8c] sm:$0x1] %v4256_v19 }
  0x25   :  { %276 = vst [vmem:[#allocation2 + $0x90] sm:$0xf] %v4256_v19 }
  0x26   :  { %1322 = vmatpush.bf16.msrb.mxu3 %v4106_v17  ;;  %916 = vmatpush.bf16.msrb.mxu0 %v4098_v21  ;;  %277 = vst [vmem:[#allocation2 + $0x94] sm:$0x1] %v4256_v19  ;;  %v474_v17 = vld [vmem:[#allocation2 + $0x2c] sm:$0x1]  ;;  %v4503_v21 = vsel %vm4495_vm8, %v3580_v3, %v1162_v4 }
  0x27   :  { %278 = vst [vmem:[#allocation2 + $0x98] sm:$0xf] %v4256_v19  ;;  %v1241_v46 = vunpack.c.l.b16 %v4503_v21 }
  0x28   :  { %279 = vst [vmem:[#allocation2 + $0x9c] sm:$0x1] %v4256_v19 }
  0x2a   :  { %1323 = vmatpush.bf16.msrb.mxu3 %v4105_v20  ;;  %917 = vmatpush.bf16.msrb.mxu0 %v4097_v23 }
  0x2e   :  { %1324 = vmatpush.bf16.msrb.mxu3 %v4104_v22  ;;  %918 = vmatpush.bf16.msrb.mxu0 %v4096_v25  ;;  %v4508_v22 = vld [vmem:[%s5368_s3] sm:$0xff] }
  0x2f   :  { %4250 = vmatpush.bf16.msra.mxu2 %v4508_v22 }
  0x31   :  { %172 = vmatmul.bf16.gmra.mxu0 %v4061_v10  ;;  %182 = vmatmul.bf16.gmra.mxu3 %v4063_v11  ;;  %v471_v11 = vld [vmem:[#allocation2 + $0x28] sm:$0xf] }
  0x32   :  { %1325 = vmatpush.bf16.msrb.mxu3 %v4103_v24  ;;  %919 = vmatpush.bf16.msrb.mxu0 %v4095_v28 }
  0x36   :  { %1326 = vmatpush.bf16.msrb.mxu3 %v4102_v27  ;;  %920 = vmatpush.bf16.msrb.mxu0 %v4094_v31 }
  0x3a   :  { %1327 = vmatpush.bf16.msrb.mxu3 %v4101_v30  ;;  %921 = vmatpush.bf16.msrb.mxu0 %v4093_v34  ;;  %v456_v34 = vld [vmem:[#allocation2 + $0x14] sm:$0x1] }
  0x3e   :  { %1328 = vmatpush.bf16.msrb.mxu3 %v4100_v33  ;;  %922 = vmatpush.bf16.msrb.mxu0 %v4092_v39  ;;  %v453_v33 = vld [vmem:[#allocation2 + $0x10] sm:$0xf] }
  0x41   :  { %187 = vmatmul.bf16.gmra.mxu3 %v4064_v12 }
  0x42   :  { %1060 = vmatpush.bf16.msra.mxu0 %v4091_v26 }
  0x46   :  { %1061 = vmatpush.bf16.msra.mxu0 %v4090_v29  ;;  %v4512_v29 = vrot.slane %v601_v14, 4 }
  0x4a   :  { %1062 = vmatpush.bf16.msra.mxu0 %v4413_v32 }
  0x4e   :  { %1063 = vmatpush.bf16.msra.mxu0 %v4434_v36 }
  0x51   :  { %192 = vmatmul.bf16.gmra.mxu3 %v4065_v13 }
  0x52   :  { %1064 = vmatpush.bf16.msra.mxu0 %v4449_v40 }
  0x56   :  { %1065 = vmatpush.bf16.msra.mxu0 %v4462_v54 }
  0x5a   :  { %1066 = vmatpush.bf16.msra.mxu0 %v4485_v5 }
  0x5e   :  { %1067 = vmatpush.bf16.msra.mxu0 %v4508_v22 }
  0x61   :  { %197 = vmatmul.bf16.gmra.mxu3 %v4066_v15  ;;  %v604_v15 = vshll.u32 %v575_v49, 16  ;;  %v477_v49 = vld [vmem:[#allocation2 + $0x30] sm:$0xf] }
  0x63   :  { %v4514_v30 = vrot.slane %v604_v15, 5 }
  0x65   :  { %v607_v40 = vsel %vm4523_vm11, %v4512_v29, %v4514_v30 }
  0x71   :  { %202 = vmatmul.bf16.gmra.mxu3 %v4067_v16 }
  0x9e   :  { %v168_v37 = vpop.f32.mrf.mxu0 }
  0x9f   :  { %v169_v38 = vadd.f32 %v4428_v35, %v168_v37 }
  0xa1   :  { %v208_v41 = vmax.f32 %v169_v38, 0.0 }
  0xa3   :  { %v224_v43 = vpack.c.bf16 %v208_v41, %v208_v41 }
  0xa4   :  { %v178_v44 = vpop.f32.mrf.mxu3 }
  0xa5   :  { %v281_v47 = vshrl.u32 %v224_v43, 16  ;;  %v179_v48 = vadd.f32 %v4428_v35, %v178_v44  ;;  %v284_v56 = vshll.u32 %v224_v43, 16 }
  0xa6   :  { %v170_v52 = vpop.f32.mrf.mxu0 }
  0xa7   :  { %v283_v55 = vrot.slane %v281_v47, 7  ;;  %v212_v58 = vmax.f32 %v179_v48, 0.0  ;;  %v171_v59 = vadd.f32 %v4428_v35, %v170_v52 }
  0xa9   :  { %v286_v63 = vor.u32 %v284_v56, %v283_v55  ;;  %v287_v0 = vrot.slane %v283_v55, 4  ;;  %v228_v1 = vpack.c.bf16 %v212_v58, %v212_v58  ;;  %v209_v2 = vmax.f32 %v171_v59, 0.0 }
  0xab   :  { %v445_v6 = vsel %vm4466_vm4, %v286_v63, %v444_v50  ;;  %v451_v7 = vsel %vm4474_vm5, %v287_v0, %v450_v51  ;;  %v313_v8 = vshrl.u32 %v228_v1, 16  ;;  %v316_v9 = vshll.u32 %v228_v1, 16  ;;  %v480_v50 = vld [vmem:[#allocation2 + $0x34] sm:$0x1] }
  0xac   :  { %446 = vst [vmem:[#allocation2 + $0x8] sm:$0xf] %v445_v6  ;;  %v225_v12 = vpack.c.bf16 %v209_v2, %v209_v2  ;;  %v180_v13 = vpop.f32.mrf.mxu3 }
  0xad   :  { %452 = vst [vmem:[#allocation2 + $0xc] sm:$0x1] %v451_v7  ;;  %v315_v16 = vrot.slane %v313_v8, 7  ;;  %v181_v18 = vadd.f32 %v4428_v35, %v180_v13  ;;  %v459_v8 = vld [vmem:[#allocation2 + $0x18] sm:$0xf] }
  0xae   :  { %v289_v19 = vshrl.u32 %v225_v12, 16  ;;  %v173_v20 = vpop.f32.mrf.mxu0  ;;  %v292_v28 = vshll.u32 %v225_v12, 16 }
  0xaf   :  { %v318_v23 = vor.u32 %v316_v9, %v315_v16  ;;  %v319_v24 = vrot.slane %v315_v16, 4  ;;  %v213_v25 = vmax.f32 %v181_v18, 0.0  ;;  %v174_v26 = vadd.f32 %v4428_v35, %v173_v20  ;;  %v462_v9 = vld [vmem:[#allocation2 + $0x1c] sm:$0x1] }
  0xb0   :  { %v291_v27 = vrot.slane %v289_v19, 7 }
  0xb1   :  { %v472_v31 = vsel %vm4466_vm4, %v318_v23, %v471_v11  ;;  %v475_v32 = vsel %vm4474_vm5, %v319_v24, %v474_v17  ;;  %v229_v36 = vpack.c.bf16 %v213_v25, %v213_v25  ;;  %v210_v37 = vmax.f32 %v174_v26, 0.0 }
  0xb2   :  { %473 = vst [vmem:[#allocation2 + $0x28] sm:$0xf] %v472_v31  ;;  %v294_v39 = vor.u32 %v292_v28, %v291_v27  ;;  %v295_v41 = vrot.slane %v291_v27, 4 }
  0xb3   :  { %476 = vst [vmem:[#allocation2 + $0x2c] sm:$0x1] %v475_v32  ;;  %v321_v42 = vshrl.u32 %v229_v36, 16  ;;  %v324_v43 = vshll.u32 %v229_v36, 16  ;;  %v226_v44 = vpack.c.bf16 %v210_v37, %v210_v37  ;;  %v1110_v45 = vld [vmem:[#allocation2 + $0x8] sm:$0xe]  ;;  %v835_v37 = vunpack.c.l.b16 %v607_v40 }
  0xb4   :  { %v454_v47 = vsel %vm4466_vm4, %v294_v39, %v453_v33  ;;  %v457_v48 = vsel %vm4474_vm5, %v295_v41, %v456_v34  ;;  %v183_v51 = vpop.f32.mrf.mxu3  ;;  %v576_v52 = vld [vmem:[#allocation2 + $0xc] sm:$0x1]  ;;  %v3581_v53 = vrot.slane %v1110_v45, 9  ;;  %v544_v55 = vld [vmem:[#allocation2 + $0x8] sm:$0xf] }
  0xb5   :  { %455 = vst [vmem:[#allocation2 + $0x10] sm:$0xf] %v454_v47  ;;  %v323_v56 = vrot.slane %v321_v42, 7  ;;  %v297_v58 = vshrl.u32 %v226_v44, 16  ;;  %v300_v59 = vshll.u32 %v226_v44, 16  ;;  %v184_v61 = vadd.f32 %v4428_v35, %v183_v51 }
  0xb6   :  { %458 = vst [vmem:[#allocation2 + $0x14] sm:$0x1] %v457_v48  ;;  %v175_v62 = vpop.f32.mrf.mxu0  ;;  %v1166_v63 = vrot.slane %v576_v52, 5  ;;  %v609_v0 = vshrl.u32 %v544_v55, 16  ;;  %v612_v1 = vshll.u32 %v544_v55, 16  ;;  %v618_v2 = vshll.u32 %v576_v52, 16 }
  0xb7   :  { %v326_v3 = vor.u32 %v324_v43, %v323_v56  ;;  %v327_v4 = vrot.slane %v323_v56, 4  ;;  %v299_v6 = vrot.slane %v297_v58, 7  ;;  %v214_v7 = vmax.f32 %v184_v61, 0.0  ;;  %v483_v34 = vld [vmem:[#allocation2 + $0x38] sm:$0xf] }
  0xb8   :  { %v176_v11 = vadd.f32 %v4428_v35, %v175_v62  ;;  %v1167_v12 = vsel %vm4495_vm8, %v3581_v53, %v1166_v63  ;;  %v611_v13 = vrot.slane %v609_v0, 4  ;;  %v614_v14 = vrot.slane %v612_v1, 5  ;;  %v486_v48 = vld [vmem:[#allocation2 + $0x3c] sm:$0x1]  ;;  %v465_v56 = vld [vmem:[#allocation2 + $0x20] sm:$0xf] }
  0xb9   :  { %v478_v15 = vsel %vm4466_vm4, %v326_v3, %v477_v49  ;;  %v481_v16 = vsel %vm4474_vm5, %v327_v4, %v480_v50  ;;  %v302_v54 = vor.u32 %v300_v59, %v299_v6  ;;  %v303_v17 = vrot.slane %v299_v6, 4  ;;  %v4546_v18 = vld [vmem:[#allocation2 + $0x28] sm:$0xf]  ;;  %v468_v58 = vld [vmem:[#allocation2 + $0x24] sm:$0x1] }
  0xba   :  { %479 = vst [vmem:[#allocation2 + $0x30] sm:$0xf] %v478_v15  ;;  %v230_v19 = vpack.c.bf16 %v214_v7, %v214_v7  ;;  %v211_v20 = vmax.f32 %v176_v11, 0.0  ;;  %v1242_v21 = vunpack.c.l.b16 %v1167_v12  ;;  %v615_v23 = vor.u32 %v614_v14, %v611_v13  ;;  %v489_v11 = vld [vmem:[#allocation2 + $0x40] sm:$0xf] }
  0xbb   :  { %482 = vst [vmem:[#allocation2 + $0x34] sm:$0x1] %v481_v16  ;;  %v460_v24 = vsel %vm4466_vm4, %v302_v54, %v459_v8  ;;  %v463_v25 = vsel %vm4474_vm5, %v303_v17, %v462_v9  ;;  %v620_v26 = vrot.slane %v618_v2, 5  ;;  %v665_v27 = vshrl.u32 %v4546_v18, 16  ;;  %v492_v12 = vld [vmem:[#allocation2 + $0x44] sm:$0x1] }
  0xbc   :  { %461 = vst [vmem:[#allocation2 + $0x18] sm:$0xf] %v460_v24  ;;  %v329_v28 = vshrl.u32 %v230_v19, 16  ;;  %v332_v29 = vshll.u32 %v230_v19, 16  ;;  %v227_v30 = vpack.c.bf16 %v211_v20, %v211_v20  ;;  %v1257_v31 = vpack.c.b16 %v1242_v21, %v1241_v46  ;;  %v185_v32 = vpop.f32.mrf.mxu3  ;;  %v1111_v33 = vld [vmem:[#allocation2 + $0x10] sm:$0xe] }
  0xbd   :  { %464 = vst [vmem:[#allocation2 + $0x1c] sm:$0x1] %v463_v25  ;;  %v186_v5 = vadd.f32 %v4428_v35, %v185_v32  ;;  %v616_v36 = vrot.slane %v615_v23, 4  ;;  %v577_v39 = vld [vmem:[#allocation2 + $0x14] sm:$0x1]  ;;  %v3582_v41 = vrot.slane %v1111_v33, 9 }
  0xbe   :  { %v331_v42 = vrot.slane %v329_v28, 7  ;;  %v305_v43 = vshrl.u32 %v227_v30, 16  ;;  %v308_v44 = vshll.u32 %v227_v30, 16  ;;  %1329 = vmatmul.bf16.vlgmr.msrb.gmra.mxu3 %v1257_v31  ;;  %v1170_v45 = vrot.slane %v577_v39, 5  ;;  %v545_v47 = vld [vmem:[#allocation2 + $0x10] sm:$0xf] }
  0xbf   :  { %v215_v46 = vmax.f32 %v186_v5, 0.0  ;;  %v621_v49 = vsel %vm4523_vm11, %v616_v36, %v620_v26  ;;  %v623_v50 = vshrl.u32 %v545_v47, 16  ;;  %v626_v51 = vshll.u32 %v545_v47, 16  ;;  %v4131_v54 = vld [vmem:[%s5368_s3 + $0x138] sm:$0xff] }
  0xc0   :  { %v334_v52 = vor.u32 %v332_v29, %v331_v42  ;;  %v335_v53 = vrot.slane %v331_v42, 4  ;;  %v307_v55 = vrot.slane %v305_v43, 7  ;;  %v836_v40 = vunpack.c.l.b16 %v621_v49  ;;  %1933 = vmatpush.bf16.msrb.mxu1 %v4131_v54 }
  0xc1   :  { %v231_v59 = vpack.c.bf16 %v215_v46, %v215_v46  ;;  %v1171_v61 = vsel %vm4495_vm8, %v3582_v41, %v1170_v45  ;;  %v625_v62 = vrot.slane %v623_v50, 4  ;;  %v628_v63 = vrot.slane %v626_v51, 5  ;;  %v4123_v51 = vld [vmem:[%s5368_s3 + $0xf8] sm:$0xff] }
  0xc2   :  { %v484_v22 = vsel %vm4466_vm4, %v334_v52, %v483_v34  ;;  %v487_v0 = vsel %vm4474_vm5, %v335_v53, %v486_v48  ;;  %v310_v1 = vor.u32 %v308_v44, %v307_v55  ;;  %v311_v2 = vrot.slane %v307_v55, 4  ;;  %v4078_v44 = vld [vmem:[#allocation2 + $0x24] sm:$0xf0] }
  0xc3   :  { %485 = vst [vmem:[#allocation2 + $0x38] sm:$0xf] %v484_v22  ;;  %v337_v3 = vshrl.u32 %v231_v59, 16  ;;  %v340_v4 = vshll.u32 %v231_v59, 16  ;;  %v851_v6 = vpack.c.b16 %v836_v40, %v835_v37  ;;  %v1112_v7 = vld [vmem:[#allocation2 + $0x18] sm:$0xe]  ;;  %v629_v16 = vor.u32 %v628_v63, %v625_v62 }
  0xc4   :  { %488 = vst [vmem:[#allocation2 + $0x3c] sm:$0x1] %v487_v0  ;;  %v466_v8 = vsel %vm4466_vm4, %v310_v1, %v465_v56  ;;  %v469_v9 = vsel %vm4474_vm5, %v311_v2, %v468_v58  ;;  %v188_v13 = vpop.f32.mrf.mxu3  ;;  %v578_v14 = vld [vmem:[#allocation2 + $0x1c] sm:$0x1]  ;;  %v3583_v15 = vrot.slane %v1112_v7, 9  ;;  %v1243_v21 = vunpack.c.l.b16 %v1171_v61 }
  0xc5   :  { %467 = vst [vmem:[#allocation2 + $0x20] sm:$0xf] %v466_v8  ;;  %v339_v17 = vrot.slane %v337_v3, 7  ;;  %923 = vmatmul.bf16.vlgmr.msrb.gmra.mxu0 %v851_v6  ;;  %v189_v19 = vadd.f32 %v4428_v35, %v188_v13  ;;  %v1174_v20 = vrot.slane %v578_v14, 5  ;;  %v546_v23 = vld [vmem:[#allocation2 + $0x18] sm:$0xf] }
  0xc6   :  { %470 = vst [vmem:[#allocation2 + $0x24] sm:$0x1] %v469_v9  ;;  %v630_v24 = vrot.slane %v629_v16, 4  ;;  %v632_v25 = vshll.u32 %v577_v39, 16  ;;  %v637_v26 = vshrl.u32 %v546_v23, 16  ;;  %v640_v28 = vshll.u32 %v546_v23, 16  ;;  %1515 = vmatpush.bf16.msrb.mxu0 %v4123_v51 }
  0xc7   :  { %v342_v29 = vor.u32 %v340_v4, %v339_v17  ;;  %v343_v30 = vrot.slane %v339_v17, 4  ;;  %v216_v31 = vmax.f32 %v189_v19, 0.0  ;;  %v1175_v32 = vsel %vm4495_vm8, %v3583_v15, %v1174_v20  ;;  %v495_v63 = vld [vmem:[#allocation2 + $0x58] sm:$0xf]  ;;  %v498_v22 = vld [vmem:[#allocation2 + $0x5c] sm:$0x1] }
  0xc8   :  { %v1244_v33 = vunpack.c.l.b16 %v1175_v32  ;;  %v634_v34 = vrot.slane %v632_v25, 5  ;;  %v639_v5 = vrot.slane %v637_v26, 4  ;;  %v642_v36 = vrot.slane %v640_v28, 5  ;;  %v4122_v9 = vld [vmem:[%s5368_s3 + $0xf0] sm:$0xff]  ;;  %v1114_v15 = vld [vmem:[#allocation2 + $0x28] sm:$0xe] }
  0xc9   :  { %v490_v37 = vsel %vm4466_vm4, %v342_v29, %v489_v11  ;;  %v493_v41 = vsel %vm4474_vm5, %v343_v30, %v492_v12  ;;  %v232_v39 = vpack.c.bf16 %v216_v31, %v216_v31  ;;  %v646_v42 = vshll.u32 %v578_v14, 16  ;;  %v580_v20 = vld [vmem:[#allocation2 + $0x2c] sm:$0x1] }
  0xca   :  { %491 = vst [vmem:[#allocation2 + $0x40] sm:$0xf] %v490_v37  ;;  %v1258_v43 = vpack.c.b16 %v1244_v33, %v1243_v21  ;;  %v643_v45 = vor.u32 %v642_v36, %v639_v5  ;;  %v667_v47 = vrot.slane %v665_v27, 4  ;;  %v635_v49 = vsel %vm4523_vm11, %v630_v24, %v634_v34  ;;  %1516 = vmatpush.bf16.msrb.mxu0 %v4122_v9  ;;  %v549_v21 = vld [vmem:[#allocation2 + $0x30] sm:$0xf] }
  0xcb   :  { %494 = vst [vmem:[#allocation2 + $0x44] sm:$0x1] %v493_v41  ;;  %v345_v48 = vshrl.u32 %v232_v39, 16  ;;  %v348_v46 = vshll.u32 %v232_v39, 16  ;;  %v648_v50 = vrot.slane %v646_v42, 5  ;;  %v668_v56 = vshll.u32 %v4546_v18, 16 }
  0xcc   :  { %v190_v52 = vpop.f32.mrf.mxu3  ;;  %v3526_v53 = vld [vmem:[#allocation2 + $0x20] sm:$0xf]  ;;  %v644_v55 = vrot.slane %v643_v45, 4  ;;  %v837_v1 = vunpack.c.l.b16 %v635_v49  ;;  %v674_v25 = vshll.u32 %v580_v20, 16  ;;  %v3585_v31 = vrot.slane %v1114_v15, 9  ;;  %v4130_v37 = vld [vmem:[%s5368_s3 + $0x130] sm:$0xff] }
  0xcd   :  { %v547_v40 = vld [vmem:[#allocation2 + $0x20] sm:$0xf]  ;;  %v347_v58 = vrot.slane %v345_v48, 7  ;;  %v191_v27 = vadd.f32 %v4428_v35, %v190_v52  ;;  %v3527_v59 = vor.u32 %v4078_v44, %v3526_v53  ;;  %v579_v61 = vld [vmem:[#allocation2 + $0x24] sm:$0x1]  ;;  %v670_v3 = vrot.slane %v668_v56, 5  ;;  %1934 = vmatpush.bf16.msrb.mxu1 %v4130_v37 }
  0xce   :  { %v651_v62 = vshrl.u32 %v547_v40, 16  ;;  %1334 = vmatmul.bf16.gmra.mxu3 %v1258_v43  ;;  %v649_v0 = vsel %vm4523_vm11, %v644_v55, %v648_v50  ;;  %v654_v2 = vshll.u32 %v547_v40, 16  ;;  %v1113_v8 = vld [vmem:[#allocation2 + $0x20] sm:$0xe]  ;;  %v660_v13 = vshll.u32 %v579_v61, 16  ;;  %v4121_v44 = vld [vmem:[%s5368_s3 + $0xe8] sm:$0xff] }
  0xcf   :  { %v350_v4 = vor.u32 %v348_v46, %v347_v58  ;;  %v351_v6 = vrot.slane %v347_v58, 4  ;;  %v217_v7 = vmax.f32 %v191_v27, 0.0  ;;  %1078 = vmatmul.bf16.vlgmr.msra.gmra.mxu2 %v3527_v59  ;;  %v838_v18 = vunpack.c.l.b16 %v649_v0  ;;  %v501_v45 = vld [vmem:[#allocation2 + $0x60] sm:$0xf]  ;;  %v550_v55 = vld [vmem:[#allocation2 + $0x38] sm:$0xf]  ;;  %1517 = vmatpush.bf16.msrb.mxu0 %v4121_v44 }
  0xd0   :  { %v653_v11 = vrot.slane %v651_v62, 4  ;;  %v656_v12 = vrot.slane %v654_v2, 5  ;;  %v671_v14 = vor.u32 %v670_v3, %v667_v47  ;;  %v3584_v26 = vrot.slane %v1113_v8, 9  ;;  %v504_v47 = vld [vmem:[#allocation2 + $0x64] sm:$0x1] }
  0xd1   :  { %v496_v16 = vsel %vm4466_vm4, %v350_v4, %v495_v63  ;;  %v499_v54 = vsel %vm4474_vm5, %v351_v6, %v498_v22  ;;  %v233_v17 = vpack.c.bf16 %v217_v7, %v217_v7  ;;  %v852_v19 = vpack.c.b16 %v838_v18, %v837_v1  ;;  %v3530_v58 = vld [vmem:[#allocation2 + $0x30] sm:$0xf]  ;;  %v4611_v27 = vld [vmem:[#allocation2 + $0x34] sm:$0x1]  ;;  %v4079_v1 = vld [vmem:[#allocation2 + $0x34] sm:$0xf0] }
  0xd2   :  { %497 = vst [vmem:[#allocation2 + $0x58] sm:$0xf] %v496_v16  ;;  %v657_v23 = vor.u32 %v656_v12, %v653_v11  ;;  %v672_v24 = vrot.slane %v671_v14, 4  ;;  %v1178_v30 = vrot.slane %v579_v61, 5  ;;  %v662_v34 = vrot.slane %v660_v13, 5 }
  0xd3   :  { %500 = vst [vmem:[#allocation2 + $0x5c] sm:$0x1] %v499_v54  ;;  %v353_v28 = vshrl.u32 %v233_v17, 16  ;;  %v356_v29 = vshll.u32 %v233_v17, 16  ;;  %v676_v5 = vrot.slane %v674_v25, 5  ;;  %v1182_v36 = vrot.slane %v580_v20, 5 }
  0xd4   :  { %v193_v32 = vpop.f32.mrf.mxu3  ;;  %v658_v33 = vrot.slane %v657_v23, 4  ;;  %v1179_v42 = vsel %vm4495_vm8, %v3584_v26, %v1178_v30  ;;  %v679_v43 = vshrl.u32 %v549_v21, 16  ;;  %v682_v61 = vshll.u32 %v549_v21, 16  ;;  %v4617_v2 = vld [vmem:[#allocation2 + $0x3c] sm:$0x1]  ;;  %v4120_v17 = vld [vmem:[%s5368_s3 + $0xe0] sm:$0xff] }
  0xd5   :  { %v355_v41 = vrot.slane %v353_v28, 7  ;;  %928 = vmatmul.bf16.gmra.mxu0 %v852_v19  ;;  %v194_v39 = vadd.f32 %v4428_v35, %v193_v32  ;;  %v677_v46 = vsel %vm4523_vm11, %v672_v24, %v676_v5  ;;  %v1183_v49 = vsel %vm4495_vm8, %v3585_v31, %v1182_v36  ;;  %v4619_v3 = vld [vmem:[#allocation2 + $0x30] sm:$0xe]  ;;  %v507_v12 = vld [vmem:[#allocation2 + $0x68] sm:$0xf]  ;;  %v4119_v32 = vld [vmem:[%s5368_s3 + $0xd8] sm:$0xff] }
  0xd6   :  { %v663_v48 = vsel %vm4523_vm11, %v658_v33, %v662_v34  ;;  %v840_v40 = vunpack.c.l.b16 %v677_v46  ;;  %v1245_v56 = vunpack.c.l.b16 %v1179_v42  ;;  %v681_v59 = vrot.slane %v679_v43, 4  ;;  %v3518_v23 = vld [vmem:[#allocation2] sm:$0xf]  ;;  %v1116_v25 = vld [vmem:[#allocation2 + $0x38] sm:$0xe]  ;;  %v4129_v26 = vld [vmem:[%s5368_s3 + $0x128] sm:$0xff]  ;;  %1518 = vmatpush.bf16.msrb.mxu0 %v4120_v17 }
  0xd7   :  { %v358_v50 = vor.u32 %v356_v29, %v355_v41  ;;  %v359_v51 = vrot.slane %v355_v41, 4  ;;  %v218_v52 = vmax.f32 %v194_v39, 0.0  ;;  %v839_v53 = vunpack.c.l.b16 %v663_v48  ;;  %v510_v28 = vld [vmem:[#allocation2 + $0x6c] sm:$0x1]  ;;  %v4076_v36 = vld [vmem:[#allocation2 + $0x4] sm:$0xf0]  ;;  %1935 = vmatpush.bf16.msrb.mxu1 %v4129_v26 }
  0xd8   :  { %v1246_v0 = vunpack.c.l.b16 %v1183_v49  ;;  %v684_v6 = vrot.slane %v682_v61, 5  ;;  %v688_v7 = vshll.u32 %v4611_v27, 16  ;;  %v693_v18 = vshrl.u32 %v550_v55, 16  ;;  %v551_v41 = vld [vmem:[#allocation2 + $0x50] sm:$0xf]  ;;  %v4128_v61 = vld [vmem:[%s5368_s3 + $0x120] sm:$0xff] }
  0xd9   :  { %v502_v62 = vsel %vm4466_vm4, %v358_v50, %v501_v45  ;;  %v505_v63 = vsel %vm4474_vm5, %v359_v51, %v504_v47  ;;  %v234_v22 = vpack.c.bf16 %v218_v52, %v218_v52  ;;  %v853_v4 = vpack.c.b16 %v840_v40, %v839_v53  ;;  %v552_v50 = vld [vmem:[#allocation2 + $0x58] sm:$0xf]  ;;  %v4118_v40 = vld [vmem:[%s5368_s3 + $0xd0] sm:$0xff] }
  0xda   :  { %503 = vst [vmem:[#allocation2 + $0x60] sm:$0xf] %v502_v62  ;;  %v696_v11 = vshll.u32 %v550_v55, 16  ;;  %v1259_v13 = vpack.c.b16 %v1246_v0, %v1245_v56  ;;  %v685_v15 = vor.u32 %v684_v6, %v681_v59  ;;  %v695_v16 = vrot.slane %v693_v18, 4  ;;  %1519 = vmatpush.bf16.msrb.mxu0 %v4119_v32  ;;  %v4117_v18 = vld [vmem:[%s5368_s3 + $0xc8] sm:$0xff] }
  0xdb   :  { %506 = vst [vmem:[#allocation2 + $0x64] sm:$0x1] %v505_v63  ;;  %v361_v8 = vshrl.u32 %v234_v22, 16  ;;  %v364_v9 = vshll.u32 %v234_v22, 16  ;;  %933 = vmatmul.bf16.vlgmr.msra.gmra.mxu1 %v853_v4  ;;  %v702_v54 = vshll.u32 %v4617_v2, 16  ;;  %v3531_v21 = vor.u32 %v4079_v1, %v3530_v58 }
  0xdc   :  { %v195_v14 = vpop.f32.mrf.mxu3  ;;  %v698_v24 = vrot.slane %v696_v11, 5  ;;  %v690_v29 = vrot.slane %v688_v7, 5  ;;  %v3586_v31 = vrot.slane %v4619_v3, 9  ;;  %v686_v39 = vrot.slane %v685_v15, 4  ;;  %v513_v63 = vld [vmem:[#allocation2 + $0x70] sm:$0xf]  ;;  %1936 = vmatpush.bf16.msrb.mxu1 %v4128_v61 }
  0xdd   :  { %v363_v19 = vrot.slane %v361_v8, 7  ;;  %v196_v20 = vadd.f32 %v4428_v35, %v195_v14  ;;  %v704_v30 = vrot.slane %v702_v54, 5  ;;  %v1186_v42 = vrot.slane %v4611_v27, 5  ;;  %v3534_v15 = vld [vmem:[#allocation2 + $0x50] sm:$0xf] }
  0xde   :  { %1339 = vmatmul.bf16.gmra.mxu3 %v1259_v13  ;;  %v699_v37 = vor.u32 %v698_v24, %v695_v16  ;;  %v3587_v43 = vrot.slane %v1116_v25, 9  ;;  %v1190_v44 = vrot.slane %v4617_v2, 5  ;;  %v3519_v49 = vor.u32 %v4076_v36, %v3518_v23  ;;  %v516_v2 = vld [vmem:[#allocation2 + $0x74] sm:$0x1]  ;;  %1520 = vmatpush.bf16.msrb.mxu0 %v4118_v40  ;;  %v4664_v24 = vld [vmem:[#allocation2 + $0x5c] sm:$0x1] }
  0xdf   :  { %v366_v33 = vor.u32 %v364_v9, %v363_v19  ;;  %v367_v34 = vrot.slane %v363_v19, 4  ;;  %v219_v5 = vmax.f32 %v196_v20, 0.0  ;;  %1083 = vmatmul.bf16.gmra.mxu2 %v3531_v21  ;;  %v707_v51 = vshrl.u32 %v551_v41, 16  ;;  %v4080_v21 = vld [vmem:[#allocation2 + $0x54] sm:$0xf0] }
  0xe0   :  { %v700_v46 = vrot.slane %v699_v37, 4  ;;  %v710_v56 = vshll.u32 %v551_v41, 16  ;;  %v691_v27 = vsel %vm4523_vm11, %v686_v39, %v690_v29  ;;  %v1187_v59 = vsel %vm4495_vm8, %v3586_v31, %v1186_v42  ;;  %v4662_v23 = vld [vmem:[#allocation2 + $0x54] sm:$0x1]  ;;  %v4127_v37 = vld [vmem:[%s5368_s3 + $0x118] sm:$0xff] }
  0xe1   :  { %v508_v45 = vsel %vm4466_vm4, %v366_v33, %v507_v12  ;;  %v511_v47 = vsel %vm4474_vm5, %v367_v34, %v510_v28  ;;  %v235_v48 = vpack.c.bf16 %v219_v5, %v219_v5  ;;  %v1191_v0 = vsel %vm4495_vm8, %v3587_v43, %v1190_v44  ;;  %v519_v34 = vld [vmem:[#allocation2 + $0x78] sm:$0xf]  ;;  %v1117_v44 = vld [vmem:[#allocation2 + $0x50] sm:$0xe]  ;;  %1937 = vmatpush.bf16.msrb.mxu1 %v4127_v37 }
  0xe2   :  { %509 = vst [vmem:[#allocation2 + $0x68] sm:$0xf] %v508_v45  ;;  %v705_v55 = vsel %vm4523_vm11, %v700_v46, %v704_v30  ;;  %v721_v1 = vshrl.u32 %v552_v50, 16  ;;  %v709_v4 = vrot.slane %v707_v51, 4  ;;  %v712_v6 = vrot.slane %v710_v56, 5  ;;  %1521 = vmatpush.bf16.msrb.mxu0 %v4117_v18  ;;  %v4116_v30 = vld [vmem:[%s5368_s3 + $0xc0] sm:$0xff] }
  0xe3   :  { %512 = vst [vmem:[#allocation2 + $0x6c] sm:$0x1] %v511_v47  ;;  %v369_v52 = vshrl.u32 %v235_v48, 16  ;;  %v372_v53 = vshll.u32 %v235_v48, 16  ;;  %v842_v3 = vunpack.c.l.b16 %v705_v55  ;;  %v724_v7 = vshll.u32 %v552_v50, 16  ;;  %v4139_v40 = vld [vmem:[%s5368_s3 + $0x178] sm:$0xff] }
  0xe4   :  { %v198_v58 = vpop.f32.mrf.mxu3  ;;  %v841_v12 = vunpack.c.l.b16 %v691_v27  ;;  %v1247_v13 = vunpack.c.l.b16 %v1187_v59  ;;  %v1248_v14 = vunpack.c.l.b16 %v1191_v0  ;;  %v723_v16 = vrot.slane %v721_v1, 4  ;;  %v4077_v43 = vld [vmem:[#allocation2 + $0x14] sm:$0xf0]  ;;  %v522_v47 = vld [vmem:[#allocation2 + $0x7c] sm:$0x1]  ;;  %2207 = vmatpush.bf16.msrb.mxu2 %v4139_v40 }
  0xe5   :  { %v371_v62 = vrot.slane %v369_v52, 7  ;;  %1068 = vmatmul.bf16.vlgmr.msra.gmra.mxu0 %v3519_v49  ;;  %v199_v22 = vadd.f32 %v4428_v35, %v198_v58  ;;  %v726_v54 = vrot.slane %v724_v7, 5  ;;  %v713_v26 = vor.u32 %v712_v6, %v709_v4  ;;  %v1118_v45 = vld [vmem:[#allocation2 + $0x58] sm:$0xe]  ;;  %v553_v0 = vld [vmem:[#allocation2 + $0x60] sm:$0xf] }
  0xe6   :  { %v854_v25 = vpack.c.b16 %v842_v3, %v841_v12  ;;  %v716_v28 = vshll.u32 %v4662_v23, 16  ;;  %v730_v29 = vshll.u32 %v4664_v24, 16  ;;  %v1260_v5 = vpack.c.b16 %v1248_v14, %v1247_v13  ;;  %1522 = vmatpush.bf16.msrb.mxu0 %v4116_v30  ;;  %v585_v37 = vld [vmem:[#allocation2 + $0x64] sm:$0x1] }
  0xe7   :  { %v374_v8 = vor.u32 %v372_v53, %v371_v62  ;;  %v375_v9 = vrot.slane %v371_v62, 4  ;;  %v220_v11 = vmax.f32 %v199_v22, 0.0  ;;  %v727_v33 = vor.u32 %v726_v54, %v723_v16  ;;  %v4138_v16 = vld [vmem:[%s5368_s3 + $0x170] sm:$0xff] }
  0xe8   :  { %v3535_v42 = vor.u32 %v4080_v21, %v3534_v15  ;;  %v714_v48 = vrot.slane %v713_v26, 4  ;;  %v718_v46 = vrot.slane %v716_v28, 5  ;;  %v732_v49 = vrot.slane %v730_v29, 5  ;;  %v4126_v54 = vld [vmem:[%s5368_s3 + $0x110] sm:$0xff]  ;;  %2208 = vmatpush.bf16.msrb.mxu2 %v4138_v16  ;;  %v4137_v28 = vld [vmem:[%s5368_s3 + $0x168] sm:$0xff] }
  0xe9   :  { %v514_v17 = vsel %vm4466_vm4, %v374_v8, %v513_v63  ;;  %v517_v19 = vsel %vm4474_vm5, %v375_v9, %v516_v2  ;;  %v236_v20 = vpack.c.bf16 %v220_v11, %v220_v11  ;;  %v728_v53 = vrot.slane %v727_v33, 4  ;;  %v554_v55 = vld [vmem:[#allocation2 + $0x68] sm:$0xf]  ;;  %v3522_v63 = vld [vmem:[#allocation2 + $0x10] sm:$0xf]  ;;  %1938 = vmatpush.bf16.msrb.mxu1 %v4126_v54 }
  0xea   :  { %515 = vst [vmem:[#allocation2 + $0x70] sm:$0xf] %v514_v17  ;;  %v3588_v56 = vrot.slane %v1117_v44, 9  ;;  %v1194_v58 = vrot.slane %v4662_v23, 5  ;;  %v3589_v27 = vrot.slane %v1118_v45, 9  ;;  %v1198_v22 = vrot.slane %v4664_v24, 5 }
  0xeb   :  { %518 = vst [vmem:[#allocation2 + $0x74] sm:$0x1] %v517_v19  ;;  %v377_v31 = vshrl.u32 %v236_v20, 16  ;;  %v380_v32 = vshll.u32 %v236_v20, 16  ;;  %938 = vmatmul.bf16.gmra.mxu1 %v854_v25  ;;  %v3523_v1 = vor.u32 %v4077_v43, %v3522_v63  ;;  %v749_v2 = vshrl.u32 %v554_v55, 16 }
  0xec   :  { %v200_v36 = vpop.f32.mrf.mxu3  ;;  %v752_v3 = vshll.u32 %v554_v55, 16  ;;  %v719_v7 = vsel %vm4523_vm11, %v714_v48, %v718_v46  ;;  %v733_v18 = vsel %vm4523_vm11, %v728_v53, %v732_v49  ;;  %v735_v9 = vshrl.u32 %v553_v0, 16  ;;  %v525_v17 = vld [vmem:[#allocation2 + $0x80] sm:$0xf]  ;;  %v528_v19 = vld [vmem:[#allocation2 + $0x84] sm:$0x1]  ;;  %2209 = vmatpush.bf16.msrb.mxu2 %v4137_v28 }
  0xed   :  { %v379_v41 = vrot.slane %v377_v31, 7  ;;  %v201_v39 = vadd.f32 %v4428_v35, %v200_v36  ;;  %v738_v11 = vshll.u32 %v553_v0, 16  ;;  %v1195_v14 = vsel %vm4495_vm8, %v3588_v56, %v1194_v58  ;;  %v3538_v31 = vld [vmem:[#allocation2 + $0x60] sm:$0xf]  ;;  %v4081_v43 = vld [vmem:[#allocation2 + $0x64] sm:$0xf0] }
  0xee   :  { %1344 = vmatmul.bf16.gmra.mxu3 %v1260_v5  ;;  %v1199_v15 = vsel %vm4495_vm8, %v3589_v27, %v1198_v22  ;;  %v843_v20 = vunpack.c.l.b16 %v719_v7  ;;  %v844_v21 = vunpack.c.l.b16 %v733_v18  ;;  %v751_v23 = vrot.slane %v749_v2, 4  ;;  %v531_v49 = vld [vmem:[#allocation2 + $0x88] sm:$0xf]  ;;  %v534_v55 = vld [vmem:[#allocation2 + $0x8c] sm:$0x1]  ;;  %v4136_v22 = vld [vmem:[%s5368_s3 + $0x160] sm:$0xff] }
  0xef   :  { %v382_v50 = vor.u32 %v380_v32, %v379_v41  ;;  %v383_v51 = vrot.slane %v379_v41, 4  ;;  %v221_v52 = vmax.f32 %v201_v39, 0.0  ;;  %1088 = vmatmul.bf16.gmra.mxu2 %v3535_v42  ;;  %v1249_v29 = vunpack.c.l.b16 %v1195_v14  ;;  %v4706_v41 = vld [vmem:[#allocation2 + $0x6c] sm:$0x1]  ;;  %v1119_v39 = vld [vmem:[#allocation2 + $0x60] sm:$0xe] }
  0xf0   :  { %v1250_v30 = vunpack.c.l.b16 %v1199_v15  ;;  %v737_v32 = vrot.slane %v735_v9, 4  ;;  %v740_v33 = vrot.slane %v738_v11, 5  ;;  %v855_v42 = vpack.c.b16 %v844_v21, %v843_v20  ;;  %v4255_v56 = vld [vmem:[%s5366_s2] ss:$0 sm:$0xff]  ;;  %v1120_v27 = vld [vmem:[#allocation2 + $0x68] sm:$0xe]  ;;  %2210 = vmatpush.bf16.msrb.mxu2 %v4136_v22 }
  0xf1   :  { %v520_v59 = vsel %vm4466_vm4, %v382_v50, %v519_v34  ;;  %v523_v61 = vsel %vm4474_vm5, %v383_v51, %v522_v47  ;;  %v237_v62 = vpack.c.bf16 %v221_v52, %v221_v52  ;;  %v758_v45 = vshll.u32 %v4706_v41, 16  ;;  %v4155_v0 = vld [vmem:[%s5368_s3 + $0x1b8] sm:$0xff]  ;;  %v4154_v11 = vld [vmem:[%s5368_s3 + $0x1b0] sm:$0xff]  ;;  %v3662_v14 = vld [vmem:[#allocation2 + $0x8] sm:$0xf] }
  0xf2   :  { %521 = vst [vmem:[#allocation2 + $0x78] sm:$0xf] %v520_v59  ;;  %v744_v46 = vshll.u32 %v585_v37, 16  ;;  %v1261_v50 = vpack.c.b16 %v1250_v30, %v1249_v29  ;;  %v741_v52 = vor.u32 %v740_v33, %v737_v32  ;;  %v3539_v40 = vor.u32 %v4081_v43, %v3538_v31  ;;  %2402 = vmatpush.bf16.msra.mxu3 %v4155_v0  ;;  %v4135_v9 = vld [vmem:[%s5368_s3 + $0x158] sm:$0xff]  ;;  %v555_v54 = vld [vmem:[#allocation2 + $0x70] sm:$0xf] }
  0xf3   :  { %524 = vst [vmem:[#allocation2 + $0x7c] sm:$0x1] %v523_v61  ;;  %v385_v4 = vshrl.u32 %v237_v62, 16  ;;  %v388_v6 = vshll.u32 %v237_v62, 16  ;;  %v760_v61 = vrot.slane %v758_v45, 5  ;;  %v3590_v62 = vrot.slane %v1119_v39, 9 }
  0xf4   :  { %v203_v8 = vpop.f32.mrf.mxu3  ;;  %v1202_v63 = vrot.slane %v585_v37, 5  ;;  %v742_v7 = vrot.slane %v741_v52, 4  ;;  %v3591_v18 = vrot.slane %v1120_v27, 9  ;;  %v1206_v16 = vrot.slane %v4706_v41, 5  ;;  %2211 = vmatpush.bf16.msrb.mxu2 %v4135_v9  ;;  %v4125_v31 = vld [vmem:[%s5368_s3 + $0x108] sm:$0xff]  ;;  %v4134_v32 = vld [vmem:[%s5368_s3 + $0x150] sm:$0xff] }
  0xf5   :  { %v387_v12 = vrot.slane %v385_v4, 7  ;;  %1073 = vmatmul.bf16.gmra.mxu0 %v3523_v1  ;;  %v204_v13 = vadd.f32 %v4428_v35, %v203_v8  ;;  %v754_v35 = vrot.slane %v752_v3, 5  ;;  %v4108_v3 = vld [vmem:[#allocation2 + $0xc] sm:$0xf0]  ;;  %v4153_v33 = vld [vmem:[%s5368_s3 + $0x1a8] sm:$0xff]  ;;  %1939 = vmatpush.bf16.msrb.mxu1 %v4125_v31  ;;  %v4152_v52 = vld [vmem:[%s5368_s3 + $0x1a0] sm:$0xff] }
  0xf6   :  { %v1203_v20 = vsel %vm4495_vm8, %v3590_v62, %v1202_v63  ;;  %2403 = vmatpush.bf16.msra.mxu3 %v4154_v11  ;;  %v1207_v30 = vsel %vm4495_vm8, %v3591_v18, %v1206_v16  ;;  %v1121_v62 = vld [vmem:[#allocation2 + $0x70] sm:$0xe]  ;;  %v4132_v22 = vld [vmem:[%s5368_s3 + $0x140] sm:$0xff]  ;;  %v4151_v0 = vld [vmem:[%s5368_s3 + $0x198] sm:$0xff] }
  0xf7   :  { %v390_v24 = vor.u32 %v388_v6, %v387_v12  ;;  %v391_v25 = vrot.slane %v387_v12, 4  ;;  %v222_v26 = vmax.f32 %v204_v13, 0.0  ;;  %v755_v44 = vor.u32 %v754_v35, %v751_v23 }
  0xf8   :  { %v746_v6 = vrot.slane %v744_v46, 5  ;;  %v1251_v37 = vunpack.c.l.b16 %v1203_v20  ;;  %v1252_v45 = vunpack.c.l.b16 %v1207_v30  ;;  %2212 = vmatpush.bf16.msrb.mxu2 %v4134_v32  ;;  %v4133_v46 = vld [vmem:[%s5368_s3 + $0x148] sm:$0xff] }
  0xf9   :  { %v526_v34 = vsel %vm4466_vm4, %v390_v24, %v525_v17  ;;  %v529_v5 = vsel %vm4474_vm5, %v391_v25, %v528_v19  ;;  %v238_v36 = vpack.c.bf16 %v222_v26, %v222_v26  ;;  %v756_v59 = vrot.slane %v755_v44, 4  ;;  %v556_v8 = vld [vmem:[#allocation2 + $0x78] sm:$0xf] }
  0xfa   :  { %527 = vst [vmem:[#allocation2 + $0x80] sm:$0xf] %v526_v34  ;;  %v3663_v17 = vor.u32 %v4108_v3, %v3662_v14  ;;  %v777_v35 = vshrl.u32 %v556_v8, 16  ;;  %v780_v24 = vshll.u32 %v556_v8, 16  ;;  %v763_v25 = vshrl.u32 %v555_v54, 16  ;;  %2404 = vmatpush.bf16.msra.mxu3 %v4153_v33 }
  0xfb   :  { %530 = vst [vmem:[#allocation2 + $0x84] sm:$0x1] %v529_v5  ;;  %v393_v47 = vshrl.u32 %v238_v36, 16  ;;  %v396_v48 = vshll.u32 %v238_v36, 16  ;;  %943 = vmatmul.bf16.gmra.mxu1 %v855_v42  ;;  %v761_v19 = vsel %vm4523_vm11, %v756_v59, %v760_v61  ;;  %v766_v26 = vshll.u32 %v555_v54, 16 }
  0xfc   :  { %v205_v51 = vpop.f32.mrf.mxu3  ;;  %v747_v29 = vsel %vm4523_vm11, %v742_v7, %v746_v6  ;;  %v537_v34 = vld [vmem:[#allocation2 + $0x90] sm:$0xf]  ;;  %v540_v5 = vld [vmem:[#allocation2 + $0x94] sm:$0x1]  ;;  %v846_v36 = vunpack.c.l.b16 %v761_v19  ;;  %v779_v42 = vrot.slane %v777_v35, 4  ;;  %v782_v43 = vrot.slane %v780_v24, 5  ;;  %2213 = vmatpush.bf16.msrb.mxu2 %v4133_v46 }
  0xfd   :  { %v395_v53 = vrot.slane %v393_v47, 7  ;;  %v206_v58 = vadd.f32 %v4255_v56, %v205_v51  ;;  %v845_v44 = vunpack.c.l.b16 %v747_v29  ;;  %v765_v47 = vrot.slane %v763_v25, 4  ;;  %v3542_v51 = vld [vmem:[#allocation2 + $0x70] sm:$0xf]  ;;  %v587_v56 = vld [vmem:[#allocation2 + $0x74] sm:$0x1] }
  0xfe   :  { %1349 = vmatmul.bf16.gmra.mxu3 %v1261_v50  ;;  %v1262_v59 = vpack.c.b16 %v1252_v45, %v1251_v37  ;;  %v772_v61 = vshll.u32 %v587_v56, 16  ;;  %v1122_v63 = vld [vmem:[#allocation2 + $0x78] sm:$0xe]  ;;  %v3592_v8 = vrot.slane %v1121_v62, 9  ;;  %v1210_v9 = vrot.slane %v587_v56, 5  ;;  %v4149_v25 = vld [vmem:[%s5368_s3 + $0x188] sm:$0xff] }
  0xff   :  { %v398_v1 = vor.u32 %v396_v48, %v395_v53  ;;  %v399_v2 = vrot.slane %v395_v53, 4  ;;  %1093 = vmatmul.bf16.gmra.mxu2 %v3539_v40  ;;  %v223_v4 = vmax.f32 %v206_v58, 0.0  ;;  %v768_v48 = vrot.slane %v766_v26, 5  ;;  %v588_v40 = vld [vmem:[#allocation2 + $0x7c] sm:$0x1]  ;;  %2405 = vmatpush.bf16.msra.mxu3 %v4152_v52 }
 0x100   :  { %v856_v53 = vpack.c.b16 %v846_v36, %v845_v44  ;;  %v783_v58 = vor.u32 %v782_v43, %v779_v42  ;;  %v786_v27 = vshll.u32 %v588_v40, 16  ;;  %v774_v7 = vrot.slane %v772_v61, 5  ;;  %2214 = vmatpush.bf16.msrb.mxu2 %v4132_v22  ;;  %v3666_v14 = vld [vmem:[#allocation2 + $0x18] sm:$0xf]  ;;  %v4148_v36 = vld [vmem:[%s5368_s3 + $0x180] sm:$0xff] }
 0x101   :  { %v532_v12 = vsel %vm4466_vm4, %v398_v1, %v531_v49  ;;  %v535_v13 = vsel %vm4474_vm5, %v399_v2, %v534_v55  ;;  %v239_v15 = vpack.c.bf16 %v223_v4, %v223_v4  ;;  %v4082_v55 = vld [vmem:[#allocation2 + $0x74] sm:$0xf0]  ;;  %v769_v57 = vor.u32 %v768_v48, %v765_v47  ;;  %v4124_v1 = vld [vmem:[%s5368_s3 + $0x100] sm:$0xff]  ;;  %v4110_v52 = vld [vmem:[#allocation2 + $0x2c] sm:$0xf0] }
 0x102   :  { %533 = vst [vmem:[#allocation2 + $0x88] sm:$0xf] %v532_v12  ;;  %v3543_v60 = vor.u32 %v4082_v55, %v3542_v51  ;;  %v784_v2 = vrot.slane %v783_v58, 4  ;;  %v788_v3 = vrot.slane %v786_v27, 5  ;;  %v4109_v4 = vld [vmem:[#allocation2 + $0x1c] sm:$0xf0]  ;;  %1940 = vmatpush.bf16.msrb.mxu1 %v4124_v1 }
 0x103   :  { %536 = vst [vmem:[#allocation2 + $0x8c] sm:$0x1] %v535_v13  ;;  %v401_v21 = vshrl.u32 %v239_v15, 16  ;;  %v404_v23 = vshll.u32 %v239_v15, 16  ;;  %v770_v6 = vrot.slane %v769_v57, 4  ;;  %v3593_v11 = vrot.slane %v1122_v63, 9  ;;  %2406 = vmatpush.bf16.msra.mxu3 %v4151_v0 }
 0x104   :  { %v1214_v12 = vrot.slane %v588_v40, 5  ;;  %v4150_v13 = vld [vmem:[%s5368_s3 + $0x190] sm:$0xff]  ;;  %v557_v15 = vld [vmem:[#allocation2 + $0x80] sm:$0xf]  ;;  %v3667_v16 = vor.u32 %v4109_v4, %v3666_v14  ;;  %v789_v54 = vsel %vm4523_vm11, %v784_v2, %v788_v3  ;;  %v4163_v26 = vld [vmem:[%s5368_s3 + $0x1f8] sm:$0xff] }
 0x105   :  { %1523 = vmatmul.bf16.vlgmr.msrb.gmra.mxu0 %v3663_v17  ;;  %v403_v28 = vrot.slane %v401_v21, 7  ;;  %v775_v20 = vsel %vm4523_vm11, %v770_v6, %v774_v7  ;;  %v1211_v21 = vsel %vm4495_vm8, %v3592_v8, %v1210_v9  ;;  %v791_v35 = vshrl.u32 %v557_v15, 16  ;;  %v589_v43 = vld [vmem:[#allocation2 + $0x84] sm:$0x1]  ;;  %v4171_v46 = vld [vmem:[%s5368_s3 + $0x238] sm:$0xff] }
 0x106   :  { %v794_v24 = vshll.u32 %v557_v15, 16  ;;  %2820 = vmatpush.bf16.msra.mxu0 %v4163_v26  ;;  %v847_v31 = vunpack.c.l.b16 %v775_v20  ;;  %v1253_v32 = vunpack.c.l.b16 %v1211_v21  ;;  %v800_v48 = vshll.u32 %v589_v43, 16  ;;  %v3670_v51 = vld [vmem:[#allocation2 + $0x28] sm:$0xf]  ;;  %3094 = vmatpush.bf16.msra.mxu1 %v4171_v46  ;;  %v4788_v58 = vld [vmem:[#allocation2 + $0xc] sm:$0x1] }
 0x107   :  { %v406_v41 = vor.u32 %v404_v23, %v403_v28  ;;  %v407_v39 = vrot.slane %v403_v28, 4  ;;  %v1215_v23 = vsel %vm4495_vm8, %v3593_v11, %v1214_v12  ;;  %2407 = vmatpush.bf16.msra.mxu3 %v4150_v13  ;;  %v848_v28 = vunpack.c.l.b16 %v789_v54  ;;  %v1583_v27 = vld [vmem:[#allocation2 + $0x14] sm:$0x1]  ;;  %v1582_v62 = vld [vmem:[#allocation2 + $0x10] sm:$0xf] }
 0x108   :  { %v1254_v33 = vunpack.c.l.b16 %v1215_v23  ;;  %v802_v57 = vrot.slane %v800_v48, 5  ;;  %v1218_v61 = vrot.slane %v589_v43, 5  ;;  %v1580_v2 = vld [vmem:[#allocation2 + $0x8] sm:$0xf]  ;;  %v2052_v4 = vrot.slane %v1583_v27, 5 }
 0x109   :  { %v538_v49 = vsel %vm4466_vm4, %v406_v41, %v537_v34  ;;  %v541_v50 = vsel %vm4474_vm5, %v407_v39, %v540_v5  ;;  %v558_v18 = vld [vmem:[#allocation2 + $0x88] sm:$0xf]  ;;  %v793_v34 = vrot.slane %v791_v35, 4  ;;  %v796_v5 = vrot.slane %v794_v24, 5  ;;  %v3546_v41 = vld [vmem:[#allocation2 + $0x80] sm:$0xf] }
 0x10a   :  { %539 = vst [vmem:[#allocation2 + $0x90] sm:$0xf] %v538_v49  ;;  %v805_v17 = vshrl.u32 %v558_v18, 16  ;;  %v808_v19 = vshll.u32 %v558_v18, 16  ;;  %v857_v37 = vpack.c.b16 %v848_v28, %v847_v31  ;;  %v4083_v39 = vld [vmem:[#allocation2 + $0x84] sm:$0xf0]  ;;  %v1263_v47 = vpack.c.b16 %v1254_v33, %v1253_v32 }
 0x10b   :  { %542 = vst [vmem:[#allocation2 + $0x94] sm:$0x1] %v541_v50  ;;  %948 = vmatmul.bf16.gmra.mxu1 %v856_v53  ;;  %2408 = vmatpush.bf16.msra.mxu3 %v4149_v25  ;;  %v590_v42 = vld [vmem:[#allocation2 + $0x8c] sm:$0x1]  ;;  %v3547_v49 = vor.u32 %v4083_v39, %v3546_v41  ;;  %v797_v50 = vor.u32 %v796_v5, %v793_v34  ;;  %v1123_v53 = vld [vmem:[#allocation2 + $0x80] sm:$0xe] }
 0x10c   :  { %v807_v29 = vrot.slane %v805_v17, 4  ;;  %v810_v30 = vrot.slane %v808_v19, 5  ;;  %v814_v45 = vshll.u32 %v590_v42, 16  ;;  %v1124_v55 = vld [vmem:[#allocation2 + $0x88] sm:$0xe]  ;;  %v3594_v22 = vrot.slane %v1123_v53, 9 }
 0x10d   :  { %v798_v63 = vrot.slane %v797_v50, 4  ;;  %v3595_v0 = vrot.slane %v1124_v55, 9  ;;  %v1222_v1 = vrot.slane %v590_v42, 5  ;;  %v3671_v6 = vor.u32 %v4110_v52, %v3670_v51  ;;  %v4170_v34 = vld [vmem:[%s5368_s3 + $0x230] sm:$0xff]  ;;  %v4809_v41 = vld [vmem:[#allocation2 + $0x24] sm:$0x1] }
 0x10e   :  { %1354 = vmatmul.bf16.gmra.mxu3 %v1262_v59  ;;  %v811_v44 = vor.u32 %v810_v30, %v807_v29  ;;  %v816_v56 = vrot.slane %v814_v45, 5  ;;  %v1999_v59 = vld [vmem:[#allocation2 + $0x10] sm:$0xe]  ;;  %v1627_v18 = vshrl.u32 %v1582_v62, 16  ;;  %v1630_v8 = vshll.u32 %v1582_v62, 16  ;;  %3095 = vmatpush.bf16.msra.mxu1 %v4170_v34 }
 0x10f   :  { %1098 = vmatmul.bf16.gmra.mxu2 %v3543_v60  ;;  %2409 = vmatpush.bf16.msra.mxu3 %v4148_v36  ;;  %v1998_v60 = vld [vmem:[#allocation2 + $0x8] sm:$0xe]  ;;  %v3773_v3 = vrot.slane %v1999_v59, 9  ;;  %v2048_v11 = vrot.slane %v4788_v58, 5  ;;  %v1613_v12 = vshrl.u32 %v1580_v2, 16  ;;  %v803_v13 = vsel %vm4523_vm11, %v798_v63, %v802_v57  ;;  %v4162_v30 = vld [vmem:[%s5368_s3 + $0x1f0] sm:$0xff] }
 0x110   :  { %v812_v40 = vrot.slane %v811_v44, 4  ;;  %v3772_v9 = vrot.slane %v1998_v60, 9  ;;  %v1219_v14 = vsel %vm4495_vm8, %v3594_v22, %v1218_v61  ;;  %v1223_v15 = vsel %vm4495_vm8, %v3595_v0, %v1222_v1  ;;  %2821 = vmatpush.bf16.msra.mxu0 %v4162_v30  ;;  %v2001_v39 = vld [vmem:[#allocation2 + $0x20] sm:$0xe]  ;;  %v3674_v42 = vld [vmem:[#allocation2 + $0x38] sm:$0xf] }
 0x111   :  { %v2053_v17 = vsel %vm4495_vm8, %v3773_v3, %v2052_v4  ;;  %v1629_v19 = vrot.slane %v1627_v18, 4  ;;  %v1632_v20 = vrot.slane %v1630_v8, 5  ;;  %v849_v21 = vunpack.c.l.b16 %v803_v13  ;;  %v4111_v43 = vld [vmem:[#allocation2 + $0x3c] sm:$0xf0]  ;;  %v2000_v50 = vld [vmem:[#allocation2 + $0x18] sm:$0xe] }
 0x112   :  { %v817_v7 = vsel %vm4523_vm11, %v812_v40, %v816_v56  ;;  %v1255_v23 = vunpack.c.l.b16 %v1219_v14  ;;  %v1256_v35 = vunpack.c.l.b16 %v1223_v15  ;;  %v2049_v24 = vsel %vm4495_vm8, %v3772_v9, %v2048_v11  ;;  %v1584_v55 = vld [vmem:[#allocation2 + $0x18] sm:$0xf]  ;;  %v4161_v9 = vld [vmem:[%s5368_s3 + $0x1e8] sm:$0xff]  ;;  %v3854_v11 = vld [vmem:[#allocation2 + $0x10] sm:$0xf] }
 0x113   :  { %v850_v54 = vunpack.c.l.b16 %v817_v7  ;;  %v2128_v25 = vunpack.c.l.b16 %v2053_v17  ;;  %v1615_v26 = vrot.slane %v1613_v12, 4  ;;  %v2127_v31 = vunpack.c.l.b16 %v2049_v24  ;;  %v4140_v4 = vld [vmem:[#allocation2 + $0x14] sm:$0xf0] }
 0x114   :  { %v1633_v32 = vor.u32 %v1632_v20, %v1629_v19  ;;  %v1264_v33 = vpack.c.b16 %v1256_v35, %v1255_v23  ;;  %v1622_v44 = vshll.u32 %v4788_v58, 16  ;;  %v3675_v51 = vor.u32 %v4111_v43, %v3674_v42  ;;  %2822 = vmatpush.bf16.msra.mxu0 %v4161_v9  ;;  %v1588_v20 = vld [vmem:[#allocation2 + $0x28] sm:$0xf]  ;;  %v1590_v35 = vld [vmem:[#allocation2 + $0x30] sm:$0xf] }
 0x115   :  { %1528 = vmatmul.bf16.gmra.mxu0 %v3667_v16  ;;  %v1616_v16 = vshll.u32 %v1580_v2, 16  ;;  %v858_v29 = vpack.c.b16 %v850_v54, %v849_v21  ;;  %v2143_v5 = vpack.c.b16 %v2128_v25, %v2127_v31  ;;  %v3775_v52 = vrot.slane %v2001_v39, 9  ;;  %v1589_v21 = vld [vmem:[#allocation2 + $0x2c] sm:$0x1]  ;;  %v2002_v23 = vld [vmem:[#allocation2 + $0x28] sm:$0xe] }
 0x116   :  { %v1634_v45 = vrot.slane %v1633_v32, 4  ;;  %v2060_v53 = vrot.slane %v4809_v41, 5  ;;  %v1624_v40 = vrot.slane %v1622_v44, 5  ;;  %v3774_v57 = vrot.slane %v2000_v50, 9  ;;  %v1591_v25 = vld [vmem:[#allocation2 + $0x34] sm:$0x1] }
 0x117   :  { %v1618_v28 = vrot.slane %v1616_v16, 5  ;;  %v1641_v60 = vshrl.u32 %v1584_v55, 16  ;;  %v1644_v62 = vshll.u32 %v1584_v55, 16  ;;  %v3855_v14 = vor.u32 %v4140_v4, %v3854_v11  ;;  %v4169_v16 = vld [vmem:[%s5368_s3 + $0x228] sm:$0xff]  ;;  %v2005_v9 = vld [vmem:[#allocation2 + $0x40] sm:$0xe] }
 0x118   :  { %v2061_v22 = vsel %vm4495_vm8, %v3775_v52, %v2060_v53  ;;  %v1664_v19 = vshll.u32 %v4809_v41, 16  ;;  %3096 = vmatpush.bf16.msra.mxu1 %v4169_v16  ;;  %v3776_v34 = vrot.slane %v2002_v23, 9  ;;  %v2068_v41 = vrot.slane %v1591_v25, 5  ;;  %v4113_v16 = vld [vmem:[#allocation2 + $0x6c] sm:$0xf0] }
 0x119   :  { %v1619_v36 = vor.u32 %v1618_v28, %v1615_v26  ;;  %v1643_v7 = vrot.slane %v1641_v60, 4  ;;  %v1646_v18 = vrot.slane %v1644_v62, 5  ;;  %v2003_v26 = vld [vmem:[#allocation2 + $0x30] sm:$0xe]  ;;  %v3678_v28 = vld [vmem:[#allocation2 + $0x58] sm:$0xf] }
 0x11a   :  { %v1669_v39 = vshrl.u32 %v1588_v20, 16  ;;  %v1672_v42 = vshll.u32 %v1588_v20, 16  ;;  %v1678_v62 = vshll.u32 %v1589_v21, 16 }
 0x11b   :  { %953 = vmatmul.bf16.gmra.mxu1 %v857_v37  ;;  %v1636_v37 = vshll.u32 %v1583_v27, 16  ;;  %v1620_v48 = vrot.slane %v1619_v36, 4  ;;  %v1647_v17 = vor.u32 %v1646_v18, %v1643_v7 }
 0x11c   :  { %v1674_v52 = vrot.slane %v1672_v42, 5  ;;  %v1680_v18 = vrot.slane %v1678_v62, 5  ;;  %v4873_v62 = vld [vmem:[#allocation2 + $0x5c] sm:$0x1] }
 0x11d   :  { %v1638_v46 = vrot.slane %v1636_v37, 5  ;;  %v1625_v58 = vsel %vm4523_vm11, %v1620_v48, %v1624_v40  ;;  %v1648_v32 = vrot.slane %v1647_v17, 4  ;;  %v3777_v37 = vrot.slane %v2003_v26, 9 }
 0x11e   :  { %1359 = vmatmul.bf16.gmra.mxu3 %v1263_v47  ;;  %v1586_v47 = vld [vmem:[#allocation2 + $0x20] sm:$0xf]  ;;  %v1853_v2 = vunpack.c.l.b16 %v1625_v58 }
 0x11f   :  { %1103 = vmatmul.bf16.gmra.mxu2 %v3547_v49  ;;  %v1585_v49 = vld [vmem:[#allocation2 + $0x1c] sm:$0x1]  ;;  %v1639_v56 = vsel %vm4523_vm11, %v1634_v45, %v1638_v46  ;;  %v1655_v27 = vshrl.u32 %v1586_v47, 16  ;;  %v1658_v59 = vshll.u32 %v1586_v47, 16  ;;  %v1683_v45 = vshrl.u32 %v1590_v35, 16 }
 0x120   :  { %v2056_v61 = vrot.slane %v1585_v49, 5  ;;  %v1854_v63 = vunpack.c.l.b16 %v1639_v56  ;;  %v1650_v15 = vshll.u32 %v1585_v49, 16  ;;  %v1686_v47 = vshll.u32 %v1590_v35, 16 }
 0x121   :  { %v1657_v0 = vrot.slane %v1655_v27, 4  ;;  %v1660_v1 = vrot.slane %v1658_v59, 5  ;;  %v2069_v50 = vsel %vm4495_vm8, %v3777_v37, %v2068_v41  ;;  %v1685_v53 = vrot.slane %v1683_v45, 4  ;;  %v3858_v27 = vld [vmem:[#allocation2 + $0x20] sm:$0xf] }
 0x122   :  { %v2057_v3 = vsel %vm4495_vm8, %v3774_v57, %v2056_v61  ;;  %v1869_v8 = vpack.c.b16 %v1854_v63, %v1853_v2  ;;  %v1652_v30 = vrot.slane %v1650_v15, 5  ;;  %v1688_v55 = vrot.slane %v1686_v47, 5  ;;  %v4141_v63 = vld [vmem:[#allocation2 + $0x24] sm:$0xf0] }
 0x123   :  { %v2129_v12 = vunpack.c.l.b16 %v2057_v3  ;;  %v1661_v13 = vor.u32 %v1660_v1, %v1657_v0  ;;  %v2132_v57 = vunpack.c.l.b16 %v2069_v50  ;;  %v1692_v0 = vshll.u32 %v1591_v25, 16  ;;  %v4160_v1 = vld [vmem:[%s5368_s3 + $0x1e0] sm:$0xff]  ;;  %v3682_v15 = vld [vmem:[#allocation2 + $0x68] sm:$0xf] }
 0x124   :  { %v1653_v48 = vsel %vm4523_vm11, %v1648_v32, %v1652_v30  ;;  %v3859_v2 = vor.u32 %v4141_v63, %v3858_v27  ;;  %v4168_v3 = vld [vmem:[%s5368_s3 + $0x220] sm:$0xff]  ;;  %2823 = vmatpush.bf16.msra.mxu0 %v4160_v1  ;;  %v4158_v63 = vld [vmem:[%s5368_s3 + $0x1d0] sm:$0xff]  ;;  %v2006_v1 = vld [vmem:[#allocation2 + $0x58] sm:$0xe] }
 0x125   :  { %1533 = vmatmul.bf16.gmra.mxu0 %v3671_v6  ;;  %v2130_v6 = vunpack.c.l.b16 %v2061_v22  ;;  %v1662_v24 = vrot.slane %v1661_v13, 4  ;;  %v1855_v40 = vunpack.c.l.b16 %v1653_v48  ;;  %v1689_v22 = vor.u32 %v1688_v55, %v1685_v53  ;;  %3097 = vmatpush.bf16.msra.mxu1 %v4168_v3  ;;  %v1595_v13 = vld [vmem:[#allocation2 + $0x44] sm:$0x1] }
 0x126   :  { %v2076_v25 = vrot.slane %v1595_v13, 5 }
 0x127   :  { %v2144_v54 = vpack.c.b16 %v2130_v6, %v2129_v12  ;;  %v4850_v6 = vld [vmem:[#allocation2 + $0x3c] sm:$0x1]  ;;  %v1690_v11 = vrot.slane %v1689_v22, 4  ;;  %v1694_v12 = vrot.slane %v1692_v0, 5  ;;  %v4878_v0 = vld [vmem:[#allocation2 + $0x64] sm:$0x1] }
 0x128   :  { %v2072_v20 = vrot.slane %v4850_v6, 5  ;;  %v1706_v27 = vshll.u32 %v4850_v6, 16 }
 0x129   :  { %v1695_v30 = vsel %vm4523_vm11, %v1690_v11, %v1694_v12  ;;  %v1598_v11 = vld [vmem:[#allocation2 + $0x60] sm:$0xf] }
 0x12a   :  { %v1858_v37 = vunpack.c.l.b16 %v1695_v30 }
 0x12b   :  { %958 = vmatmul.bf16.gmra.mxu1 %v858_v29  ;;  %v4112_v29 = vld [vmem:[#allocation2 + $0x5c] sm:$0xf0] }
 0x12c   :  { %v3679_v43 = vor.u32 %v4112_v29, %v3678_v28  ;;  %v3683_v29 = vor.u32 %v4113_v16, %v3682_v15  ;;  %v2080_v15 = vrot.slane %v4873_v62, 5  ;;  %v3686_v16 = vld [vmem:[#allocation2 + $0x78] sm:$0xf] }
 0x12e   :  { %1364 = vmatmul.bf16.gmra.mxu3 %v1264_v33  ;;  %v1666_v33 = vrot.slane %v1664_v19, 5 }
 0x12f   :  { %2215 = vmatmul.bf16.vlgmr.msrb.gmra.mxu2 %v2143_v5  ;;  %v2064_v5 = vrot.slane %v1589_v21, 5  ;;  %v3779_v21 = vrot.slane %v2005_v9, 9 }
 0x130   :  { %v1667_v44 = vsel %vm4523_vm11, %v1662_v24, %v1666_v33 }
 0x131   :  { %v2065_v46 = vsel %vm4495_vm8, %v3776_v34, %v2064_v5  ;;  %v1856_v49 = vunpack.c.l.b16 %v1667_v44  ;;  %v4159_v34 = vld [vmem:[%s5368_s3 + $0x1d8] sm:$0xff] }
 0x132   :  { %v2131_v59 = vunpack.c.l.b16 %v2065_v46  ;;  %2824 = vmatpush.bf16.msra.mxu0 %v4159_v34  ;;  %v3862_v46 = vld [vmem:[#allocation2 + $0x30] sm:$0xf] }
 0x133   :  { %v1870_v58 = vpack.c.b16 %v1856_v49, %v1855_v40  ;;  %v4142_v49 = vld [vmem:[#allocation2 + $0x34] sm:$0xf0] }
 0x134   :  { %v2145_v4 = vpack.c.b16 %v2132_v57, %v2131_v59  ;;  %v1720_v59 = vshll.u32 %v1595_v13, 16  ;;  %v1596_v57 = vld [vmem:[#allocation2 + $0x58] sm:$0xf]  ;;  %v3863_v22 = vor.u32 %v4142_v49, %v3862_v46 }
 0x135   :  { %1538 = vmatmul.bf16.gmra.mxu0 %v3675_v51  ;;  %v1671_v51 = vrot.slane %v1669_v39, 4  ;;  %v2077_v39 = vsel %vm4495_vm8, %v3779_v21, %v2076_v25  ;;  %v1725_v6 = vshrl.u32 %v1596_v57, 16 }
 0x136   :  { %2825 = vmatpush.bf16.msra.mxu0 %v4158_v63  ;;  %v1722_v9 = vrot.slane %v1720_v59, 5  ;;  %v2467_v59 = vld [vmem:[#allocation2 + $0x10] sm:$0xf] }
 0x137   :  { %v1675_v60 = vor.u32 %v1674_v52, %v1671_v51  ;;  %v2134_v51 = vunpack.c.l.b16 %v2077_v39  ;;  %v4156_v39 = vld [vmem:[%s5368_s3 + $0x1c0] sm:$0xff] }
 0x139   :  { %v1676_v7 = vrot.slane %v1675_v60, 4 }
 0x13b   :  { %1941 = vmatmul.bf16.vlgmr.msrb.gmra.mxu1 %v1869_v8  ;;  %v2004_v8 = vld [vmem:[#allocation2 + $0x38] sm:$0xe]  ;;  %v1681_v24 = vsel %vm4523_vm11, %v1676_v7, %v1680_v18  ;;  %v1728_v7 = vshll.u32 %v1596_v57, 16  ;;  %v4157_v18 = vld [vmem:[%s5368_s3 + $0x1c8] sm:$0xff] }
 0x13c   :  { %v3778_v19 = vrot.slane %v2004_v8, 9  ;;  %v1857_v5 = vunpack.c.l.b16 %v1681_v24  ;;  %v1708_v8 = vrot.slane %v1706_v27, 5  ;;  %v1727_v24 = vrot.slane %v1725_v6, 4  ;;  %2826 = vmatpush.bf16.msra.mxu0 %v4157_v18  ;;  %v2008_v18 = vld [vmem:[#allocation2 + $0x68] sm:$0xe] }
 0x13d   :  { %v1730_v25 = vrot.slane %v1728_v7, 5 }
 0x13e   :  { %2410 = vmatmul.bf16.vlgmr.msra.gmra.mxu3 %v3855_v14  ;;  %v1592_v14 = vld [vmem:[#allocation2 + $0x38] sm:$0xf]  ;;  %v2073_v41 = vsel %vm4495_vm8, %v3778_v19, %v2072_v20  ;;  %v1871_v40 = vpack.c.b16 %v1858_v37, %v1857_v5  ;;  %v2084_v20 = vrot.slane %v4878_v0, 5 }
 0x13f   :  { %2220 = vmatmul.bf16.gmra.mxu2 %v2144_v54  ;;  %v1594_v54 = vld [vmem:[#allocation2 + $0x40] sm:$0xf]  ;;  %v1697_v26 = vshrl.u32 %v1592_v14, 16  ;;  %v1700_v28 = vshll.u32 %v1592_v14, 16  ;;  %v2133_v50 = vunpack.c.l.b16 %v2073_v41  ;;  %v3780_v14 = vrot.slane %v2006_v1, 9 }
 0x140   :  { %v1711_v32 = vshrl.u32 %v1594_v54, 16  ;;  %v1714_v33 = vshll.u32 %v1594_v54, 16  ;;  %v4114_v54 = vld [vmem:[#allocation2 + $0x7c] sm:$0xf0]  ;;  %2827 = vmatpush.bf16.msra.mxu0 %v4156_v39  ;;  %v2469_v1 = vld [vmem:[#allocation2 + $0x18] sm:$0xf] }
 0x141   :  { %v4828_v31 = vpop.f32.mrf.mxu3  ;;  %v1699_v42 = vrot.slane %v1697_v26, 4  ;;  %v2146_v3 = vpack.c.b16 %v2134_v51, %v2133_v50  ;;  %v1739_v26 = vshrl.u32 %v1598_v11, 16  ;;  %v3687_v5 = vor.u32 %v4114_v54, %v3686_v16  ;;  %v3866_v51 = vld [vmem:[#allocation2 + $0x40] sm:$0xf] }
 0x142   :  { %v4830_v36 = vpop.f32.mrf.mxu0  ;;  %v1713_v44 = vrot.slane %v1711_v32, 4  ;;  %v1716_v45 = vrot.slane %v1714_v33, 5  ;;  %v2514_v54 = vshrl.u32 %v2469_v1, 16 }
 0x144   :  { %v1717_v60 = vor.u32 %v1716_v45, %v1713_v44  ;;  %v1734_v44 = vshll.u32 %v4873_v62, 16  ;;  %v1741_v45 = vrot.slane %v1739_v26, 4  ;;  %v1600_v26 = vld [vmem:[#allocation2 + $0x68] sm:$0xf] }
 0x145   :  { %1543 = vmatmul.bf16.gmra.mxu0 %v3679_v43  ;;  %v1702_v43 = vrot.slane %v1700_v28, 5  ;;  %v1742_v28 = vshll.u32 %v1598_v11, 16  ;;  %v4914_v11 = vld [vmem:[#allocation2 + $0x74] sm:$0x1] }
 0x146   :  { %v1718_v13 = vrot.slane %v1717_v60, 4  ;;  %v1736_v62 = vrot.slane %v1734_v44, 5 }
 0x148   :  { %v1723_v41 = vsel %vm4523_vm11, %v1718_v13, %v1722_v9  ;;  %v2503_v13 = vshll.u32 %v2467_v59, 16 }
 0x149   :  { %v4840_v56 = vpop.f32.mrf.mxu3  ;;  %v1860_v50 = vunpack.c.l.b16 %v1723_v41  ;;  %v4115_v41 = vld [vmem:[#allocation2 + $0x8c] sm:$0xf0] }
 0x14a   :  { %v4842_v61 = vpop.f32.mrf.mxu0 }
 0x14b   :  { %1946 = vmatmul.bf16.gmra.mxu1 %v1870_v58  ;;  %v1703_v58 = vor.u32 %v1702_v43, %v1699_v42  ;;  %v2081_v42 = vsel %vm4495_vm8, %v3780_v14, %v2080_v15  ;;  %v2009_v15 = vld [vmem:[#allocation2 + $0x70] sm:$0xe] }
 0x14d   :  { %v1704_v12 = vrot.slane %v1703_v58, 4 }
 0x14e   :  { %2415 = vmatmul.bf16.gmra.mxu3 %v3859_v2  ;;  %v4167_v2 = vld [vmem:[%s5368_s3 + $0x218] sm:$0xff] }
 0x14f   :  { %2225 = vmatmul.bf16.gmra.mxu2 %v2145_v4  ;;  %v2007_v4 = vld [vmem:[#allocation2 + $0x60] sm:$0xe]  ;;  %3098 = vmatpush.bf16.msra.mxu1 %v4167_v2  ;;  %v1709_v37 = vsel %vm4523_vm11, %v1704_v12, %v1708_v8  ;;  %v2500_v12 = vshrl.u32 %v2467_v59, 16 }
 0x150   :  { %v3781_v19 = vrot.slane %v2007_v4, 9  ;;  %v1859_v49 = vunpack.c.l.b16 %v1709_v37  ;;  %v3690_v37 = vld [vmem:[#allocation2 + $0x88] sm:$0xf] }
 0x151   :  { %v4852_v17 = vpop.f32.mrf.mxu3 }
 0x152   :  { %v4855_v23 = vpop.f32.mrf.mxu0  ;;  %v1079_v35 = vpop.f32.mrf.mxu2  ;;  %v2085_v43 = vsel %vm4495_vm8, %v3781_v19, %v2084_v20  ;;  %v1872_v6 = vpack.c.b16 %v1860_v50, %v1859_v49  ;;  %v2517_v19 = vshll.u32 %v2469_v1, 16  ;;  %v4166_v20 = vld [vmem:[%s5368_s3 + $0x210] sm:$0xff]  ;;  %v1756_v49 = vshll.u32 %v1600_v26, 16 }
 0x153   :  { %v2136_v27 = vunpack.c.l.b16 %v2085_v43  ;;  %3099 = vmatpush.bf16.msra.mxu1 %v4166_v20 }
 0x154   :  { %v2519_v43 = vrot.slane %v2517_v19, 5  ;;  %v4144_v19 = vld [vmem:[#allocation2 + $0x64] sm:$0xf0] }
 0x155   :  { %1548 = vmatmul.bf16.gmra.mxu0 %v3683_v29 }
 0x158   :  { %v934_v47 = vpop.f32.mrf.mxu1 }
 0x159   :  { %v4868_v48 = vpop.f32.mrf.mxu3  ;;  %v1080_v53 = vadd.f32 %v1079_v35, %v934_v47  ;;  %v1744_v47 = vrot.slane %v1742_v28, 5  ;;  %v2471_v28 = vld [vmem:[#allocation2 + $0x20] sm:$0xf] }
 0x15a   :  { %v4870_v52 = vpop.f32.mrf.mxu0  ;;  %v1081_v55 = vpop.f32.mrf.mxu2 }
 0x15b   :  { %1951 = vmatmul.bf16.gmra.mxu1 %v1871_v40  ;;  %v2135_v40 = vunpack.c.l.b16 %v2081_v42  ;;  %v1745_v63 = vor.u32 %v1744_v47, %v1741_v45  ;;  %v2516_v42 = vrot.slane %v2514_v54, 4  ;;  %v1753_v47 = vshrl.u32 %v1600_v26, 16 }
 0x15d   :  { %v2147_v14 = vpack.c.b16 %v2136_v27, %v2135_v40  ;;  %v4933_v40 = vld [vmem:[#allocation2 + $0x1c] sm:$0x1] }
 0x15e   :  { %2420 = vmatmul.bf16.gmra.mxu3 %v3863_v22  ;;  %v4907_v22 = vld [vmem:[#allocation2 + $0x6c] sm:$0x1] }
 0x15f   :  { %2230 = vmatmul.bf16.gmra.mxu2 %v2146_v3  ;;  %v2088_v16 = vrot.slane %v4907_v22, 5 }
 0x160   :  { %v936_v21 = vpop.f32.mrf.mxu1 }
 0x161   :  { %v1340_v35 = vpop.f32.mrf.mxu3  ;;  %v1082_v29 = vadd.f32 %v1081_v55, %v936_v21  ;;  %v1748_v55 = vshll.u32 %v4878_v0, 16  ;;  %v4911_v0 = vld [vmem:[#allocation2 + $0x14] sm:$0x1] }
 0x162   :  { %v1069_v30 = vpop.f32.mrf.mxu0  ;;  %v4888_v32 = vadd.f32 %v1340_v35, %v1080_v53  ;;  %v1084_v33 = vpop.f32.mrf.mxu2  ;;  %v4143_v53 = vld [vmem:[#allocation2 + $0x44] sm:$0xf0]  ;;  %v3782_v35 = vrot.slane %v2008_v18, 9 }
 0x163   :  { %v1070_v34 = vadd.f32 %v1069_v30, %v4830_v36  ;;  %v1731_v36 = vor.u32 %v1730_v25, %v1727_v24  ;;  %v3867_v7 = vor.u32 %v4143_v53, %v3866_v51  ;;  %v1750_v9 = vrot.slane %v1748_v55, 5 }
 0x164   :  { %v2509_v25 = vshll.u32 %v4911_v0, 16  ;;  %v2092_v30 = vrot.slane %v4914_v11, 5  ;;  %v2089_v45 = vsel %vm4495_vm8, %v3782_v35, %v2088_v16 }
 0x165   :  { %1553 = vmatmul.bf16.gmra.mxu0 %v3687_v5  ;;  %v4904_v46 = vadd.f32 %v4828_v31, %v1070_v34  ;;  %v1732_v60 = vrot.slane %v1731_v36, 4  ;;  %v2505_v34 = vrot.slane %v2503_v13, 5  ;;  %v1602_v5 = vld [vmem:[#allocation2 + $0x70] sm:$0xf]  ;;  %v3870_v13 = vld [vmem:[#allocation2 + $0x60] sm:$0xf] }
 0x166   :  { %v1767_v27 = vshrl.u32 %v1602_v5, 16  ;;  %v1770_v59 = vshll.u32 %v1602_v5, 16 }
 0x167   :  { %v1737_v21 = vsel %vm4523_vm11, %v1732_v60, %v1736_v62  ;;  %v2528_v62 = vshrl.u32 %v2471_v28, 16 }
 0x168   :  { %v939_v57 = vpop.f32.mrf.mxu1  ;;  %v1861_v39 = vunpack.c.l.b16 %v1737_v21 }
 0x169   :  { %v1342_v58 = vpop.f32.mrf.mxu3  ;;  %v1085_v31 = vadd.f32 %v1084_v33, %v939_v57  ;;  %v2502_v33 = vrot.slane %v2500_v12, 4  ;;  %v1772_v12 = vrot.slane %v1770_v59, 5  ;;  %v2530_v54 = vrot.slane %v2528_v62, 4  ;;  %v1604_v59 = vld [vmem:[#allocation2 + $0x78] sm:$0xf] }
 0x16a   :  { %v1071_v2 = vpop.f32.mrf.mxu0  ;;  %v4909_v3 = vadd.f32 %v1342_v58, %v1082_v29  ;;  %v1086_v4 = vpop.f32.mrf.mxu2  ;;  %v3783_v29 = vrot.slane %v2009_v15, 9  ;;  %v3691_v58 = vor.u32 %v4115_v41, %v3690_v37  ;;  %v1606_v62 = vld [vmem:[#allocation2 + $0x80] sm:$0xf] }
 0x16b   :  { %v1072_v8 = vadd.f32 %v1071_v2, %v4842_v61  ;;  %1956 = vmatmul.bf16.gmra.mxu1 %v1872_v6  ;;  %v1746_v61 = vrot.slane %v1745_v63, 4  ;;  %v2506_v60 = vor.u32 %v2505_v34, %v2502_v33  ;;  %v2520_v2 = vor.u32 %v2519_v43, %v2516_v42  ;;  %v4948_v43 = vld [vmem:[#allocation2 + $0x24] sm:$0x1] }
 0x16c   :  { %v2093_v1 = vsel %vm4495_vm8, %v3783_v29, %v2092_v30  ;;  %v2531_v6 = vshll.u32 %v2471_v28, 16  ;;  %v1762_v33 = vshll.u32 %v4907_v22, 16  ;;  %v1776_v42 = vshll.u32 %v4914_v11, 16  ;;  %v4165_v11 = vld [vmem:[%s5368_s3 + $0x208] sm:$0xff] }
 0x16d   :  { %v4923_v24 = vadd.f32 %v4840_v56, %v1072_v8  ;;  %v1751_v36 = vsel %vm4523_vm11, %v1746_v61, %v1750_v9  ;;  %v2473_v8 = vld [vmem:[#allocation2 + $0x28] sm:$0xf]  ;;  %v2511_v9 = vrot.slane %v2509_v25, 5  ;;  %v2138_v15 = vunpack.c.l.b16 %v2093_v1  ;;  %3100 = vmatpush.bf16.msra.mxu1 %v4165_v11 }
 0x16e   :  { %2425 = vmatmul.bf16.gmra.mxu3 %v3867_v7  ;;  %v1862_v63 = vunpack.c.l.b16 %v1751_v36  ;;  %v1758_v7 = vrot.slane %v1756_v49, 5  ;;  %v2507_v16 = vrot.slane %v2506_v60, 4  ;;  %v2521_v20 = vrot.slane %v2520_v2, 4  ;;  %v4964_v60 = vld [vmem:[#allocation2 + $0x7c] sm:$0x1] }
 0x16f   :  { %2235 = vmatmul.bf16.gmra.mxu2 %v2147_v14  ;;  %v2137_v14 = vunpack.c.l.b16 %v2089_v45  ;;  %v2533_v21 = vrot.slane %v2531_v6, 5  ;;  %v2542_v61 = vshrl.u32 %v2473_v8, 16  ;;  %v2545_v35 = vshll.u32 %v2473_v8, 16  ;;  %v4966_v2 = vld [vmem:[#allocation2 + $0x84] sm:$0x1] }
 0x170   :  { %v941_v56 = vpop.f32.mrf.mxu1  ;;  %v1873_v29 = vpack.c.b16 %v1862_v63, %v1861_v39  ;;  %v2512_v39 = vsel %vm4523_vm11, %v2507_v16, %v2511_v9  ;;  %v2010_v6 = vld [vmem:[#allocation2 + $0x78] sm:$0xe]  ;;  %v1781_v8 = vshrl.u32 %v1604_v59, 16  ;;  %v1790_v11 = vshll.u32 %v4964_v60, 16 }
 0x171   :  { %v1345_v44 = vpop.f32.mrf.mxu3  ;;  %v1087_v50 = vadd.f32 %v1086_v4, %v941_v56  ;;  %v1755_v4 = vrot.slane %v1753_v47, 4  ;;  %v2148_v36 = vpack.c.b16 %v2138_v15, %v2137_v14  ;;  %v2534_v45 = vor.u32 %v2533_v21, %v2530_v54 }
 0x172   :  { %v1074_v51 = vpop.f32.mrf.mxu0  ;;  %v4931_v53 = vadd.f32 %v1345_v44, %v1085_v31  ;;  %v1089_v55 = vpop.f32.mrf.mxu2  ;;  %v2523_v31 = vshll.u32 %v4933_v40, 16  ;;  %v3871_v44 = vor.u32 %v4144_v19, %v3870_v13  ;;  %v2544_v47 = vrot.slane %v2542_v61, 4 }
 0x173   :  { %v1075_v57 = vadd.f32 %v1074_v51, %v4855_v23  ;;  %v1769_v23 = vrot.slane %v1767_v27, 4  ;;  %v2547_v49 = vrot.slane %v2545_v35, 5  ;;  %v1764_v51 = vrot.slane %v1762_v33, 5 }
 0x174   :  { %v2525_v30 = vrot.slane %v2523_v31, 5  ;;  %v2740_v63 = vunpack.c.l.b16 %v2512_v39  ;;  %v2011_v31 = vld [vmem:[#allocation2 + $0x80] sm:$0xe]  ;;  %v1784_v13 = vshll.u32 %v1604_v59, 16  ;;  %v1795_v14 = vshrl.u32 %v1606_v62, 16 }
 0x175   :  { %1558 = vmatmul.bf16.gmra.mxu0 %v3691_v58  ;;  %v4940_v18 = vadd.f32 %v4852_v17, %v1075_v57  ;;  %v1759_v17 = vor.u32 %v1758_v7, %v1755_v4  ;;  %v1773_v41 = vor.u32 %v1772_v12, %v1769_v23  ;;  %v1778_v58 = vrot.slane %v1776_v42, 5 }
 0x176   :  { %v2526_v22 = vsel %vm4523_vm11, %v2521_v20, %v2525_v30  ;;  %v2535_v4 = vrot.slane %v2534_v45, 4  ;;  %v2548_v7 = vor.u32 %v2547_v49, %v2544_v47  ;;  %v2096_v12 = vrot.slane %v4964_v60, 5  ;;  %v2475_v45 = vld [vmem:[#allocation2 + $0x30] sm:$0xf] }
 0x177   :  { %v1774_v57 = vrot.slane %v1773_v41, 4  ;;  %v2741_v1 = vunpack.c.l.b16 %v2526_v22  ;;  %v1798_v15 = vshll.u32 %v1606_v62, 16  ;;  %v3784_v20 = vrot.slane %v2010_v6, 9 }
 0x178   :  { %v944_v26 = vpop.f32.mrf.mxu1  ;;  %v3785_v21 = vrot.slane %v2011_v31, 9  ;;  %v2100_v61 = vrot.slane %v4966_v2, 5  ;;  %v1783_v33 = vrot.slane %v1781_v8, 4  ;;  %v2549_v39 = vrot.slane %v2548_v7, 4 }
 0x179   :  { %v1347_v28 = vpop.f32.mrf.mxu3  ;;  %v1090_v25 = vadd.f32 %v1089_v55, %v944_v26  ;;  %v4958_v55 = vld [vmem:[#allocation2 + $0x2c] sm:$0x1]  ;;  %v2756_v26 = vpack.c.b16 %v2741_v1, %v2740_v63  ;;  %v1800_v41 = vrot.slane %v1798_v15, 5  ;;  %v2556_v8 = vshrl.u32 %v2475_v45, 16 }
 0x17a   :  { %v1076_v34 = vpop.f32.mrf.mxu0  ;;  %v4943_v5 = vadd.f32 %v1347_v28, %v1087_v50  ;;  %v4945_v37 = vpop.f32.mrf.mxu2  ;;  %v1760_v50 = vrot.slane %v1759_v17, 4  ;;  %v2477_v17 = vld [vmem:[#allocation2 + $0x38] sm:$0xf] }
 0x17b   :  { %v1077_v56 = vadd.f32 %v1076_v34, %v4870_v52  ;;  %1961 = vmatmul.bf16.gmra.mxu1 %v1873_v29  ;;  %v2537_v52 = vshll.u32 %v4948_v43, 16  ;;  %v1779_v29 = vsel %vm4523_vm11, %v1774_v57, %v1778_v58  ;;  %v1797_v34 = vrot.slane %v1795_v14, 4  ;;  %v3874_v57 = vld [vmem:[#allocation2 + $0x70] sm:$0xf]  ;;  %v4145_v58 = vld [vmem:[#allocation2 + $0x74] sm:$0xf0] }
 0x17c   :  { %v1765_v28 = vsel %vm4523_vm11, %v1760_v50, %v1764_v51  ;;  %v2570_v47 = vshrl.u32 %v2477_v17, 16  ;;  %v1804_v50 = vshll.u32 %v4966_v2, 16  ;;  %v2573_v51 = vshll.u32 %v2477_v17, 16  ;;  %v5005_v17 = vld [vmem:[#allocation2 + $0x94] sm:$0x1] }
 0x17d   :  { %v4962_v27 = vadd.f32 %v4868_v48, %v1077_v56  ;;  %v2551_v48 = vshll.u32 %v4958_v55, 16  ;;  %v2539_v30 = vrot.slane %v2537_v52, 5  ;;  %v1863_v42 = vunpack.c.l.b16 %v1765_v28  ;;  %v5003_v28 = vld [vmem:[#allocation2 + $0x8c] sm:$0x1] }
 0x17e   :  { %2430 = vmatmul.bf16.gmra.mxu3 %v3871_v44  ;;  %v1864_v56 = vunpack.c.l.b16 %v1779_v29  ;;  %v2101_v44 = vsel %vm4495_vm8, %v3785_v21, %v2100_v61  ;;  %v1801_v6 = vor.u32 %v1800_v41, %v1797_v34  ;;  %v2572_v14 = vrot.slane %v2570_v47, 4  ;;  %v2012_v29 = vld [vmem:[#allocation2 + $0x88] sm:$0xe] }
 0x17f   :  { %2240 = vmatmul.bf16.gmra.mxu2 %v2148_v36  ;;  %v2540_v36 = vsel %vm4523_vm11, %v2535_v4, %v2539_v30  ;;  %v2553_v22 = vrot.slane %v2551_v48, 5  ;;  %v2140_v63 = vunpack.c.l.b16 %v2101_v44  ;;  %v2575_v15 = vrot.slane %v2573_v51, 5 }
 0x180   :  { %v946_v9 = vpop.f32.mrf.mxu1  ;;  %v1802_v21 = vrot.slane %v1801_v6, 4  ;;  %v1806_v61 = vrot.slane %v1804_v50, 5  ;;  %v2558_v30 = vrot.slane %v2556_v8, 4  ;;  %v2104_v47 = vrot.slane %v5003_v28, 5  ;;  %v2479_v8 = vld [vmem:[#allocation2 + $0x40] sm:$0xf] }
 0x181   :  { %v1350_v23 = vpop.f32.mrf.mxu3  ;;  %v1092_v49 = vadd.f32 %v4945_v37, %v946_v9  ;;  %v1874_v37 = vpack.c.b16 %v1864_v56, %v1863_v42  ;;  %v2554_v2 = vsel %vm4523_vm11, %v2549_v39, %v2553_v22  ;;  %v2742_v9 = vunpack.c.l.b16 %v2540_v36 }
 0x182   :  { %v4970_v16 = vadd.f32 %v1350_v23, %v1090_v25  ;;  %v1524_v54 = vpop.f32.mrf.mxu0  ;;  %v1094_v19 = vpop.f32.mrf.mxu2  ;;  %v1786_v25 = vrot.slane %v1784_v13, 5  ;;  %v2559_v23 = vshll.u32 %v2475_v45, 16  ;;  %v1792_v13 = vrot.slane %v1790_v11, 5 }
 0x183   :  { %v4974_v35 = vadd.f32 %v1524_v54, %v4904_v46  ;;  %v2097_v46 = vsel %vm4495_vm8, %v3784_v20, %v2096_v12  ;;  %v3875_v12 = vor.u32 %v4145_v58, %v3874_v57  ;;  %v4164_v54 = vld [vmem:[%s5368_s3 + $0x200] sm:$0xff]  ;;  %v2576_v42 = vor.u32 %v2575_v15, %v2572_v14  ;;  %v5019_v57 = vld [vmem:[#allocation2 + $0x34] sm:$0x1] }
 0x184   :  { %v2139_v62 = vunpack.c.l.b16 %v2097_v46  ;;  %v1787_v1 = vor.u32 %v1786_v25, %v1783_v33  ;;  %3101 = vmatpush.bf16.msra.mxu1 %v4164_v54  ;;  %v2013_v33 = vld [vmem:[#allocation2 + $0x90] sm:$0xe]  ;;  %v1608_v25 = vld [vmem:[#allocation2 + $0x88] sm:$0xf]  ;;  %v2561_v41 = vrot.slane %v2559_v23, 5  ;;  %v1807_v22 = vsel %vm4523_vm11, %v1802_v21, %v1806_v61 }
 0x185   :  { %2828 = vmatmul.bf16.vlgmr.msra.gmra.mxu0 %v2756_v26  ;;  %v2743_v26 = vunpack.c.l.b16 %v2554_v2  ;;  %v1610_v46 = vld [vmem:[#allocation2 + $0x90] sm:$0xf]  ;;  %v3786_v45 = vrot.slane %v2012_v29, 9  ;;  %v3787_v50 = vrot.slane %v2013_v33, 9  ;;  %v2108_v51 = vrot.slane %v5005_v17, 5 }
 0x186   :  { %v1788_v20 = vrot.slane %v1787_v1, 4  ;;  %v1812_v58 = vshll.u32 %v1608_v25, 16  ;;  %v2565_v6 = vshll.u32 %v5019_v57, 16  ;;  %v2584_v21 = vshrl.u32 %v2479_v8, 16  ;;  %v4146_v33 = vld [vmem:[#allocation2 + $0x84] sm:$0xf0] }
 0x187   :  { %v2757_v34 = vpack.c.b16 %v2743_v26, %v2742_v9  ;;  %v1866_v9 = vunpack.c.l.b16 %v1807_v22  ;;  %v2105_v23 = vsel %vm4495_vm8, %v3786_v45, %v2104_v47  ;;  %v2587_v61 = vshll.u32 %v2479_v8, 16 }
 0x188   :  { %v949_v52 = vpop.f32.mrf.mxu1  ;;  %v1793_v39 = vsel %vm4523_vm11, %v1788_v20, %v1792_v13  ;;  %v1814_v13 = vrot.slane %v1812_v58, 5  ;;  %v2481_v20 = vld [vmem:[#allocation2 + $0x48] sm:$0xf]  ;;  %v1832_v47 = vshll.u32 %v5005_v17, 16 }
 0x189   :  { %v1352_v59 = vpop.f32.mrf.mxu3  ;;  %v1095_v31 = vadd.f32 %v1094_v19, %v949_v52  ;;  %v2149_v19 = vpack.c.b16 %v2140_v63, %v2139_v62  ;;  %v1809_v52 = vshrl.u32 %v1608_v25, 16  ;;  %v1823_v62 = vshrl.u32 %v1610_v46, 16 }
 0x18a   :  { %v4989_v4 = vadd.f32 %v1352_v59, %v1092_v49  ;;  %v1526_v7 = vpop.f32.mrf.mxu0  ;;  %v4991_v48 = vpop.f32.mrf.mxu2  ;;  %v1826_v63 = vshll.u32 %v1610_v46, 16  ;;  %v1865_v2 = vunpack.c.l.b16 %v1793_v39  ;;  %v2141_v25 = vunpack.c.l.b16 %v2105_v23  ;;  %v5038_v23 = vld [vmem:[#allocation2 + $0x44] sm:$0x1] }
 0x18b   :  { %v4994_v60 = vadd.f32 %v1526_v7, %v4923_v24  ;;  %1966 = vmatmul.bf16.gmra.mxu1 %v1874_v37  ;;  %v5001_v24 = vld [vmem:[#allocation2 + $0x3c] sm:$0x1]  ;;  %v2562_v7 = vor.u32 %v2561_v41, %v2558_v30  ;;  %v1825_v14 = vrot.slane %v1823_v62, 4  ;;  %v3878_v30 = vld [vmem:[#allocation2 + $0x80] sm:$0xf] }
 0x18c   :  { %v2579_v56 = vshll.u32 %v5001_v24, 16  ;;  %v1828_v15 = vrot.slane %v1826_v63, 5  ;;  %v1875_v39 = vpack.c.b16 %v1866_v9, %v1865_v2 }
 0x18d   :  { %v2563_v41 = vrot.slane %v2562_v7, 4 }
 0x18e   :  { %2435 = vmatmul.bf16.gmra.mxu3 %v3875_v12  ;;  %v2581_v37 = vrot.slane %v2579_v56, 5  ;;  %v1811_v12 = vrot.slane %v1809_v52, 4  ;;  %v1829_v45 = vor.u32 %v1828_v15, %v1825_v14  ;;  %v2593_v14 = vshll.u32 %v5038_v23, 16 }
 0x18f   :  { %2245 = vmatmul.bf16.gmra.mxu2 %v2149_v19  ;;  %v2567_v19 = vrot.slane %v2565_v6, 5 }
 0x190   :  { %v951_v44 = vpop.f32.mrf.mxu1  ;;  %v1815_v22 = vor.u32 %v1814_v13, %v1811_v12  ;;  %v1830_v7 = vrot.slane %v1829_v45, 4 }
 0x191   :  { %v1355_v36 = vpop.f32.mrf.mxu3  ;;  %v1097_v54 = vadd.f32 %v4991_v48, %v951_v44  ;;  %v1818_v48 = vshll.u32 %v5003_v28, 16  ;;  %v2568_v62 = vsel %vm4523_vm11, %v2563_v41, %v2567_v19  ;;  %v2589_v28 = vrot.slane %v2587_v61, 5 }
 0x192   :  { %v5013_v49 = vadd.f32 %v1355_v36, %v1095_v31  ;;  %v1529_v11 = vpop.f32.mrf.mxu0  ;;  %v1099_v1 = vpop.f32.mrf.mxu2  ;;  %v2577_v31 = vrot.slane %v2576_v42, 4  ;;  %v2744_v9 = vunpack.c.l.b16 %v2568_v62  ;;  %v2483_v62 = vld [vmem:[#allocation2 + $0x60] sm:$0xf] }
 0x193   :  { %v5017_v59 = vadd.f32 %v1529_v11, %v4940_v18  ;;  %v2109_v18 = vsel %vm4495_vm8, %v3787_v50, %v2108_v51  ;;  %v3879_v11 = vor.u32 %v4146_v33, %v3878_v30  ;;  %v2598_v50 = vshrl.u32 %v2481_v20, 16 }
 0x194   :  { %v2582_v42 = vsel %vm4523_vm11, %v2577_v31, %v2581_v37  ;;  %v2601_v51 = vshll.u32 %v2481_v20, 16  ;;  %v1820_v6 = vrot.slane %v1818_v48, 5  ;;  %v1834_v31 = vrot.slane %v1832_v47, 5  ;;  %v4147_v48 = vld [vmem:[#allocation2 + $0x94] sm:$0xf0] }
 0x195   :  { %2833 = vmatmul.bf16.gmra.mxu0 %v2757_v34  ;;  %v2142_v34 = vunpack.c.l.b16 %v2109_v18  ;;  %v2745_v63 = vunpack.c.l.b16 %v2582_v42  ;;  %v2600_v37 = vrot.slane %v2598_v50, 4 }
 0x196   :  { %v2603_v17 = vrot.slane %v2601_v51, 5  ;;  %v1835_v20 = vsel %vm4523_vm11, %v1830_v7, %v1834_v31  ;;  %v2885_v7 = vld [vmem:[#allocation2 + $0x10] sm:$0xe]  ;;  %v2939_v31 = vrot.slane %v4933_v40, 5 }
 0x197   :  { %v2150_v52 = vpack.c.b16 %v2142_v34, %v2141_v25  ;;  %v1868_v30 = vunpack.c.l.b16 %v1835_v20  ;;  %v2595_v25 = vrot.slane %v2593_v14, 5 }
 0x198   :  { %v954_v26 = vpop.f32.mrf.mxu1  ;;  %v2604_v61 = vor.u32 %v2603_v17, %v2600_v37  ;;  %v2612_v37 = vshrl.u32 %v2483_v62, 16  ;;  %v2615_v17 = vshll.u32 %v2483_v62, 16 }
 0x199   :  { %v1357_v29 = vpop.f32.mrf.mxu3  ;;  %v1100_v56 = vadd.f32 %v1099_v1, %v954_v26  ;;  %v2586_v1 = vrot.slane %v2584_v21, 4  ;;  %v5050_v21 = vld [vmem:[#allocation2 + $0x4c] sm:$0x1] }
 0x19a   :  { %v5029_v46 = vadd.f32 %v1357_v29, %v1097_v54  ;;  %v1531_v36 = vpop.f32.mrf.mxu0  ;;  %v1101_v58 = vpop.f32.mrf.mxu2  ;;  %v2758_v54 = vpack.c.b16 %v2745_v63, %v2744_v9  ;;  %v2607_v26 = vshll.u32 %v5050_v21, 16  ;;  %v2605_v41 = vrot.slane %v2604_v61, 4  ;;  %v4179_v63 = vld [vmem:[%s5369_s5 + $0x38] sm:$0xff] }
 0x19b   :  { %v5033_v44 = vadd.f32 %v1531_v36, %v4962_v27  ;;  %1971 = vmatmul.bf16.gmra.mxu1 %v1875_v39  ;;  %v1816_v27 = vrot.slane %v1815_v22, 4  ;;  %v2590_v13 = vor.u32 %v2589_v28, %v2586_v1  ;;  %v3882_v39 = vld [vmem:[#allocation2 + $0x90] sm:$0xf]  ;;  %v2485_v22 = vld [vmem:[#allocation2 + $0x68] sm:$0xf]  ;;  %3271 = vmatpush.bf16.msra.mxu2 %v4179_v63  ;;  %v3964_v9 = vrot.slane %v2885_v7, 9 }
 0x19c   :  { %v2609_v42 = vrot.slane %v2607_v26, 5  ;;  %v3883_v1 = vor.u32 %v4147_v48, %v3882_v39  ;;  %v2487_v7 = vld [vmem:[#allocation2 + $0x70] sm:$0xf] }
 0x19d   :  { %v1821_v19 = vsel %vm4523_vm11, %v1816_v27, %v1820_v6  ;;  %v2591_v33 = vrot.slane %v2590_v13, 4  ;;  %v2626_v27 = vshrl.u32 %v2485_v22, 16  ;;  %v2629_v6 = vshll.u32 %v2485_v22, 16 }
 0x19e   :  { %2440 = vmatmul.bf16.gmra.mxu3 %v3879_v11  ;;  %v1867_v29 = vunpack.c.l.b16 %v1821_v19  ;;  %v2610_v28 = vsel %vm4523_vm11, %v2605_v41, %v2609_v42  ;;  %v5079_v42 = vld [vmem:[#allocation2 + $0x64] sm:$0x1] }
 0x19f   :  { %2250 = vmatmul.bf16.gmra.mxu2 %v2150_v52  ;;  %v2596_v52 = vsel %vm4523_vm11, %v2591_v33, %v2595_v25  ;;  %v2628_v13 = vrot.slane %v2626_v27, 4  ;;  %v2631_v14 = vrot.slane %v2629_v6, 5  ;;  %v5074_v25 = vld [vmem:[#allocation2 + $0x6c] sm:$0x1] }
 0x1a0   :  { %v956_v8 = vpop.f32.mrf.mxu1  ;;  %v1876_v50 = vpack.c.b16 %v1868_v30, %v1867_v29  ;;  %v2614_v29 = vrot.slane %v2612_v37, 4  ;;  %v2617_v30 = vrot.slane %v2615_v17, 5  ;;  %v2887_v37 = vld [vmem:[#allocation2 + $0x20] sm:$0xe] }
 0x1a1   :  { %v1360_v2 = vpop.f32.mrf.mxu3  ;;  %v1102_v34 = vadd.f32 %v1101_v58, %v956_v8  ;;  %v2886_v58 = vld [vmem:[#allocation2 + $0x18] sm:$0xe]  ;;  %v2746_v8 = vunpack.c.l.b16 %v2596_v52 }
 0x1a2   :  { %v5040_v18 = vadd.f32 %v1360_v2, %v1100_v56  ;;  %v1534_v12 = vpop.f32.mrf.mxu0  ;;  %v2747_v2 = vunpack.c.l.b16 %v2610_v28 }
 0x1a3   :  { %v5044_v15 = vadd.f32 %v1534_v12, %v4888_v32  ;;  %v1104_v32 = vpop.f32.mrf.mxu2  ;;  %v2935_v12 = vrot.slane %v4911_v0, 5 }
 0x1a4   :  { %v2759_v33 = vpack.c.b16 %v2747_v2, %v2746_v8  ;;  %v2888_v2 = vld [vmem:[#allocation2 + $0x28] sm:$0xe] }
 0x1a5   :  { %2838 = vmatmul.bf16.gmra.mxu0 %v2758_v54  ;;  %v2936_v0 = vsel %vm4495_vm8, %v3964_v9, %v2935_v12  ;;  %v2640_v9 = vshrl.u32 %v2487_v7, 16 }
 0x1a6   :  { %v3014_v48 = vunpack.c.l.b16 %v2936_v0 }
 0x1a8   :  { %v959_v56 = vpop.f32.mrf.mxu1 }
 0x1a9   :  { %v1362_v36 = vpop.f32.mrf.mxu3  ;;  %v1105_v45 = vadd.f32 %v1104_v32, %v959_v56  ;;  %v2635_v32 = vshll.u32 %v5074_v25, 16  ;;  %v2618_v56 = vor.u32 %v2617_v30, %v2614_v29  ;;  %v3967_v29 = vrot.slane %v2888_v2, 9 }
 0x1aa   :  { %v5053_v47 = vadd.f32 %v1362_v36, %v1102_v34  ;;  %v1536_v11 = vpop.f32.mrf.mxu0  ;;  %v2632_v34 = vor.u32 %v2631_v14, %v2628_v13  ;;  %v2621_v36 = vshll.u32 %v5079_v42, 16  ;;  %v3966_v13 = vrot.slane %v2887_v37, 9  ;;  %v2890_v37 = vld [vmem:[#allocation2 + $0x38] sm:$0xe] }
 0x1ab   :  { %v5056_v51 = vadd.f32 %v1536_v11, %v4909_v3  ;;  %1976 = vmatmul.bf16.gmra.mxu1 %v1876_v50  ;;  %v3965_v3 = vrot.slane %v2886_v58, 9  ;;  %v1106_v39 = vpop.f32.mrf.mxu2  ;;  %v2489_v58 = vld [vmem:[#allocation2 + $0x78] sm:$0xf]  ;;  %v2619_v28 = vrot.slane %v2618_v56, 4  ;;  %v2943_v14 = vrot.slane %v4948_v43, 5 }
 0x1ac   :  { %v2633_v22 = vrot.slane %v2632_v34, 4  ;;  %v2623_v27 = vrot.slane %v2621_v36, 5  ;;  %v2654_v17 = vshrl.u32 %v2489_v58, 16  ;;  %v2657_v8 = vshll.u32 %v2489_v58, 16  ;;  %v5107_v36 = vld [vmem:[#allocation2 + $0x7c] sm:$0x1] }
 0x1ad   :  { %v2940_v26 = vsel %vm4495_vm8, %v3965_v3, %v2939_v31  ;;  %v4178_v3 = vld [vmem:[%s5369_s5 + $0x30] sm:$0xff]  ;;  %v2947_v30 = vrot.slane %v4958_v55, 5  ;;  %v2642_v34 = vrot.slane %v2640_v9, 4  ;;  %v2944_v43 = vsel %vm4495_vm8, %v3966_v13, %v2943_v14  ;;  %v4177_v9 = vld [vmem:[%s5369_s5 + $0x28] sm:$0xff] }
 0x1ae   :  { %2445 = vmatmul.bf16.gmra.mxu3 %v3883_v1  ;;  %v3015_v41 = vunpack.c.l.b16 %v2940_v26  ;;  %3272 = vmatpush.bf16.msra.mxu2 %v4178_v3  ;;  %v3969_v13 = vrot.slane %v2890_v37, 9  ;;  %v2955_v14 = vrot.slane %v5001_v24, 5 }
 0x1af   :  { %v2948_v55 = vsel %vm4495_vm8, %v3967_v29, %v2947_v30 }
 0x1b0   :  { %v961_v54 = vpop.f32.mrf.mxu1  ;;  %v3030_v52 = vpack.c.b16 %v3015_v41, %v3014_v48  ;;  %v2663_v48 = vshll.u32 %v5107_v36, 16 }
 0x1b1   :  { %v1365_v19 = vpop.f32.mrf.mxu3 }
 0x1b2   :  { %v5067_v20 = vadd.f32 %v1365_v19, %v1105_v45  ;;  %v1539_v61 = vpop.f32.mrf.mxu0  ;;  %v2637_v45 = vrot.slane %v2635_v32, 5  ;;  %v2659_v19 = vrot.slane %v2657_v8, 5  ;;  %v2491_v8 = vld [vmem:[#allocation2 + $0x80] sm:$0xf]  ;;  %3273 = vmatpush.bf16.msra.mxu2 %v4177_v9 }
 0x1b3   :  { %v5072_v40 = vadd.f32 %v1539_v61, %v4931_v53  ;;  %v1107_v53 = vadd.f32 %v1106_v39, %v961_v54  ;;  %v2656_v54 = vrot.slane %v2654_v17, 4  ;;  %v2891_v9 = vld [vmem:[#allocation2 + $0x40] sm:$0xe] }
 0x1b4   :  { %v2638_v31 = vsel %vm4523_vm11, %v2633_v22, %v2637_v45  ;;  %v3017_v45 = vunpack.c.l.b16 %v2948_v55 }
 0x1b5   :  { %2843 = vmatmul.bf16.gmra.mxu0 %v2759_v33  ;;  %v2749_v12 = vunpack.c.l.b16 %v2638_v31  ;;  %v2660_v39 = vor.u32 %v2659_v19, %v2656_v54  ;;  %v2889_v31 = vld [vmem:[#allocation2 + $0x30] sm:$0xe]  ;;  %v2668_v54 = vshrl.u32 %v2491_v8, 16  ;;  %v2671_v19 = vshll.u32 %v2491_v8, 16 }
 0x1b7   :  { %v2670_v24 = vrot.slane %v2668_v54, 4 }
 0x1b8   :  { %v1942_v50 = vpop.f32.mrf.mxu1 }
 0x1b9   :  { %v1367_v11 = vpop.f32.mrf.mxu3  ;;  %v5085_v1 = vadd.f32 %v1942_v50, %v4974_v35  ;;  %v2624_v35 = vsel %vm4523_vm11, %v2619_v28, %v2623_v27  ;;  %v2665_v50 = vrot.slane %v2663_v48, 5 }
 0x1ba   :  { %v5082_v62 = vadd.f32 %v1367_v11, %v1107_v53  ;;  %v1541_v63 = vpop.f32.mrf.mxu0  ;;  %v2748_v26 = vunpack.c.l.b16 %v2624_v35  ;;  %v3016_v53 = vunpack.c.l.b16 %v2944_v43  ;;  %v2661_v11 = vrot.slane %v2660_v39, 4  ;;  %v5137_v43 = vld [vmem:[#allocation2 + $0x8c] sm:$0x1] }
 0x1bb   :  { %v5088_v6 = vadd.f32 %v1541_v63, %v4943_v5  ;;  %3102 = vmatmul.bf16.vlgmr.msra.gmra.mxu1 %v3030_v52  ;;  %v2643_v5 = vshll.u32 %v2487_v7, 16  ;;  %v2493_v52 = vld [vmem:[#allocation2 + $0x88] sm:$0xf]  ;;  %v2673_v39 = vrot.slane %v2671_v19, 5  ;;  %v2959_v19 = vrot.slane %v5038_v23, 5 }
 0x1bc   :  { %v2760_v56 = vpack.c.b16 %v2749_v12, %v2748_v26  ;;  %v3031_v27 = vpack.c.b16 %v3017_v45, %v3016_v53  ;;  %v2682_v35 = vshrl.u32 %v2493_v52, 16  ;;  %v2685_v2 = vshll.u32 %v2493_v52, 16 }
 0x1bd   :  { %v2645_v32 = vrot.slane %v2643_v5, 5  ;;  %v3968_v5 = vrot.slane %v2889_v31, 9  ;;  %v2951_v12 = vrot.slane %v5019_v57, 5 }
 0x1be   :  { %v2684_v26 = vrot.slane %v2682_v35, 4  ;;  %v2687_v29 = vrot.slane %v2685_v2, 5 }
 0x1bf   :  { %v2646_v22 = vor.u32 %v2645_v32, %v2642_v34  ;;  %v2952_v34 = vsel %vm4495_vm8, %v3968_v5, %v2951_v12  ;;  %v2892_v5 = vld [vmem:[#allocation2 + $0x48] sm:$0xe] }
 0x1c0   :  { %v1944_v61 = vpop.f32.mrf.mxu1  ;;  %v2688_v53 = vor.u32 %v2687_v29, %v2684_v26  ;;  %v3018_v45 = vunpack.c.l.b16 %v2952_v34  ;;  %v2963_v26 = vrot.slane %v5050_v21, 5 }
 0x1c1   :  { %v5100_v0 = vadd.f32 %v1944_v61, %v4994_v60  ;;  %v5112_v60 = vld [vmem:[#allocation2 + $0x74] sm:$0x1]  ;;  %v2647_v7 = vrot.slane %v2646_v22, 4  ;;  %v2691_v22 = vshll.u32 %v5137_v43, 16 }
 0x1c2   :  { %v1544_v33 = vpop.f32.mrf.mxu0  ;;  %v2689_v52 = vrot.slane %v2688_v53, 4 }
 0x1c3   :  { %v5103_v41 = vadd.f32 %v1544_v33, %v4970_v16  ;;  %v2649_v16 = vshll.u32 %v5112_v60, 16 }
 0x1c5   :  { %2848 = vmatmul.bf16.gmra.mxu0 %v2760_v56  ;;  %v2651_v3 = vrot.slane %v2649_v16, 5  ;;  %v2956_v56 = vsel %vm4495_vm8, %v3969_v13, %v2955_v14  ;;  %v5143_v16 = vld [vmem:[#allocation2 + $0x84] sm:$0x1] }
 0x1c8   :  { %v1947_v58 = vpop.f32.mrf.mxu1 }
 0x1c9   :  { %v5116_v28 = vadd.f32 %v1947_v58, %v5017_v59  ;;  %v2666_v59 = vsel %vm4523_vm11, %v2661_v11, %v2665_v50  ;;  %v2674_v11 = vor.u32 %v2673_v39, %v2670_v24  ;;  %v2677_v50 = vshll.u32 %v5143_v16, 16 }
 0x1ca   :  { %v1546_v63 = vpop.f32.mrf.mxu0  ;;  %v2751_v61 = vunpack.c.l.b16 %v2666_v59  ;;  %v2693_v58 = vrot.slane %v2691_v22, 5  ;;  %v4176_v59 = vld [vmem:[%s5369_s5 + $0x20] sm:$0xff]  ;;  %v5171_v22 = vld [vmem:[#allocation2 + $0x94] sm:$0x1] }
 0x1cb   :  { %v5119_v17 = vadd.f32 %v1546_v63, %v4989_v4  ;;  %3107 = vmatmul.bf16.gmra.mxu1 %v3031_v27  ;;  %v2652_v4 = vsel %vm4523_vm11, %v2647_v7, %v2651_v3  ;;  %v2495_v27 = vld [vmem:[#allocation2 + $0x90] sm:$0xf]  ;;  %v2497_v7 = vld [vmem:[#allocation2 + $0x98] sm:$0xf]  ;;  %v2675_v37 = vrot.slane %v2674_v11, 4  ;;  %v2679_v8 = vrot.slane %v2677_v50, 5  ;;  %3274 = vmatpush.bf16.msra.mxu2 %v4176_v59 }
 0x1cc   :  { %v2750_v33 = vunpack.c.l.b16 %v2652_v4  ;;  %v2694_v2 = vsel %vm4523_vm11, %v2689_v52, %v2693_v58  ;;  %v2696_v12 = vshrl.u32 %v2495_v27, 16  ;;  %v2699_v13 = vshll.u32 %v2495_v27, 16  ;;  %v4175_v59 = vld [vmem:[%s5369_s5 + $0x18] sm:$0xff] }
 0x1cd   :  { %v2713_v4 = vshll.u32 %v2497_v7, 16  ;;  %v2680_v14 = vsel %vm4523_vm11, %v2675_v37, %v2679_v8  ;;  %v2753_v54 = vunpack.c.l.b16 %v2694_v2  ;;  %v2705_v11 = vshll.u32 %v5171_v22, 16 }
 0x1ce   :  { %v2761_v55 = vpack.c.b16 %v2751_v61, %v2750_v33  ;;  %v3971_v61 = vrot.slane %v2892_v5, 9  ;;  %v2698_v29 = vrot.slane %v2696_v12, 4 }
 0x1cf   :  { %v2715_v34 = vrot.slane %v2713_v4, 5  ;;  %3275 = vmatpush.bf16.msra.mxu2 %v4175_v59 }
 0x1d0   :  { %v1949_v30 = vpop.f32.mrf.mxu1  ;;  %v2964_v21 = vsel %vm4495_vm8, %v3971_v61, %v2963_v26 }
 0x1d1   :  { %v5133_v57 = vadd.f32 %v1949_v30, %v5033_v44  ;;  %v3019_v44 = vunpack.c.l.b16 %v2956_v56  ;;  %v2701_v30 = vrot.slane %v2699_v13, 5  ;;  %v2752_v56 = vunpack.c.l.b16 %v2680_v14  ;;  %v2894_v13 = vld [vmem:[#allocation2 + $0x68] sm:$0xe] }
 0x1d2   :  { %v1549_v32 = vpop.f32.mrf.mxu0  ;;  %v3021_v52 = vunpack.c.l.b16 %v2964_v21  ;;  %v3973_v14 = vrot.slane %v2894_v13, 9  ;;  %v2975_v21 = vrot.slane %v5112_v60, 5  ;;  %v2411_v13 = vpop.f32.mrf.mxu3 }
 0x1d3   :  { %v5140_v48 = vadd.f32 %v1549_v32, %v5013_v49  ;;  %v3032_v31 = vpack.c.b16 %v3019_v44, %v3018_v45  ;;  %v2762_v53 = vpack.c.b16 %v2753_v54, %v2752_v56  ;;  %v5173_v45 = vld [vmem:[#allocation2 + $0x9c] sm:$0x1]  ;;  %v2702_v44 = vor.u32 %v2701_v30, %v2698_v29 }
 0x1d5   :  { %2853 = vmatmul.bf16.gmra.mxu0 %v2761_v55  ;;  %v2703_v58 = vrot.slane %v2702_v44, 4 }
 0x1d8   :  { %v1952_v63 = vpop.f32.mrf.mxu1 }
 0x1d9   :  { %v5147_v49 = vadd.f32 %v1952_v63, %v5044_v15  ;;  %v2710_v15 = vshrl.u32 %v2497_v7, 16  ;;  %v2707_v63 = vrot.slane %v2705_v11, 5  ;;  %v2979_v11 = vrot.slane %v5107_v36, 5  ;;  %v4173_v36 = vld [vmem:[%s5369_s5 + $0x8] sm:$0xff] }
 0x1da   :  { %v1551_v3 = vpop.f32.mrf.mxu0 }
 0x1db   :  { %v5150_v35 = vadd.f32 %v1551_v3, %v5029_v46  ;;  %3112 = vmatmul.bf16.gmra.mxu1 %v3032_v31  ;;  %v3970_v46 = vrot.slane %v2891_v9, 9  ;;  %v2712_v33 = vrot.slane %v2710_v15, 4  ;;  %v2893_v9 = vld [vmem:[#allocation2 + $0x60] sm:$0xe]  ;;  %v2708_v5 = vsel %vm4523_vm11, %v2703_v58, %v2707_v63 }
 0x1dc   :  { %v2967_v15 = vrot.slane %v5079_v42, 5  ;;  %v2754_v4 = vunpack.c.l.b16 %v2708_v5 }
 0x1dd   :  { %v2960_v23 = vsel %vm4495_vm8, %v3970_v46, %v2959_v19  ;;  %v2716_v50 = vor.u32 %v2715_v34, %v2712_v33  ;;  %v2971_v46 = vrot.slane %v5074_v25, 5 }
 0x1df   :  { %v2717_v27 = vrot.slane %v2716_v50, 4  ;;  %v2972_v42 = vsel %vm4495_vm8, %v3973_v14, %v2971_v46  ;;  %v2899_v14 = vld [vmem:[#allocation2 + $0x90] sm:$0xe] }
 0x1e0   :  { %v1954_v32 = vpop.f32.mrf.mxu1  ;;  %v3023_v33 = vunpack.c.l.b16 %v2972_v42 }
 0x1e1   :  { %v5162_v39 = vadd.f32 %v1954_v32, %v5056_v51  ;;  %v2719_v51 = vshll.u32 %v5173_v45, 16 }
 0x1e2   :  { %v1554_v24 = vpop.f32.mrf.mxu0 }
 0x1e3   :  { %v5165_v55 = vadd.f32 %v1554_v24, %v5040_v18  ;;  %v3020_v18 = vunpack.c.l.b16 %v2960_v23  ;;  %v2721_v7 = vrot.slane %v2719_v51, 5  ;;  %v2895_v24 = vld [vmem:[#allocation2 + $0x70] sm:$0xe] }
 0x1e4   :  { %v3974_v23 = vrot.slane %v2895_v24, 9 }
 0x1e5   :  { %2858 = vmatmul.bf16.gmra.mxu0 %v2762_v53  ;;  %v3033_v8 = vpack.c.b16 %v3021_v52, %v3020_v18  ;;  %v2722_v12 = vsel %vm4523_vm11, %v2717_v27, %v2721_v7  ;;  %v2896_v53 = vld [vmem:[#allocation2 + $0x78] sm:$0xe]  ;;  %v2898_v27 = vld [vmem:[#allocation2 + $0x88] sm:$0xe] }
 0x1e6   :  { %v3975_v44 = vrot.slane %v2896_v53, 9 }
 0x1e8   :  { %v1957_v3 = vpop.f32.mrf.mxu1  ;;  %v2980_v51 = vsel %vm4495_vm8, %v3975_v44, %v2979_v11 }
 0x1e9   :  { %v5178_v37 = vadd.f32 %v1957_v3, %v5072_v40  ;;  %v3972_v40 = vrot.slane %v2893_v9, 9  ;;  %v3025_v52 = vunpack.c.l.b16 %v2980_v51  ;;  %v2983_v3 = vrot.slane %v5143_v16, 5 }
 0x1ea   :  { %v1556_v31 = vpop.f32.mrf.mxu0 }
 0x1eb   :  { %v5181_v2 = vadd.f32 %v1556_v31, %v5053_v47  ;;  %3117 = vmatmul.bf16.gmra.mxu1 %v3033_v8  ;;  %v2755_v47 = vunpack.c.l.b16 %v2722_v12  ;;  %v2968_v29 = vsel %vm4495_vm8, %v3972_v40, %v2967_v15  ;;  %v3977_v31 = vrot.slane %v2898_v27, 9  ;;  %v2216_v12 = vpop.f32.mrf.mxu2 }
 0x1ec   :  { %v3022_v30 = vunpack.c.l.b16 %v2968_v29  ;;  %v2987_v8 = vrot.slane %v5137_v43, 5  ;;  %v2991_v29 = vrot.slane %v5171_v22, 5  ;;  %v2256_v10 = vadd.f32 %v2216_v12, %v5085_v1 }
 0x1ed   :  { %v2763_v38 = vpack.c.b16 %v2755_v47, %v2754_v4 }
 0x1ee   :  { %v2988_v5 = vsel %vm4495_vm8, %v3977_v31, %v2987_v8 }
 0x1ef   :  { %v3027_v15 = vunpack.c.l.b16 %v2988_v5 }
 0x1f0   :  { %v1959_v54 = vpop.f32.mrf.mxu1 }
 0x1f1   :  { %v5193_v61 = vadd.f32 %v1959_v54, %v5088_v6  ;;  %v3034_v6 = vpack.c.b16 %v3023_v33, %v3022_v30  ;;  %v4172_v54 = vld [vmem:[%s5369_s5] sm:$0xff]  ;;  %v2995_v30 = vrot.slane %v5173_v45, 5 }
 0x1f2   :  { %v1559_v19 = vpop.f32.mrf.mxu0 }
 0x1f3   :  { %v5196_v26 = vadd.f32 %v1559_v19, %v5067_v20  ;;  %v4174_v20 = vld [vmem:[%s5369_s5 + $0x10] sm:$0xff]  ;;  %v2218_v46 = vpop.f32.mrf.mxu2  ;;  %v2413_v19 = vpop.f32.mrf.mxu3 }
 0x1f4   :  { %3276 = vmatpush.bf16.msra.mxu2 %v4174_v20 }
 0x1f5   :  { %2863 = vmatmul.bf16.gmra.mxu0 %v2763_v38  ;;  %v3978_v38 = vrot.slane %v2899_v14, 9 }
 0x1f8   :  { %v1962_v34 = vpop.f32.mrf.mxu1  ;;  %3277 = vmatpush.bf16.msra.mxu2 %v4173_v36 }
 0x1f9   :  { %v5203_v32 = vadd.f32 %v1962_v34, %v5103_v41 }
 0x1fa   :  { %v1561_v25 = vpop.f32.mrf.mxu0 }
 0x1fb   :  { %v5206_v56 = vadd.f32 %v1561_v25, %v5082_v62  ;;  %3122 = vmatmul.bf16.gmra.mxu1 %v3034_v6  ;;  %v2976_v62 = vsel %vm4495_vm8, %v3974_v23, %v2975_v21  ;;  %v2992_v25 = vsel %vm4495_vm8, %v3978_v38, %v2991_v29  ;;  %v2221_v53 = vpop.f32.mrf.mxu2  ;;  %v2416_v23 = vpop.f32.mrf.mxu3 }
 0x1fc   :  { %v3024_v18 = vunpack.c.l.b16 %v2976_v62  ;;  %3278 = vmatpush.bf16.msra.mxu2 %v4172_v54  ;;  %v3028_v20 = vunpack.c.l.b16 %v2992_v25 }
 0x1fe   :  { %v3035_v60 = vpack.c.b16 %v3025_v52, %v3024_v18  ;;  %v2451_v52 = vadd.f32 %v2411_v13, %v2256_v10  ;;  %v2258_v13 = vadd.f32 %v2221_v53, %v5116_v28 }
 0x200   :  { %v1964_v41 = vpop.f32.mrf.mxu1 }
 0x201   :  { %v5214_v50 = vadd.f32 %v1964_v41, %v5119_v17  ;;  %v2897_v17 = vld [vmem:[#allocation2 + $0x80] sm:$0xe] }
 0x202   :  { %v3976_v7 = vrot.slane %v2897_v17, 9  ;;  %v2829_v4 = vpop.f32.mrf.mxu0 }
 0x203   :  { %v2418_v62 = vpop.f32.mrf.mxu3  ;;  %v2869_v36 = vadd.f32 %v2829_v4, %v2451_v52 }
 0x208   :  { %v1967_v58 = vpop.f32.mrf.mxu1 }
 0x209   :  { %v5221_v63 = vadd.f32 %v1967_v58, %v5140_v48  ;;  %v2984_v48 = vsel %vm4495_vm8, %v3976_v7, %v2983_v3  ;;  %v2257_v58 = vadd.f32 %v2218_v46, %v5100_v0  ;;  %v5261_v7 = vld [vmem:[%s5370_s4] ss:$0 sm:$0xff] }
 0x20a   :  { %v3026_v40 = vunpack.c.l.b16 %v2984_v48  ;;  %v2831_v33 = vpop.f32.mrf.mxu0 }
 0x20b   :  { %3127 = vmatmul.bf16.gmra.mxu1 %v3035_v60  ;;  %v2452_v17 = vadd.f32 %v2413_v19, %v2257_v58 }
 0x20c   :  { %v3036_v43 = vpack.c.b16 %v3027_v15, %v3026_v40 }
 0x20d   :  { %v2870_v3 = vadd.f32 %v2831_v33, %v2452_v17 }
 0x210   :  { %v1969_v9 = vpop.f32.mrf.mxu1 }
 0x211   :  { %v5229_v59 = vadd.f32 %v1969_v9, %v5150_v35  ;;  %v2900_v35 = vld [vmem:[#allocation2 + $0x98] sm:$0xe] }
 0x212   :  { %v3979_v42 = vrot.slane %v2900_v35, 9  ;;  %v2834_v44 = vpop.f32.mrf.mxu0 }
 0x214   :  { %v2996_v6 = vsel %vm4495_vm8, %v3979_v42, %v2995_v30 }
 0x215   :  { %v3029_v24 = vunpack.c.l.b16 %v2996_v6 }
 0x217   :  { %v3037_v45 = vpack.c.b16 %v3029_v24, %v3028_v20 }
 0x218   :  { %v1972_v47 = vpop.f32.mrf.mxu1 }
 0x219   :  { %v5236_v16 = vadd.f32 %v1972_v47, %v5165_v55  ;;  %v2453_v47 = vadd.f32 %v2416_v23, %v2258_v13 }
 0x21a   :  { %v2836_v51 = vpop.f32.mrf.mxu0 }
 0x21b   :  { %3132 = vmatmul.bf16.gmra.mxu1 %v3036_v43  ;;  %v2871_v14 = vadd.f32 %v2834_v44, %v2453_v47 }
 0x220   :  { %v1974_v55 = vpop.f32.mrf.mxu1 }
 0x221   :  { %v5244_v34 = vadd.f32 %v1974_v55, %v5181_v2  ;;  %v2223_v2 = vpop.f32.mrf.mxu2 }
 0x222   :  { %v2259_v43 = vadd.f32 %v2223_v2, %v5133_v57 }
 0x224   :  { %v2454_v35 = vadd.f32 %v2418_v62, %v2259_v43 }
 0x226   :  { %v2872_v19 = vadd.f32 %v2836_v51, %v2454_v35 }
 0x228   :  { %v1977_v22 = vpop.f32.mrf.mxu1 }
 0x229   :  { %v5251_v21 = vadd.f32 %v1977_v22, %v5196_v26  ;;  %v2226_v60 = vpop.f32.mrf.mxu2  ;;  %v2421_v26 = vpop.f32.mrf.mxu3 }
 0x22a   :  { %v2260_v6 = vadd.f32 %v2226_v60, %v5147_v49 }
 0x22b   :  { %3137 = vmatmul.bf16.gmra.mxu1 %v3037_v45 }
 0x22c   :  { %v2455_v57 = vadd.f32 %v2421_v26, %v2260_v6 }
 0x230   :  { %v1979_v11 = vpop.f32.mrf.mxu1 }
 0x231   :  { %v5254_v41 = vadd.f32 %v1979_v11, %v5206_v56  ;;  %v2839_v56 = vpop.f32.mrf.mxu0  ;;  %v2228_v48 = vpop.f32.mrf.mxu2 }
 0x232   :  { %v2423_v12 = vpop.f32.mrf.mxu3  ;;  %v2261_v22 = vadd.f32 %v2228_v48, %v5162_v39  ;;  %v2873_v45 = vadd.f32 %v2839_v56, %v2455_v57 }
 0x234   :  { %v2456_v11 = vadd.f32 %v2423_v12, %v2261_v22 }
 0x238   :  { %v3103_v18 = vpop.f32.mrf.mxu1 }
 0x239   :  { %v3143_v27 = vadd.f32 %v3103_v18, %v2869_v36  ;;  %v2841_v15 = vpop.f32.mrf.mxu0  ;;  %v2231_v54 = vpop.f32.mrf.mxu2 }
 0x23a   :  { %v2426_v38 = vpop.f32.mrf.mxu3  ;;  %v2874_v62 = vadd.f32 %v2841_v15, %v2456_v11  ;;  %v2262_v17 = vadd.f32 %v2231_v54, %v5178_v37 }
 0x23b   :  { %v3163_v8 = vadd.f32 %v5261_v7, %v3143_v27 }
 0x23c   :  { %v2457_v56 = vadd.f32 %v2426_v38, %v2262_v17 }
 0x23d   :  { %v3179_v0 = vmax.f32 %v3163_v8, 0.0 }
 0x240   :  { %v3105_v31 = vpop.f32.mrf.mxu1 }
 0x241   :  { %v3144_v1 = vadd.f32 %v3105_v31, %v2870_v3  ;;  %v2844_v33 = vpop.f32.mrf.mxu0  ;;  %v2233_v53 = vpop.f32.mrf.mxu2 }
 0x242   :  { %v2428_v23 = vpop.f32.mrf.mxu3  ;;  %v2263_v3 = vadd.f32 %v2233_v53, %v5193_v61  ;;  %v2875_v31 = vadd.f32 %v2844_v33, %v2457_v56 }
 0x243   :  { %v3164_v9 = vadd.f32 %v5261_v7, %v3144_v1 }
 0x244   :  { %v2458_v8 = vadd.f32 %v2428_v23, %v2263_v3 }
 0x245   :  { %v3180_v5 = vmax.f32 %v3164_v9, 0.0 }
 0x247   :  { %v3195_v40 = vpack.c.bf16 %v3180_v5, %v3179_v0 }
 0x248   :  { %v3108_v4 = vpop.f32.mrf.mxu1 }
 0x249   :  { %3279 = vmatmul.bf16.vlgmr.msra.gmra.mxu2 %v3195_v40  ;;  %v3145_v46 = vadd.f32 %v3108_v4, %v2871_v14  ;;  %v2846_v44 = vpop.f32.mrf.mxu0  ;;  %v2236_v52 = vpop.f32.mrf.mxu2 }
 0x24a   :  { %v2431_v58 = vpop.f32.mrf.mxu3  ;;  %v2876_v0 = vadd.f32 %v2846_v44, %v2458_v8  ;;  %v2264_v47 = vadd.f32 %v2236_v52, %v5203_v32 }
 0x24b   :  { %v3165_v42 = vadd.f32 %v5261_v7, %v3145_v46 }
 0x24c   :  { %v2459_v46 = vadd.f32 %v2431_v58, %v2264_v47 }
 0x24d   :  { %v3181_v55 = vmax.f32 %v3165_v42, 0.0 }
 0x250   :  { %v3110_v29 = vpop.f32.mrf.mxu1 }
 0x251   :  { %v3146_v30 = vadd.f32 %v3110_v29, %v2872_v19  ;;  %v2849_v26 = vpop.f32.mrf.mxu0  ;;  %v2238_v1 = vpop.f32.mrf.mxu2 }
 0x252   :  { %v2433_v48 = vpop.f32.mrf.mxu3  ;;  %v2265_v19 = vadd.f32 %v2238_v1, %v5214_v50  ;;  %v2877_v38 = vadd.f32 %v2849_v26, %v2459_v46 }
 0x253   :  { %v3166_v28 = vadd.f32 %v5261_v7, %v3146_v30 }
 0x254   :  { %v2460_v29 = vadd.f32 %v2433_v48, %v2265_v19 }
 0x255   :  { %v3182_v25 = vmax.f32 %v3166_v28, 0.0 }
 0x257   :  { %v3196_v20 = vpack.c.bf16 %v3182_v25, %v3181_v55 }
 0x258   :  { %v3113_v24 = vpop.f32.mrf.mxu1 }
 0x259   :  { %3284 = vmatmul.bf16.gmra.mxu2 %v3196_v20  ;;  %v3147_v2 = vadd.f32 %v3113_v24, %v2873_v45  ;;  %v2851_v5 = vpop.f32.mrf.mxu0  ;;  %v2241_v43 = vpop.f32.mrf.mxu2 }
 0x25a   :  { %v2436_v61 = vpop.f32.mrf.mxu3  ;;  %v2878_v30 = vadd.f32 %v2851_v5, %v2460_v29  ;;  %v2266_v53 = vadd.f32 %v2241_v43, %v5221_v63 }
 0x25b   :  { %v3167_v10 = vadd.f32 %v5261_v7, %v3147_v2 }
 0x25c   :  { %v2461_v50 = vadd.f32 %v2436_v61, %v2266_v53 }
 0x25d   :  { %v3183_v60 = vmax.f32 %v3167_v10, 0.0 }
 0x260   :  { %v3115_v51 = vpop.f32.mrf.mxu1 }
 0x261   :  { %v3148_v18 = vadd.f32 %v3115_v51, %v2874_v62  ;;  %v2854_v54 = vpop.f32.mrf.mxu0  ;;  %v2243_v28 = vpop.f32.mrf.mxu2 }
 0x262   :  { %v2438_v6 = vpop.f32.mrf.mxu3  ;;  %v2267_v44 = vadd.f32 %v2243_v28, %v5229_v59  ;;  %v2879_v11 = vadd.f32 %v2854_v54, %v2461_v50 }
 0x263   :  { %v3168_v49 = vadd.f32 %v5261_v7, %v3148_v18 }
 0x264   :  { %v2462_v62 = vadd.f32 %v2438_v6, %v2267_v44 }
 0x265   :  { %v3184_v36 = vmax.f32 %v3168_v49, 0.0 }
 0x267   :  { %v3197_v27 = vpack.c.bf16 %v3184_v36, %v3183_v60 }
 0x268   :  { %v3118_v39 = vpop.f32.mrf.mxu1 }
 0x269   :  { %3289 = vmatmul.bf16.gmra.mxu2 %v3197_v27  ;;  %v3149_v9 = vadd.f32 %v3118_v39, %v2875_v31  ;;  %v2856_v20 = vpop.f32.mrf.mxu0  ;;  %v2246_v45 = vpop.f32.mrf.mxu2 }
 0x26a   :  { %v2441_v2 = vpop.f32.mrf.mxu3  ;;  %v2880_v18 = vadd.f32 %v2856_v20, %v2462_v62  ;;  %v2268_v27 = vadd.f32 %v2246_v45, %v5236_v16  ;;  %v27_v20 = vld [vmem:[%s5367_s0] sm:$0xf] }
 0x26b   :  { %v3169_v13 = vadd.f32 %v5261_v7, %v3149_v9 }
 0x26c   :  { %v2463_v3 = vadd.f32 %v2441_v2, %v2268_v27 }
 0x26d   :  { %v3185_v37 = vmax.f32 %v3169_v13, 0.0 }
 0x270   :  { %v3120_v12 = vpop.f32.mrf.mxu1 }
 0x271   :  { %v3150_v40 = vadd.f32 %v3120_v12, %v2876_v0  ;;  %v2859_v10 = vpop.f32.mrf.mxu0  ;;  %v2248_v63 = vpop.f32.mrf.mxu2 }
 0x272   :  { %v2443_v17 = vpop.f32.mrf.mxu3  ;;  %v2269_v31 = vadd.f32 %v2248_v63, %v5244_v34  ;;  %v2881_v8 = vadd.f32 %v2859_v10, %v2463_v3 }
 0x273   :  { %v3170_v15 = vadd.f32 %v5261_v7, %v3150_v40 }
 0x274   :  { %v2464_v1 = vadd.f32 %v2443_v17, %v2269_v31 }
 0x275   :  { %v3186_v4 = vmax.f32 %v3170_v15, 0.0 }
 0x277   :  { %v3198_v14 = vpack.c.bf16 %v3186_v4, %v3185_v37 }
 0x278   :  { %v3123_v35 = vpop.f32.mrf.mxu1 }
 0x279   :  { %3294 = vmatmul.bf16.gmra.mxu2 %v3198_v14  ;;  %v3151_v42 = vadd.f32 %v3123_v35, %v2877_v38  ;;  %v2861_v59 = vpop.f32.mrf.mxu0  ;;  %v2251_v48 = vpop.f32.mrf.mxu2 }
 0x27a   :  { %v2882_v0 = vadd.f32 %v2861_v59, %v2464_v1  ;;  %v2446_v5 = vpop.f32.mrf.mxu3  ;;  %v2270_v47 = vadd.f32 %v2251_v48, %v5251_v21 }
 0x27b   :  { %v3171_v55 = vadd.f32 %v5261_v7, %v3151_v42 }
 0x27c   :  { %v2465_v34 = vadd.f32 %v2446_v5, %v2270_v47 }
 0x27d   :  { %v3187_v24 = vmax.f32 %v3171_v55, 0.0 }
 0x280   :  { %v3125_v33 = vpop.f32.mrf.mxu1 }
 0x281   :  { %v3152_v25 = vadd.f32 %v3125_v33, %v2878_v30  ;;  %v2864_v15 = vpop.f32.mrf.mxu0  ;;  %v2253_v61 = vpop.f32.mrf.mxu2 }
 0x282   :  { %v2448_v35 = vpop.f32.mrf.mxu3  ;;  %v2271_v46 = vadd.f32 %v2253_v61, %v5254_v41  ;;  %v2883_v54 = vadd.f32 %v2864_v15, %v2465_v34  ;;  %v5296_v41 = vld [vmem:[%s5371_s6] ss:$0 sm:$0xff] }
 0x283   :  { %v3172_v32 = vadd.f32 %v5261_v7, %v3152_v25 }
 0x284   :  { %v2466_v38 = vadd.f32 %v2448_v35, %v2271_v46  ;;  %v36_v46 = vld [vmem:[%s5367_s0 + $0x24] sm:$0xff]  }
 0x285   :  { %v3188_v57 = vmax.f32 %v3172_v32, 0.0 }
 0x287   :  { %v3199_v23 = vpack.c.bf16 %v3188_v57, %v3187_v24  ;;  %v28_v24 = vld [vmem:[%s5367_s0 + $0x4] sm:$0xff]   ;;  %v3320_v57 = vunpack.c.l.bf16 %v27_v20  ;;  %v3330_v20 = vunpack.c.h.bf16 %v36_v46 }
 0x288   :  { %v3128_v22 = vpop.f32.mrf.mxu1  ;;  %v3321_v53 = vunpack.c.l.bf16 %v28_v24 }
 0x289   :  { %3299 = vmatmul.bf16.gmra.mxu2 %v3199_v23  ;;  %v3153_v51 = vadd.f32 %v3128_v22, %v2879_v11  ;;  %v2866_v19 = vpop.f32.mrf.mxu0 }
 0x28a   :  { %v2884_v42 = vadd.f32 %v2866_v19, %v2466_v38  ;;  %v3329_v38 = vunpack.c.l.bf16 %v36_v46 }
 0x28b   :  { %v3173_v49 = vadd.f32 %v5261_v7, %v3153_v51  ;;  %v30_v51 = vld [vmem:[%s5367_s0 + $0xc] sm:$0xff]  }
 0x28d   :  { %v3189_v36 = vmax.f32 %v3173_v49, 0.0 }
 0x290   :  { %v3130_v52 = vpop.f32.mrf.mxu1 }
 0x291   :  { %v3154_v58 = vadd.f32 %v3130_v52, %v2880_v18  ;;  %v3322_v18 = vunpack.c.h.bf16 %v28_v24  ;;  %v3323_v52 = vunpack.c.l.bf16 %v30_v51 }
 0x293   :  { %v3174_v60 = vadd.f32 %v5261_v7, %v3154_v58 }
 0x295   :  { %v3190_v26 = vmax.f32 %v3174_v60, 0.0 }
 0x297   :  { %v3200_v39 = vpack.c.bf16 %v3190_v26, %v3189_v36 }
 0x298   :  { %v3133_v56 = vpop.f32.mrf.mxu1 }
 0x299   :  { %3304 = vmatmul.bf16.gmra.mxu2 %v3200_v39  ;;  %v3155_v9 = vadd.f32 %v3133_v56, %v2881_v8  ;;  %v32_v39 = vld [vmem:[%s5367_s0 + $0x14] sm:$0xff]   ;;  %v3324_v56 = vunpack.c.h.bf16 %v30_v51 }
 0x29a   :  { %v3325_v3 = vunpack.c.l.bf16 %v32_v39  ;;  %v3326_v15 = vunpack.c.h.bf16 %v32_v39 }
 0x29b   :  { %v3175_v13 = vadd.f32 %v5261_v7, %v3155_v9 }
 0x29d   :  { %v3191_v37 = vmax.f32 %v3175_v13, 0.0  ;;  %v34_v13 = vld [vmem:[%s5367_s0 + $0x1c] sm:$0xff]  }
 0x29e   :  { %v3328_v19 = vunpack.c.h.bf16 %v34_v13 }
 0x2a0   :  { %v3135_v12 = vpop.f32.mrf.mxu1 }
 0x2a1   :  { %v3156_v40 = vadd.f32 %v3135_v12, %v2882_v0 }
 0x2a3   :  { %v3176_v16 = vadd.f32 %v5261_v7, %v3156_v40 }
 0x2a5   :  { %v3192_v4 = vmax.f32 %v3176_v16, 0.0  ;;  %v3327_v16 = vunpack.c.l.bf16 %v34_v13 }
 0x2a7   :  { %v3201_v43 = vpack.c.bf16 %v3192_v4, %v3191_v37 }
 0x2a8   :  { %v3138_v14 = vpop.f32.mrf.mxu1 }
 0x2a9   :  { %3309 = vmatmul.bf16.gmra.mxu2 %v3201_v43  ;;  %v3157_v29 = vadd.f32 %v3138_v14, %v2883_v54 }
 0x2ab   :  { %v3177_v33 = vadd.f32 %v5261_v7, %v3157_v29 }
 0x2ad   :  { %v3193_v21 = vmax.f32 %v3177_v33, 0.0 }
 0x2b0   :  { %v3140_v30 = vpop.f32.mrf.mxu1 }
 0x2b1   :  { %v3158_v28 = vadd.f32 %v3140_v30, %v2884_v42 }
 0x2b3   :  { %v3178_v55 = vadd.f32 %v5261_v7, %v3158_v28 }
 0x2b5   :  { %v3194_v25 = vmax.f32 %v3178_v55, 0.0 }
 0x2b7   :  { %v3202_v6 = vpack.c.bf16 %v3194_v25, %v3193_v21 }
 0x2b9   :  { %3314 = vmatmul.bf16.gmra.mxu2 %v3202_v6  ;;  %v38_v6 = vld [vmem:[%s5367_s0 + $0x2c] sm:$0xff]  }
 0x2ba   :  { %v3331_v24 = vunpack.c.l.bf16 %v38_v6 }
 0x2cc   :  { %v3280_v32 = vpop.f32.mrf.mxu2 }
 0x2cd   :  { %v3281_v7 = vadd.f32 %v5296_v41, %v3280_v32 }
 0x2cf   :  { %v3336_v22 = vadd.f32 %v3320_v57, %v3281_v7 }
 0x2d1   :  { %v3352_v44 = vmax.f32 %v3336_v22, 0.0 }
 0x2d4   :  { %v3282_v23 = vpop.f32.mrf.mxu2 }
 0x2d5   :  { %v3283_v50 = vadd.f32 %v5296_v41, %v3282_v23 }
 0x2d7   :  { %v3337_v45 = vadd.f32 %v3321_v53, %v3283_v50 }
 0x2d9   :  { %v3353_v11 = vmax.f32 %v3337_v45, 0.0 }
 0x2db   :  { %v4183_v2 = vpack.c.bf16 %v3353_v11, %v3352_v44  ;;  %v40_v11 = vld [vmem:[%s5367_s0 + $0x34] sm:$0xff]  }
 0x2dc   :  { %v3285_v62 = vpop.f32.mrf.mxu2  ;;  %v3333_v51 = vunpack.c.l.bf16 %v40_v11 }
 0x2dd   :  { %4184 = vst [vmem:[%s5372_s7] sm:$0xff] %v4183_v2   ;;  %v3286_v10 = vadd.f32 %v5296_v41, %v3285_v62  ;;  %v3332_v62 = vunpack.c.h.bf16 %v38_v6 }
 0x2df   :  { %v3338_v58 = vadd.f32 %v3322_v18, %v3286_v10 }
 0x2e1   :  { %v3354_v36 = vmax.f32 %v3338_v58, 0.0 }
 0x2e4   :  { %v3287_v49 = vpop.f32.mrf.mxu2 }
 0x2e5   :  { %v3288_v60 = vadd.f32 %v5296_v41, %v3287_v49 }
 0x2e7   :  { %v3339_v63 = vadd.f32 %v3323_v52, %v3288_v60 }
 0x2e9   :  { %v3355_v26 = vmax.f32 %v3339_v63, 0.0 }
 0x2eb   :  { %v4188_v17 = vpack.c.bf16 %v3355_v26, %v3354_v36  ;;  %v42_v26 = vld [vmem:[%s5367_s0 + $0x3c] sm:$0xf] }
 0x2ec   :  { %v3290_v27 = vpop.f32.mrf.mxu2  ;;  %v3335_v39 = vunpack.c.l.bf16 %v42_v26 }
 0x2ed   :  { %4220 = vst [vmem:[%s5372_s7 + $0x8] sm:$0xff] %v4188_v17   ;;  %v3291_v59 = vadd.f32 %v5296_v41, %v3290_v27  ;;  %v3334_v27 = vunpack.c.h.bf16 %v40_v11 }
 0x2ef   :  { %v3340_v8 = vadd.f32 %v3324_v56, %v3291_v59 }
 0x2f1   :  { %v3356_v48 = vmax.f32 %v3340_v8, 0.0 }
 0x2f4   :  { %v3292_v31 = vpop.f32.mrf.mxu2 }
 0x2f5   :  { %v3293_v1 = vadd.f32 %v5296_v41, %v3292_v31 }
 0x2f7   :  { %v3341_v9 = vadd.f32 %v3325_v3, %v3293_v1 }
 0x2f9   :  { %v3357_v0 = vmax.f32 %v3341_v9, 0.0 }
 0x2fb   :  { %v4193_v5 = vpack.c.bf16 %v3357_v0, %v3356_v48 }
 0x2fc   :  { %v3295_v12 = vpop.f32.mrf.mxu2 }
 0x2fd   :  { %4221 = vst [vmem:[%s5372_s7 + $0x10] sm:$0xff] %v4193_v5   ;;  %v3296_v40 = vadd.f32 %v5296_v41, %v3295_v12 }
 0x2ff   :  { %v3342_v4 = vadd.f32 %v3326_v15, %v3296_v40 }
 0x301   :  { %v3358_v14 = vmax.f32 %v3342_v4, 0.0 }
 0x304   :  { %v3297_v37 = vpop.f32.mrf.mxu2 }
 0x305   :  { %v3298_v47 = vadd.f32 %v5296_v41, %v3297_v37 }
 0x307   :  { %v3343_v43 = vadd.f32 %v3327_v16, %v3298_v47 }
 0x309   :  { %v3359_v34 = vmax.f32 %v3343_v43, 0.0 }
 0x30b   :  { %v4198_v61 = vpack.c.bf16 %v3359_v34, %v3358_v14 }
 0x30c   :  { %v3300_v35 = vpop.f32.mrf.mxu2 }
 0x30d   :  { %4222 = vst [vmem:[%s5372_s7 + $0x18] sm:$0xff] %v4198_v61   ;;  %v3301_v54 = vadd.f32 %v5296_v41, %v3300_v35 }
 0x30f   :  { %v3344_v42 = vadd.f32 %v3328_v19, %v3301_v54 }
 0x311   :  { %v3360_v28 = vmax.f32 %v3344_v42, 0.0 }
 0x314   :  { %v3302_v29 = vpop.f32.mrf.mxu2 }
 0x315   :  { %v3303_v30 = vadd.f32 %v5296_v41, %v3302_v29 }
 0x317   :  { %v3345_v33 = vadd.f32 %v3329_v38, %v3303_v30 }
 0x319   :  { %v3361_v55 = vmax.f32 %v3345_v33, 0.0 }
 0x31b   :  { %v4203_v21 = vpack.c.bf16 %v3361_v55, %v3360_v28 }
 0x31c   :  { %v3305_v25 = vpop.f32.mrf.mxu2 }
 0x31d   :  { %4223 = vst [vmem:[%s5372_s7 + $0x20] sm:$0xff] %v4203_v21   ;;  %v3306_v32 = vadd.f32 %v5296_v41, %v3305_v25 }
 0x31f   :  { %v3346_v57 = vadd.f32 %v3330_v20, %v3306_v32 }
 0x321   :  { %v3362_v22 = vmax.f32 %v3346_v57, 0.0 }
 0x324   :  { %v3307_v7 = vpop.f32.mrf.mxu2 }
 0x325   :  { %v3308_v53 = vadd.f32 %v5296_v41, %v3307_v7 }
 0x327   :  { %v3347_v23 = vadd.f32 %v3331_v24, %v3308_v53 }
 0x329   :  { %v3363_v50 = vmax.f32 %v3347_v23, 0.0 }
 0x32b   :  { %v4208_v45 = vpack.c.bf16 %v3363_v50, %v3362_v22 }
 0x32c   :  { %v3310_v44 = vpop.f32.mrf.mxu2 }
 0x32d   :  { %4224 = vst [vmem:[%s5372_s7 + $0x28] sm:$0xff] %v4208_v45   ;;  %v3311_v2 = vadd.f32 %v5296_v41, %v3310_v44 }
 0x32f   :  { %v3348_v18 = vadd.f32 %v3332_v62, %v3311_v2 }
 0x331   :  { %v3364_v58 = vmax.f32 %v3348_v18, 0.0 }
 0x334   :  { %v3312_v10 = vpop.f32.mrf.mxu2 }
 0x335   :  { %v3313_v52 = vadd.f32 %v5296_v41, %v3312_v10 }
 0x337   :  { %v3349_v49 = vadd.f32 %v3333_v51, %v3313_v52 }
 0x339   :  { %v3365_v60 = vmax.f32 %v3349_v49, 0.0 }
 0x33b   :  { %v4213_v63 = vpack.c.bf16 %v3365_v60, %v3364_v58 }
 0x33c   :  { %v3315_v36 = vpop.f32.mrf.mxu2 }
 0x33d   :  { %4225 = vst [vmem:[%s5372_s7 + $0x30] sm:$0xff] %v4213_v63   ;;  %v3316_v17 = vadd.f32 %v5296_v41, %v3315_v36 }
 0x33f   :  { %v3350_v56 = vadd.f32 %v3334_v27, %v3316_v17 }
 0x341   :  { %v3366_v8 = vmax.f32 %v3350_v56, 0.0 }
 0x344   :  { %v3317_v59 = vpop.f32.mrf.mxu2 }
 0x345   :  { %v3318_v3 = vadd.f32 %v5296_v41, %v3317_v59 }
 0x347   :  { %v3351_v31 = vadd.f32 %v3335_v39, %v3318_v3 }
 0x349   :  { %v3367_v1 = vmax.f32 %v3351_v31, 0.0 }
 0x34b   :  { %v4218_v9 = vpack.c.bf16 %v3367_v1, %v3366_v8 }
 0x34d   :  { %4226 = vst [vmem:[%s5372_s7 + $0x38] sm:$0xff] %v4218_v9  }

</bundles_post_ra>
